<compile_context>
chip_gen: v7x
topology: tpu7x:2x2x1
jax: 0.10.0
libtpu: 0.0.40
codegen_flags: <defaults>
</compile_context>

<pallas_src>
import functools
import numpy as np
import jax
import jax.numpy as jnp
from jax.experimental import pallas as pl
from jax.experimental.pallas import tpu as pltpu

_BN_EPS = 1e-5


# --------------------------------------------------------------------------
# helpers
# --------------------------------------------------------------------------

def _interp_matrix(n_in, n_out):
    """Dense (n_out, n_in) operator for torch Upsample(bilinear, align_corners=True)."""
    u = np.zeros((n_out, n_in), np.float32)
    for o in range(n_out):
        src = o * (n_in - 1) / (n_out - 1) if n_out > 1 else 0.0
        i0 = min(int(np.floor(src)), n_in - 1)
        i1 = min(i0 + 1, n_in - 1)
        f = float(src - i0)
        u[o, i0] += 1.0 - f
        u[o, i1] += f
    return u


def _zero_border(xp_ref, h, w):
    """Zero ONLY the 1-pixel border of a (h+2, w+2, C) padded scratch.

    The interior is fully overwritten every grid step, so full-scratch zeroing
    is wasted vst traffic.  (Not hoisted under program_id==0: with 'parallel'
    semantics each TensorCore owns its own scratch.)
    """
    c = xp_ref.shape[-1]
    dt = xp_ref.dtype
    zrow = jnp.zeros((1, w + 2, c), dt)
    xp_ref[pl.ds(0, 1), :, :] = zrow
    xp_ref[pl.ds(h + 1, 1), :, :] = zrow
    zcol = jnp.zeros((h + 2, 1, c), dt)
    xp_ref[:, pl.ds(0, 1), :] = zcol
    xp_ref[:, pl.ds(w + 1, 1), :] = zcol


def _conv3x3_relu(xp_ref, h, w, w_ref, b_ref):
    """3x3 conv (zero-padded bf16 input in xp_ref) + bias + ReLU.

    Nine accumulated MXU matmuls (bf16 operands, f32 accumulation) instead of
    im2col: no (HW, 9*Cin) col buffer and no lane-offset concatenate.
    BN scale is already folded into w_ref.  Returns (h*w, Cout) f32, rows in
    (y, x) row-major order.
    """
    cin = xp_ref.shape[-1]
    cout = w_ref.shape[-1]
    acc = jnp.zeros((h * w, cout), jnp.float32)
    for dy in range(3):
        for dx in range(3):
            patch = xp_ref[pl.ds(dy, h), pl.ds(dx, w), :]          # (h, w, cin) bf16
            acc = acc + jnp.dot(patch.reshape(h * w, cin),
                                w_ref[dy * 3 + dx],
                                preferred_element_type=jnp.float32)
    return jnp.maximum(acc + b_ref[...], 0.0)                      # f32 epilogue


# --------------------------------------------------------------------------
# fused forward kernel (one batch element per grid step)
# --------------------------------------------------------------------------

def _fused_kernel(H, W,
                  x_ref, w1_ref, b1_ref, w2_ref, b2_ref, w3_ref, b3_ref,
                  kup_ref, wout_ref, bout_ref,
                  o_ref,
                  xp1_ref, xp2_ref, xp3_ref):
    Hh, Wh = H // 2, W // 2
    C1 = w1_ref.shape[-1]      # 64
    C2 = w2_ref.shape[-1]      # 128
    C3 = w3_ref.shape[-1]      # 64

    _zero_border(xp1_ref, H, W)
    _zero_border(xp2_ref, Hh, Wh)
    _zero_border(xp3_ref, H, W)

    # ---- stage 1: conv1 (3x3, pad=1) + folded-BN + ReLU --------------------
    xp1_ref[pl.ds(1, H), pl.ds(1, W), :] = x_ref[0]                # bf16, channels pre-padded
    y1 = _conv3x3_relu(xp1_ref, H, W, w1_ref, b1_ref)              # (H*W, C1) f32

    # ---- stage 2: 2x2 max-pool, stride 2 (rows of y1 are (y,x) row-major) --
    m1 = y1.reshape(H * Wh, 2, C1)
    m1 = jnp.maximum(m1[:, 0, :], m1[:, 1, :])                     # pool along W -> (H*Wh, C1)
    m2 = m1.reshape(Hh, 2 * Wh, C1)
    pooled = jnp.maximum(m2[:, :Wh, :], m2[:, Wh:, :])             # pool along H -> (Hh, Wh, C1)
    xp2_ref[pl.ds(1, Hh), pl.ds(1, Wh), :] = pooled.astype(xp2_ref.dtype)

    # ---- stage 3: conv2 (3x3, pad=1) + folded-BN + ReLU --------------------
    y2 = _conv3x3_relu(xp2_ref, Hh, Wh, w2_ref, b2_ref)            # (Hh*Wh, C2) f32

    # ---- stage 4: bilinear x2 upsample (align_corners=True) ----------------
    # One MXU matmul against the precomputed kron(Uh, Uw) operator.
    up = jnp.dot(kup_ref[...], y2.astype(jnp.bfloat16),
                 preferred_element_type=jnp.float32)               # (H*W, C2) f32
    xp3_ref[pl.ds(1, H), pl.ds(1, W), :] = up.astype(xp3_ref.dtype).reshape(H, W, C2)

    # ---- stage 5: conv3 (3x3, pad=1) + folded-BN + ReLU --------------------
    y3 = _conv3x3_relu(xp3_ref, H, W, w3_ref, b3_ref)              # (H*W, C3) f32

    # ---- stage 6: skip add + 1x1 conv (C3 -> 1), lane-dense output ---------
    hw = H * W
    rows, lanes = o_ref.shape[-2], o_ref.shape[-1]
    prod = (y1 + y3) * wout_ref[...]                               # (H*W, C3) f32, natural layout
    if rows * lanes != hw:                                         # static pad to a multiple of 128
        prod = jnp.concatenate(
            [prod, jnp.zeros((rows * lanes - hw, C3), jnp.float32)], axis=0)
    out2d = jnp.sum(prod.reshape(rows, lanes, C3), axis=-1)        # (rows, 128)
    o_ref[0] = out2d + bout_ref[...]


# --------------------------------------------------------------------------
# wrapper
# --------------------------------------------------------------------------

def multiscale_cnn_forward(x_nchw, p):
    N, Cin, H, W = x_nchw.shape
    assert H % 2 == 0 and W % 2 == 0, "even H,W (the PyTorch F.pad branch is a no-op)"
    Hh, Wh = H // 2, W // 2
    HW = H * W
    M128 = int(pl.cdiv(HW, 128))
    cin_pad = p["w1"].shape[1]                                     # 8

    # Pre-pack the input once: NCHW -> NHWC, pad channels to cin_pad, bf16.
    x = jnp.transpose(x_nchw, (0, 2, 3, 1))
    x = jnp.pad(x, ((0, 0), (0, 0), (0, 0), (0, cin_pad - Cin))).astype(jnp.bfloat16)

    # Bilinear x2 (align_corners=True) as one (H*W, Hh*Wh) bf16 operator.
    kup = jnp.asarray(np.kron(_interp_matrix(Hh, H), _interp_matrix(Wh, W)),
                      jnp.bfloat16)

    kernel = functools.partial(_fused_kernel, H, W)

    def full_spec(a):
        nd = a.ndim
        return pl.BlockSpec(a.shape, lambda n, _nd=nd: (0,) * _nd)

    out = pl.pallas_call(
        kernel,
        out_shape=jax.ShapeDtypeStruct((N, M128, 128), jnp.float32),
        grid=(N,),
        in_specs=[
            pl.BlockSpec((1, H, W, cin_pad), lambda n: (n, 0, 0, 0)),
            full_spec(p["w1"]), full_spec(p["b1"]),
            full_spec(p["w2"]), full_spec(p["b2"]),
            full_spec(p["w3"]), full_spec(p["b3"]),
            full_spec(kup),
            full_spec(p["w_out"]), full_spec(p["b_out"]),
        ],
        out_specs=pl.BlockSpec((1, M128, 128), lambda n: (n, 0, 0)),
        scratch_shapes=[
            pltpu.VMEM((H + 2, W + 2, cin_pad), jnp.bfloat16),             # conv1 padded input
            pltpu.VMEM((Hh + 2, Wh + 2, p["w1"].shape[-1]), jnp.bfloat16),  # conv2 padded input
            pltpu.VMEM((H + 2, W + 2, p["w2"].shape[-1]), jnp.bfloat16),    # conv3 padded input
        ],
        compiler_params=pltpu.CompilerParams(
            dimension_semantics=("parallel",)),
    )(x, p["w1"], p["b1"], p["w2"], p["b2"], p["w3"], p["b3"],
      kup, p["w_out"], p["b_out"])

    return out.reshape(N, M128 * 128)[:, :HW].reshape(N, H, W)


# --------------------------------------------------------------------------
# parameters (conv weights (9, Cin, Cout), BN folded into weights + bias)
# --------------------------------------------------------------------------

def init_params(key):
    ks = jax.random.split(key, 11)

    def conv_w(k, cin, cout):
        std = (2.0 / (9 * cin)) ** 0.5
        return std * jax.random.normal(k, (3, 3, cin, cout), jnp.float32)

    def bn_stats(k, c):
        k1, k2, k3, k4 = jax.random.split(k, 4)
        gamma = 1.0 + 0.1 * jax.random.normal(k1, (c,), jnp.float32)
        beta = 0.1 * jax.random.normal(k2, (c,), jnp.float32)
        mean = 0.1 * jax.random.normal(k3, (c,), jnp.float32)
        var = 1.0 + 0.1 * jnp.abs(jax.random.normal(k4, (c,), jnp.float32))
        return gamma, beta, mean, var

    def fold_bn(w, conv_b, gamma, beta, mean, var):
        # Inference-mode BN folded into the conv weights (per output channel).
        scale = gamma * jax.lax.rsqrt(var + _BN_EPS)
        return w * scale, (conv_b - mean) * scale + beta

    p = {}
    # conv1: 3 -> 64 (input channels zero-padded 3 -> 8)
    w1 = conv_w(ks[0], 3, 64)
    b1 = 0.1 * jax.random.normal(ks[1], (64,), jnp.float32)
    w1, b1 = fold_bn(w1, b1, *bn_stats(ks[2], 64))
    w1 = jnp.pad(w1, ((0, 0), (0, 0), (0, 5), (0, 0)))
    p["w1"] = w1.reshape(9, 8, 64).astype(jnp.bfloat16)
    p["b1"] = b1.reshape(1, 64)

    # down conv: 64 -> 128
    w2 = conv_w(ks[3], 64, 128)
    b2 = 0.1 * jax.random.normal(ks[4], (128,), jnp.float32)
    w2, b2 = fold_bn(w2, b2, *bn_stats(ks[5], 128))
    p["w2"] = w2.reshape(9, 64, 128).astype(jnp.bfloat16)
    p["b2"] = b2.reshape(1, 128)

    # up conv: 128 -> 64
    w3 = conv_w(ks[6], 128, 64)
    b3 = 0.1 * jax.random.normal(ks[7], (64,), jnp.float32)
    w3, b3 = fold_bn(w3, b3, *bn_stats(ks[8], 64))
    p["w3"] = w3.reshape(9, 128, 64).astype(jnp.bfloat16)
    p["b3"] = b3.reshape(1, 64)

    # out conv: 1x1, 64 -> 1 (bias pre-broadcast to the 128-lane output tile)
    p["w_out"] = 0.1 * jax.random.normal(ks[9], (1, 64), jnp.float32)
    p["b_out"] = jnp.full((1, 128), 0.1 * jax.random.normal(ks[10], ()), jnp.float32)
    return p


if __name__ == "__main__":
    key = jax.random.PRNGKey(0)
    kp, kx = jax.random.split(key)
    params = init_params(kp)
    x = jax.random.normal(kx, (2, 3, 16, 16), jnp.float32)        # NCHW like the PyTorch module

    fwd = jax.jit(functools.partial(multiscale_cnn_forward, p=params))
    out = fwd(x)
    jax.block_until_ready(out)

    assert out.shape == (2, 16, 16), out.shape
    assert out.dtype == jnp.float32
    assert bool(jnp.all(jnp.isfinite(out)))
    print("KERNEL_OK")
</pallas_src>

<mosaic_0001>
module attributes {stable_mosaic.version = 11 : i64} {
  func.func @_fused_kernel(%arg0: i32, %arg1: memref<1x16x16x8xbf16, #tpu.memory_space<vmem>>, %arg2: memref<9x8x64xbf16, #tpu.memory_space<vmem>>, %arg3: memref<1x64xf32, #tpu.memory_space<vmem>>, %arg4: memref<9x64x128xbf16, #tpu.memory_space<vmem>>, %arg5: memref<1x128xf32, #tpu.memory_space<vmem>>, %arg6: memref<9x128x64xbf16, #tpu.memory_space<vmem>>, %arg7: memref<1x64xf32, #tpu.memory_space<vmem>>, %arg8: memref<256x64xbf16, #tpu.memory_space<vmem>>, %arg9: memref<1x64xf32, #tpu.memory_space<vmem>>, %arg10: memref<1x128xf32, #tpu.memory_space<vmem>>, %arg11: memref<1x2x128xf32, #tpu.memory_space<vmem>>, %arg12: memref<18x18x8xbf16, #tpu.memory_space<vmem>>, %arg13: memref<10x10x64xbf16, #tpu.memory_space<vmem>>, %arg14: memref<18x18x128xbf16, #tpu.memory_space<vmem>>) attributes {dimension_semantics = [#tpu.dimension_semantics<parallel>], iteration_bounds = array<i64: 2>, scalar_prefetch = 0 : i64, scratch_operands = 3 : i64, tpu.core_type = #tpu.core_type<tc>, window_params = [{transform_indices = @transform_0, window_bounds = array<i64: 1, 16, 16, 8>}, {pipeline_mode = #tpu.pipeline_mode<synchronous>, transform_indices = @transform_1, window_bounds = array<i64: 9, 8, 64>}, {pipeline_mode = #tpu.pipeline_mode<synchronous>, transform_indices = @transform_2, window_bounds = array<i64: 1, 64>}, {pipeline_mode = #tpu.pipeline_mode<synchronous>, transform_indices = @transform_3, window_bounds = array<i64: 9, 64, 128>}, {pipeline_mode = #tpu.pipeline_mode<synchronous>, transform_indices = @transform_4, window_bounds = array<i64: 1, 128>}, {pipeline_mode = #tpu.pipeline_mode<synchronous>, transform_indices = @transform_5, window_bounds = array<i64: 9, 128, 64>}, {pipeline_mode = #tpu.pipeline_mode<synchronous>, transform_indices = @transform_6, window_bounds = array<i64: 1, 64>}, {pipeline_mode = #tpu.pipeline_mode<synchronous>, transform_indices = @transform_7, window_bounds = array<i64: 256, 64>}, {pipeline_mode = #tpu.pipeline_mode<synchronous>, transform_indices = @transform_8, window_bounds = array<i64: 1, 64>}, {pipeline_mode = #tpu.pipeline_mode<synchronous>, transform_indices = @transform_9, window_bounds = array<i64: 1, 128>}, {transform_indices = @transform_10, window_bounds = array<i64: 1, 2, 128>}]} {
    %cst = arith.constant 0.000000e+00 : bf16
    %0 = vector.broadcast %cst : bf16 to vector<1x18x8xbf16>
    %c0 = arith.constant 0 : index
    %c0_0 = arith.constant 0 : index
    %c0_1 = arith.constant 0 : index
    %1 = vector.load %arg12[%c0, %c0_0, %c0_1] : memref<18x18x8xbf16, #tpu.memory_space<vmem>>, vector<1x18x8xbf16>
    tpu.vector_store %arg12[%c0, %c0_0, %c0_1], %0 {strides = array<i32>} : memref<18x18x8xbf16, #tpu.memory_space<vmem>>, vector<1x18x8xbf16>,
    %c17 = arith.constant 17 : index
    %c0_2 = arith.constant 0 : index
    %c0_3 = arith.constant 0 : index
    %2 = vector.load %arg12[%c17, %c0_2, %c0_3] : memref<18x18x8xbf16, #tpu.memory_space<vmem>>, vector<1x18x8xbf16>
    tpu.vector_store %arg12[%c17, %c0_2, %c0_3], %0 {strides = array<i32>} : memref<18x18x8xbf16, #tpu.memory_space<vmem>>, vector<1x18x8xbf16>,
    %cst_4 = arith.constant 0.000000e+00 : bf16
    %3 = vector.broadcast %cst_4 : bf16 to vector<18x1x8xbf16>
    %c0_5 = arith.constant 0 : index
    %c0_6 = arith.constant 0 : index
    %c0_7 = arith.constant 0 : index
    %4 = vector.load %arg12[%c0_5, %c0_6, %c0_7] : memref<18x18x8xbf16, #tpu.memory_space<vmem>>, vector<18x1x8xbf16>
    tpu.vector_store %arg12[%c0_5, %c0_6, %c0_7], %3 {strides = array<i32>} : memref<18x18x8xbf16, #tpu.memory_space<vmem>>, vector<18x1x8xbf16>,
    %c0_8 = arith.constant 0 : index
    %c17_9 = arith.constant 17 : index
    %c0_10 = arith.constant 0 : index
    %5 = vector.load %arg12[%c0_8, %c17_9, %c0_10] : memref<18x18x8xbf16, #tpu.memory_space<vmem>>, vector<18x1x8xbf16>
    tpu.vector_store %arg12[%c0_8, %c17_9, %c0_10], %3 {strides = array<i32>} : memref<18x18x8xbf16, #tpu.memory_space<vmem>>, vector<18x1x8xbf16>,
    %cst_11 = arith.constant 0.000000e+00 : bf16
    %6 = vector.broadcast %cst_11 : bf16 to vector<1x10x64xbf16>
    %c0_12 = arith.constant 0 : index
    %c0_13 = arith.constant 0 : index
    %c0_14 = arith.constant 0 : index
    %7 = vector.load %arg13[%c0_12, %c0_13, %c0_14] : memref<10x10x64xbf16, #tpu.memory_space<vmem>>, vector<1x10x64xbf16>
    tpu.vector_store %arg13[%c0_12, %c0_13, %c0_14], %6 {strides = array<i32>} : memref<10x10x64xbf16, #tpu.memory_space<vmem>>, vector<1x10x64xbf16>,
    %c9 = arith.constant 9 : index
    %c0_15 = arith.constant 0 : index
    %c0_16 = arith.constant 0 : index
    %8 = vector.load %arg13[%c9, %c0_15, %c0_16] : memref<10x10x64xbf16, #tpu.memory_space<vmem>>, vector<1x10x64xbf16>
    tpu.vector_store %arg13[%c9, %c0_15, %c0_16], %6 {strides = array<i32>} : memref<10x10x64xbf16, #tpu.memory_space<vmem>>, vector<1x10x64xbf16>,
    %cst_17 = arith.constant 0.000000e+00 : bf16
    %9 = vector.broadcast %cst_17 : bf16 to vector<10x1x64xbf16>
    %c0_18 = arith.constant 0 : index
    %c0_19 = arith.constant 0 : index
    %c0_20 = arith.constant 0 : index
    %10 = vector.load %arg13[%c0_18, %c0_19, %c0_20] : memref<10x10x64xbf16, #tpu.memory_space<vmem>>, vector<10x1x64xbf16>
    tpu.vector_store %arg13[%c0_18, %c0_19, %c0_20], %9 {strides = array<i32>} : memref<10x10x64xbf16, #tpu.memory_space<vmem>>, vector<10x1x64xbf16>,
    %c0_21 = arith.constant 0 : index
    %c9_22 = arith.constant 9 : index
    %c0_23 = arith.constant 0 : index
    %11 = vector.load %arg13[%c0_21, %c9_22, %c0_23] : memref<10x10x64xbf16, #tpu.memory_space<vmem>>, vector<10x1x64xbf16>
    tpu.vector_store %arg13[%c0_21, %c9_22, %c0_23], %9 {strides = array<i32>} : memref<10x10x64xbf16, #tpu.memory_space<vmem>>, vector<10x1x64xbf16>,
    %cst_24 = arith.constant 0.000000e+00 : bf16
    %12 = vector.broadcast %cst_24 : bf16 to vector<1x18x128xbf16>
    %c0_25 = arith.constant 0 : index
    %c0_26 = arith.constant 0 : index
    %c0_27 = arith.constant 0 : index
    %13 = vector.load %arg14[%c0_25, %c0_26, %c0_27] : memref<18x18x128xbf16, #tpu.memory_space<vmem>>, vector<1x18x128xbf16>
    tpu.vector_store %arg14[%c0_25, %c0_26, %c0_27], %12 {strides = array<i32>} : memref<18x18x128xbf16, #tpu.memory_space<vmem>>, vector<1x18x128xbf16>,
    %c17_28 = arith.constant 17 : index
    %c0_29 = arith.constant 0 : index
    %c0_30 = arith.constant 0 : index
    %14 = vector.load %arg14[%c17_28, %c0_29, %c0_30] : memref<18x18x128xbf16, #tpu.memory_space<vmem>>, vector<1x18x128xbf16>
    tpu.vector_store %arg14[%c17_28, %c0_29, %c0_30], %12 {strides = array<i32>} : memref<18x18x128xbf16, #tpu.memory_space<vmem>>, vector<1x18x128xbf16>,
    %cst_31 = arith.constant 0.000000e+00 : bf16
    %15 = vector.broadcast %cst_31 : bf16 to vector<18x1x128xbf16>
    %c0_32 = arith.constant 0 : index
    %c0_33 = arith.constant 0 : index
    %c0_34 = arith.constant 0 : index
    %16 = vector.load %arg14[%c0_32, %c0_33, %c0_34] : memref<18x18x128xbf16, #tpu.memory_space<vmem>>, vector<18x1x128xbf16>
    tpu.vector_store %arg14[%c0_32, %c0_33, %c0_34], %15 {strides = array<i32>} : memref<18x18x128xbf16, #tpu.memory_space<vmem>>, vector<18x1x128xbf16>,
    %c0_35 = arith.constant 0 : index
    %c17_36 = arith.constant 17 : index
    %c0_37 = arith.constant 0 : index
    %17 = vector.load %arg14[%c0_35, %c17_36, %c0_37] : memref<18x18x128xbf16, #tpu.memory_space<vmem>>, vector<18x1x128xbf16>
    tpu.vector_store %arg14[%c0_35, %c17_36, %c0_37], %15 {strides = array<i32>} : memref<18x18x128xbf16, #tpu.memory_space<vmem>>, vector<18x1x128xbf16>,
    %c0_38 = arith.constant 0 : index
    %c0_39 = arith.constant 0 : index
    %c0_40 = arith.constant 0 : index
    %c0_41 = arith.constant 0 : index
    %18 = vector.load %arg1[%c0_38, %c0_39, %c0_40, %c0_41] : memref<1x16x16x8xbf16, #tpu.memory_space<vmem>>, vector<1x16x16x8xbf16>
    %19 = vector.shape_cast %18 : vector<1x16x16x8xbf16> to vector<16x16x8xbf16>
    %c1 = arith.constant 1 : index
    %c1_42 = arith.constant 1 : index
    %c0_43 = arith.constant 0 : index
    %20 = vector.load %arg12[%c1, %c1_42, %c0_43] : memref<18x18x8xbf16, #tpu.memory_space<vmem>>, vector<16x16x8xbf16>
    tpu.vector_store %arg12[%c1, %c1_42, %c0_43], %19 {strides = array<i32>} : memref<18x18x8xbf16, #tpu.memory_space<vmem>>, vector<16x16x8xbf16>,
    %cst_44 = arith.constant 0.000000e+00 : f32
    %21 = vector.broadcast %cst_44 : f32 to vector<256x64xf32>
    %c0_45 = arith.constant 0 : index
    %c0_46 = arith.constant 0 : index
    %c0_47 = arith.constant 0 : index
    %22 = vector.load %arg12[%c0_45, %c0_46, %c0_47] : memref<18x18x8xbf16, #tpu.memory_space<vmem>>, vector<16x16x8xbf16>
    %23 = vector.shape_cast %22 : vector<16x16x8xbf16> to vector<256x8xbf16>
    %c0_48 = arith.constant 0 : index
    %c0_49 = arith.constant 0 : index
    %c0_50 = arith.constant 0 : index
    %24 = vector.load %arg2[%c0_48, %c0_49, %c0_50] : memref<9x8x64xbf16, #tpu.memory_space<vmem>>, vector<1x8x64xbf16>
    %25 = vector.shape_cast %24 : vector<1x8x64xbf16> to vector<8x64xbf16>
    %cst_51 = arith.constant dense<0.000000e+00> : vector<256x64xf32>
    %26 = tpu.matmul %23, %25, %cst_51 {dimension_numbers = #tpu.dot_dimension_numbers<[1], [0], [0], [1], [0, 0, 1, 1], [], []>} : vector<256x8xbf16>, vector<8x64xbf16>, vector<256x64xf32> -> vector<256x64xf32>
    %27 = arith.addf %21, %26 : vector<256x64xf32>
    %c0_52 = arith.constant 0 : index
    %c1_53 = arith.constant 1 : index
    %c0_54 = arith.constant 0 : index
    %28 = vector.load %arg12[%c0_52, %c1_53, %c0_54] : memref<18x18x8xbf16, #tpu.memory_space<vmem>>, vector<16x16x8xbf16>
    %29 = vector.shape_cast %28 : vector<16x16x8xbf16> to vector<256x8xbf16>
    %c1_55 = arith.constant 1 : index
    %c0_56 = arith.constant 0 : index
    %c0_57 = arith.constant 0 : index
    %30 = vector.load %arg2[%c1_55, %c0_56, %c0_57] : memref<9x8x64xbf16, #tpu.memory_space<vmem>>, vector<1x8x64xbf16>
    %31 = vector.shape_cast %30 : vector<1x8x64xbf16> to vector<8x64xbf16>
    %cst_58 = arith.constant dense<0.000000e+00> : vector<256x64xf32>
    %32 = tpu.matmul %29, %31, %cst_58 {dimension_numbers = #tpu.dot_dimension_numbers<[1], [0], [0], [1], [0, 0, 1, 1], [], []>} : vector<256x8xbf16>, vector<8x64xbf16>, vector<256x64xf32> -> vector<256x64xf32>
    %33 = arith.addf %27, %32 : vector<256x64xf32>
    %c0_59 = arith.constant 0 : index
    %c2 = arith.constant 2 : index
    %c0_60 = arith.constant 0 : index
    %34 = vector.load %arg12[%c0_59, %c2, %c0_60] : memref<18x18x8xbf16, #tpu.memory_space<vmem>>, vector<16x16x8xbf16>
    %35 = vector.shape_cast %34 : vector<16x16x8xbf16> to vector<256x8xbf16>
    %c2_61 = arith.constant 2 : index
    %c0_62 = arith.constant 0 : index
    %c0_63 = arith.constant 0 : index
    %36 = vector.load %arg2[%c2_61, %c0_62, %c0_63] : memref<9x8x64xbf16, #tpu.memory_space<vmem>>, vector<1x8x64xbf16>
    %37 = vector.shape_cast %36 : vector<1x8x64xbf16> to vector<8x64xbf16>
    %cst_64 = arith.constant dense<0.000000e+00> : vector<256x64xf32>
    %38 = tpu.matmul %35, %37, %cst_64 {dimension_numbers = #tpu.dot_dimension_numbers<[1], [0], [0], [1], [0, 0, 1, 1], [], []>} : vector<256x8xbf16>, vector<8x64xbf16>, vector<256x64xf32> -> vector<256x64xf32>
    %39 = arith.addf %33, %38 : vector<256x64xf32>
    %c1_65 = arith.constant 1 : index
    %c0_66 = arith.constant 0 : index
    %c0_67 = arith.constant 0 : index
    %40 = vector.load %arg12[%c1_65, %c0_66, %c0_67] : memref<18x18x8xbf16, #tpu.memory_space<vmem>>, vector<16x16x8xbf16>
    %41 = vector.shape_cast %40 : vector<16x16x8xbf16> to vector<256x8xbf16>
    %c3 = arith.constant 3 : index
    %c0_68 = arith.constant 0 : index
    %c0_69 = arith.constant 0 : index
    %42 = vector.load %arg2[%c3, %c0_68, %c0_69] : memref<9x8x64xbf16, #tpu.memory_space<vmem>>, vector<1x8x64xbf16>
    %43 = vector.shape_cast %42 : vector<1x8x64xbf16> to vector<8x64xbf16>
    %cst_70 = arith.constant dense<0.000000e+00> : vector<256x64xf32>
    %44 = tpu.matmul %41, %43, %cst_70 {dimension_numbers = #tpu.dot_dimension_numbers<[1], [0], [0], [1], [0, 0, 1, 1], [], []>} : vector<256x8xbf16>, vector<8x64xbf16>, vector<256x64xf32> -> vector<256x64xf32>
    %45 = arith.addf %39, %44 : vector<256x64xf32>
    %c1_71 = arith.constant 1 : index
    %c1_72 = arith.constant 1 : index
    %c0_73 = arith.constant 0 : index
    %46 = vector.load %arg12[%c1_71, %c1_72, %c0_73] : memref<18x18x8xbf16, #tpu.memory_space<vmem>>, vector<16x16x8xbf16>
    %47 = vector.shape_cast %46 : vector<16x16x8xbf16> to vector<256x8xbf16>
    %c4 = arith.constant 4 : index
    %c0_74 = arith.constant 0 : index
    %c0_75 = arith.constant 0 : index
    %48 = vector.load %arg2[%c4, %c0_74, %c0_75] : memref<9x8x64xbf16, #tpu.memory_space<vmem>>, vector<1x8x64xbf16>
    %49 = vector.shape_cast %48 : vector<1x8x64xbf16> to vector<8x64xbf16>
    %cst_76 = arith.constant dense<0.000000e+00> : vector<256x64xf32>
    %50 = tpu.matmul %47, %49, %cst_76 {dimension_numbers = #tpu.dot_dimension_numbers<[1], [0], [0], [1], [0, 0, 1, 1], [], []>} : vector<256x8xbf16>, vector<8x64xbf16>, vector<256x64xf32> -> vector<256x64xf32>
    %51 = arith.addf %45, %50 : vector<256x64xf32>
    %c1_77 = arith.constant 1 : index
    %c2_78 = arith.constant 2 : index
    %c0_79 = arith.constant 0 : index
    %52 = vector.load %arg12[%c1_77, %c2_78, %c0_79] : memref<18x18x8xbf16, #tpu.memory_space<vmem>>, vector<16x16x8xbf16>
    %53 = vector.shape_cast %52 : vector<16x16x8xbf16> to vector<256x8xbf16>
    %c5 = arith.constant 5 : index
    %c0_80 = arith.constant 0 : index
    %c0_81 = arith.constant 0 : index
    %54 = vector.load %arg2[%c5, %c0_80, %c0_81] : memref<9x8x64xbf16, #tpu.memory_space<vmem>>, vector<1x8x64xbf16>
    %55 = vector.shape_cast %54 : vector<1x8x64xbf16> to vector<8x64xbf16>
    %cst_82 = arith.constant dense<0.000000e+00> : vector<256x64xf32>
    %56 = tpu.matmul %53, %55, %cst_82 {dimension_numbers = #tpu.dot_dimension_numbers<[1], [0], [0], [1], [0, 0, 1, 1], [], []>} : vector<256x8xbf16>, vector<8x64xbf16>, vector<256x64xf32> -> vector<256x64xf32>
    %57 = arith.addf %51, %56 : vector<256x64xf32>
    %c2_83 = arith.constant 2 : index
    %c0_84 = arith.constant 0 : index
    %c0_85 = arith.constant 0 : index
    %58 = vector.load %arg12[%c2_83, %c0_84, %c0_85] : memref<18x18x8xbf16, #tpu.memory_space<vmem>>, vector<16x16x8xbf16>
    %59 = vector.shape_cast %58 : vector<16x16x8xbf16> to vector<256x8xbf16>
    %c6 = arith.constant 6 : index
    %c0_86 = arith.constant 0 : index
    %c0_87 = arith.constant 0 : index
    %60 = vector.load %arg2[%c6, %c0_86, %c0_87] : memref<9x8x64xbf16, #tpu.memory_space<vmem>>, vector<1x8x64xbf16>
    %61 = vector.shape_cast %60 : vector<1x8x64xbf16> to vector<8x64xbf16>
    %cst_88 = arith.constant dense<0.000000e+00> : vector<256x64xf32>
    %62 = tpu.matmul %59, %61, %cst_88 {dimension_numbers = #tpu.dot_dimension_numbers<[1], [0], [0], [1], [0, 0, 1, 1], [], []>} : vector<256x8xbf16>, vector<8x64xbf16>, vector<256x64xf32> -> vector<256x64xf32>
    %63 = arith.addf %57, %62 : vector<256x64xf32>
    %c2_89 = arith.constant 2 : index
    %c1_90 = arith.constant 1 : index
    %c0_91 = arith.constant 0 : index
    %64 = vector.load %arg12[%c2_89, %c1_90, %c0_91] : memref<18x18x8xbf16, #tpu.memory_space<vmem>>, vector<16x16x8xbf16>
    %65 = vector.shape_cast %64 : vector<16x16x8xbf16> to vector<256x8xbf16>
    %c7 = arith.constant 7 : index
    %c0_92 = arith.constant 0 : index
    %c0_93 = arith.constant 0 : index
    %66 = vector.load %arg2[%c7, %c0_92, %c0_93] : memref<9x8x64xbf16, #tpu.memory_space<vmem>>, vector<1x8x64xbf16>
    %67 = vector.shape_cast %66 : vector<1x8x64xbf16> to vector<8x64xbf16>
    %cst_94 = arith.constant dense<0.000000e+00> : vector<256x64xf32>
    %68 = tpu.matmul %65, %67, %cst_94 {dimension_numbers = #tpu.dot_dimension_numbers<[1], [0], [0], [1], [0, 0, 1, 1], [], []>} : vector<256x8xbf16>, vector<8x64xbf16>, vector<256x64xf32> -> vector<256x64xf32>
    %69 = arith.addf %63, %68 : vector<256x64xf32>
    %c2_95 = arith.constant 2 : index
    %c2_96 = arith.constant 2 : index
    %c0_97 = arith.constant 0 : index
    %70 = vector.load %arg12[%c2_95, %c2_96, %c0_97] : memref<18x18x8xbf16, #tpu.memory_space<vmem>>, vector<16x16x8xbf16>
    %71 = vector.shape_cast %70 : vector<16x16x8xbf16> to vector<256x8xbf16>
    %c8 = arith.constant 8 : index
    %c0_98 = arith.constant 0 : index
    %c0_99 = arith.constant 0 : index
    %72 = vector.load %arg2[%c8, %c0_98, %c0_99] : memref<9x8x64xbf16, #tpu.memory_space<vmem>>, vector<1x8x64xbf16>
    %73 = vector.shape_cast %72 : vector<1x8x64xbf16> to vector<8x64xbf16>
    %cst_100 = arith.constant dense<0.000000e+00> : vector<256x64xf32>
    %74 = tpu.matmul %71, %73, %cst_100 {dimension_numbers = #tpu.dot_dimension_numbers<[1], [0], [0], [1], [0, 0, 1, 1], [], []>} : vector<256x8xbf16>, vector<8x64xbf16>, vector<256x64xf32> -> vector<256x64xf32>
    %75 = arith.addf %69, %74 : vector<256x64xf32>
    %c0_101 = arith.constant 0 : index
    %c0_102 = arith.constant 0 : index
    %76 = vector.load %arg3[%c0_101, %c0_102] : memref<1x64xf32, #tpu.memory_space<vmem>>, vector<1x64xf32>
    %77 = vector.broadcast %76 : vector<1x64xf32> to vector<256x64xf32>
    %78 = arith.addf %75, %77 : vector<256x64xf32>
    %cst_103 = arith.constant 0.000000e+00 : f32
    %79 = vector.broadcast %cst_103 : f32 to vector<256x64xf32>
    %80 = arith.maximumf %78, %79 : vector<256x64xf32>
    %81 = vector.shape_cast %80 : vector<256x64xf32> to vector<128x2x64xf32>
    %82 = vector.extract_strided_slice %81 {offsets = [0, 0, 0], sizes = [128, 1, 64], strides = [1, 1, 1]} : vector<128x2x64xf32> to vector<128x1x64xf32>
    %83 = vector.shape_cast %82 : vector<128x1x64xf32> to vector<128x64xf32>
    %84 = vector.extract_strided_slice %81 {offsets = [0, 1, 0], sizes = [128, 1, 64], strides = [1, 1, 1]} : vector<128x2x64xf32> to vector<128x1x64xf32>
    %85 = vector.shape_cast %84 : vector<128x1x64xf32> to vector<128x64xf32>
    %86 = arith.maximumf %83, %85 : vector<128x64xf32>
    %87 = vector.shape_cast %86 : vector<128x64xf32> to vector<8x16x64xf32>
    %88 = vector.extract_strided_slice %87 {offsets = [0, 0, 0], sizes = [8, 8, 64], strides = [1, 1, 1]} : vector<8x16x64xf32> to vector<8x8x64xf32>
    %89 = vector.extract_strided_slice %87 {offsets = [0, 8, 0], sizes = [8, 8, 64], strides = [1, 1, 1]} : vector<8x16x64xf32> to vector<8x8x64xf32>
    %90 = arith.maximumf %88, %89 : vector<8x8x64xf32>
    %91 = arith.truncf %90 : vector<8x8x64xf32> to vector<8x8x64xbf16>
    %c1_104 = arith.constant 1 : index
    %c1_105 = arith.constant 1 : index
    %c0_106 = arith.constant 0 : index
    %92 = vector.load %arg13[%c1_104, %c1_105, %c0_106] : memref<10x10x64xbf16, #tpu.memory_space<vmem>>, vector<8x8x64xbf16>
    tpu.vector_store %arg13[%c1_104, %c1_105, %c0_106], %91 {strides = array<i32>} : memref<10x10x64xbf16, #tpu.memory_space<vmem>>, vector<8x8x64xbf16>,
    %cst_107 = arith.constant 0.000000e+00 : f32
    %93 = vector.broadcast %cst_107 : f32 to vector<64x128xf32>
    %c0_108 = arith.constant 0 : index
    %c0_109 = arith.constant 0 : index
    %c0_110 = arith.constant 0 : index
    %94 = vector.load %arg13[%c0_108, %c0_109, %c0_110] : memref<10x10x64xbf16, #tpu.memory_space<vmem>>, vector<8x8x64xbf16>
    %95 = vector.shape_cast %94 : vector<8x8x64xbf16> to vector<64x64xbf16>
    %c0_111 = arith.constant 0 : index
    %c0_112 = arith.constant 0 : index
    %c0_113 = arith.constant 0 : index
    %96 = vector.load %arg4[%c0_111, %c0_112, %c0_113] : memref<9x64x128xbf16, #tpu.memory_space<vmem>>, vector<1x64x128xbf16>
    %97 = vector.shape_cast %96 : vector<1x64x128xbf16> to vector<64x128xbf16>
    %cst_114 = arith.constant dense<0.000000e+00> : vector<64x128xf32>
    %98 = tpu.matmul %95, %97, %cst_114 {dimension_numbers = #tpu.dot_dimension_numbers<[1], [0], [0], [1], [0, 0, 1, 1], [], []>} : vector<64x64xbf16>, vector<64x128xbf16>, vector<64x128xf32> -> vector<64x128xf32>
    %99 = arith.addf %93, %98 : vector<64x128xf32>
    %c0_115 = arith.constant 0 : index
    %c1_116 = arith.constant 1 : index
    %c0_117 = arith.constant 0 : index
    %100 = vector.load %arg13[%c0_115, %c1_116, %c0_117] : memref<10x10x64xbf16, #tpu.memory_space<vmem>>, vector<8x8x64xbf16>
    %101 = vector.shape_cast %100 : vector<8x8x64xbf16> to vector<64x64xbf16>
    %c1_118 = arith.constant 1 : index
    %c0_119 = arith.constant 0 : index
    %c0_120 = arith.constant 0 : index
    %102 = vector.load %arg4[%c1_118, %c0_119, %c0_120] : memref<9x64x128xbf16, #tpu.memory_space<vmem>>, vector<1x64x128xbf16>
    %103 = vector.shape_cast %102 : vector<1x64x128xbf16> to vector<64x128xbf16>
    %cst_121 = arith.constant dense<0.000000e+00> : vector<64x128xf32>
    %104 = tpu.matmul %101, %103, %cst_121 {dimension_numbers = #tpu.dot_dimension_numbers<[1], [0], [0], [1], [0, 0, 1, 1], [], []>} : vector<64x64xbf16>, vector<64x128xbf16>, vector<64x128xf32> -> vector<64x128xf32>
    %105 = arith.addf %99, %104 : vector<64x128xf32>
    %c0_122 = arith.constant 0 : index
    %c2_123 = arith.constant 2 : index
    %c0_124 = arith.constant 0 : index
    %106 = vector.load %arg13[%c0_122, %c2_123, %c0_124] : memref<10x10x64xbf16, #tpu.memory_space<vmem>>, vector<8x8x64xbf16>
    %107 = vector.shape_cast %106 : vector<8x8x64xbf16> to vector<64x64xbf16>
    %c2_125 = arith.constant 2 : index
    %c0_126 = arith.constant 0 : index
    %c0_127 = arith.constant 0 : index
    %108 = vector.load %arg4[%c2_125, %c0_126, %c0_127] : memref<9x64x128xbf16, #tpu.memory_space<vmem>>, vector<1x64x128xbf16>
    %109 = vector.shape_cast %108 : vector<1x64x128xbf16> to vector<64x128xbf16>
    %cst_128 = arith.constant dense<0.000000e+00> : vector<64x128xf32>
    %110 = tpu.matmul %107, %109, %cst_128 {dimension_numbers = #tpu.dot_dimension_numbers<[1], [0], [0], [1], [0, 0, 1, 1], [], []>} : vector<64x64xbf16>, vector<64x128xbf16>, vector<64x128xf32> -> vector<64x128xf32>
    %111 = arith.addf %105, %110 : vector<64x128xf32>
    %c1_129 = arith.constant 1 : index
    %c0_130 = arith.constant 0 : index
    %c0_131 = arith.constant 0 : index
    %112 = vector.load %arg13[%c1_129, %c0_130, %c0_131] : memref<10x10x64xbf16, #tpu.memory_space<vmem>>, vector<8x8x64xbf16>
    %113 = vector.shape_cast %112 : vector<8x8x64xbf16> to vector<64x64xbf16>
    %c3_132 = arith.constant 3 : index
    %c0_133 = arith.constant 0 : index
    %c0_134 = arith.constant 0 : index
    %114 = vector.load %arg4[%c3_132, %c0_133, %c0_134] : memref<9x64x128xbf16, #tpu.memory_space<vmem>>, vector<1x64x128xbf16>
    %115 = vector.shape_cast %114 : vector<1x64x128xbf16> to vector<64x128xbf16>
    %cst_135 = arith.constant dense<0.000000e+00> : vector<64x128xf32>
    %116 = tpu.matmul %113, %115, %cst_135 {dimension_numbers = #tpu.dot_dimension_numbers<[1], [0], [0], [1], [0, 0, 1, 1], [], []>} : vector<64x64xbf16>, vector<64x128xbf16>, vector<64x128xf32> -> vector<64x128xf32>
    %117 = arith.addf %111, %116 : vector<64x128xf32>
    %c1_136 = arith.constant 1 : index
    %c1_137 = arith.constant 1 : index
    %c0_138 = arith.constant 0 : index
    %118 = vector.load %arg13[%c1_136, %c1_137, %c0_138] : memref<10x10x64xbf16, #tpu.memory_space<vmem>>, vector<8x8x64xbf16>
    %119 = vector.shape_cast %118 : vector<8x8x64xbf16> to vector<64x64xbf16>
    %c4_139 = arith.constant 4 : index
    %c0_140 = arith.constant 0 : index
    %c0_141 = arith.constant 0 : index
    %120 = vector.load %arg4[%c4_139, %c0_140, %c0_141] : memref<9x64x128xbf16, #tpu.memory_space<vmem>>, vector<1x64x128xbf16>
    %121 = vector.shape_cast %120 : vector<1x64x128xbf16> to vector<64x128xbf16>
    %cst_142 = arith.constant dense<0.000000e+00> : vector<64x128xf32>
    %122 = tpu.matmul %119, %121, %cst_142 {dimension_numbers = #tpu.dot_dimension_numbers<[1], [0], [0], [1], [0, 0, 1, 1], [], []>} : vector<64x64xbf16>, vector<64x128xbf16>, vector<64x128xf32> -> vector<64x128xf32>
    %123 = arith.addf %117, %122 : vector<64x128xf32>
    %c1_143 = arith.constant 1 : index
    %c2_144 = arith.constant 2 : index
    %c0_145 = arith.constant 0 : index
    %124 = vector.load %arg13[%c1_143, %c2_144, %c0_145] : memref<10x10x64xbf16, #tpu.memory_space<vmem>>, vector<8x8x64xbf16>
    %125 = vector.shape_cast %124 : vector<8x8x64xbf16> to vector<64x64xbf16>
    %c5_146 = arith.constant 5 : index
    %c0_147 = arith.constant 0 : index
    %c0_148 = arith.constant 0 : index
    %126 = vector.load %arg4[%c5_146, %c0_147, %c0_148] : memref<9x64x128xbf16, #tpu.memory_space<vmem>>, vector<1x64x128xbf16>
    %127 = vector.shape_cast %126 : vector<1x64x128xbf16> to vector<64x128xbf16>
    %cst_149 = arith.constant dense<0.000000e+00> : vector<64x128xf32>
    %128 = tpu.matmul %125, %127, %cst_149 {dimension_numbers = #tpu.dot_dimension_numbers<[1], [0], [0], [1], [0, 0, 1, 1], [], []>} : vector<64x64xbf16>, vector<64x128xbf16>, vector<64x128xf32> -> vector<64x128xf32>
    %129 = arith.addf %123, %128 : vector<64x128xf32>
    %c2_150 = arith.constant 2 : index
    %c0_151 = arith.constant 0 : index
    %c0_152 = arith.constant 0 : index
    %130 = vector.load %arg13[%c2_150, %c0_151, %c0_152] : memref<10x10x64xbf16, #tpu.memory_space<vmem>>, vector<8x8x64xbf16>
    %131 = vector.shape_cast %130 : vector<8x8x64xbf16> to vector<64x64xbf16>
    %c6_153 = arith.constant 6 : index
    %c0_154 = arith.constant 0 : index
    %c0_155 = arith.constant 0 : index
    %132 = vector.load %arg4[%c6_153, %c0_154, %c0_155] : memref<9x64x128xbf16, #tpu.memory_space<vmem>>, vector<1x64x128xbf16>
    %133 = vector.shape_cast %132 : vector<1x64x128xbf16> to vector<64x128xbf16>
    %cst_156 = arith.constant dense<0.000000e+00> : vector<64x128xf32>
    %134 = tpu.matmul %131, %133, %cst_156 {dimension_numbers = #tpu.dot_dimension_numbers<[1], [0], [0], [1], [0, 0, 1, 1], [], []>} : vector<64x64xbf16>, vector<64x128xbf16>, vector<64x128xf32> -> vector<64x128xf32>
    %135 = arith.addf %129, %134 : vector<64x128xf32>
    %c2_157 = arith.constant 2 : index
    %c1_158 = arith.constant 1 : index
    %c0_159 = arith.constant 0 : index
    %136 = vector.load %arg13[%c2_157, %c1_158, %c0_159] : memref<10x10x64xbf16, #tpu.memory_space<vmem>>, vector<8x8x64xbf16>
    %137 = vector.shape_cast %136 : vector<8x8x64xbf16> to vector<64x64xbf16>
    %c7_160 = arith.constant 7 : index
    %c0_161 = arith.constant 0 : index
    %c0_162 = arith.constant 0 : index
    %138 = vector.load %arg4[%c7_160, %c0_161, %c0_162] : memref<9x64x128xbf16, #tpu.memory_space<vmem>>, vector<1x64x128xbf16>
    %139 = vector.shape_cast %138 : vector<1x64x128xbf16> to vector<64x128xbf16>
    %cst_163 = arith.constant dense<0.000000e+00> : vector<64x128xf32>
    %140 = tpu.matmul %137, %139, %cst_163 {dimension_numbers = #tpu.dot_dimension_numbers<[1], [0], [0], [1], [0, 0, 1, 1], [], []>} : vector<64x64xbf16>, vector<64x128xbf16>, vector<64x128xf32> -> vector<64x128xf32>
    %141 = arith.addf %135, %140 : vector<64x128xf32>
    %c2_164 = arith.constant 2 : index
    %c2_165 = arith.constant 2 : index
    %c0_166 = arith.constant 0 : index
    %142 = vector.load %arg13[%c2_164, %c2_165, %c0_166] : memref<10x10x64xbf16, #tpu.memory_space<vmem>>, vector<8x8x64xbf16>
    %143 = vector.shape_cast %142 : vector<8x8x64xbf16> to vector<64x64xbf16>
    %c8_167 = arith.constant 8 : index
    %c0_168 = arith.constant 0 : index
    %c0_169 = arith.constant 0 : index
    %144 = vector.load %arg4[%c8_167, %c0_168, %c0_169] : memref<9x64x128xbf16, #tpu.memory_space<vmem>>, vector<1x64x128xbf16>
    %145 = vector.shape_cast %144 : vector<1x64x128xbf16> to vector<64x128xbf16>
    %cst_170 = arith.constant dense<0.000000e+00> : vector<64x128xf32>
    %146 = tpu.matmul %143, %145, %cst_170 {dimension_numbers = #tpu.dot_dimension_numbers<[1], [0], [0], [1], [0, 0, 1, 1], [], []>} : vector<64x64xbf16>, vector<64x128xbf16>, vector<64x128xf32> -> vector<64x128xf32>
    %147 = arith.addf %141, %146 : vector<64x128xf32>
    %c0_171 = arith.constant 0 : index
    %c0_172 = arith.constant 0 : index
    %148 = vector.load %arg5[%c0_171, %c0_172] : memref<1x128xf32, #tpu.memory_space<vmem>>, vector<1x128xf32>
    %149 = vector.broadcast %148 : vector<1x128xf32> to vector<64x128xf32>
    %150 = arith.addf %147, %149 : vector<64x128xf32>
    %cst_173 = arith.constant 0.000000e+00 : f32
    %151 = vector.broadcast %cst_173 : f32 to vector<64x128xf32>
    %152 = arith.maximumf %150, %151 : vector<64x128xf32>
    %c0_174 = arith.constant 0 : index
    %c0_175 = arith.constant 0 : index
    %153 = vector.load %arg8[%c0_174, %c0_175] : memref<256x64xbf16, #tpu.memory_space<vmem>>, vector<256x64xbf16>
    %154 = arith.truncf %152 : vector<64x128xf32> to vector<64x128xbf16>
    %cst_176 = arith.constant dense<0.000000e+00> : vector<256x128xf32>
    %155 = tpu.matmul %153, %154, %cst_176 {dimension_numbers = #tpu.dot_dimension_numbers<[1], [0], [0], [1], [0, 0, 1, 1], [], []>} : vector<256x64xbf16>, vector<64x128xbf16>, vector<256x128xf32> -> vector<256x128xf32>
    %156 = arith.truncf %155 : vector<256x128xf32> to vector<256x128xbf16>
    %157 = vector.shape_cast %156 : vector<256x128xbf16> to vector<16x16x128xbf16>
    %c1_177 = arith.constant 1 : index
    %c1_178 = arith.constant 1 : index
    %c0_179 = arith.constant 0 : index
    %158 = vector.load %arg14[%c1_177, %c1_178, %c0_179] : memref<18x18x128xbf16, #tpu.memory_space<vmem>>, vector<16x16x128xbf16>
    tpu.vector_store %arg14[%c1_177, %c1_178, %c0_179], %157 {strides = array<i32>} : memref<18x18x128xbf16, #tpu.memory_space<vmem>>, vector<16x16x128xbf16>,
    %cst_180 = arith.constant 0.000000e+00 : f32
    %159 = vector.broadcast %cst_180 : f32 to vector<256x64xf32>
    %c0_181 = arith.constant 0 : index
    %c0_182 = arith.constant 0 : index
    %c0_183 = arith.constant 0 : index
    %160 = vector.load %arg14[%c0_181, %c0_182, %c0_183] : memref<18x18x128xbf16, #tpu.memory_space<vmem>>, vector<16x16x128xbf16>
    %161 = vector.shape_cast %160 : vector<16x16x128xbf16> to vector<256x128xbf16>
    %c0_184 = arith.constant 0 : index
    %c0_185 = arith.constant 0 : index
    %c0_186 = arith.constant 0 : index
    %162 = vector.load %arg6[%c0_184, %c0_185, %c0_186] : memref<9x128x64xbf16, #tpu.memory_space<vmem>>, vector<1x128x64xbf16>
    %163 = vector.shape_cast %162 : vector<1x128x64xbf16> to vector<128x64xbf16>
    %cst_187 = arith.constant dense<0.000000e+00> : vector<256x64xf32>
    %164 = tpu.matmul %161, %163, %cst_187 {dimension_numbers = #tpu.dot_dimension_numbers<[1], [0], [0], [1], [0, 0, 1, 1], [], []>} : vector<256x128xbf16>, vector<128x64xbf16>, vector<256x64xf32> -> vector<256x64xf32>
    %165 = arith.addf %159, %164 : vector<256x64xf32>
    %c0_188 = arith.constant 0 : index
    %c1_189 = arith.constant 1 : index
    %c0_190 = arith.constant 0 : index
    %166 = vector.load %arg14[%c0_188, %c1_189, %c0_190] : memref<18x18x128xbf16, #tpu.memory_space<vmem>>, vector<16x16x128xbf16>
    %167 = vector.shape_cast %166 : vector<16x16x128xbf16> to vector<256x128xbf16>
    %c1_191 = arith.constant 1 : index
    %c0_192 = arith.constant 0 : index
    %c0_193 = arith.constant 0 : index
    %168 = vector.load %arg6[%c1_191, %c0_192, %c0_193] : memref<9x128x64xbf16, #tpu.memory_space<vmem>>, vector<1x128x64xbf16>
    %169 = vector.shape_cast %168 : vector<1x128x64xbf16> to vector<128x64xbf16>
    %cst_194 = arith.constant dense<0.000000e+00> : vector<256x64xf32>
    %170 = tpu.matmul %167, %169, %cst_194 {dimension_numbers = #tpu.dot_dimension_numbers<[1], [0], [0], [1], [0, 0, 1, 1], [], []>} : vector<256x128xbf16>, vector<128x64xbf16>, vector<256x64xf32> -> vector<256x64xf32>
    %171 = arith.addf %165, %170 : vector<256x64xf32>
    %c0_195 = arith.constant 0 : index
    %c2_196 = arith.constant 2 : index
    %c0_197 = arith.constant 0 : index
    %172 = vector.load %arg14[%c0_195, %c2_196, %c0_197] : memref<18x18x128xbf16, #tpu.memory_space<vmem>>, vector<16x16x128xbf16>
    %173 = vector.shape_cast %172 : vector<16x16x128xbf16> to vector<256x128xbf16>
    %c2_198 = arith.constant 2 : index
    %c0_199 = arith.constant 0 : index
    %c0_200 = arith.constant 0 : index
    %174 = vector.load %arg6[%c2_198, %c0_199, %c0_200] : memref<9x128x64xbf16, #tpu.memory_space<vmem>>, vector<1x128x64xbf16>
    %175 = vector.shape_cast %174 : vector<1x128x64xbf16> to vector<128x64xbf16>
    %cst_201 = arith.constant dense<0.000000e+00> : vector<256x64xf32>
    %176 = tpu.matmul %173, %175, %cst_201 {dimension_numbers = #tpu.dot_dimension_numbers<[1], [0], [0], [1], [0, 0, 1, 1], [], []>} : vector<256x128xbf16>, vector<128x64xbf16>, vector<256x64xf32> -> vector<256x64xf32>
    %177 = arith.addf %171, %176 : vector<256x64xf32>
    %c1_202 = arith.constant 1 : index
    %c0_203 = arith.constant 0 : index
    %c0_204 = arith.constant 0 : index
    %178 = vector.load %arg14[%c1_202, %c0_203, %c0_204] : memref<18x18x128xbf16, #tpu.memory_space<vmem>>, vector<16x16x128xbf16>
    %179 = vector.shape_cast %178 : vector<16x16x128xbf16> to vector<256x128xbf16>
    %c3_205 = arith.constant 3 : index
    %c0_206 = arith.constant 0 : index
    %c0_207 = arith.constant 0 : index
    %180 = vector.load %arg6[%c3_205, %c0_206, %c0_207] : memref<9x128x64xbf16, #tpu.memory_space<vmem>>, vector<1x128x64xbf16>
    %181 = vector.shape_cast %180 : vector<1x128x64xbf16> to vector<128x64xbf16>
    %cst_208 = arith.constant dense<0.000000e+00> : vector<256x64xf32>
    %182 = tpu.matmul %179, %181, %cst_208 {dimension_numbers = #tpu.dot_dimension_numbers<[1], [0], [0], [1], [0, 0, 1, 1], [], []>} : vector<256x128xbf16>, vector<128x64xbf16>, vector<256x64xf32> -> vector<256x64xf32>
    %183 = arith.addf %177, %182 : vector<256x64xf32>
    %c1_209 = arith.constant 1 : index
    %c1_210 = arith.constant 1 : index
    %c0_211 = arith.constant 0 : index
    %184 = vector.load %arg14[%c1_209, %c1_210, %c0_211] : memref<18x18x128xbf16, #tpu.memory_space<vmem>>, vector<16x16x128xbf16>
    %185 = vector.shape_cast %184 : vector<16x16x128xbf16> to vector<256x128xbf16>
    %c4_212 = arith.constant 4 : index
    %c0_213 = arith.constant 0 : index
    %c0_214 = arith.constant 0 : index
    %186 = vector.load %arg6[%c4_212, %c0_213, %c0_214] : memref<9x128x64xbf16, #tpu.memory_space<vmem>>, vector<1x128x64xbf16>
    %187 = vector.shape_cast %186 : vector<1x128x64xbf16> to vector<128x64xbf16>
    %cst_215 = arith.constant dense<0.000000e+00> : vector<256x64xf32>
    %188 = tpu.matmul %185, %187, %cst_215 {dimension_numbers = #tpu.dot_dimension_numbers<[1], [0], [0], [1], [0, 0, 1, 1], [], []>} : vector<256x128xbf16>, vector<128x64xbf16>, vector<256x64xf32> -> vector<256x64xf32>
    %189 = arith.addf %183, %188 : vector<256x64xf32>
    %c1_216 = arith.constant 1 : index
    %c2_217 = arith.constant 2 : index
    %c0_218 = arith.constant 0 : index
    %190 = vector.load %arg14[%c1_216, %c2_217, %c0_218] : memref<18x18x128xbf16, #tpu.memory_space<vmem>>, vector<16x16x128xbf16>
    %191 = vector.shape_cast %190 : vector<16x16x128xbf16> to vector<256x128xbf16>
    %c5_219 = arith.constant 5 : index
    %c0_220 = arith.constant 0 : index
    %c0_221 = arith.constant 0 : index
    %192 = vector.load %arg6[%c5_219, %c0_220, %c0_221] : memref<9x128x64xbf16, #tpu.memory_space<vmem>>, vector<1x128x64xbf16>
    %193 = vector.shape_cast %192 : vector<1x128x64xbf16> to vector<128x64xbf16>
    %cst_222 = arith.constant dense<0.000000e+00> : vector<256x64xf32>
    %194 = tpu.matmul %191, %193, %cst_222 {dimension_numbers = #tpu.dot_dimension_numbers<[1], [0], [0], [1], [0, 0, 1, 1], [], []>} : vector<256x128xbf16>, vector<128x64xbf16>, vector<256x64xf32> -> vector<256x64xf32>
    %195 = arith.addf %189, %194 : vector<256x64xf32>
    %c2_223 = arith.constant 2 : index
    %c0_224 = arith.constant 0 : index
    %c0_225 = arith.constant 0 : index
    %196 = vector.load %arg14[%c2_223, %c0_224, %c0_225] : memref<18x18x128xbf16, #tpu.memory_space<vmem>>, vector<16x16x128xbf16>
    %197 = vector.shape_cast %196 : vector<16x16x128xbf16> to vector<256x128xbf16>
    %c6_226 = arith.constant 6 : index
    %c0_227 = arith.constant 0 : index
    %c0_228 = arith.constant 0 : index
    %198 = vector.load %arg6[%c6_226, %c0_227, %c0_228] : memref<9x128x64xbf16, #tpu.memory_space<vmem>>, vector<1x128x64xbf16>
    %199 = vector.shape_cast %198 : vector<1x128x64xbf16> to vector<128x64xbf16>
    %cst_229 = arith.constant dense<0.000000e+00> : vector<256x64xf32>
    %200 = tpu.matmul %197, %199, %cst_229 {dimension_numbers = #tpu.dot_dimension_numbers<[1], [0], [0], [1], [0, 0, 1, 1], [], []>} : vector<256x128xbf16>, vector<128x64xbf16>, vector<256x64xf32> -> vector<256x64xf32>
    %201 = arith.addf %195, %200 : vector<256x64xf32>
    %c2_230 = arith.constant 2 : index
    %c1_231 = arith.constant 1 : index
    %c0_232 = arith.constant 0 : index
    %202 = vector.load %arg14[%c2_230, %c1_231, %c0_232] : memref<18x18x128xbf16, #tpu.memory_space<vmem>>, vector<16x16x128xbf16>
    %203 = vector.shape_cast %202 : vector<16x16x128xbf16> to vector<256x128xbf16>
    %c7_233 = arith.constant 7 : index
    %c0_234 = arith.constant 0 : index
    %c0_235 = arith.constant 0 : index
    %204 = vector.load %arg6[%c7_233, %c0_234, %c0_235] : memref<9x128x64xbf16, #tpu.memory_space<vmem>>, vector<1x128x64xbf16>
    %205 = vector.shape_cast %204 : vector<1x128x64xbf16> to vector<128x64xbf16>
    %cst_236 = arith.constant dense<0.000000e+00> : vector<256x64xf32>
    %206 = tpu.matmul %203, %205, %cst_236 {dimension_numbers = #tpu.dot_dimension_numbers<[1], [0], [0], [1], [0, 0, 1, 1], [], []>} : vector<256x128xbf16>, vector<128x64xbf16>, vector<256x64xf32> -> vector<256x64xf32>
    %207 = arith.addf %201, %206 : vector<256x64xf32>
    %c2_237 = arith.constant 2 : index
    %c2_238 = arith.constant 2 : index
    %c0_239 = arith.constant 0 : index
    %208 = vector.load %arg14[%c2_237, %c2_238, %c0_239] : memref<18x18x128xbf16, #tpu.memory_space<vmem>>, vector<16x16x128xbf16>
    %209 = vector.shape_cast %208 : vector<16x16x128xbf16> to vector<256x128xbf16>
    %c8_240 = arith.constant 8 : index
    %c0_241 = arith.constant 0 : index
    %c0_242 = arith.constant 0 : index
    %210 = vector.load %arg6[%c8_240, %c0_241, %c0_242] : memref<9x128x64xbf16, #tpu.memory_space<vmem>>, vector<1x128x64xbf16>
    %211 = vector.shape_cast %210 : vector<1x128x64xbf16> to vector<128x64xbf16>
    %cst_243 = arith.constant dense<0.000000e+00> : vector<256x64xf32>
    %212 = tpu.matmul %209, %211, %cst_243 {dimension_numbers = #tpu.dot_dimension_numbers<[1], [0], [0], [1], [0, 0, 1, 1], [], []>} : vector<256x128xbf16>, vector<128x64xbf16>, vector<256x64xf32> -> vector<256x64xf32>
    %213 = arith.addf %207, %212 : vector<256x64xf32>
    %c0_244 = arith.constant 0 : index
    %c0_245 = arith.constant 0 : index
    %214 = vector.load %arg7[%c0_244, %c0_245] : memref<1x64xf32, #tpu.memory_space<vmem>>, vector<1x64xf32>
    %215 = vector.broadcast %214 : vector<1x64xf32> to vector<256x64xf32>
    %216 = arith.addf %213, %215 : vector<256x64xf32>
    %cst_246 = arith.constant 0.000000e+00 : f32
    %217 = vector.broadcast %cst_246 : f32 to vector<256x64xf32>
    %218 = arith.maximumf %216, %217 : vector<256x64xf32>
    %219 = arith.addf %80, %218 : vector<256x64xf32>
    %c0_247 = arith.constant 0 : index
    %c0_248 = arith.constant 0 : index
    %220 = vector.load %arg9[%c0_247, %c0_248] : memref<1x64xf32, #tpu.memory_space<vmem>>, vector<1x64xf32>
    %221 = vector.broadcast %220 : vector<1x64xf32> to vector<256x64xf32>
    %222 = arith.mulf %219, %221 : vector<256x64xf32>
    %223 = vector.shape_cast %222 : vector<256x64xf32> to vector<2x128x64xf32>
    %cst_249 = arith.constant dense<0.000000e+00> : vector<2x128xf32>
    %224 = vector.multi_reduction <add>, %223, %cst_249 [2] : vector<2x128x64xf32> to vector<2x128xf32>
    %c0_250 = arith.constant 0 : index
    %c0_251 = arith.constant 0 : index
    %225 = vector.load %arg10[%c0_250, %c0_251] : memref<1x128xf32, #tpu.memory_space<vmem>>, vector<1x128xf32>
    %226 = vector.broadcast %225 : vector<1x128xf32> to vector<2x128xf32>
    %227 = arith.addf %224, %226 : vector<2x128xf32>
    %c0_252 = arith.constant 0 : index
    %c0_253 = arith.constant 0 : index
    %c0_254 = arith.constant 0 : index
    %228 = vector.load %arg11[%c0_252, %c0_253, %c0_254] : memref<1x2x128xf32, #tpu.memory_space<vmem>>, vector<1x2x128xf32>
    %229 = vector.shape_cast %228 : vector<1x2x128xf32> to vector<2x128xf32>
    %230 = vector.shape_cast %227 : vector<2x128xf32> to vector<1x2x128xf32>
    tpu.vector_store %arg11[%c0_252, %c0_253, %c0_254], %230 {strides = array<i32>} : memref<1x2x128xf32, #tpu.memory_space<vmem>>, vector<1x2x128xf32>,
    return
  }
  func.func @transform_0(%arg0: i32) -> (i32, i32, i32, i32) {
    %c0_i32 = arith.constant 0 : i32
    %c0_i32_0 = arith.constant 0 : i32
    %c0_i32_1 = arith.constant 0 : i32
    %c0_i32_2 = arith.constant 0 : i32
    return %arg0, %c0_i32, %c0_i32_0, %c0_i32_1 : i32, i32, i32, i32
  }
  func.func @transform_1(%arg0: i32) -> (i32, i32, i32) {
    %c0_i32 = arith.constant 0 : i32
    %c0_i32_0 = arith.constant 0 : i32
    %c0_i32_1 = arith.constant 0 : i32
    %c0_i32_2 = arith.constant 0 : i32
    return %c0_i32, %c0_i32_0, %c0_i32_1 : i32, i32, i32
  }
  func.func @transform_2(%arg0: i32) -> (i32, i32) {
    %c0_i32 = arith.constant 0 : i32
    %c0_i32_0 = arith.constant 0 : i32
    %c0_i32_1 = arith.constant 0 : i32
    return %c0_i32, %c0_i32_0 : i32, i32
  }
  func.func @transform_3(%arg0: i32) -> (i32, i32, i32) {
    %c0_i32 = arith.constant 0 : i32
    %c0_i32_0 = arith.constant 0 : i32
    %c0_i32_1 = arith.constant 0 : i32
    %c0_i32_2 = arith.constant 0 : i32
    return %c0_i32, %c0_i32_0, %c0_i32_1 : i32, i32, i32
  }
  func.func @transform_4(%arg0: i32) -> (i32, i32) {
    %c0_i32 = arith.constant 0 : i32
    %c0_i32_0 = arith.constant 0 : i32
    %c0_i32_1 = arith.constant 0 : i32
    return %c0_i32, %c0_i32_0 : i32, i32
  }
  func.func @transform_5(%arg0: i32) -> (i32, i32, i32) {
    %c0_i32 = arith.constant 0 : i32
    %c0_i32_0 = arith.constant 0 : i32
    %c0_i32_1 = arith.constant 0 : i32
    %c0_i32_2 = arith.constant 0 : i32
    return %c0_i32, %c0_i32_0, %c0_i32_1 : i32, i32, i32
  }
  func.func @transform_6(%arg0: i32) -> (i32, i32) {
    %c0_i32 = arith.constant 0 : i32
    %c0_i32_0 = arith.constant 0 : i32
    %c0_i32_1 = arith.constant 0 : i32
    return %c0_i32, %c0_i32_0 : i32, i32
  }
  func.func @transform_7(%arg0: i32) -> (i32, i32) {
    %c0_i32 = arith.constant 0 : i32
    %c0_i32_0 = arith.constant 0 : i32
    %c0_i32_1 = arith.constant 0 : i32
    return %c0_i32, %c0_i32_0 : i32, i32
  }
  func.func @transform_8(%arg0: i32) -> (i32, i32) {
    %c0_i32 = arith.constant 0 : i32
    %c0_i32_0 = arith.constant 0 : i32
    %c0_i32_1 = arith.constant 0 : i32
    return %c0_i32, %c0_i32_0 : i32, i32
  }
  func.func @transform_9(%arg0: i32) -> (i32, i32) {
    %c0_i32 = arith.constant 0 : i32
    %c0_i32_0 = arith.constant 0 : i32
    %c0_i32_1 = arith.constant 0 : i32
    return %c0_i32, %c0_i32_0 : i32, i32
  }
  func.func @transform_10(%arg0: i32) -> (i32, i32, i32) {
    %c0_i32 = arith.constant 0 : i32
    %c0_i32_0 = arith.constant 0 : i32
    %c0_i32_1 = arith.constant 0 : i32
    return %arg0, %c0_i32, %c0_i32_0 : i32, i32, i32
  }
}

</mosaic_0001>

<bundles_post_ra>
// kernel: multiscale_cnn_forward.1
= control target key start
LH: loop header
LB: loop body
LE: loop exit
PB: predicated region body
PF: predicated region fallthrough
CT: control target
= control target key end

     0   :  { %15 = vsyncpa [#allocation6], 0  ;;  %s19453_s13 = smov 0   ;;  %s24280_s0 = inlined_call_operand.vmem [shape: bf16[2,16,16,8], index: 0, kind: input, shape index: {}]   ;;  %s24281_s1 = inlined_call_operand.hbm [shape: bf16[9,8,64], index: 1, kind: input, shape index: {}]   ;;  %s24282_s2 = inlined_call_operand.vmem [shape: f32[1,64], index: 2, kind: input, shape index: {}]   ;;  %s24283_s3 = inlined_call_operand.vmem [shape: bf16[9,64,128], index: 3, kind: input, shape index: {}]   ;;  %s24284_s4 = inlined_call_operand.vmem [shape: f32[1,128], index: 4, kind: input, shape index: {}]   ;;  %s24285_s5 = inlined_call_operand.vmem [shape: bf16[9,128,64], index: 5, kind: input, shape index: {}]   ;;  %s24286_s6 = inlined_call_operand.vmem [shape: f32[1,64], index: 6, kind: input, shape index: {}]   ;;  %s24287_s7 = inlined_call_operand.vmem [shape: bf16[256,64], index: 7, kind: input, shape index: {}]   ;;  %s24288_s8 = inlined_call_operand.vmem [shape: f32[1,64], index: 8, kind: input, shape index: {}]   ;;  %s24289_s9 = inlined_call_operand.vmem [shape: f32[1,128], index: 9, kind: input, shape index: {}]   ;;  %s24290_s10 = inlined_call_operand.vmem [shape: f32[2,2,128], index: 10, kind: output, shape index: {}]  }
   0x1 LB: > { %s19459_s14 = sadd.s32 4294967295, %s19391_s13   ;;  %p15747_p0 = scmp.ge.s32.totalorder %s19391_s13, 1  ;;  %s19391_s13 = sphi %s19453_s13, %s21_s13  }
   0x2   : > { %p267_p1 = scmp.lt.s32.totalorder %s19391_s13, 3  ;;  %s19393_s15 = smov [#allocation5]  }
   0x3   : > { %s279_s16 = sshll.u32 %s19393_s15, 4  ;;  %p24291_p3 = scmp.eq.s32.totalorder %s19459_s14, 0  ;;  %s280_s16 = int_to_ptr.vmem [resolvable:$true] %s279_s16 }
   0x4   : > { %p19463_p2 = pnand %p15747_p0, %p267_p1  ;;  %s19353_s21 = scalar_lea.hbm %s24281_s1, 576 }
   0x5   : > { %p19354_p6 = scmp.ne.s32.totalorder %s24281_s1, %s19353_s21  ;;  %p19360_p10 = scmp.lt.u32.totalorder %s19353_s21, %s24281_s1 }
   0x6   : > { %s24370_s17 = scalar_select %p19463_p2, 1, 0 }
   0x7   : > { %p19043_p4 = pneg %p19463_p2 }
   0x9   : > { %p19472_p5 = pnand %p24291_p3, %p19043_p4 }
   0xb   : > { %p19355_p7 = pneg %p19472_p5 }
   0xd   : > { %p19356_p8 = pnand %p19355_p7, %p19354_p6 }
   0xf   : > { %p19357_p9 = pneg %p19356_p8 }
  0x11   : > { %p19362_p11 = pnand %p19360_p10, %p19357_p9 }
  0x13   : > { %19365 = shalt.err (!%p19362_p11)
}
  0x14   : > { %s19366_s26 = scalar_lea.vmem %s280_s16, 576  ;;  %p19374_p1 = scmp.lt.s32.totalorder %s280_s16, %s280_s16 }
  0x15   : > { %p19367_p12 = scmp.ne.s32.totalorder %s280_s16, %s19366_s26  ;;  %p19375_p4 = scmp.lt.s32.totalorder %s19366_s26, %s19366_s26 }
  0x17   : > { %p19369_p13 = pnand %p19367_p12, %p19355_p7  ;;  %p19376_p3 = por %p19375_p4, %p19374_p1 }
  0x19   : > { %p19370_p0 = pneg %p19369_p13 }
  0x1b   : > { %p19377_p2 = pnand %p19376_p3, %p19370_p0 }
  0x1d   : > { %19380 = shalt.err (!%p19377_p2)
}
  0x1e   : > { %s19394_s27 = smov 64   ;;  %s19395_s28 = smov 4  }
  0x1f   : > { %19046 = dma.hbm_to_vmem [thread:$0]  (!%p19472_p5), %s24281_s1, 576, %s280_s16, [#allocation6], %s19394_s27, %s19394_s27, %s19395_s28  }
  0x20   : > { %p24372_p6 = scmp.ne.s32.totalorder %s24370_s17, 0 }
  0x22   : > { %327 = sbr.rel (%p24372_p6) target bundleno = 2719 (0xa9f), region = 60 }
  0x29   : > { %p24373_p8 = scmp.eq.s32.totalorder %s19459_s14, 0 }
  0x2b   : > { %19386 = dma.done.wait (%p24373_p8), [#allocation6], 576   ;;  %p24374_p7 = pmov %p24373_p8 }
  0x2c   : > { %vm374_vm0 = vcmask 60416   ;;  %vm377_vm1 = vcmask 57344   ;;  %v24293_v0 = vmov 0   ;;  %vm384_vm2 = vsmask.f32 256  ;;  %p364_p2 = scmp.lt.s32.totalorder %s19459_s14, 1 }
  0x2d   : > { %19388 = vsyncadd (%p24374_p7), [#allocation6], 4294966720  ;;  %375 = vst.msk [vmem:[#allocation2] sm:$0xf] %vm374_vm0, %v24293_v0  ;;  %19062 = vset.pattern.permute.xlu1 %v24293_v0  ;;  %19063 = vset.pattern.permute.xlu0 %v24293_v0  ;;  %vm440_vm3 = vsmask.f32 7938 }
  0x2e   : > { %376 = vst.msk [vmem:[#allocation2 + $0x4] sm:$0xf] %vm374_vm0, %v24293_v0  ;;  %380 = vst.msk [vmem:[#allocation2 + $0xcc] sm:$0xf] %vm374_vm0, %v24293_v0  ;;  %s24658_s14 = smov (!%p364_p2, %s19459_s14), 1  ;;  %vm1688_vm4 = vcmask 1043456  }
  0x2f   : > { %378 = vst.msk [vmem:[#allocation2 + $0x8] sm:$0x1] %vm377_vm1, %v24293_v0  ;;  %382 = vst.msk [vmem:[#allocation2 + $0xd4] sm:$0x1] %vm377_vm1, %v24293_v0  ;;  %s16950_s11 = sshll.u32 %s24658_s14, 7  ;;  %v24377_v3 = vmov 0 }
  0x30   : > { %381 = vst.msk [vmem:[#allocation2 + $0xd0] sm:$0xf] %vm374_vm0, %v24293_v0  ;;  %566 = vst [vmem:[#allocation4] sm:$0xf] %v24293_v0  ;;  %v1590_v2 = vld [vmem:[#allocation5 + $0x4] sm:$0xf]  ;;  %s19538_s16 = scalar_lea.vmem %s24280_s0, %s16950_s11 }
  0x31   : > { %567 = vst [vmem:[#allocation4 + $0x4] sm:$0xf] %v24293_v0  ;;  %568 = vst [vmem:[#allocation4 + $0x8] sm:$0x1] %v24293_v0  ;;  %v389_v4 = vld [vmem:[#allocation2 + $0xc] sm:$0x1]  ;;  %19030 = vmatprep.subr.msk.bf16.mxu0 %vm1688_vm4, %v1590_v2 }
  0x32   : > { %570 = vst [vmem:[#allocation4 + $0xcc] sm:$0xf] %v24293_v0  ;;  %571 = vst [vmem:[#allocation4 + $0xd0] sm:$0xf] %v24293_v0  ;;  %v1690_v5 = vsel %vm1688_vm4, %v1590_v2, 0  ;;  %v24382_v39 = vmov 0 }
  0x33   : > { %572 = vst [vmem:[#allocation4 + $0xd4] sm:$0x1] %v24293_v0  ;;  %vm19524_vm5 = vmand %vm377_vm1, %vm384_vm2  ;;  %vm1202_vm7 = vsmask.f32 3328  ;;  %vm1203_vm8 = vsmask.f32 7440  ;;  %17517 = vmatpush3.bf16.msra.mxu0 %v1690_v5 }
  0x34   : > { %vm19531_vm6 = vmand %vm377_vm1, %vm440_vm3  ;;  %v386_v6 = vld [vmem:[#allocation2] sm:$0x1]  ;;  %v390_v8 = vsel %vm19524_vm5, 0, %v389_v4  ;;  %v445_v12 = vld [vmem:[#allocation2 + $0x14] sm:$0x1]  ;;  %vm1639_vm13 = vcmask 64512  }
  0x35   : > { %v24378_v3 = vsel %vm19531_vm6, 4294967295, %v24377_v3  ;;  %v387_v9 = vsel %vm19524_vm5, 0, %v386_v6  ;;  %v1154_v11 = vld [vmem:[#allocation2 + $0x4] sm:$0xf]  ;;  %391 = vst [vmem:[#allocation2 + $0xc] sm:$0x1] %v390_v8  ;;  %vm19562_vm10 = vmand %vm374_vm0, %vm440_vm3 }
  0x36   : > { %24379 = vst [vmem:[#allocation8_spill] sm:$0xff] %v24378_v3  ;;  %v442_v7 = vld [vmem:[#allocation2 + $0x8] sm:$0x1]  ;;  %388 = vst [vmem:[#allocation2] sm:$0x1] %v387_v9  ;;  %v1215_v13 = vshll.u32 %v1154_v11, 16 }
  0x37   : > { %v443_v10 = vsel %vm19531_vm6, 0, %v442_v7  ;;  %v1219_v14 = vshrl.u32 %v1154_v11, 16  ;;  %v446_v15 = vsel %vm19531_vm6, 0, %v445_v12  ;;  %v684_v16 = vld [vmem:[%s19538_s16] sm:$0xf]  ;;  %vm19581_vm12 = vmor %vm1202_vm7, %vm1203_vm8  ;;  %vm2193_vm14 = vcmask 1042432  }
  0x38   : > { %444 = vst [vmem:[#allocation2 + $0x8] sm:$0x1] %v443_v10  ;;  %447 = vst [vmem:[#allocation2 + $0x14] sm:$0x1] %v446_v15  ;;  %v685_v17 = vld [vmem:[%s19538_s16 + $0x4] sm:$0xf] }
  0x39   : > { %v719_v18 = vshrl.u32 %v684_v16, 16  ;;  %v722_v19 = vshll.u32 %v684_v16, 16  ;;  %v19552_v20 = vld [vmem:[#allocation5] sm:$0xf]  ;;  %v19554_v21 = vrot.slane %v1215_v13, 5  ;;  %v1221_v22 = vrot.slane %v1219_v14, 4 }
  0x3a   : > { %v727_v23 = vshrl.u32 %v685_v17, 16  ;;  %v730_v24 = vshll.u32 %v685_v17, 16  ;;  %19031 = vmatprep.subr.msk.bf16.mxu0 %vm1688_vm4, %v19552_v20  ;;  %v392_v25 = vld [vmem:[#allocation2 + $0x18] sm:$0x1]  ;;  %vm716_vm9 = vsmask.f32 4368 }
  0x3b   : > { %v721_v26 = vrot.slane %v719_v18, 7  ;;  %v393_v27 = vsel %vm19524_vm5, 0, %v392_v25  ;;  %v448_v28 = vld [vmem:[#allocation2 + $0x20] sm:$0x1]  ;;  %v1222_v30 = vor.u32 %v1221_v22, %v19554_v21  ;;  %v686_v33 = vld [vmem:[%s19538_s16 + $0x8] sm:$0xf]  ;;  %vm19573_vm11 = vmor %vm384_vm2, %vm716_vm9 }
  0x3c   : > { %v729_v31 = vrot.slane %v727_v23, 7  ;;  %394 = vst [vmem:[#allocation2 + $0x18] sm:$0x1] %v393_v27  ;;  %v449_v32 = vsel %vm19531_vm6, 0, %v448_v28  ;;  %v687_v34 = vld [vmem:[%s19538_s16 + $0xc] sm:$0xf] }
  0x3d   : > { %v724_v35 = vor.u32 %v722_v19, %v721_v26  ;;  %v725_v36 = vrot.slane %v721_v26, 4  ;;  %450 = vst [vmem:[#allocation2 + $0x20] sm:$0x1] %v449_v32  ;;  %v736_v37 = vshrl.u32 %v686_v33, 16  ;;  %v739_v38 = vshll.u32 %v686_v33, 16  ;;  %s15754_s25 = sshll.u32 %s24658_s14, 1 }
  0x3e   : > { %v24383_v39 = vsel %vm19573_vm11, 4294967295, %v24382_v39  ;;  %v732_v40 = vor.u32 %v730_v24, %v729_v31  ;;  %v734_v41 = vrot.slane %v729_v31, 4  ;;  %v1041_v42 = vld [vmem:[#allocation2 + $0xc] sm:$0xf]  ;;  %v744_v43 = vshrl.u32 %v687_v34, 16  ;;  %s372_s28 = scalar_lea.vmem %s24290_s10, %s15754_s25 }
  0x3f   : > { %24384 = vst [vmem:[#allocation9_spill] sm:$0xff] %v24383_v39  ;;  %v395_v44 = vld [vmem:[#allocation2 + $0x24] sm:$0x1]  ;;  %v1153_v45 = vld [vmem:[#allocation2] sm:$0xf]  ;;  %v1223_v47 = vrot.slane %v1222_v30, 4  ;;  %v1042_v48 = vsel %vm19562_vm10, %v724_v35, %v1041_v42 }
  0x40   : > { %v1186_v46 = vld [vmem:[#allocation2 + $0x8] sm:$0x1]  ;;  %v738_v49 = vrot.slane %v736_v37, 7  ;;  %v1206_v50 = vshrl.u32 %v1153_v45, 16  ;;  %v1209_v51 = vshll.u32 %v1153_v45, 16  ;;  %v747_v54 = vshll.u32 %v687_v34, 16 }
  0x41   : > { %v1225_v52 = vshll.u32 %v1186_v46, 16  ;;  %1043 = vst [vmem:[#allocation2 + $0xc] sm:$0xf] %v1042_v48  ;;  %v1045_v53 = vld [vmem:[#allocation2 + $0x14] sm:$0x1]  ;;  %v733_v56 = vsel %vm19573_vm11, %v725_v36, %v732_v40  ;;  %v746_v4 = vrot.slane %v744_v43, 7 }
  0x42   : > { %v1046_v57 = vsel %vm19524_vm5, %v734_v41, %v1045_v53  ;;  %v741_v58 = vor.u32 %v739_v38, %v738_v49  ;;  %v742_v59 = vrot.slane %v738_v49, 4  ;;  %v451_v60 = vld [vmem:[#allocation2 + $0x2c] sm:$0x1]  ;;  %v688_v61 = vld [vmem:[%s19538_s16 + $0x10] sm:$0xf]  ;;  %v1208_v62 = vrot.slane %v1206_v50, 4 }
  0x43   : > { %v1211_v63 = vrot.slane %v1209_v51, 5  ;;  %v1227_v2 = vrot.slane %v1225_v52, 5  ;;  %1044 = vst.msk [vmem:[#allocation2 + $0x10] sm:$0xf] %vm374_vm0, %v733_v56  ;;  %1047 = vst [vmem:[#allocation2 + $0x14] sm:$0x1] %v1046_v57  ;;  %v749_v13 = vor.u32 %v747_v54, %v746_v4 }
  0x44   : > { %v689_v5 = vld [vmem:[%s19538_s16 + $0x14] sm:$0xf]  ;;  %v1048_v6 = vld [vmem:[#allocation2 + $0x18] sm:$0xf]  ;;  %v396_v7 = vsel %vm19524_vm5, 0, %v395_v44  ;;  %v452_v8 = vsel %vm19531_vm6, 0, %v451_v60 }
  0x45   : > { %v753_v9 = vshrl.u32 %v688_v61, 16  ;;  %v756_v10 = vshll.u32 %v688_v61, 16  ;;  %v1212_v11 = vor.u32 %v1211_v63, %v1208_v62  ;;  %v1228_v12 = vsel %vm19581_vm12, %v1223_v47, %v1227_v2  ;;  %v1052_v15 = vld [vmem:[#allocation2 + $0x20] sm:$0x1]  ;;  %397 = vst [vmem:[#allocation2 + $0x24] sm:$0x1] %v396_v7 }
  0x46   : > { %v751_v14 = vrot.slane %v746_v4, 4  ;;  %453 = vst [vmem:[#allocation2 + $0x2c] sm:$0x1] %v452_v8  ;;  %v398_v16 = vld [vmem:[#allocation2 + $0x30] sm:$0x1]  ;;  %v1049_v17 = vsel %vm19562_vm10, %v741_v58, %v1048_v6  ;;  %v761_v19 = vshrl.u32 %v689_v5, 16  ;;  %v750_v25 = vsel %vm19573_vm11, %v742_v59, %v749_v13 }
  0x47   : > { %v755_v18 = vrot.slane %v753_v9, 7  ;;  %v764_v22 = vshll.u32 %v689_v5, 16  ;;  %v454_v23 = vld [vmem:[#allocation2 + $0x38] sm:$0x1]  ;;  %v1213_v24 = vrot.slane %v1212_v11, 4  ;;  %v399_v27 = vsel %vm19524_vm5, 0, %v398_v16 }
  0x48   : > { %1050 = vst [vmem:[#allocation2 + $0x18] sm:$0xf] %v1049_v17  ;;  %v1053_v26 = vsel %vm19524_vm5, %v751_v14, %v1052_v15  ;;  %v690_v28 = vld [vmem:[%s19538_s16 + $0x18] sm:$0xf]  ;;  %v19607_v30 = vld [vmem:[#allocation2 + $0xc] sm:$0xf] }
  0x49   : > { %1051 = vst.msk [vmem:[#allocation2 + $0x1c] sm:$0xf] %vm374_vm0, %v750_v25  ;;  %1054 = vst [vmem:[#allocation2 + $0x20] sm:$0x1] %v1053_v26  ;;  %v759_v31 = vrot.slane %v755_v18, 4  ;;  %v763_v32 = vrot.slane %v761_v19, 7  ;;  %v1218_v34 = vsel %vm19581_vm12, %v1213_v24, %v19554_v21  ;;  %v758_v37 = vor.u32 %v756_v10, %v755_v18 }
  0x4a   : > { %400 = vst [vmem:[#allocation2 + $0x30] sm:$0x1] %v399_v27  ;;  %v455_v33 = vsel %vm19531_vm6, 0, %v454_v23  ;;  %v1230_v35 = vshrl.u32 %v19607_v30, 16  ;;  %v1233_v36 = vshll.u32 %v19607_v30, 16  ;;  %v15755_v38 = vcombine.low %v1218_v34, %v1228_v12 }
  0x4b   : > { %456 = vst [vmem:[#allocation2 + $0x38] sm:$0x1] %v455_v33  ;;  %v19617_v40 = vld [vmem:[#allocation2 + $0x10] sm:$0xf]  ;;  %v1187_v41 = vld [vmem:[#allocation2 + $0x14] sm:$0x1]  ;;  %v766_v42 = vor.u32 %v764_v22, %v763_v32 }
  0x4c   : > { %v768_v43 = vrot.slane %v763_v32, 4  ;;  %v770_v44 = vshrl.u32 %v690_v28, 16  ;;  %v1232_v45 = vrot.slane %v1230_v35, 4  ;;  %v1235_v46 = vrot.slane %v1233_v36, 5  ;;  %v691_v21 = vld [vmem:[%s19538_s16 + $0x1c] sm:$0xf]  ;;  %17518 = vmatprep.mubr.msk.bf16.mxu0 %vm1639_vm13, %v15755_v38 }
  0x4d   : > { %v1239_v47 = vshll.u32 %v19617_v40, 16  ;;  %v1243_v48 = vshrl.u32 %v19617_v40, 16  ;;  %v1249_v49 = vshll.u32 %v1187_v41, 16  ;;  %v1982_v50 = vsel %vm1688_vm4, %v19552_v20, 0  ;;  %v1055_v52 = vld [vmem:[#allocation2 + $0x24] sm:$0xf] }
  0x4e   : > { %v767_v51 = vsel %vm19573_vm11, %v759_v31, %v766_v42  ;;  %v773_v53 = vshll.u32 %v690_v28, 16  ;;  %v1236_v54 = vor.u32 %v1235_v46, %v1232_v45  ;;  %v1056_v58 = vsel %vm19562_vm10, %v758_v37, %v1055_v52  ;;  %v1059_v59 = vld [vmem:[#allocation2 + $0x2c] sm:$0x1]  ;;  %v401_v42 = vld [vmem:[#allocation2 + $0x3c] sm:$0x1] }
  0x4f   : > { %v1241_v56 = vrot.slane %v1239_v47, 5  ;;  %v1245_v57 = vrot.slane %v1243_v48, 4  ;;  %1058 = vst.msk [vmem:[#allocation2 + $0x28] sm:$0xf] %vm374_vm0, %v767_v51  ;;  %v1251_v60 = vrot.slane %v1249_v49, 5  ;;  %v1060_v20 = vsel %vm19524_vm5, %v768_v43, %v1059_v59 }
  0x50   : > { %v1157_v61 = vld [vmem:[#allocation2 + $0x18] sm:$0xf]  ;;  %1057 = vst [vmem:[#allocation2 + $0x24] sm:$0xf] %v1056_v58  ;;  %v772_v62 = vrot.slane %v770_v44, 7  ;;  %v778_v63 = vshrl.u32 %v691_v21, 16 }
  0x51   : > { %v1237_v2 = vrot.slane %v1236_v54, 4  ;;  %v1246_v4 = vor.u32 %v1245_v57, %v1241_v56  ;;  %v1158_v5 = vld [vmem:[#allocation2 + $0x1c] sm:$0xf]  ;;  %v1188_v6 = vld [vmem:[#allocation2 + $0x20] sm:$0x1]  ;;  %v1254_v7 = vshrl.u32 %v1157_v61, 16 }
  0x52   : > { %1061 = vst [vmem:[#allocation2 + $0x2c] sm:$0x1] %v1060_v20  ;;  %v1257_v8 = vshll.u32 %v1157_v61, 16  ;;  %v1263_v9 = vshll.u32 %v1158_v5, 16  ;;  %v1267_v10 = vshrl.u32 %v1158_v5, 16  ;;  %v1273_v11 = vshll.u32 %v1188_v6, 16 }
  0x53   : > { %v1242_v12 = vsel %vm19581_vm12, %v1237_v2, %v1241_v56  ;;  %v1247_v13 = vrot.slane %v1246_v4, 4  ;;  %v1256_v14 = vrot.slane %v1254_v7, 4  ;;  %v775_v15 = vor.u32 %v773_v53, %v772_v62  ;;  %v1062_v16 = vld [vmem:[#allocation2 + $0x30] sm:$0xf]  ;;  %v1066_v34 = vld [vmem:[#allocation2 + $0x38] sm:$0x1] }
  0x54   : > { %v1259_v17 = vrot.slane %v1257_v8, 5  ;;  %v1265_v18 = vrot.slane %v1263_v9, 5  ;;  %v1269_v19 = vrot.slane %v1267_v10, 4  ;;  %v1275_v22 = vrot.slane %v1273_v11, 5  ;;  %v457_v43 = vld [vmem:[#allocation2 + $0x44] sm:$0x1] }
  0x55   : > { %v1252_v23 = vsel %vm19581_vm12, %v1247_v13, %v1251_v60  ;;  %v776_v24 = vrot.slane %v772_v62, 4  ;;  %v780_v25 = vrot.slane %v778_v63, 7  ;;  %v781_v26 = vshll.u32 %v691_v21, 16  ;;  %v692_v53 = vld [vmem:[%s19538_s16 + $0x20] sm:$0xf] }
  0x56   : > { %v15756_v27 = vcombine.low %v1242_v12, %v1252_v23  ;;  %v1260_v28 = vor.u32 %v1259_v17, %v1256_v14  ;;  %v1270_v31 = vor.u32 %v1269_v19, %v1265_v18  ;;  %v1160_v32 = vld [vmem:[#allocation2 + $0x28] sm:$0xf]  ;;  %v1063_v33 = vsel %vm19562_vm10, %v775_v15, %v1062_v16  ;;  %v693_v59 = vld [vmem:[%s19538_s16 + $0x24] sm:$0xf]  ;;  %v460_v63 = vld [vmem:[#allocation2 + $0x50] sm:$0x1] }
  0x57   : > { %v1159_v35 = vld [vmem:[#allocation2 + $0x24] sm:$0xf]  ;;  %v1287_v36 = vshll.u32 %v1160_v32, 16  ;;  %v1291_v37 = vshrl.u32 %v1160_v32, 16  ;;  %v783_v38 = vor.u32 %v781_v26, %v780_v25  ;;  %v785_v41 = vrot.slane %v780_v25, 4 }
  0x58   : > { %1064 = vst [vmem:[#allocation2 + $0x30] sm:$0xf] %v1063_v33  ;;  %17519 = vmatmul.mubr.msk.bf16.vlgmr.msra.gmra.mrb[0].mxu0 %vm1639_vm13, %v15756_v27  ;;  %v1261_v44 = vrot.slane %v1260_v28, 4  ;;  %v1271_v45 = vrot.slane %v1270_v31, 4  ;;  %v1278_v47 = vshrl.u32 %v1159_v35, 16  ;;  %v1281_v48 = vshll.u32 %v1159_v35, 16 }
  0x59   : > { %v1189_v46 = vld [vmem:[#allocation2 + $0x2c] sm:$0x1]  ;;  %17551 = vmatpush3.bf16.msra.mxu0 %v1982_v50  ;;  %v1289_v21 = vrot.slane %v1287_v36, 5  ;;  %v1293_v49 = vrot.slane %v1291_v37, 4  ;;  %v784_v52 = vsel %vm19573_vm11, %v776_v24, %v783_v38  ;;  %v1067_v20 = vsel %vm19524_vm5, %v785_v41, %v1066_v34  ;;  %v404_v62 = vld [vmem:[#allocation2 + $0x48] sm:$0x1] }
  0x5a   : > { %v1297_v51 = vshll.u32 %v1189_v46, 16  ;;  %v1266_v54 = vsel %vm19581_vm12, %v1261_v44, %v1265_v18  ;;  %v1276_v56 = vsel %vm19581_vm12, %v1271_v45, %v1275_v22  ;;  %v1280_v57 = vrot.slane %v1278_v47, 4  ;;  %1065 = vst.msk [vmem:[#allocation2 + $0x34] sm:$0xf] %vm374_vm0, %v784_v52  ;;  %1068 = vst [vmem:[#allocation2 + $0x38] sm:$0x1] %v1067_v20 }
  0x5b   : > { %v1283_v58 = vrot.slane %v1281_v48, 5  ;;  %v15757_v60 = vcombine.low %v1266_v54, %v1276_v56  ;;  %v1294_v50 = vor.u32 %v1293_v49, %v1289_v21  ;;  %v402_v4 = vsel %vm19524_vm5, 0, %v401_v42  ;;  %v694_v11 = vld [vmem:[%s19538_s16 + $0x28] sm:$0xf]  ;;  %v695_v26 = vld [vmem:[%s19538_s16 + $0x2c] sm:$0xf] }
  0x5c   : > { %v1299_v61 = vrot.slane %v1297_v51, 5  ;;  %v458_v5 = vsel %vm19531_vm6, 0, %v457_v43  ;;  %v787_v6 = vshrl.u32 %v692_v53, 16  ;;  %403 = vst [vmem:[#allocation2 + $0x3c] sm:$0x1] %v402_v4  ;;  %v790_v8 = vshll.u32 %v692_v53, 16 }
  0x5d   : > { %v1284_v2 = vor.u32 %v1283_v58, %v1280_v57  ;;  %17522 = vmatprep.mubr.msk.bf16.mxu0 %vm1639_vm13, %v15757_v60  ;;  %v1295_v7 = vrot.slane %v1294_v50, 4  ;;  %459 = vst [vmem:[#allocation2 + $0x44] sm:$0x1] %v458_v5  ;;  %v795_v9 = vshrl.u32 %v693_v59, 16  ;;  %v798_v10 = vshll.u32 %v693_v59, 16 }
  0x5e   : > { %v789_v14 = vrot.slane %v787_v6, 7  ;;  %v405_v15 = vsel %vm19524_vm5, 0, %v404_v62  ;;  %v461_v16 = vsel %vm19531_vm6, 0, %v460_v63  ;;  %v804_v27 = vshrl.u32 %v694_v11, 16  ;;  %v407_v41 = vld [vmem:[#allocation2 + $0x54] sm:$0x1] }
  0x5f   : > { %v1285_v12 = vrot.slane %v1284_v2, 4  ;;  %v1161_v13 = vld [vmem:[#allocation2 + $0x30] sm:$0xf]  ;;  %v1300_v17 = vsel %vm19581_vm12, %v1295_v7, %v1299_v61  ;;  %v797_v22 = vrot.slane %v795_v9, 7  ;;  %406 = vst [vmem:[#allocation2 + $0x48] sm:$0x1] %v405_v15 }
  0x60   : > { %v1302_v18 = vshrl.u32 %v1161_v13, 16  ;;  %v1305_v19 = vshll.u32 %v1161_v13, 16  ;;  %462 = vst [vmem:[#allocation2 + $0x50] sm:$0x1] %v461_v16  ;;  %v792_v24 = vor.u32 %v790_v8, %v789_v14  ;;  %v793_v25 = vrot.slane %v789_v14, 4 }
  0x61   : > { %v1290_v23 = vsel %vm19581_vm12, %v1285_v12, %v1289_v21  ;;  %v1162_v31 = vld [vmem:[#allocation2 + $0x34] sm:$0xf]  ;;  %v800_v34 = vor.u32 %v798_v10, %v797_v22  ;;  %v802_v37 = vrot.slane %v797_v22, 4  ;;  %v806_v38 = vrot.slane %v804_v27, 7  ;;  %v1190_v42 = vld [vmem:[#allocation2 + $0x38] sm:$0x1] }
  0x62   : > { %v15758_v28 = vcombine.low %v1290_v23, %v1300_v17  ;;  %v1304_v32 = vrot.slane %v1302_v18, 4  ;;  %v1307_v33 = vrot.slane %v1305_v19, 5  ;;  %v1311_v35 = vshll.u32 %v1162_v31, 16  ;;  %v463_v47 = vld [vmem:[#allocation2 + $0x5c] sm:$0x1] }
  0x63   : > { %v1315_v36 = vshrl.u32 %v1162_v31, 16  ;;  %v801_v44 = vsel %vm19573_vm11, %v793_v25, %v800_v34  ;;  %v807_v45 = vshll.u32 %v694_v11, 16  ;;  %v812_v46 = vshrl.u32 %v695_v26, 16  ;;  %v696_v48 = vld [vmem:[%s19538_s16 + $0x30] sm:$0xf] }
  0x64   : > { %17523 = vmatmul.mubr.msk.bf16.gmra.mrb[4].mxu0 %vm1639_vm13, %v15758_v28  ;;  %v1308_v43 = vor.u32 %v1307_v33, %v1304_v32  ;;  %v1313_v21 = vrot.slane %v1311_v35, 5  ;;  %v1321_v51 = vshll.u32 %v1190_v42, 16  ;;  %v1069_v52 = vld [vmem:[#allocation2 + $0x3c] sm:$0xf]  ;;  %1072 = vst.msk [vmem:[#allocation2 + $0x40] sm:$0xf] %vm374_vm0, %v801_v44 }
  0x65   : > { %v1317_v49 = vrot.slane %v1315_v36, 4  ;;  %v810_v53 = vrot.slane %v806_v38, 4  ;;  %v1070_v56 = vsel %vm19562_vm10, %v792_v24, %v1069_v52  ;;  %v1073_v57 = vld [vmem:[#allocation2 + $0x44] sm:$0x1]  ;;  %v809_v58 = vor.u32 %v807_v45, %v806_v38  ;;  %v697_v60 = vld [vmem:[%s19538_s16 + $0x34] sm:$0xf] }
  0x66   : > { %v1309_v54 = vrot.slane %v1308_v43, 4  ;;  %v814_v59 = vrot.slane %v812_v46, 7  ;;  %v1323_v61 = vrot.slane %v1321_v51, 5  ;;  %1071 = vst [vmem:[#allocation2 + $0x3c] sm:$0xf] %v1070_v56  ;;  %v1074_v20 = vsel %vm19524_vm5, %v802_v37, %v1073_v57 }
  0x67   : > { %v1318_v50 = vor.u32 %v1317_v49, %v1313_v21  ;;  %v815_v62 = vshll.u32 %v695_v26, 16  ;;  %v1076_v63 = vld [vmem:[#allocation2 + $0x48] sm:$0xf]  ;;  %v1080_v2 = vld [vmem:[#allocation2 + $0x50] sm:$0x1]  ;;  %v408_v7 = vsel %vm19524_vm5, 0, %v407_v41 }
  0x68   : > { %v1314_v4 = vsel %vm19581_vm12, %v1309_v54, %v1313_v21  ;;  %1075 = vst [vmem:[#allocation2 + $0x44] sm:$0x1] %v1074_v20  ;;  %v819_v5 = vrot.slane %v814_v59, 4  ;;  %v1077_v6 = vsel %vm19562_vm10, %v809_v58, %v1076_v63  ;;  %v410_v8 = vld [vmem:[#allocation2 + $0x60] sm:$0x1]  ;;  %v464_v12 = vsel %vm19531_vm6, 0, %v463_v47 }
  0x69   : > { %v466_v9 = vld [vmem:[#allocation2 + $0x68] sm:$0x1]  ;;  %v1319_v10 = vrot.slane %v1318_v50, 4  ;;  %v817_v11 = vor.u32 %v815_v62, %v814_v59  ;;  %1078 = vst [vmem:[#allocation2 + $0x48] sm:$0xf] %v1077_v6  ;;  %v821_v13 = vshrl.u32 %v696_v48, 16 }
  0x6a   : > { %409 = vst [vmem:[#allocation2 + $0x54] sm:$0x1] %v408_v7  ;;  %v698_v14 = vld [vmem:[%s19538_s16 + $0x38] sm:$0xf]  ;;  %v1081_v15 = vsel %vm19524_vm5, %v819_v5, %v1080_v2  ;;  %465 = vst [vmem:[#allocation2 + $0x5c] sm:$0x1] %v464_v12 }
  0x6b   : > { %v824_v16 = vshll.u32 %v696_v48, 16  ;;  %v829_v17 = vshrl.u32 %v697_v60, 16  ;;  %v832_v18 = vshll.u32 %v697_v60, 16  ;;  %v1324_v19 = vsel %vm19581_vm12, %v1319_v10, %v1323_v61  ;;  %1082 = vst [vmem:[#allocation2 + $0x50] sm:$0x1] %v1081_v15 }
  0x6c   : > { %v818_v22 = vsel %vm19573_vm11, %v810_v53, %v817_v11  ;;  %v823_v23 = vrot.slane %v821_v13, 7  ;;  %v411_v24 = vsel %vm19524_vm5, 0, %v410_v8  ;;  %v15759_v25 = vcombine.low %v1314_v4, %v1324_v19  ;;  %v1164_v26 = vld [vmem:[#allocation2 + $0x40] sm:$0xf]  ;;  %v699_v48 = vld [vmem:[%s19538_s16 + $0x3c] sm:$0xf] }
  0x6d   : > { %1079 = vst.msk [vmem:[#allocation2 + $0x4c] sm:$0xf] %vm374_vm0, %v818_v22  ;;  %v831_v27 = vrot.slane %v829_v17, 7  ;;  %412 = vst [vmem:[#allocation2 + $0x60] sm:$0x1] %v411_v24  ;;  %v467_v28 = vsel %vm19531_vm6, 0, %v466_v9 }
  0x6e   : > { %v838_v31 = vshrl.u32 %v698_v14, 16  ;;  %v1335_v32 = vshll.u32 %v1164_v26, 16  ;;  %v1339_v33 = vshrl.u32 %v1164_v26, 16  ;;  %v826_v34 = vor.u32 %v824_v16, %v823_v23  ;;  %468 = vst [vmem:[#allocation2 + $0x68] sm:$0x1] %v467_v28  ;;  %17526 = vmatprep.mubr.msk.bf16.mxu0 %vm1639_vm13, %v15759_v25 }
  0x6f   : > { %v827_v35 = vrot.slane %v823_v23, 4  ;;  %v1163_v36 = vld [vmem:[#allocation2 + $0x3c] sm:$0xf]  ;;  %v834_v37 = vor.u32 %v832_v18, %v831_v27  ;;  %v836_v38 = vrot.slane %v831_v27, 4  ;;  %v841_v42 = vshll.u32 %v698_v14, 16 }
  0x70   : > { %v19696_v41 = vrot.slane %v838_v31, 7  ;;  %v1191_v43 = vld [vmem:[#allocation2 + $0x44] sm:$0x1]  ;;  %v1326_v44 = vshrl.u32 %v1163_v36, 16  ;;  %v1329_v45 = vshll.u32 %v1163_v36, 16  ;;  %v1337_v46 = vrot.slane %v1335_v32, 5 }
  0x71   : > { %v1341_v47 = vrot.slane %v1339_v33, 4  ;;  %v1345_v21 = vshll.u32 %v1191_v43, 16  ;;  %v1165_v49 = vld [vmem:[#allocation2 + $0x48] sm:$0xf]  ;;  %v835_v51 = vsel %vm19573_vm11, %v827_v35, %v834_v37  ;;  %v1083_v52 = vld [vmem:[#allocation2 + $0x54] sm:$0xf] }
  0x72   : > { %v843_v53 = vor.u32 %v841_v42, %v19696_v41  ;;  %v844_v54 = vrot.slane %v19696_v41, 4  ;;  %v1328_v56 = vrot.slane %v1326_v44, 4  ;;  %v1331_v57 = vrot.slane %v1329_v45, 5  ;;  %1086 = vst.msk [vmem:[#allocation2 + $0x58] sm:$0xf] %vm374_vm0, %v835_v51 }
  0x73   : > { %v1342_v58 = vor.u32 %v1341_v47, %v1337_v46  ;;  %v1350_v59 = vshrl.u32 %v1165_v49, 16  ;;  %v1087_v60 = vld [vmem:[#allocation2 + $0x5c] sm:$0x1]  ;;  %v1347_v50 = vrot.slane %v1345_v21, 5  ;;  %v1192_v61 = vld [vmem:[#allocation2 + $0x50] sm:$0x1]  ;;  %v1084_v62 = vsel %vm19562_vm10, %v826_v34, %v1083_v52 }
  0x74   : > { %v1353_v20 = vshll.u32 %v1165_v49, 16  ;;  %v1088_v63 = vsel %vm19524_vm5, %v836_v38, %v1087_v60  ;;  %v413_v2 = vld [vmem:[#allocation2 + $0x6c] sm:$0x1]  ;;  %v469_v4 = vld [vmem:[#allocation2 + $0x74] sm:$0x1]  ;;  %v1332_v5 = vor.u32 %v1331_v57, %v1328_v56  ;;  %v1369_v9 = vshll.u32 %v1192_v61, 16 }
  0x75   : > { %v1343_v6 = vrot.slane %v1342_v58, 4  ;;  %v1166_v7 = vld [vmem:[#allocation2 + $0x4c] sm:$0xf]  ;;  %v1352_v8 = vrot.slane %v1350_v59, 4  ;;  %1085 = vst [vmem:[#allocation2 + $0x54] sm:$0xf] %v1084_v62 }
  0x76   : > { %1089 = vst [vmem:[#allocation2 + $0x5c] sm:$0x1] %v1088_v63  ;;  %v1355_v10 = vrot.slane %v1353_v20, 5  ;;  %v1359_v11 = vshll.u32 %v1166_v7, 16  ;;  %v1363_v12 = vshrl.u32 %v1166_v7, 16  ;;  %v846_v13 = vshrl.u32 %v699_v48, 16 }
  0x77   : > { %v1090_v14 = vld [vmem:[#allocation2 + $0x60] sm:$0xf]  ;;  %v1333_v15 = vrot.slane %v1332_v5, 4  ;;  %v1348_v16 = vsel %vm19581_vm12, %v1343_v6, %v1347_v50  ;;  %v1371_v17 = vrot.slane %v1369_v9, 5  ;;  %v849_v18 = vshll.u32 %v699_v48, 16 }
  0x78   : > { %v1356_v19 = vor.u32 %v1355_v10, %v1352_v8  ;;  %v1361_v22 = vrot.slane %v1359_v11, 5  ;;  %v1365_v23 = vrot.slane %v1363_v12, 4  ;;  %v848_v24 = vrot.slane %v846_v13, 7  ;;  %v700_v25 = vld [vmem:[%s19538_s16 + $0x40] sm:$0xf] }
  0x79   : > { %v1338_v26 = vsel %vm19581_vm12, %v1333_v15, %v1337_v46  ;;  %v1091_v27 = vsel %vm19562_vm10, %v843_v53, %v1090_v14  ;;  %v414_v28 = vsel %vm19524_vm5, 0, %v413_v2  ;;  %v470_v31 = vsel %vm19531_vm6, 0, %v469_v4  ;;  %v1168_v35 = vld [vmem:[#allocation2 + $0x58] sm:$0xf]  ;;  %v1094_v42 = vld [vmem:[#allocation2 + $0x68] sm:$0x1] }
  0x7a   : > { %v15760_v32 = vcombine.low %v1338_v26, %v1348_v16  ;;  %v1357_v33 = vrot.slane %v1356_v19, 4  ;;  %v1366_v34 = vor.u32 %v1365_v23, %v1361_v22  ;;  %v851_v36 = vor.u32 %v849_v18, %v848_v24  ;;  %1092 = vst [vmem:[#allocation2 + $0x60] sm:$0xf] %v1091_v27  ;;  %415 = vst [vmem:[#allocation2 + $0x6c] sm:$0x1] %v414_v28 }
  0x7b   : > { %471 = vst [vmem:[#allocation2 + $0x74] sm:$0x1] %v470_v31  ;;  %v1383_v37 = vshll.u32 %v1168_v35, 16  ;;  %v1387_v38 = vshrl.u32 %v1168_v35, 16  ;;  %v853_v41 = vrot.slane %v848_v24, 4  ;;  %v855_v43 = vshrl.u32 %v700_v25, 16 }
  0x7c   : > { %17527 = vmatmul.mubr.msk.bf16.gmra.mrb[8].mxu0 %vm1639_vm13, %v15760_v32  ;;  %v1362_v44 = vsel %vm19581_vm12, %v1357_v33, %v1361_v22  ;;  %v1367_v45 = vrot.slane %v1366_v34, 4  ;;  %v1167_v46 = vld [vmem:[#allocation2 + $0x54] sm:$0xf]  ;;  %v852_v48 = vsel %vm19573_vm11, %v844_v54, %v851_v36  ;;  %v858_v21 = vshll.u32 %v700_v25, 16  ;;  %v701_v56 = vld [vmem:[%s19538_s16 + $0x44] sm:$0xf] }
  0x7d   : > { %v1193_v47 = vld [vmem:[#allocation2 + $0x5c] sm:$0x1]  ;;  %v1374_v49 = vshrl.u32 %v1167_v46, 16  ;;  %v1377_v51 = vshll.u32 %v1167_v46, 16  ;;  %v1385_v52 = vrot.slane %v1383_v37, 5  ;;  %v1389_v53 = vrot.slane %v1387_v38, 4 }
  0x7e   : > { %1093 = vst.msk [vmem:[#allocation2 + $0x64] sm:$0xf] %vm374_vm0, %v852_v48  ;;  %v1372_v57 = vsel %vm19581_vm12, %v1367_v45, %v1371_v17  ;;  %v1393_v58 = vshll.u32 %v1193_v47, 16  ;;  %v1095_v59 = vsel %vm19524_vm5, %v853_v41, %v1094_v42  ;;  %v857_v60 = vrot.slane %v855_v43, 7  ;;  %v416_v62 = vld [vmem:[#allocation2 + $0x78] sm:$0x1] }
  0x7f   : > { %v15761_v50 = vcombine.low %v1362_v44, %v1372_v57  ;;  %v1376_v61 = vrot.slane %v1374_v49, 4  ;;  %v1379_v20 = vrot.slane %v1377_v51, 5  ;;  %v1390_v54 = vor.u32 %v1389_v53, %v1385_v52  ;;  %1096 = vst [vmem:[#allocation2 + $0x68] sm:$0x1] %v1095_v59  ;;  %v472_v6 = vld [vmem:[#allocation2 + $0x80] sm:$0x1] }
  0x80   : > { %v1395_v63 = vrot.slane %v1393_v58, 5  ;;  %v860_v2 = vor.u32 %v858_v21, %v857_v60  ;;  %v861_v4 = vrot.slane %v857_v60, 4  ;;  %v863_v5 = vshrl.u32 %v701_v56, 16  ;;  %v702_v17 = vld [vmem:[%s19538_s16 + $0x48] sm:$0xf] }
  0x81   : > { %17530 = vmatprep.mubr.msk.bf16.mxu0 %vm1639_vm13, %v15761_v50  ;;  %v1380_v7 = vor.u32 %v1379_v20, %v1376_v61  ;;  %v1391_v8 = vrot.slane %v1390_v54, 4  ;;  %v1169_v9 = vld [vmem:[#allocation2 + $0x60] sm:$0xf]  ;;  %v866_v10 = vshll.u32 %v701_v56, 16  ;;  %v1097_v11 = vld [vmem:[#allocation2 + $0x6c] sm:$0xf]  ;;  %v15788_v12 = vcombine.low %v19607_v30, %v19617_v40 }
  0x82   : > { %v1398_v13 = vshrl.u32 %v1169_v9, 16  ;;  %v1401_v14 = vshll.u32 %v1169_v9, 16  ;;  %v865_v15 = vrot.slane %v863_v5, 7  ;;  %v1098_v16 = vsel %vm19562_vm10, %v860_v2, %v1097_v11  ;;  %v1101_v22 = vld [vmem:[#allocation2 + $0x74] sm:$0x1] }
  0x83   : > { %v1381_v18 = vrot.slane %v1380_v7, 4  ;;  %v1396_v19 = vsel %vm19581_vm12, %v1391_v8, %v1395_v63  ;;  %1099 = vst [vmem:[#allocation2 + $0x6c] sm:$0xf] %v1098_v16  ;;  %v417_v23 = vsel %vm19524_vm5, 0, %v416_v62  ;;  %v473_v24 = vsel %vm19531_vm6, 0, %v472_v6 }
  0x84   : > { %v1400_v26 = vrot.slane %v1398_v13, 4  ;;  %v1403_v27 = vrot.slane %v1401_v14, 5  ;;  %v868_v28 = vor.u32 %v866_v10, %v865_v15  ;;  %v870_v31 = vrot.slane %v865_v15, 4  ;;  %418 = vst [vmem:[#allocation2 + $0x78] sm:$0x1] %v417_v23 }
  0x85   : > { %v19742_v25 = vld [vmem:[#allocation2 + $0x64] sm:$0xf]  ;;  %474 = vst [vmem:[#allocation2 + $0x80] sm:$0x1] %v473_v24  ;;  %v1386_v32 = vsel %vm19581_vm12, %v1381_v18, %v1385_v52  ;;  %v703_v35 = vld [vmem:[%s19538_s16 + $0x4c] sm:$0xf] }
  0x86   : > { %v1407_v33 = vshll.u32 %v19742_v25, 16  ;;  %v1411_v34 = vshrl.u32 %v19742_v25, 16  ;;  %v872_v36 = vshrl.u32 %v702_v17, 16  ;;  %v15762_v37 = vcombine.low %v1386_v32, %v1396_v19  ;;  %v1194_v38 = vld [vmem:[#allocation2 + $0x68] sm:$0x1] }
  0x87   : > { %v1404_v41 = vor.u32 %v1403_v27, %v1400_v26  ;;  %v869_v42 = vsel %vm19573_vm11, %v861_v4, %v868_v28  ;;  %v1102_v43 = vsel %vm19524_vm5, %v870_v31, %v1101_v22  ;;  %v419_v44 = vld [vmem:[#allocation2 + $0x84] sm:$0x1]  ;;  %v19753_v45 = vld [vmem:[#allocation5 + $0x8] sm:$0xf]  ;;  %v1417_v48 = vshll.u32 %v1194_v38, 16 }
  0x88   : > { %v1409_v46 = vrot.slane %v1407_v33, 5  ;;  %v1413_v47 = vrot.slane %v1411_v34, 4  ;;  %1100 = vst.msk [vmem:[#allocation2 + $0x70] sm:$0xf] %vm374_vm0, %v869_v42  ;;  %1103 = vst [vmem:[#allocation2 + $0x74] sm:$0x1] %v1102_v43  ;;  %19032 = vmatprep.subr.msk.bf16.mxu0 %vm1688_vm4, %v19753_v45  ;;  %17531 = vmatmul.mubr.msk.bf16.gmra.mrb[12].mxu0 %vm1639_vm13, %v15762_v37 }
  0x89   : > { %v874_v21 = vrot.slane %v872_v36, 7  ;;  %v475_v49 = vld [vmem:[#allocation2 + $0x8c] sm:$0x1]  ;;  %v1405_v51 = vrot.slane %v1404_v41, 4  ;;  %v875_v52 = vshll.u32 %v702_v17, 16  ;;  %v880_v53 = vshrl.u32 %v703_v35, 16 }
  0x8a   : > { %v883_v56 = vshll.u32 %v703_v35, 16  ;;  %v704_v57 = vld [vmem:[%s19538_s16 + $0x50] sm:$0xf]  ;;  %v1414_v58 = vor.u32 %v1413_v47, %v1409_v46  ;;  %v1419_v59 = vrot.slane %v1417_v48, 5  ;;  %v420_v50 = vsel %vm19524_vm5, 0, %v419_v44 }
  0x8b   : > { %v878_v60 = vrot.slane %v874_v21, 4  ;;  %v705_v61 = vld [vmem:[%s19538_s16 + $0x54] sm:$0xf]  ;;  %v1410_v20 = vsel %vm19581_vm12, %v1405_v51, %v1409_v46  ;;  %v19765_v54 = vld [vmem:[#allocation2 + $0x6c] sm:$0xf]  ;;  %v877_v62 = vor.u32 %v875_v52, %v874_v21  ;;  %v882_v63 = vrot.slane %v880_v53, 7 }
  0x8c   : > { %421 = vst [vmem:[#allocation2 + $0x84] sm:$0x1] %v420_v50  ;;  %v476_v2 = vsel %vm19531_vm6, 0, %v475_v49  ;;  %v1415_v4 = vrot.slane %v1414_v58, 4  ;;  %v1422_v5 = vshrl.u32 %v19765_v54, 16  ;;  %v1425_v6 = vshll.u32 %v19765_v54, 16 }
  0x8d   : > { %v1104_v7 = vld [vmem:[#allocation2 + $0x78] sm:$0xf]  ;;  %477 = vst [vmem:[#allocation2 + $0x8c] sm:$0x1] %v476_v2  ;;  %v889_v8 = vshrl.u32 %v704_v57, 16  ;;  %v885_v9 = vor.u32 %v883_v56, %v882_v63  ;;  %v887_v10 = vrot.slane %v882_v63, 4 }
  0x8e   : > { %v1105_v11 = vsel %vm19562_vm10, %v877_v62, %v1104_v7  ;;  %v1108_v13 = vld [vmem:[#allocation2 + $0x80] sm:$0x1]  ;;  %v892_v14 = vshll.u32 %v704_v57, 16  ;;  %v1420_v15 = vsel %vm19581_vm12, %v1415_v4, %v1419_v59  ;;  %v1424_v16 = vrot.slane %v1422_v5, 4  ;;  %v422_v19 = vld [vmem:[#allocation2 + $0x90] sm:$0x1] }
  0x8f   : > { %v1427_v17 = vrot.slane %v1425_v6, 5  ;;  %1106 = vst [vmem:[#allocation2 + $0x78] sm:$0xf] %v1105_v11  ;;  %v891_v18 = vrot.slane %v889_v8, 7  ;;  %v15763_v22 = vcombine.low %v1410_v20, %v1420_v15  ;;  %v19775_v23 = vld [vmem:[#allocation2 + $0x70] sm:$0xf]  ;;  %v886_v26 = vsel %vm19573_vm11, %v878_v60, %v885_v9 }
  0x90   : > { %v1195_v24 = vld [vmem:[#allocation2 + $0x74] sm:$0x1]  ;;  %v1109_v27 = vsel %vm19524_vm5, %v887_v10, %v1108_v13  ;;  %v897_v28 = vshrl.u32 %v705_v61, 16  ;;  %v478_v31 = vld [vmem:[#allocation2 + $0x98] sm:$0x1]  ;;  %v1431_v33 = vshll.u32 %v19775_v23, 16 }
  0x91   : > { %v1428_v32 = vor.u32 %v1427_v17, %v1424_v16  ;;  %v1435_v34 = vshrl.u32 %v19775_v23, 16  ;;  %v1441_v35 = vshll.u32 %v1195_v24, 16  ;;  %1107 = vst.msk [vmem:[#allocation2 + $0x7c] sm:$0xf] %vm374_vm0, %v886_v26  ;;  %1110 = vst [vmem:[#allocation2 + $0x80] sm:$0x1] %v1109_v27  ;;  %17534 = vmatprep.mubr.msk.bf16.mxu0 %vm1639_vm13, %v15763_v22  ;;  %v894_v37 = vor.u32 %v892_v14, %v891_v18 }
  0x92   : > { %v706_v36 = vld [vmem:[%s19538_s16 + $0x58] sm:$0xf]  ;;  %v895_v38 = vrot.slane %v891_v18, 4  ;;  %v899_v41 = vrot.slane %v897_v28, 7  ;;  %v900_v42 = vshll.u32 %v705_v61, 16  ;;  %v1433_v46 = vrot.slane %v1431_v33, 5 }
  0x93   : > { %v707_v43 = vld [vmem:[%s19538_s16 + $0x5c] sm:$0xf]  ;;  %v1429_v44 = vrot.slane %v1428_v32, 4  ;;  %v1437_v47 = vrot.slane %v1435_v34, 4  ;;  %v1443_v48 = vrot.slane %v1441_v35, 5  ;;  %v423_v56 = vsel %vm19524_vm5, 0, %v422_v19 }
  0x94   : > { %v1111_v21 = vld [vmem:[#allocation2 + $0x84] sm:$0xf]  ;;  %v902_v49 = vor.u32 %v900_v42, %v899_v41  ;;  %v904_v51 = vrot.slane %v899_v41, 4  ;;  %v1115_v53 = vld [vmem:[#allocation2 + $0x8c] sm:$0x1]  ;;  %v479_v59 = vsel %vm19531_vm6, 0, %v478_v31 }
  0x95   : > { %v1112_v52 = vsel %vm19562_vm10, %v894_v37, %v1111_v21  ;;  %v1434_v57 = vsel %vm19581_vm12, %v1429_v44, %v1433_v46  ;;  %v1438_v58 = vor.u32 %v1437_v47, %v1433_v46  ;;  %424 = vst [vmem:[#allocation2 + $0x90] sm:$0x1] %v423_v56  ;;  %v906_v60 = vshrl.u32 %v706_v36, 16  ;;  %480 = vst [vmem:[#allocation2 + $0x98] sm:$0x1] %v479_v59 }
  0x96   : > { %1113 = vst [vmem:[#allocation2 + $0x84] sm:$0xf] %v1112_v52  ;;  %v19795_v50 = vld [vmem:[#allocation2 + $0x78] sm:$0xf]  ;;  %v903_v61 = vsel %vm19573_vm11, %v895_v38, %v902_v49  ;;  %v1116_v20 = vsel %vm19524_vm5, %v904_v51, %v1115_v53  ;;  %v909_v62 = vshll.u32 %v706_v36, 16  ;;  %v914_v63 = vshrl.u32 %v707_v43, 16 }
  0x97   : > { %v1439_v2 = vrot.slane %v1438_v58, 4  ;;  %v1446_v4 = vshrl.u32 %v19795_v50, 16  ;;  %v1449_v5 = vshll.u32 %v19795_v50, 16  ;;  %1114 = vst.msk [vmem:[#allocation2 + $0x88] sm:$0xf] %vm374_vm0, %v903_v61  ;;  %v908_v6 = vrot.slane %v906_v60, 7 }
  0x98   : > { %1117 = vst [vmem:[#allocation2 + $0x8c] sm:$0x1] %v1116_v20  ;;  %v19804_v7 = vld [vmem:[#allocation2 + $0x7c] sm:$0xf]  ;;  %v19806_v8 = vld [vmem:[#allocation2 + $0x80] sm:$0x1] }
  0x99   : > { %v916_v9 = vrot.slane %v914_v63, 7  ;;  %v917_v10 = vshll.u32 %v707_v43, 16  ;;  %v1444_v11 = vsel %vm19581_vm12, %v1439_v2, %v1443_v48  ;;  %v1448_v13 = vrot.slane %v1446_v4, 4  ;;  %v425_v16 = vld [vmem:[#allocation2 + $0x9c] sm:$0x1] }
  0x9a   : > { %v1451_v14 = vrot.slane %v1449_v5, 5  ;;  %v1455_v15 = vshll.u32 %v19804_v7, 16  ;;  %v15764_v17 = vcombine.low %v1434_v57, %v1444_v11  ;;  %v1459_v18 = vshrl.u32 %v19804_v7, 16  ;;  %v481_v36 = vld [vmem:[#allocation2 + $0xa4] sm:$0x1] }
  0x9b   : > { %v1465_v19 = vshll.u32 %v19806_v8, 16  ;;  %v911_v22 = vor.u32 %v909_v62, %v908_v6  ;;  %v912_v27 = vrot.slane %v908_v6, 4  ;;  %v919_v28 = vor.u32 %v917_v10, %v916_v9  ;;  %v708_v37 = vld [vmem:[%s19538_s16 + $0x60] sm:$0xf]  ;;  %v709_v51 = vld [vmem:[%s19538_s16 + $0x64] sm:$0xf] }
  0x9c   : > { %v1452_v24 = vor.u32 %v1451_v14, %v1448_v13  ;;  %v1457_v26 = vrot.slane %v1455_v15, 5  ;;  %17535 = vmatmul.mubr.msk.bf16.gmra.mrb[16].mxu0 %vm1639_vm13, %v15764_v17  ;;  %v1461_v31 = vrot.slane %v1459_v18, 4  ;;  %v921_v34 = vrot.slane %v916_v9, 4  ;;  %v1118_v44 = vld [vmem:[#allocation2 + $0x90] sm:$0xf] }
  0x9d   : > { %v1467_v32 = vrot.slane %v1465_v19, 5  ;;  %v19814_v33 = vld [vmem:[#allocation2 + $0x84] sm:$0xf]  ;;  %v426_v35 = vsel %vm19524_vm5, 0, %v425_v16  ;;  %v920_v43 = vsel %vm19573_vm11, %v912_v27, %v919_v28  ;;  %v1119_v21 = vsel %vm19562_vm10, %v911_v22, %v1118_v44  ;;  %v1122_v49 = vld [vmem:[#allocation2 + $0x98] sm:$0x1] }
  0x9e   : > { %v1453_v38 = vrot.slane %v1452_v24, 4  ;;  %v1470_v41 = vshrl.u32 %v19814_v33, 16  ;;  %v1473_v42 = vshll.u32 %v19814_v33, 16  ;;  %427 = vst [vmem:[#allocation2 + $0x9c] sm:$0x1] %v426_v35  ;;  %v1462_v46 = vor.u32 %v1461_v31, %v1457_v26 }
  0x9f   : > { %v19823_v47 = vld [vmem:[#allocation2 + $0x88] sm:$0xf]  ;;  %v19825_v48 = vld [vmem:[#allocation2 + $0x8c] sm:$0x1]  ;;  %1121 = vst.msk [vmem:[#allocation2 + $0x94] sm:$0xf] %vm374_vm0, %v920_v43  ;;  %v1123_v20 = vsel %vm19524_vm5, %v921_v34, %v1122_v49 }
  0xa0   : > { %v1458_v52 = vsel %vm19581_vm12, %v1453_v38, %v1457_v26  ;;  %v1472_v53 = vrot.slane %v1470_v41, 4  ;;  %v1475_v56 = vrot.slane %v1473_v42, 5  ;;  %v1479_v57 = vshll.u32 %v19823_v47, 16  ;;  %1120 = vst [vmem:[#allocation2 + $0x90] sm:$0xf] %v1119_v21 }
  0xa1   : > { %v428_v58 = vld [vmem:[#allocation2 + $0xa8] sm:$0x1]  ;;  %v1463_v59 = vrot.slane %v1462_v46, 4  ;;  %v1483_v60 = vshrl.u32 %v19823_v47, 16  ;;  %v1489_v61 = vshll.u32 %v19825_v48, 16  ;;  %v482_v2 = vsel %vm19531_vm6, 0, %v481_v36 }
  0xa2   : > { %v1476_v62 = vor.u32 %v1475_v56, %v1472_v53  ;;  %v1481_v63 = vrot.slane %v1479_v57, 5  ;;  %1124 = vst [vmem:[#allocation2 + $0x98] sm:$0x1] %v1123_v20  ;;  %v923_v4 = vshrl.u32 %v708_v37, 16  ;;  %v484_v5 = vld [vmem:[#allocation2 + $0xb0] sm:$0x1] }
  0xa3   : > { %v1468_v6 = vsel %vm19581_vm12, %v1463_v59, %v1467_v32  ;;  %v1485_v9 = vrot.slane %v1483_v60, 4  ;;  %v1491_v10 = vrot.slane %v1489_v61, 5  ;;  %483 = vst [vmem:[#allocation2 + $0xa4] sm:$0x1] %v482_v2  ;;  %v926_v11 = vshll.u32 %v708_v37, 16 }
  0xa4   : > { %v710_v13 = vld [vmem:[%s19538_s16 + $0x68] sm:$0xf]  ;;  %v15765_v14 = vcombine.low %v1458_v52, %v1468_v6  ;;  %v1477_v15 = vrot.slane %v1476_v62, 4  ;;  %v925_v16 = vrot.slane %v923_v4, 7  ;;  %v931_v17 = vshrl.u32 %v709_v51, 16 }
  0xa5   : > { %v1486_v18 = vor.u32 %v1485_v9, %v1481_v63  ;;  %v934_v19 = vshll.u32 %v709_v51, 16  ;;  %v1125_v22 = vld [vmem:[#allocation2 + $0x9c] sm:$0xf]  ;;  %v429_v24 = vsel %vm19524_vm5, 0, %v428_v58  ;;  %v485_v26 = vsel %vm19531_vm6, 0, %v484_v5 }
  0xa6   : > { %17538 = vmatprep.mubr.msk.bf16.mxu0 %vm1639_vm13, %v15765_v14  ;;  %v1482_v27 = vsel %vm19581_vm12, %v1477_v15, %v1481_v63  ;;  %v19850_v28 = vld [vmem:[#allocation2 + $0x94] sm:$0xf]  ;;  %v928_v31 = vor.u32 %v926_v11, %v925_v16  ;;  %v929_v32 = vrot.slane %v925_v16, 4  ;;  %v933_v34 = vrot.slane %v931_v17, 7  ;;  %430 = vst [vmem:[#allocation2 + $0xa8] sm:$0x1] %v429_v24 }
  0xa7   : > { %486 = vst [vmem:[#allocation2 + $0xb0] sm:$0x1] %v485_v26  ;;  %v1487_v35 = vrot.slane %v1486_v18, 4  ;;  %v19852_v36 = vld [vmem:[#allocation2 + $0x90] sm:$0xf]  ;;  %v1503_v37 = vshll.u32 %v19850_v28, 16 }
  0xa8   : > { %v1507_v38 = vshrl.u32 %v19850_v28, 16  ;;  %v711_v41 = vld [vmem:[%s19538_s16 + $0x6c] sm:$0xf]  ;;  %v940_v42 = vshrl.u32 %v710_v13, 16  ;;  %v1494_v43 = vshrl.u32 %v19852_v36, 16  ;;  %v1497_v44 = vshll.u32 %v19852_v36, 16 }
  0xa9   : > { %v936_v46 = vor.u32 %v934_v19, %v933_v34  ;;  %v938_v21 = vrot.slane %v933_v34, 4  ;;  %v431_v49 = vld [vmem:[#allocation2 + $0xb4] sm:$0x1]  ;;  %v1492_v51 = vsel %vm19581_vm12, %v1487_v35, %v1491_v10  ;;  %v19861_v52 = vld [vmem:[#allocation2 + $0x98] sm:$0x1]  ;;  %v1505_v53 = vrot.slane %v1503_v37, 5 }
  0xaa   : > { %v1509_v56 = vrot.slane %v1507_v38, 4  ;;  %v1126_v57 = vsel %vm19562_vm10, %v928_v31, %v1125_v22  ;;  %v487_v58 = vld [vmem:[#allocation2 + $0xbc] sm:$0x1]  ;;  %v15766_v59 = vcombine.low %v1482_v27, %v1492_v51  ;;  %v1496_v60 = vrot.slane %v1494_v43, 4  ;;  %v1129_v62 = vld [vmem:[#allocation2 + $0xa4] sm:$0x1] }
  0xab   : > { %v1499_v61 = vrot.slane %v1497_v44, 5  ;;  %v1513_v20 = vshll.u32 %v19861_v52, 16  ;;  %1127 = vst [vmem:[#allocation2 + $0x9c] sm:$0xf] %v1126_v57  ;;  %v937_v2 = vsel %vm19573_vm11, %v929_v32, %v936_v46  ;;  %v1130_v4 = vsel %vm19524_vm5, %v938_v21, %v1129_v62  ;;  %v712_v6 = vld [vmem:[%s19538_s16 + $0x70] sm:$0xf] }
  0xac   : > { %v1510_v63 = vor.u32 %v1509_v56, %v1505_v53  ;;  %v942_v5 = vrot.slane %v940_v42, 7  ;;  %v713_v9 = vld [vmem:[%s19538_s16 + $0x74] sm:$0xf]  ;;  %17539 = vmatmul.mubr.msk.bf16.gmra.mrb[20].mxu0 %vm1639_vm13, %v15766_v59  ;;  %1128 = vst.msk [vmem:[#allocation2 + $0xa0] sm:$0xf] %vm374_vm0, %v937_v2  ;;  %v943_v14 = vshll.u32 %v710_v13, 16 }
  0xad   : > { %v1500_v10 = vor.u32 %v1499_v61, %v1496_v60  ;;  %v1515_v11 = vrot.slane %v1513_v20, 5  ;;  %1131 = vst [vmem:[#allocation2 + $0xa4] sm:$0x1] %v1130_v4  ;;  %v948_v15 = vshrl.u32 %v711_v41, 16  ;;  %v951_v18 = vshll.u32 %v711_v41, 16 }
  0xae   : > { %v1511_v16 = vrot.slane %v1510_v63, 4  ;;  %v946_v17 = vrot.slane %v942_v5, 4  ;;  %v1132_v19 = vld [vmem:[#allocation2 + $0xa8] sm:$0xf]  ;;  %v432_v22 = vsel %vm19524_vm5, 0, %v431_v49  ;;  %v945_v26 = vor.u32 %v943_v14, %v942_v5 }
  0xaf   : > { %v1501_v24 = vrot.slane %v1500_v10, 4  ;;  %v950_v27 = vrot.slane %v948_v15, 7  ;;  %v1136_v31 = vld [vmem:[#allocation2 + $0xb0] sm:$0x1]  ;;  %433 = vst [vmem:[#allocation2 + $0xb4] sm:$0x1] %v432_v22 }
  0xb0   : > { %v488_v32 = vsel %vm19531_vm6, 0, %v487_v58  ;;  %v1516_v34 = vsel %vm19581_vm12, %v1511_v16, %v1515_v11  ;;  %v957_v13 = vshrl.u32 %v712_v6, 16  ;;  %v960_v35 = vshll.u32 %v712_v6, 16 }
  0xb1   : > { %489 = vst [vmem:[#allocation2 + $0xbc] sm:$0x1] %v488_v32  ;;  %v965_v37 = vshrl.u32 %v713_v9, 16  ;;  %v1506_v38 = vsel %vm19581_vm12, %v1501_v24, %v1505_v53  ;;  %v953_v41 = vor.u32 %v951_v18, %v950_v27  ;;  %v955_v42 = vrot.slane %v950_v27, 4 }
  0xb2   : > { %v1133_v43 = vsel %vm19562_vm10, %v945_v26, %v1132_v19  ;;  %v15767_v44 = vcombine.low %v1506_v38, %v1516_v34  ;;  %v19884_v46 = vld [vmem:[#allocation2 + $0x9c] sm:$0xf]  ;;  %v959_v21 = vrot.slane %v957_v13, 7  ;;  %v968_v51 = vshll.u32 %v713_v9, 16  ;;  %v19906_v19 = vld [vmem:[#allocation2 + $0x10] sm:$0xf] }
  0xb3   : > { %1134 = vst [vmem:[#allocation2 + $0xa8] sm:$0xf] %v1133_v43  ;;  %v967_v49 = vrot.slane %v965_v37, 7  ;;  %v1518_v56 = vshrl.u32 %v19884_v46, 16  ;;  %v1521_v57 = vshll.u32 %v19884_v46, 16  ;;  %v954_v58 = vsel %vm19573_vm11, %v946_v17, %v953_v41 }
  0xb4   : > { %v1137_v53 = vsel %vm19524_vm5, %v955_v42, %v1136_v31  ;;  %17542 = vmatprep.mubr.msk.bf16.mxu0 %vm1639_vm13, %v15767_v44  ;;  %v19893_v59 = vld [vmem:[#allocation2 + $0xa0] sm:$0xf]  ;;  %v19895_v60 = vld [vmem:[#allocation2 + $0xa4] sm:$0x1]  ;;  %1135 = vst.msk [vmem:[#allocation2 + $0xac] sm:$0xf] %vm374_vm0, %v954_v58  ;;  %v962_v61 = vor.u32 %v960_v35, %v959_v21  ;;  %v15796_v34 = vcombine.low %v19765_v54, %v19775_v23 }
  0xb5   : > { %1138 = vst [vmem:[#allocation2 + $0xb0] sm:$0x1] %v1137_v53  ;;  %v963_v20 = vrot.slane %v959_v21, 4  ;;  %v970_v62 = vor.u32 %v968_v51, %v967_v49  ;;  %v972_v63 = vrot.slane %v967_v49, 4  ;;  %v1520_v2 = vrot.slane %v1518_v56, 4 }
  0xb6   : > { %v1523_v4 = vrot.slane %v1521_v57, 5  ;;  %v1527_v5 = vshll.u32 %v19893_v59, 16  ;;  %v1531_v6 = vshrl.u32 %v19893_v59, 16  ;;  %v1537_v9 = vshll.u32 %v19895_v60, 16  ;;  %v1139_v11 = vld [vmem:[#allocation2 + $0xb4] sm:$0xf] }
  0xb7   : > { %v971_v10 = vsel %vm19573_vm11, %v963_v20, %v970_v62  ;;  %v1140_v17 = vsel %vm19562_vm10, %v962_v61, %v1139_v11  ;;  %v2205_v22 = vrot.slane %v19906_v19, 5  ;;  %v15797_v13 = vcombine.low %v19795_v50, %v19804_v7  ;;  %v19282_v42 = vld [vmem:[#allocation2 + $0x14] sm:$0x1]  ;;  %v19981_v19 = vld [vmem:[#allocation2 + $0x4] sm:$0xf] }
  0xb8   : > { %v1524_v14 = vor.u32 %v1523_v4, %v1520_v2  ;;  %v1529_v15 = vrot.slane %v1527_v5, 5  ;;  %v1533_v16 = vrot.slane %v1531_v6, 4  ;;  %1142 = vst.msk [vmem:[#allocation2 + $0xb8] sm:$0xf] %vm374_vm0, %v971_v10  ;;  %v1143_v18 = vld [vmem:[#allocation2 + $0xbc] sm:$0x1]  ;;  %v15798_v38 = vcombine.low %v19814_v33, %v19823_v47 }
  0xb9   : > { %v1539_v24 = vrot.slane %v1537_v9, 5  ;;  %1141 = vst [vmem:[#allocation2 + $0xb4] sm:$0xf] %v1140_v17  ;;  %v1144_v26 = vsel %vm19524_vm5, %v972_v63, %v1143_v18  ;;  %v15799_v41 = vcombine.low %v19852_v36, %v19850_v28  ;;  %v2208_v43 = vrot.slane %v19282_v42, 5  ;;  %v2146_v10 = vld [vmem:[#allocation2 + $0xc] sm:$0xe] }
  0xba   : > { %v1525_v27 = vrot.slane %v1524_v14, 4  ;;  %v1534_v31 = vor.u32 %v1533_v16, %v1529_v15  ;;  %v19911_v32 = vld [vmem:[#allocation2 + $0xa8] sm:$0xf]  ;;  %1145 = vst [vmem:[#allocation2 + $0xbc] sm:$0x1] %v1144_v26  ;;  %v15800_v56 = vcombine.low %v19884_v46, %v19893_v59  ;;  %vm2194_vm15 = vcmask 1046532  }
  0xbb   : > { %v1542_v35 = vshrl.u32 %v19911_v32, 16  ;;  %v1545_v37 = vshll.u32 %v19911_v32, 16  ;;  %v19925_v49 = vld [vmem:[#allocation2 + $0xac] sm:$0xf]  ;;  %vm19956_vm1 = vmor %vm2193_vm14, %vm2194_vm15  ;;  %v2271_v30 = vrot.slane %v19806_v8, 5  ;;  %v2198_v54 = vrot.slane %v19981_v19, 5 }
  0xbc   : > { %v1530_v44 = vsel %vm19581_vm12, %v1525_v27, %v1529_v15  ;;  %v1535_v21 = vrot.slane %v1534_v31, 4  ;;  %v19927_v51 = vld [vmem:[#allocation2 + $0xb0] sm:$0x1]  ;;  %v1551_v53 = vshll.u32 %v19925_v49, 16  ;;  %v1555_v61 = vshrl.u32 %v19925_v49, 16 }
  0xbd   : > { %v1544_v57 = vrot.slane %v1542_v35, 4  ;;  %v1547_v58 = vrot.slane %v1545_v37, 5  ;;  %v1561_v62 = vshll.u32 %v19927_v51, 16  ;;  %v15801_v63 = vcombine.low %v19911_v32, %v19925_v49  ;;  %v2159_v40 = vld [vmem:[#allocation2 + $0xa8] sm:$0xe] }
  0xbe   : > { %v1540_v20 = vsel %vm19581_vm12, %v1535_v21, %v1539_v24  ;;  %v1553_v5 = vrot.slane %v1551_v53, 5  ;;  %v1557_v6 = vrot.slane %v1555_v61, 4  ;;  %v19298_v50 = vld [vmem:[#allocation2 + $0x8] sm:$0x1]  ;;  %v2200_v33 = vrot.slane %v2198_v54, 4 }
  0xbf   : > { %v15768_v2 = vcombine.low %v1530_v44, %v1540_v20  ;;  %v1548_v4 = vor.u32 %v1547_v58, %v1544_v57  ;;  %v19938_v9 = vld [vmem:[#allocation2 + $0xb8] sm:$0xf]  ;;  %v1563_v11 = vrot.slane %v1561_v62, 5  ;;  %v15820_v62 = vrot.slane %v2146_v10, 9  ;;  %v19299_v46 = vld [vmem:[#allocation2 + $0x20] sm:$0x1] }
  0xc0   : > { %v19940_v14 = vld [vmem:[#allocation2 + $0xb4] sm:$0xf]  ;;  %v1575_v15 = vshll.u32 %v19938_v9, 16  ;;  %v1579_v16 = vshrl.u32 %v19938_v9, 16  ;;  %v1558_v18 = vor.u32 %v1557_v6, %v1553_v5  ;;  %v2207_v6 = vrot.slane %v2205_v22, 4 }
  0xc1   : > { %17543 = vmatmul.mubr.msk.bf16.gmra.mrb[24].mxu0 %vm1639_vm13, %v15768_v2  ;;  %v1549_v17 = vrot.slane %v1548_v4, 4  ;;  %v19945_v24 = vld [vmem:[#allocation2 + $0xbc] sm:$0x1]  ;;  %v1566_v26 = vshrl.u32 %v19940_v14, 16  ;;  %v1569_v27 = vshll.u32 %v19940_v14, 16  ;;  %v15802_v42 = vcombine.low %v19940_v14, %v19938_v9 }
  0xc2   : > { %v1577_v31 = vrot.slane %v1575_v15, 5  ;;  %v1581_v35 = vrot.slane %v1579_v16, 4  ;;  %v1585_v37 = vshll.u32 %v19945_v24, 16  ;;  %v1559_v21 = vrot.slane %v1558_v18, 4  ;;  %v2147_v36 = vld [vmem:[#allocation2 + $0x18] sm:$0xe] }
  0xc3   : > { %v1554_v44 = vsel %vm19581_vm12, %v1549_v17, %v1553_v5  ;;  %v1568_v57 = vrot.slane %v1566_v26, 4  ;;  %v1571_v58 = vrot.slane %v1569_v27, 5  ;;  %v19968_v17 = vsel %vm19956_vm1, %v15820_v62, %v2205_v22  ;;  %v19284_v27 = vld [vmem:[#allocation2] sm:$0xf]  ;;  %v2157_v62 = vld [vmem:[#allocation2 + $0x90] sm:$0xe] }
  0xc4   : > { %v1582_v53 = vor.u32 %v1581_v35, %v1577_v31  ;;  %v1587_v61 = vrot.slane %v1585_v37, 5  ;;  %v1564_v2 = vsel %vm19581_vm12, %v1559_v21, %v1563_v11  ;;  %v19972_v18 = vsel %vm19956_vm1, %v2207_v6, %v2208_v43  ;;  %v19285_v43 = vld [vmem:[#allocation2 + $0x18] sm:$0xf]  ;;  %v19986_v37 = vld [vmem:[#allocation2 + $0x1c] sm:$0xf] }
  0xc5   : > { %v1572_v4 = vor.u32 %v1571_v58, %v1568_v57  ;;  %v15769_v5 = vcombine.low %v1554_v44, %v1564_v2  ;;  %v15836_v11 = vcombine.low %v19968_v17, %v19972_v18  ;;  %v15787_v22 = vcombine.low %v19284_v27, %v19981_v19  ;;  %v2155_v21 = vld [vmem:[#allocation2 + $0x78] sm:$0xe]  ;;  %v2158_v2 = vld [vmem:[#allocation2 + $0x9c] sm:$0xe]  ;;  %v19288_v6 = vld [vmem:[#allocation2 + $0x24] sm:$0xf] }
  0xc6   : > { %v1583_v15 = vrot.slane %v1582_v53, 4  ;;  %v15789_v44 = vcombine.low %v19285_v43, %v19986_v37  ;;  %v2407_v57 = vsel %vm1688_vm4, %v19753_v45, 0  ;;  %v15829_v58 = vrot.slane %v2155_v21, 9  ;;  %v20011_v27 = vld [vmem:[#allocation2 + $0x34] sm:$0xf] }
  0xc7   : > { %v1573_v16 = vrot.slane %v1572_v4, 4  ;;  %17546 = vmatprep.mubr.msk.bf16.mxu0 %vm1639_vm13, %v15769_v5  ;;  %v2268_v53 = vrot.slane %v19804_v7, 5  ;;  %v15831_v8 = vrot.slane %v2157_v62, 9  ;;  %v2282_v43 = vrot.slane %v19850_v28, 5  ;;  %v2148_v32 = vld [vmem:[#allocation2 + $0x24] sm:$0xe] }
  0xc8   : > { %v1588_v10 = vsel %vm19581_vm12, %v1583_v15, %v1587_v61  ;;  %v2156_v61 = vld [vmem:[#allocation2 + $0x84] sm:$0xe]  ;;  %v2289_v62 = vrot.slane %v19893_v59, 5  ;;  %v2201_v7 = vrot.slane %v19298_v50, 5  ;;  %v2215_v59 = vrot.slane %v19299_v46, 5 }
  0xc9   : > { %v1578_v26 = vsel %vm19581_vm12, %v1573_v16, %v1577_v31  ;;  %v19991_v31 = vld [vmem:[#allocation5 + $0xc] sm:$0xf]  ;;  %v20003_v45 = vsel %vm19956_vm1, %v15829_v58, %v2268_v53  ;;  %v2270_v4 = vrot.slane %v2268_v53, 4  ;;  %v15830_v15 = vrot.slane %v2156_v61, 9  ;;  %v2160_v58 = vld [vmem:[#allocation2 + $0xb4] sm:$0xe] }
  0xca   : > { %v15770_v35 = vcombine.low %v1578_v26, %v1588_v10  ;;  %v2275_v16 = vrot.slane %v19823_v47, 5  ;;  %v2278_v10 = vrot.slane %v19825_v48, 5  ;;  %v19289_v26 = vld [vmem:[#allocation2 + $0x30] sm:$0xf]  ;;  %v20028_v53 = vsel %vm19956_vm1, %v15831_v8, %v2282_v43  ;;  %v19300_v50 = vld [vmem:[#allocation2 + $0x2c] sm:$0x1] }
  0xcb   : > { %v2284_v61 = vrot.slane %v2282_v43, 4  ;;  %v15834_v43 = vrot.slane %v2160_v58, 9  ;;  %v2150_v17 = vld [vmem:[#allocation2 + $0x3c] sm:$0xe]  ;;  %v20436_v3 = vld [vmem:[#allocation2 + $0xb8] sm:$0xf] }
  0xcc   : > { %17547 = vmatmul.mubr.msk.bf16.gmra.mrb[28].mxu0 %vm1639_vm13, %v15770_v35  ;;  %v20016_v35 = vsel %vm19956_vm1, %v2270_v4, %v2271_v30  ;;  %v20023_v21 = vsel %vm19956_vm1, %v15830_v15, %v2275_v16  ;;  %v2277_v48 = vrot.slane %v2275_v16, 4  ;;  %v15832_v4 = vrot.slane %v2158_v2, 9 }
  0xcd   : > { %17552 = vmatprep.mubr.msk.bf16.mxu0 %vm1639_vm13, %v15787_v22  ;;  %v15791_v22 = vcombine.low %v19289_v26, %v20011_v27  ;;  %v15833_v15 = vrot.slane %v2159_v40, 9  ;;  %vm7384_vm8 = vcmask 1042434   ;;  %vm7387_vm9 = vcmask 1043459  }
  0xce   : > { %v20034_v30 = vsel %vm19956_vm1, %v2277_v48, %v2278_v10  ;;  %v2291_v10 = vrot.slane %v2289_v62, 4  ;;  %v2303_v48 = vrot.slane %v19938_v9, 5  ;;  %v15822_v9 = vrot.slane %v2148_v32, 9  ;;  %v2152_v32 = vld [vmem:[#allocation2 + $0x54] sm:$0xe] }
  0xcf   : > { %v15846_v16 = vcombine.low %v20023_v21, %v20034_v30  ;;  %v19065_v21 = vld [vmem:[#allocation2 + $0xc] sm:$0xff]   ;;  %vm7396_vm14 = vcmask 1046534   ;;  %vm7399_vm15 = vcmask 1047559  }
  0xd4   : > { %17553 = vmatmul.mubr.msk.bf16.vlgmr.msra.gmra.mrb[0].mxu0 %vm1639_vm13, %v15788_v12  ;;  %v20006_v12 = vld [vmem:[#allocation2 + $0x28] sm:$0xf] }
  0xd5   : > { %17585 = vmatpush3.bf16.msra.mxu0 %v2407_v57  ;;  %17556 = vmatprep.mubr.msk.bf16.mxu0 %vm1639_vm13, %v15789_v44  ;;  %v15790_v5 = vcombine.low %v19288_v6, %v20006_v12  ;;  %v15845_v44 = vcombine.low %v20003_v45, %v20016_v35  ;;  %v2285_v57 = vrot.slane %v19861_v52, 5  ;;  %v2292_v6 = vrot.slane %v19895_v60, 5  ;;  %v2961_v35 = vld [vmem:[#allocation2 + $0x10] sm:$0xf] }
  0xd6   : > { %19033 = vmatprep.subr.msk.bf16.mxu0 %vm1688_vm4, %v19991_v31  ;;  %v2296_v52 = vrot.slane %v19925_v49, 5  ;;  %v2219_v49 = vrot.slane %v20006_v12, 5  ;;  %v19301_v12 = vld [vmem:[#allocation2 + $0x38] sm:$0x1] }
  0xd7   : > { %v20043_v2 = vsel %vm19956_vm1, %v2284_v61, %v2285_v57  ;;  %v20058_v8 = vsel %vm19956_vm1, %v2291_v10, %v2292_v6  ;;  %v2306_v57 = vrot.slane %v19945_v24, 5  ;;  %v20062_v61 = vld [vmem:[#allocation2 + $0x40] sm:$0xf]  ;;  %v20071_v6 = vld [vmem:[#allocation2 + $0x4c] sm:$0xf]  ;;  %v20078_v10 = vsel %vm19956_vm1, %v15834_v43, %v2303_v48 }
  0xd8   : > { %v15847_v60 = vcombine.low %v20028_v53, %v20043_v2  ;;  %v20053_v40 = vsel %vm19956_vm1, %v15833_v15, %v2296_v52  ;;  %v2298_v26 = vrot.slane %v2296_v52, 4  ;;  %v19293_v52 = vld [vmem:[#allocation2 + $0x48] sm:$0xf]  ;;  %v19297_v24 = vld [vmem:[#allocation2 + $0x60] sm:$0xf]  ;;  %v2240_v18 = vrot.slane %v20071_v6, 5 }
  0xd9   : > { %v15793_v58 = vcombine.low %v19293_v52, %v20071_v6  ;;  %v19296_v52 = vld [vmem:[#allocation2 + $0x54] sm:$0xf]  ;;  %v3018_v2 = vshll.u32 %v2961_v35, 16 }
  0xdc   : > { %17557 = vmatmul.mubr.msk.bf16.gmra.mrb[4].mxu0 %vm1639_vm13, %v15790_v5  ;;  %v20047_v5 = vsel %vm19956_vm1, %v15832_v4, %v2289_v62  ;;  %v19292_v4 = vld [vmem:[#allocation2 + $0x3c] sm:$0xf] }
  0xdd   : > { %17560 = vmatprep.mubr.msk.bf16.mxu0 %vm1639_vm13, %v15791_v22  ;;  %v2299_v22 = vrot.slane %v19927_v51, 5  ;;  %v15792_v62 = vcombine.low %v19292_v4, %v20062_v61  ;;  %v15848_v15 = vcombine.low %v20047_v5, %v20058_v8  ;;  %v2305_v4 = vrot.slane %v2303_v48, 4  ;;  %v2962_v5 = vld [vmem:[#allocation2 + $0x14] sm:$0x1] }
  0xde   : > { %v15795_v48 = vcombine.low %v19297_v24, %v19742_v25  ;;  %v714_v25 = vld [vmem:[%s19538_s16 + $0x78] sm:$0xf]  ;;  %v715_v24 = vld [vmem:[%s19538_s16 + $0x7c] sm:$0xf] }
  0xdf   : > { %v20069_v51 = vsel %vm19956_vm1, %v2298_v26, %v2299_v22  ;;  %v20082_v0 = vsel %vm19956_vm1, %v2305_v4, %v2306_v57  ;;  %v20088_v22 = vld [vmem:[#allocation2 + $0x58] sm:$0xf]  ;;  %v2145_v57 = vld [vmem:[#allocation2] sm:$0xe]  ;;  %v974_v23 = vshrl.u32 %v714_v25, 16 }
  0xe0   : > { %v15850_v26 = vcombine.low %v20078_v10, %v20082_v0  ;;  %v15794_v43 = vcombine.low %v19296_v52, %v20088_v22  ;;  %v977_v52 = vshll.u32 %v714_v25, 16  ;;  %v24389_v45 = vcombine.low %v20053_v40, %v20069_v51 }
  0xe1   : > { %v976_v4 = vrot.slane %v974_v23, 7  ;;  %v20223_v51 = vrot.slane %v3018_v2, 5 }
  0xe3   : > { %v979_v47 = vor.u32 %v977_v52, %v976_v4  ;;  %v2229_v52 = vrot.slane %v19301_v12, 5 }
  0xe4   : > { %17561 = vmatmul.mubr.msk.bf16.gmra.mrb[8].mxu0 %vm1639_vm13, %v15792_v62  ;;  %v434_v62 = vld [vmem:[#allocation2 + $0xc0] sm:$0x1] }
  0xe5   : > { %17564 = vmatprep.mubr.msk.bf16.mxu0 %vm1639_vm13, %v15793_v58  ;;  %v435_v58 = vsel %vm19524_vm5, 0, %v434_v62 }
  0xe6   : > { %436 = vst [vmem:[#allocation2 + $0xc0] sm:$0x1] %v435_v58 }
  0xec   : > { %17565 = vmatmul.mubr.msk.bf16.gmra.mrb[12].mxu0 %vm1639_vm13, %v15794_v43 }
  0xed   : > { %17568 = vmatprep.mubr.msk.bf16.mxu0 %vm1639_vm13, %v15795_v48  ;;  %v985_v48 = vshll.u32 %v715_v24, 16  ;;  %v1146_v62 = vld [vmem:[#allocation2 + $0xc0] sm:$0xf] }
  0xee   : > { %v1147_v28 = vsel %vm19562_vm10, %v979_v47, %v1146_v62  ;;  %vm7390_vm10 = vcmask 1044484  }
  0xef   : > { %1148 = vst [vmem:[#allocation2 + $0xc0] sm:$0xf] %v1147_v28 }
  0xf4   : > { %17569 = vmatmul.mubr.msk.bf16.gmra.mrb[16].mxu0 %vm1639_vm13, %v15796_v34  ;;  %v982_v34 = vshrl.u32 %v715_v24, 16  ;;  %v15821_v24 = vrot.slane %v2147_v36, 9  ;;  %v19302_v36 = vld [vmem:[#allocation2 + $0x44] sm:$0x1] }
  0xf5   : > { %17572 = vmatprep.mubr.msk.bf16.mxu0 %vm1639_vm13, %v15797_v13  ;;  %v15819_v13 = vrot.slane %v2145_v57, 9  ;;  %v2202_v57 = vsel %vm19956_vm1, %v2200_v33, %v2201_v7  ;;  %v2222_v7 = vrot.slane %v19300_v50, 5  ;;  %v2233_v33 = vrot.slane %v20062_v61, 5 }
  0xf6   : > { %v20115_v43 = vrot.slane %v982_v34, 7  ;;  %v2765_v34 = vsel %vm1688_vm4, %v19991_v31, 0  ;;  %v2220_v31 = vsel %vm19956_vm1, %v15822_v9, %v2219_v49 }
  0xf7   : > { %v2199_v29 = vsel %vm19956_vm1, %v15819_v13, %v2198_v54  ;;  %v2226_v54 = vrot.slane %v20011_v27, 5  ;;  %v2235_v28 = vrot.slane %v2233_v33, 4 }
  0xf8   : > { %v987_v19 = vor.u32 %v985_v48, %v20115_v43  ;;  %v15835_v25 = vcombine.low %v2199_v29, %v2202_v57  ;;  %v20149_v48 = vld [vmem:[#allocation5 + $0x10] sm:$0xf]  ;;  %v2242_v29 = vrot.slane %v2240_v18, 4  ;;  %v989_v40 = vrot.slane %v20115_v43, 4 }
  0xf9   : > { %v19303_v57 = vld [vmem:[#allocation2 + $0x50] sm:$0x1] }
  0xfc   : > { %17573 = vmatmul.mubr.msk.bf16.gmra.mrb[20].mxu0 %vm1639_vm13, %v15798_v38  ;;  %v980_v38 = vrot.slane %v976_v4, 4  ;;  %v2228_v4 = vrot.slane %v2226_v54, 4 }
  0xfd   : > { %17576 = vmatprep.mubr.msk.bf16.mxu0 %vm1639_vm13, %v15799_v41  ;;  %v2212_v41 = vrot.slane %v19986_v37, 5  ;;  %v2149_v37 = vld [vmem:[#allocation2 + $0x30] sm:$0xe] }
  0xfe   : > { %v988_v58 = vsel %vm19573_vm11, %v980_v38, %v987_v19  ;;  %v15823_v13 = vrot.slane %v2149_v37, 9  ;;  %v2230_v38 = vsel %vm19956_vm1, %v2228_v4, %v2229_v52  ;;  %v19307_v52 = vld [vmem:[#allocation2 + $0x70] sm:$0xf] }
  0xff   : > { %1149 = vst.msk [vmem:[#allocation2 + $0xc4] sm:$0xf] %vm374_vm0, %v988_v58  ;;  %v2214_v23 = vrot.slane %v2212_v41, 4  ;;  %v15824_v58 = vrot.slane %v2150_v17, 9  ;;  %vm498_vm0 = vcmask 516096  }
 0x100   : > { %v2227_v47 = vsel %vm19956_vm1, %v15823_v13, %v2226_v54  ;;  %v19306_v13 = vld [vmem:[#allocation2 + $0x68] sm:$0x1]  ;;  %vm21201_vm7 = vmand %vm498_vm0, %vm384_vm2 }
 0x101   : > { %v15839_v62 = vcombine.low %v2227_v47, %v2230_v38  ;;  %v2234_v6 = vsel %vm19956_vm1, %v15824_v58, %v2233_v33  ;;  %v2154_v47 = vld [vmem:[#allocation2 + $0x6c] sm:$0xe] }
 0x104   : > { %17577 = vmatmul.mubr.msk.bf16.gmra.mrb[24].mxu0 %vm1639_vm13, %v15800_v56  ;;  %v2213_v56 = vsel %vm19956_vm1, %v15821_v24, %v2212_v41  ;;  %v2236_v41 = vrot.slane %v19302_v36, 5 }
 0x105   : > { %17580 = vmatprep.mubr.msk.bf16.mxu0 %vm1639_vm13, %v15801_v63  ;;  %v2216_v63 = vsel %vm19956_vm1, %v2214_v23, %v2215_v59  ;;  %v2247_v23 = vrot.slane %v20088_v22, 5  ;;  %v2257_v22 = vrot.slane %v19306_v13, 5  ;;  %v2966_v13 = vld [vmem:[#allocation2 + $0x24] sm:$0xf] }
 0x106   : > { %v15837_v14 = vcombine.low %v2213_v56, %v2216_v63  ;;  %v2237_v24 = vsel %vm19956_vm1, %v2235_v28, %v2236_v41  ;;  %v2153_v63 = vld [vmem:[#allocation2 + $0x60] sm:$0xe]  ;;  %v2960_v41 = vld [vmem:[#allocation2 + $0xc] sm:$0xf] }
 0x107   : > { %v15840_v37 = vcombine.low %v2234_v6, %v2237_v24  ;;  %v2249_v9 = vrot.slane %v2247_v23, 4  ;;  %v15827_v50 = vrot.slane %v2153_v63, 9  ;;  %v3012_v30 = vshll.u32 %v2960_v41, 16  ;;  %v2964_v24 = vld [vmem:[#allocation2 + $0x1c] sm:$0xf] }
 0x108   : > { %v3028_v6 = vshll.u32 %v2962_v5, 16  ;;  %v3042_v10 = vshll.u32 %v2964_v24, 16 }
 0x10c   : > { %17581 = vmatmul.mubr.msk.bf16.gmra.mrb[28].mxu0 %vm1639_vm13, %v15802_v42  ;;  %v2221_v42 = vrot.slane %v2219_v49, 4  ;;  %v19304_v49 = vld [vmem:[#allocation2 + $0x64] sm:$0xf] }
 0x10d   : > { %17586 = vmatprep.mubr.msk.bf16.mxu0 %vm1639_vm13, %v15835_v25  ;;  %v2243_v25 = vrot.slane %v19303_v57, 5  ;;  %v2254_v56 = vrot.slane %v19304_v49, 5  ;;  %v3014_v57 = vrot.slane %v3012_v30, 5 }
 0x10e   : > { %v2223_v27 = vsel %vm19956_vm1, %v2221_v42, %v2222_v7 }
 0x10f   : > { %v15838_v19 = vcombine.low %v2220_v31, %v2223_v27  ;;  %v2244_v59 = vsel %vm19956_vm1, %v2242_v29, %v2243_v25  ;;  %v2256_v7 = vrot.slane %v2254_v56, 4  ;;  %v2261_v31 = vrot.slane %v19307_v52, 5  ;;  %v20247_v52 = vld [vmem:[#allocation2 + $0x38] sm:$0x1] }
 0x110   : > { %v2255_v27 = vsel %vm19956_vm1, %v15827_v50, %v2254_v56  ;;  %v19067_v56 = vld [vmem:[#allocation2 + $0x24] sm:$0xff]   ;;  %v20240_v50 = vrot.slane %v3042_v10, 5 }
 0x111   : > { %v2258_v33 = vsel %vm19956_vm1, %v2256_v7, %v2257_v22  ;;  %v20243_v22 = vld [vmem:[#allocation2 + $0x34] sm:$0xf] }
 0x112   : > { %v15843_v17 = vcombine.low %v2255_v27, %v2258_v33  ;;  %v3773_v27 = vrot.slane %v20243_v22, 5  ;;  %v19069_v33 = vld [vmem:[#allocation2 + $0x3c] sm:$0xff]  }
 0x114   : > { %17587 = vmatmul.mubr.msk.bf16.vlgmr.msra.gmra.mrb[0].mxu0 %vm1639_vm13, %v15836_v11  ;;  %v2151_v11 = vld [vmem:[#allocation2 + $0x48] sm:$0xe] }
 0x115   : > { %17619 = vmatpush3.bf16.msra.mxu0 %v2765_v34  ;;  %17590 = vmatprep.mubr.msk.bf16.mxu0 %vm1639_vm13, %v15837_v14  ;;  %v15825_v61 = vrot.slane %v2151_v11, 9  ;;  %v15826_v34 = vrot.slane %v2152_v32, 9  ;;  %v19305_v14 = vld [vmem:[#allocation2 + $0x5c] sm:$0x1]  ;;  %v2263_v11 = vrot.slane %v2261_v31, 4 }
 0x116   : > { %19034 = vmatprep.subr.msk.bf16.mxu0 %vm1688_vm4, %v20149_v48  ;;  %v2250_v42 = vrot.slane %v19305_v14, 5 }
 0x117   : > { %v2241_v46 = vsel %vm19956_vm1, %v15825_v61, %v2240_v18  ;;  %v2248_v4 = vsel %vm19956_vm1, %v15826_v34, %v2247_v23  ;;  %v15828_v18 = vrot.slane %v2154_v47, 9  ;;  %v490_v61 = vld [vmem:[#allocation2 + $0xc8] sm:$0x1]  ;;  %v3491_v23 = vsel %vm1688_vm4, %v20149_v48, 0 }
 0x118   : > { %v15841_v54 = vcombine.low %v2241_v46, %v2244_v59  ;;  %v2251_v12 = vsel %vm19956_vm1, %v2249_v9, %v2250_v42  ;;  %v491_v53 = vsel %vm19531_vm6, 0, %v490_v61  ;;  %v2965_v46 = vld [vmem:[#allocation2 + $0x20] sm:$0x1]  ;;  %v19066_v59 = vld [vmem:[#allocation2 + $0x18] sm:$0xff]   ;;  %v20233_v9 = vld [vmem:[#allocation5 + $0x14] sm:$0xf] }
 0x119   : > { %v15842_v38 = vcombine.low %v2248_v4, %v2251_v12  ;;  %v2262_v58 = vsel %vm19956_vm1, %v15828_v18, %v2261_v31  ;;  %492 = vst [vmem:[#allocation2 + $0xc8] sm:$0x1] %v491_v53  ;;  %v3689_v4 = vld [vmem:[#allocation2 + $0x30] sm:$0xe]  ;;  %v20255_v18 = vld [vmem:[#allocation2 + $0x28] sm:$0xf] }
 0x11a   : > { %v19068_v12 = vld [vmem:[#allocation2 + $0x30] sm:$0xff]   ;;  %v15934_v31 = vrot.slane %v3689_v4, 9  ;;  %v3070_v61 = vshrl.u32 %v20255_v18, 16  ;;  %v2975_v4 = vld [vmem:[#allocation2 + $0x48] sm:$0xf] }
 0x11c   : > { %17591 = vmatmul.mubr.msk.bf16.gmra.mrb[4].mxu0 %vm1639_vm13, %v15838_v19  ;;  %v19308_v19 = vld [vmem:[#allocation2 + $0x74] sm:$0x1] }
 0x11d   : > { %17594 = vmatprep.mubr.msk.bf16.mxu0 %vm1639_vm13, %v15839_v62  ;;  %v2264_v62 = vrot.slane %v19308_v19, 5  ;;  %v3775_v19 = vrot.slane %v3773_v27, 4 }
 0x11f   : > { %v2265_v28 = vsel %vm19956_vm1, %v2263_v11, %v2264_v62  ;;  %v20259_v11 = vsel %vm19956_vm1, %v15934_v31, %v3773_v27  ;;  %v20318_v31 = vld [vmem:[#allocation2 + $0x80] sm:$0x1]  ;;  %v20323_v27 = vsel %vm1688_vm4, %v20233_v9, 0 }
 0x120   : > { %v15844_v36 = vcombine.low %v2262_v58, %v2265_v28  ;;  %v1150_v63 = vld [vmem:[#allocation2 + $0xc8] sm:$0x1]  ;;  %v3057_v58 = vshrl.u32 %v2966_v13, 16  ;;  %v3060_v28 = vshll.u32 %v2966_v13, 16 }
 0x121   : > { %v1151_v34 = vsel %vm19524_vm5, %v989_v40, %v1150_v63  ;;  %v2969_v40 = vld [vmem:[#allocation2 + $0x30] sm:$0xf] }
 0x122   : > { %1152 = vst [vmem:[#allocation2 + $0xc8] sm:$0x1] %v1151_v34  ;;  %v3059_v30 = vrot.slane %v3057_v58, 4  ;;  %v3062_v5 = vrot.slane %v3060_v28, 5  ;;  %v3084_v34 = vshll.u32 %v2969_v40, 16  ;;  %v19074_v58 = vld [vmem:[#allocation2 + $0x78] sm:$0xff]  }
 0x124   : > { %17595 = vmatmul.mubr.msk.bf16.gmra.mrb[8].mxu0 %vm1639_vm13, %v15840_v37  ;;  %v20229_v37 = vrot.slane %v3028_v6, 5  ;;  %v20286_v6 = vld [vmem:[#allocation2 + $0x2c] sm:$0x1] }
 0x125   : > { %17598 = vmatprep.mubr.msk.bf16.mxu0 %vm1639_vm13, %v15841_v54  ;;  %v3052_v54 = vshll.u32 %v2965_v46, 16  ;;  %v20295_v46 = vld [vmem:[#allocation2 + $0x64] sm:$0xf]  ;;  %v3076_v63 = vshll.u32 %v20286_v6, 16 }
 0x127   : > { %v20250_v47 = vrot.slane %v3052_v54, 5  ;;  %v19073_v54 = vld [vmem:[#allocation2 + $0x6c] sm:$0xff]  }
 0x12c   : > { %17599 = vmatmul.mubr.msk.bf16.gmra.mrb[12].mxu0 %vm1639_vm13, %v15842_v38  ;;  %v3776_v38 = vrot.slane %v20247_v52, 5 }
 0x12d   : > { %17602 = vmatprep.mubr.msk.bf16.mxu0 %vm1639_vm13, %v15843_v17 }
 0x134   : > { %17603 = vmatmul.mubr.msk.bf16.gmra.mrb[16].mxu0 %vm1639_vm13, %v15844_v36  ;;  %v20264_v36 = vsel %vm19956_vm1, %v3775_v19, %v3776_v38  ;;  %v3695_v38 = vld [vmem:[#allocation2 + $0x78] sm:$0xe] }
 0x135   : > { %17606 = vmatprep.mubr.msk.bf16.mxu0 %vm1639_vm13, %v15845_v44  ;;  %v3009_v44 = vshrl.u32 %v2960_v41, 16  ;;  %v3066_v41 = vshll.u32 %v20255_v18, 16 }
 0x137   : > { %v3011_v29 = vrot.slane %v3009_v44, 4  ;;  %v20273_v44 = vld [vmem:[#allocation2 + $0x50] sm:$0x1] }
 0x138   : > { %v3790_v2 = vrot.slane %v20273_v44, 5 }
 0x139   : > { %v3015_v0 = vor.u32 %v3014_v57, %v3011_v29  ;;  %v20280_v29 = vrot.slane %v3066_v41, 5  ;;  %v15940_v41 = vrot.slane %v3695_v38, 9  ;;  %v20359_v38 = vld [vmem:[#allocation2 + $0x40] sm:$0xf] }
 0x13b   : > { %v20236_v14 = vrot.slane %v3015_v0, 4  ;;  %v3801_v0 = vrot.slane %v20295_v46, 5 }
 0x13c   : > { %17607 = vmatmul.mubr.msk.bf16.gmra.mrb[20].mxu0 %vm1639_vm13, %v15846_v16  ;;  %v2963_v16 = vld [vmem:[#allocation2 + $0x18] sm:$0xf] }
 0x13d   : > { %17610 = vmatprep.mubr.msk.bf16.mxu0 %vm1639_vm13, %v15847_v60  ;;  %v3022_v60 = vshrl.u32 %v2961_v35, 16  ;;  %v3033_v8 = vshrl.u32 %v2963_v16, 16  ;;  %v20271_v35 = vld [vmem:[#allocation2 + $0x4c] sm:$0xf] }
 0x13e   : > { %v3787_v53 = vrot.slane %v20271_v35, 5 }
 0x13f   : > { %v3024_v25 = vrot.slane %v3022_v60, 4  ;;  %v3035_v32 = vrot.slane %v3033_v8, 4  ;;  %v19070_v60 = vld [vmem:[#allocation2 + $0x48] sm:$0xff]  }
 0x140   : > { %v3789_v57 = vrot.slane %v3787_v53, 4 }
 0x141   : > { %v3025_v43 = vor.u32 %v3024_v25, %v20223_v51 }
 0x143   : > { %v20238_v42 = vrot.slane %v3025_v43, 4 }
 0x144   : > { %17611 = vmatmul.mubr.msk.bf16.gmra.mrb[24].mxu0 %vm1639_vm13, %v15848_v15  ;;  %v3036_v15 = vshll.u32 %v2963_v16, 16  ;;  %v3691_v16 = vld [vmem:[#allocation2 + $0x48] sm:$0xe] }
 0x145   : > { %17614 = vmatprep.mubr.msk.bf16.mxu0 %vm1639_vm13, %v24389_v45  ;;  %v15936_v8 = vrot.slane %v3691_v16, 9  ;;  %v20331_v16 = vrot.slane %v3084_v34, 5 }
 0x146   : > { %v3038_v49 = vrot.slane %v3036_v15, 5  ;;  %v19071_v15 = vld [vmem:[#allocation2 + $0x54] sm:$0xff]  }
 0x147   : > { %v20284_v25 = vsel %vm19956_vm1, %v15936_v8, %v3787_v53  ;;  %v2972_v8 = vld [vmem:[#allocation2 + $0x3c] sm:$0xf] }
 0x148   : > { %v3039_v48 = vor.u32 %v3038_v49, %v3035_v32  ;;  %v20300_v32 = vrot.slane %v3070_v61, 4  ;;  %v3081_v49 = vshrl.u32 %v2969_v40, 16  ;;  %v19075_v61 = vld [vmem:[#allocation2 + $0x84] sm:$0xff]   ;;  %v20346_v40 = vld [vmem:[#allocation2 + $0x98] sm:$0x1] }
 0x14a   : > { %v20253_v17 = vrot.slane %v3039_v48, 4  ;;  %v3803_v48 = vrot.slane %v3801_v0, 4  ;;  %v20329_v28 = vrot.slane %v3081_v49, 4 }
 0x14c   : > { %17615 = vmatmul.mubr.msk.bf16.gmra.mrb[28].mxu0 %vm1639_vm13, %v15850_v26  ;;  %v3046_v26 = vshrl.u32 %v2964_v24, 16  ;;  %v20290_v24 = vsel %vm19956_vm1, %v3789_v57, %v3790_v2  ;;  %v20344_v57 = vld [vmem:[#allocation2 + $0x94] sm:$0xf] }
 0x14d   : > { %17620 = vmatprep.mubr.msk.bf16.mxu0 %vm1639_vm13, %v19065_v21 }
 0x14e   : > { %v3048_v7 = vrot.slane %v3046_v26, 4  ;;  %v19072_v26 = vld [vmem:[#allocation2 + $0x60] sm:$0xff]  }
 0x150   : > { %v3049_v62 = vor.u32 %v3048_v7, %v20240_v50 }
 0x152   : > { %v20276_v21 = vrot.slane %v3049_v62, 4  ;;  %v3818_v62 = vrot.slane %v20318_v31, 5 }
 0x154   : > { %17621 = vmatmul.mubr.msk.bf16.vlgmr.msra.gmra.mrb[0].mxu0 %vm1639_vm13, %v19066_v59  ;;  %v20297_v59 = vld [vmem:[#allocation2 + $0x68] sm:$0x1] }
 0x155   : > { %17653 = vmatpush3.bf16.msra.mxu0 %v3491_v23  ;;  %17624 = vmatprep.mubr.msk.bf16.mxu0 %vm1639_vm13, %v19067_v56  ;;  %v3693_v56 = vld [vmem:[#allocation2 + $0x60] sm:$0xe]  ;;  %v3804_v10 = vrot.slane %v20297_v59, 5 }
 0x156   : > { %19035 = vmatprep.subr.msk.bf16.mxu0 %vm1688_vm4, %v20233_v9  ;;  %v15938_v43 = vrot.slane %v3693_v56, 9  ;;  %v3063_v9 = vor.u32 %v3062_v5, %v3059_v30  ;;  %v3090_v30 = vshll.u32 %v20243_v22, 16  ;;  %v3697_v5 = vld [vmem:[#allocation2 + $0x90] sm:$0xe]  ;;  %v3829_v56 = vrot.slane %v20344_v57, 5 }
 0x157   : > { %v20311_v13 = vsel %vm19956_vm1, %v3803_v48, %v3804_v10  ;;  %v19076_v10 = vld [vmem:[#allocation2 + $0x90] sm:$0xff]  }
 0x158   : > { %v20307_v7 = vsel %vm19956_vm1, %v15938_v43, %v3801_v0  ;;  %v20349_v49 = vrot.slane %v3063_v9, 4  ;;  %v3832_v0 = vrot.slane %v20346_v40, 5  ;;  %v19077_v43 = vld [vmem:[#allocation2 + $0x9c] sm:$0xff]   ;;  %v3831_v34 = vrot.slane %v3829_v56, 4  ;;  %v20381_v9 = vld [vmem:[#allocation2 + $0xa4] sm:$0x1] }
 0x15c   : > { %17625 = vmatmul.mubr.msk.bf16.gmra.mrb[4].mxu0 %vm1639_vm13, %v19068_v12  ;;  %v20316_v12 = vld [vmem:[#allocation2 + $0x7c] sm:$0xf] }
 0x15d   : > { %17628 = vmatprep.mubr.msk.bf16.mxu0 %vm1639_vm13, %v19069_v33  ;;  %v20325_v33 = vrot.slane %v3076_v63, 5  ;;  %v3815_v19 = vrot.slane %v20316_v12, 5  ;;  %v15942_v63 = vrot.slane %v3697_v5, 9  ;;  %v3055_v5 = vsel %vm19581_vm12, %v20276_v21, %v20250_v47 }
 0x15e   : > { %v3114_v47 = vshll.u32 %v20359_v38, 16 }
 0x15f   : > { %v3817_v53 = vrot.slane %v3815_v19, 4  ;;  %v20335_v2 = vsel %vm19956_vm1, %v15940_v41, %v3815_v19  ;;  %v20357_v48 = vsel %vm19956_vm1, %v15942_v63, %v3829_v56  ;;  %v20361_v19 = vld [vmem:[#allocation2 + $0xa0] sm:$0xf]  ;;  %v20402_v41 = vrot.slane %v3090_v30, 5 }
 0x160   : > { %24390 = vst [vmem:[#allocation10_spill] sm:$0xff] %v20335_v2  ;;  %24392 = vst [vmem:[#allocation12_spill] sm:$0xff] %v20357_v48  ;;  %v3836_v56 = vrot.slane %v20361_v19, 5  ;;  %v20464_v48 = vld [vmem:[#allocation2 + $0x44] sm:$0x1] }
 0x162   : > { %v3838_v21 = vrot.slane %v3836_v56, 4 }
 0x164   : > { %17629 = vmatmul.mubr.msk.bf16.gmra.mrb[8].mxu0 %vm1639_vm13, %v19070_v60  ;;  %v20339_v60 = vsel %vm19956_vm1, %v3817_v53, %v3818_v62  ;;  %v20365_v62 = vsel %vm19956_vm1, %v3831_v34, %v3832_v0  ;;  %v3031_v53 = vsel %vm19581_vm12, %v20238_v42, %v20229_v37  ;;  %v3839_v37 = vrot.slane %v20381_v9, 5 }
 0x165   : > { %17632 = vmatprep.mubr.msk.bf16.mxu0 %vm1639_vm13, %v19071_v15  ;;  %24391 = vst [vmem:[#allocation11_spill] sm:$0xff] %v20339_v60  ;;  %24393 = vst [vmem:[#allocation13_spill] sm:$0xff] %v20365_v62  ;;  %v3108_v42 = vshll.u32 %v2972_v8, 16  ;;  %v3100_v15 = vshll.u32 %v20247_v52, 16  ;;  %v19079_v52 = vld [vmem:[#allocation2 + $0xb4] sm:$0xff]  }
 0x166   : > { %v20438_v62 = vld [vmem:[#allocation2 + $0xbc] sm:$0x1] }
 0x16c   : > { %17633 = vmatmul.mubr.msk.bf16.gmra.mrb[12].mxu0 %vm1639_vm13, %v19072_v26  ;;  %v3094_v26 = vshrl.u32 %v20243_v22, 16  ;;  %v20369_v22 = vld [vmem:[#allocation2 + $0xac] sm:$0xf] }
 0x16d   : > { %17636 = vmatprep.mubr.msk.bf16.mxu0 %vm1639_vm13, %v19073_v54  ;;  %v3105_v54 = vshrl.u32 %v2972_v8, 16  ;;  %v3843_v63 = vrot.slane %v20369_v22, 5 }
 0x16e   : > { %v20409_v23 = vrot.slane %v3094_v26, 4 }
 0x16f   : > { %v20411_v45 = vrot.slane %v3105_v54, 4  ;;  %v20430_v54 = vrot.slane %v3114_v47, 5 }
 0x174   : > { %17637 = vmatmul.mubr.msk.bf16.gmra.mrb[16].mxu0 %vm1639_vm13, %v19074_v58  ;;  %v3073_v58 = vor.u32 %v20300_v32, %v20280_v29  ;;  %v3045_v32 = vsel %vm19581_vm12, %v20253_v17, %v20240_v50 }
 0x175   : > { %17640 = vmatprep.mubr.msk.bf16.mxu0 %vm1639_vm13, %v19075_v61  ;;  %v3021_v61 = vsel %vm19581_vm12, %v20236_v14, %v20223_v51  ;;  %v20392_v51 = vld [vmem:[#allocation2 + $0xb0] sm:$0x1]  ;;  %v3698_v14 = vld [vmem:[#allocation2 + $0x9c] sm:$0xe]  ;;  %v20434_v39 = vcombine.low %v3045_v32, %v3055_v5  ;;  %v3850_v32 = vrot.slane %v20436_v3, 5  ;;  %v3853_v5 = vrot.slane %v20438_v62, 5 }
 0x176   : > { %v15943_v0 = vrot.slane %v3698_v14, 9  ;;  %v3846_v50 = vrot.slane %v20392_v51, 5  ;;  %v20399_v17 = vrot.slane %v3073_v58, 4  ;;  %v19078_v14 = vld [vmem:[#allocation2 + $0xa8] sm:$0xff]   ;;  %v20415_v58 = vsel %vm19956_vm1, %v3838_v21, %v3839_v37 }
 0x177   : > { %24395 = vst [vmem:[#allocation15_spill] sm:$0xff] %v20415_v58  ;;  %v3129_v37 = vshrl.u32 %v2975_v4, 16  ;;  %v3132_v21 = vshll.u32 %v2975_v4, 16  ;;  %v3069_v4 = vsel %vm19581_vm12, %v20349_v49, %v20280_v29  ;;  %v3138_v58 = vshll.u32 %v20271_v35, 16 }
 0x178   : > { %v20407_v8 = vsel %vm19956_vm1, %v15943_v0, %v3836_v56  ;;  %v3118_v56 = vshrl.u32 %v20359_v38, 16  ;;  %v20440_v0 = vld [vmem:[#allocation2 + $0xc4] sm:$0xf] }
 0x179   : > { %24394 = vst [vmem:[#allocation14_spill] sm:$0xff] %v20407_v8  ;;  %v3131_v29 = vrot.slane %v3129_v37, 4  ;;  %v3134_v49 = vrot.slane %v3132_v21, 5  ;;  %v3142_v8 = vshrl.u32 %v20271_v35, 16 }
 0x17a   : > { %v3120_v47 = vrot.slane %v3118_v56, 4 }
 0x17c   : > { %17641 = vmatmul.mubr.msk.bf16.gmra.mrb[20].mxu0 %vm1639_vm13, %v19076_v10  ;;  %v3699_v10 = vld [vmem:[#allocation2 + $0xa8] sm:$0xe] }
 0x17d   : > { %17644 = vmatprep.mubr.msk.bf16.mxu0 %vm1639_vm13, %v19077_v43  ;;  %v15944_v34 = vrot.slane %v3699_v10, 9  ;;  %v3845_v43 = vrot.slane %v3843_v63, 4  ;;  %v20421_v10 = vrot.slane %v3108_v42, 5  ;;  %v2978_v42 = vld [vmem:[#allocation2 + $0x54] sm:$0xf] }
 0x17e   : > { %v3153_v60 = vshrl.u32 %v2978_v42, 16  ;;  %v3156_v2 = vshll.u32 %v2978_v42, 16  ;;  %v3079_v42 = vsel %vm19581_vm12, %v20399_v17, %v20325_v33  ;;  %v3135_v33 = vor.u32 %v3134_v49, %v3131_v29 }
 0x17f   : > { %v20419_v30 = vsel %vm19956_vm1, %v15944_v34, %v3843_v63  ;;  %v20428_v26 = vsel %vm19956_vm1, %v3845_v43, %v3846_v50  ;;  %v15899_v34 = vcombine.low %v3021_v61, %v3031_v53  ;;  %v3087_v50 = vor.u32 %v20331_v16, %v20329_v28  ;;  %v20449_v61 = vld [vmem:[#allocation2 + $0xc8] sm:$0x1]  ;;  %v3700_v53 = vld [vmem:[#allocation2 + $0xb4] sm:$0xe] }
 0x180   : > { %24396 = vst [vmem:[#allocation16_spill] sm:$0xff] %v20419_v30  ;;  %24397 = vst [vmem:[#allocation17_spill] sm:$0xff] %v20428_v26  ;;  %v15945_v43 = vrot.slane %v3700_v53, 9  ;;  %v3857_v63 = vrot.slane %v20440_v0, 5  ;;  %v3860_v26 = vrot.slane %v20449_v61, 5  ;;  %v3852_v28 = vrot.slane %v3850_v32, 4 }
 0x181   : > { %v20456_v30 = vld [vmem:[#allocation2 + $0x58] sm:$0xf]  ;;  %v19080_v53 = vld [vmem:[#allocation2 + $0xc0] sm:$0xff]   ;;  %v20499_v17 = vrot.slane %v3138_v58, 5 }
 0x182   : > { %v3859_v56 = vrot.slane %v3857_v63, 4  ;;  %v20468_v37 = vsel %vm19956_vm1, %v3852_v28, %v3853_v5  ;;  %v3162_v35 = vshll.u32 %v20456_v30, 16  ;;  %v20486_v5 = vrot.slane %v3087_v50, 4 }
 0x183   : > { %24399 = vst [vmem:[#allocation19_spill] sm:$0xff] %v20468_v37  ;;  %v2981_v37 = vld [vmem:[#allocation2 + $0x60] sm:$0xf]  ;;  %v3148_v50 = vshll.u32 %v20273_v44, 16  ;;  %v3155_v28 = vrot.slane %v3153_v60, 4  ;;  %v3186_v44 = vshll.u32 %v20295_v46, 16 }
 0x184   : > { %17645 = vmatmul.mubr.msk.bf16.gmra.mrb[24].mxu0 %vm1639_vm13, %v19078_v14  ;;  %v3701_v14 = vld [vmem:[#allocation2 + $0xc0] sm:$0xe]  ;;  %v3177_v58 = vshrl.u32 %v2981_v37, 16  ;;  %v3180_v29 = vshll.u32 %v2981_v37, 16  ;;  %v3190_v60 = vshrl.u32 %v20295_v46, 16 }
 0x185   : > { %17648 = vmatprep.mubr.msk.bf16.mxu0 %vm1639_vm13, %v19079_v52  ;;  %v15946_v16 = vrot.slane %v3701_v14, 9  ;;  %v20462_v52 = vsel %vm19956_vm1, %v15945_v43, %v3850_v32  ;;  %v3166_v14 = vshrl.u32 %v20456_v30, 16  ;;  %v20480_v43 = vsel %vm19956_vm1, %v3859_v56, %v3860_v26 }
 0x186   : > { %24398 = vst [vmem:[#allocation18_spill] sm:$0xff] %v20462_v52  ;;  %24401 = vst [vmem:[#allocation21_spill] sm:$0xff] %v20480_v43  ;;  %v3111_v32 = vor.u32 %v20421_v10, %v20411_v45  ;;  %v3121_v26 = vor.u32 %v3120_v47, %v20430_v54  ;;  %v3124_v56 = vshll.u32 %v20464_v48, 16  ;;  %v20503_v43 = vrot.slane %v3162_v35, 5 }
 0x187   : > { %v20472_v21 = vsel %vm19956_vm1, %v15946_v16, %v3857_v63  ;;  %v20488_v63 = vrot.slane %v3100_v15, 5  ;;  %v3097_v16 = vor.u32 %v20409_v23, %v20402_v41  ;;  %v3144_v15 = vrot.slane %v3142_v8, 4 }
 0x188   : > { %24400 = vst [vmem:[#allocation20_spill] sm:$0xff] %v20472_v21  ;;  %v3158_v23 = vrot.slane %v3156_v2, 5  ;;  %v3168_v45 = vrot.slane %v3166_v14, 4  ;;  %v15901_v10 = vcombine.low %v3069_v4, %v3079_v42  ;;  %v3093_v47 = vsel %vm19581_vm12, %v20486_v5, %v20402_v41  ;;  %v2984_v2 = vld [vmem:[#allocation2 + $0x6c] sm:$0xf] }
 0x189   : > { %v3098_v8 = vrot.slane %v3097_v16, 4  ;;  %v3112_v49 = vrot.slane %v3111_v32, 4  ;;  %v3126_v35 = vrot.slane %v3124_v56, 5  ;;  %v3145_v4 = vor.u32 %v3144_v15, %v20499_v17  ;;  %v20520_v16 = vld [vmem:[#allocation2 + $0x70] sm:$0xf] }
 0x18a   : > { %v20514_v14 = vrot.slane %v3148_v50, 5  ;;  %v20516_v42 = vrot.slane %v3135_v33, 4  ;;  %v3159_v41 = vor.u32 %v3158_v23, %v3155_v28  ;;  %v3169_v5 = vor.u32 %v3168_v45, %v20503_v43  ;;  %v2987_v15 = vld [vmem:[#allocation2 + $0x78] sm:$0xf] }
 0x18b   : > { %v3179_v32 = vrot.slane %v3177_v58, 4  ;;  %v3182_v21 = vrot.slane %v3180_v29, 5  ;;  %v3201_v52 = vshrl.u32 %v2984_v2, 16  ;;  %v3204_v46 = vshll.u32 %v2984_v2, 16  ;;  %v20530_v50 = vld [vmem:[#allocation5 + $0x18] sm:$0xf] }
 0x18c   : > { %17649 = vmatmul.mubr.msk.bf16.gmra.mrb[28].mxu0 %vm1639_vm13, %v19080_v53  ;;  %v20509_v53 = vld [vmem:[#allocation2 + $0x5c] sm:$0x1]  ;;  %v3117_v56 = vsel %vm19581_vm12, %v3112_v49, %v20430_v54  ;;  %v20528_v33 = vrot.slane %v3186_v44, 5  ;;  %v3192_v28 = vrot.slane %v3190_v60, 4  ;;  %v3146_v45 = vrot.slane %v3145_v4, 4 }
 0x18d   : > { %17654 = vmatprep.mubr.msk.bf16.mxu0 %vm1639_vm13, %v15899_v34  ;;  %v3122_v34 = vrot.slane %v3121_v26, 4  ;;  %v3172_v37 = vshll.u32 %v20509_v53, 16  ;;  %v3103_v26 = vsel %vm19581_vm12, %v3098_v8, %v20488_v63  ;;  %v3210_v58 = vshll.u32 %v20520_v16, 16 }
 0x18e   : > { %v3214_v63 = vshrl.u32 %v20520_v16, 16  ;;  %v3160_v54 = vrot.slane %v3159_v41, 4  ;;  %v3170_v29 = vrot.slane %v3169_v5, 4  ;;  %v3196_v49 = vshll.u32 %v20297_v59, 16 }
 0x18f   : > { %v3127_v23 = vsel %vm19581_vm12, %v3122_v34, %v3126_v35  ;;  %v3174_v8 = vrot.slane %v3172_v37, 5  ;;  %v3203_v44 = vrot.slane %v3201_v52, 4  ;;  %v3206_v60 = vrot.slane %v3204_v46, 5 }
 0x190   : > { %v3228_v2 = vshll.u32 %v2987_v15, 16  ;;  %v3183_v34 = vor.u32 %v3182_v21, %v3179_v32  ;;  %v3193_v35 = vor.u32 %v3192_v28, %v20528_v33  ;;  %v3234_v4 = vshll.u32 %v20316_v12, 16 }
 0x191   : > { %v15903_v41 = vcombine.low %v3117_v56, %v3127_v23  ;;  %v20546_v5 = vrot.slane %v3210_v58, 5  ;;  %v3216_v37 = vrot.slane %v3214_v63, 4  ;;  %v3141_v59 = vsel %vm19581_vm12, %v20516_v42, %v20499_v17 }
 0x192   : > { %v3151_v52 = vsel %vm19581_vm12, %v3146_v45, %v20514_v14  ;;  %v3165_v21 = vsel %vm19581_vm12, %v3160_v54, %v20503_v43  ;;  %v3198_v32 = vrot.slane %v3196_v49, 5  ;;  %v3175_v46 = vsel %vm19581_vm12, %v3170_v29, %v3174_v8 }
 0x193   : > { %v3230_v28 = vrot.slane %v3228_v2, 5  ;;  %v3184_v17 = vrot.slane %v3183_v34, 4  ;;  %v3194_v42 = vrot.slane %v3193_v35, 4  ;;  %v20564_v23 = vrot.slane %v3234_v4, 5 }
 0x194   : > { %17655 = vmatmul.mubr.msk.bf16.vlgmr.msra.gmra.mrb[0].mxu0 %vm1639_vm13, %v20434_v39  ;;  %v3225_v39 = vshrl.u32 %v2987_v15, 16  ;;  %v20562_v15 = vld [vmem:[#allocation2 + $0x88] sm:$0xf]  ;;  %v3217_v43 = vor.u32 %v3216_v37, %v20546_v5  ;;  %v15904_v8 = vcombine.low %v3141_v59, %v3151_v52  ;;  %v15905_v2 = vcombine.low %v3165_v21, %v3175_v46  ;;  %v2996_v59 = vld [vmem:[#allocation2 + $0x9c] sm:$0xf] }
 0x195   : > { %17687 = vmatpush3.bf16.msra.mxu0 %v20323_v27  ;;  %17658 = vmatprep.mubr.msk.bf16.mxu0 %vm1639_vm13, %v15901_v10  ;;  %v3238_v27 = vshrl.u32 %v20316_v12, 16  ;;  %v15902_v10 = vcombine.low %v3093_v47, %v3103_v26  ;;  %v20558_v12 = vld [vmem:[#allocation2 + $0x74] sm:$0x1]  ;;  %v2990_v47 = vld [vmem:[#allocation2 + $0x84] sm:$0xf]  ;;  %v3207_v26 = vor.u32 %v3206_v60, %v3203_v44  ;;  %v3258_v54 = vshll.u32 %v20562_v15, 16 }
 0x196   : > { %19036 = vmatprep.subr.msk.bf16.mxu0 %vm1688_vm4, %v20530_v50  ;;  %v3227_v56 = vrot.slane %v3225_v39, 4  ;;  %v3220_v45 = vshll.u32 %v20558_v12, 16  ;;  %v3249_v58 = vshrl.u32 %v2990_v47, 16  ;;  %v3252_v63 = vshll.u32 %v2990_v47, 16  ;;  %v2993_v39 = vld [vmem:[#allocation2 + $0x90] sm:$0xf] }
 0x197   : > { %v3240_v14 = vrot.slane %v3238_v27, 4  ;;  %v3262_v29 = vshrl.u32 %v20562_v15, 16  ;;  %v3208_v49 = vrot.slane %v3207_v26, 4  ;;  %v3244_v60 = vshll.u32 %v20318_v31, 16  ;;  %v20579_v52 = vld [vmem:[#allocation2 + $0x8c] sm:$0x1] }
 0x198   : > { %v3231_v44 = vor.u32 %v3230_v28, %v3227_v56  ;;  %v3189_v34 = vsel %vm19581_vm12, %v3184_v17, %v20528_v33  ;;  %v3199_v35 = vsel %vm19581_vm12, %v3194_v42, %v3198_v32  ;;  %v3218_v27 = vrot.slane %v3217_v43, 4 }
 0x199   : > { %v3241_v4 = vor.u32 %v3240_v14, %v20564_v23  ;;  %v3254_v37 = vrot.slane %v3252_v63, 5  ;;  %v20581_v47 = vrot.slane %v3258_v54, 5  ;;  %v3264_v31 = vrot.slane %v3262_v29, 4 }
 0x19a   : > { %v3273_v21 = vshrl.u32 %v2993_v39, 16  ;;  %v3276_v46 = vshll.u32 %v2993_v39, 16  ;;  %v3213_v33 = vsel %vm19581_vm12, %v3208_v49, %v20546_v5  ;;  %v3232_v26 = vrot.slane %v3231_v44, 4 }
 0x19b   : > { %v3246_v32 = vrot.slane %v3244_v60, 5  ;;  %v3282_v56 = vshll.u32 %v20344_v57, 16  ;;  %v3242_v28 = vrot.slane %v3241_v4, 4  ;;  %v3286_v17 = vshrl.u32 %v20344_v57, 16 }
 0x19c   : > { %17659 = vmatmul.mubr.msk.bf16.gmra.mrb[4].mxu0 %vm1639_vm13, %v15902_v10  ;;  %v3222_v10 = vrot.slane %v3220_v45, 5  ;;  %v3297_v42 = vshrl.u32 %v2996_v59, 16  ;;  %v3300_v14 = vshll.u32 %v2996_v59, 16  ;;  %v3268_v45 = vshll.u32 %v20579_v52, 16 }
 0x19d   : > { %17662 = vmatprep.mubr.msk.bf16.mxu0 %vm1639_vm13, %v15903_v41  ;;  %v3251_v41 = vrot.slane %v3249_v58, 4  ;;  %v3306_v58 = vshll.u32 %v20361_v19, 16  ;;  %v3310_v5 = vshrl.u32 %v20361_v19, 16  ;;  %v3265_v54 = vor.u32 %v3264_v31, %v20581_v47 }
 0x19e   : > { %v3223_v43 = vsel %vm19581_vm12, %v3218_v27, %v3222_v10  ;;  %v3275_v29 = vrot.slane %v3273_v21, 4  ;;  %v3278_v57 = vrot.slane %v3276_v46, 5  ;;  %v15906_v49 = vcombine.low %v3189_v34, %v3199_v35 }
 0x19f   : > { %v3255_v63 = vor.u32 %v3254_v37, %v3251_v41  ;;  %v20599_v44 = vrot.slane %v3282_v56, 5  ;;  %v3247_v60 = vsel %vm19581_vm12, %v3242_v28, %v3246_v32  ;;  %v3288_v39 = vrot.slane %v3286_v17, 4  ;;  %v2999_v37 = vld [vmem:[#allocation2 + $0xa8] sm:$0xf]  ;;  %v3002_v56 = vld [vmem:[#allocation2 + $0xb4] sm:$0xf] }
 0x1a0   : > { %v3299_v4 = vrot.slane %v3297_v42, 4  ;;  %v3302_v19 = vrot.slane %v3300_v14, 5  ;;  %v15907_v27 = vcombine.low %v3213_v33, %v3223_v43  ;;  %v3308_v10 = vrot.slane %v3306_v58, 5 }
 0x1a1   : > { %v3312_v41 = vrot.slane %v3310_v5, 4  ;;  %v3256_v59 = vrot.slane %v3255_v63, 4  ;;  %v3266_v31 = vrot.slane %v3265_v54, 4  ;;  %v3279_v34 = vor.u32 %v3278_v57, %v3275_v29 }
 0x1a2   : > { %v3292_v35 = vshll.u32 %v20346_v40, 16  ;;  %v3303_v46 = vor.u32 %v3302_v19, %v3299_v4  ;;  %v3321_v32 = vshrl.u32 %v2999_v37, 16  ;;  %v3324_v28 = vshll.u32 %v2999_v37, 16 }
 0x1a3   : > { %v3313_v33 = vor.u32 %v3312_v41, %v3308_v10  ;;  %v3330_v17 = vshll.u32 %v20369_v22, 16  ;;  %v3334_v42 = vshrl.u32 %v20369_v22, 16  ;;  %v3261_v40 = vsel %vm19581_vm12, %v3256_v59, %v20581_v47  ;;  %v3005_v41 = vld [vmem:[#allocation2 + $0xc0] sm:$0xf] }
 0x1a4   : > { %17663 = vmatmul.mubr.msk.bf16.gmra.mrb[8].mxu0 %vm1639_vm13, %v15904_v8  ;;  %v3237_v8 = vsel %vm19581_vm12, %v3232_v26, %v20564_v23  ;;  %v3289_v23 = vor.u32 %v3288_v39, %v20599_v44  ;;  %v3316_v26 = vshll.u32 %v20381_v9, 16  ;;  %v3280_v9 = vrot.slane %v3279_v34, 4 }
 0x1a5   : > { %17666 = vmatprep.mubr.msk.bf16.mxu0 %vm1639_vm13, %v15905_v2  ;;  %v3270_v2 = vrot.slane %v3268_v45, 5  ;;  %v15908_v21 = vcombine.low %v3237_v8, %v3247_v60  ;;  %v3294_v43 = vrot.slane %v3292_v35, 5  ;;  %v3345_v45 = vshrl.u32 %v3002_v56, 16 }
 0x1a6   : > { %v3348_v58 = vshll.u32 %v3002_v56, 16  ;;  %v3354_v5 = vshll.u32 %v20436_v3, 16  ;;  %v3358_v63 = vshrl.u32 %v20436_v3, 16  ;;  %v3290_v54 = vrot.slane %v3289_v23, 4 }
 0x1a7   : > { %v3271_v14 = vsel %vm19581_vm12, %v3266_v31, %v3270_v2  ;;  %v3304_v29 = vrot.slane %v3303_v46, 4  ;;  %v3318_v22 = vrot.slane %v3316_v26, 5  ;;  %v3323_v57 = vrot.slane %v3321_v32, 4 }
 0x1a8   : > { %v3326_v8 = vrot.slane %v3324_v28, 5  ;;  %v3332_v60 = vrot.slane %v3330_v17, 5  ;;  %v3336_v39 = vrot.slane %v3334_v42, 4  ;;  %v15909_v47 = vcombine.low %v3261_v40, %v3271_v14 }
 0x1a9   : > { %v3347_v4 = vrot.slane %v3345_v45, 4  ;;  %v3350_v19 = vrot.slane %v3348_v58, 5  ;;  %v3360_v2 = vrot.slane %v3358_v63, 4  ;;  %v3285_v37 = vsel %vm19581_vm12, %v3280_v9, %v20599_v44 }
 0x1aa   : > { %v3295_v3 = vsel %vm19581_vm12, %v3290_v54, %v3294_v43  ;;  %v3340_v59 = vshll.u32 %v20392_v51, 16  ;;  %v3309_v31 = vsel %vm19581_vm12, %v3304_v29, %v3308_v10  ;;  %v3327_v35 = vor.u32 %v3326_v8, %v3323_v57 }
 0x1ab   : > { %v3337_v23 = vor.u32 %v3336_v39, %v3332_v60  ;;  %v3369_v46 = vshrl.u32 %v3005_v41, 16  ;;  %v3372_v26 = vshll.u32 %v3005_v41, 16  ;;  %v3378_v44 = vshll.u32 %v20440_v0, 16  ;;  %v3686_v39 = vld [vmem:[#allocation2 + $0xc] sm:$0xe] }
 0x1ac   : > { %17667 = vmatmul.mubr.msk.bf16.gmra.mrb[12].mxu0 %vm1639_vm13, %v15906_v49  ;;  %v3314_v49 = vrot.slane %v3313_v33, 4  ;;  %v3382_v32 = vshrl.u32 %v20440_v0, 16  ;;  %v3351_v56 = vor.u32 %v3350_v19, %v3347_v4  ;;  %v15910_v33 = vcombine.low %v3285_v37, %v3295_v3  ;;  %v437_v41 = vld [vmem:[#allocation2 + $0xcc] sm:$0x1] }
 0x1ad   : > { %17670 = vmatprep.mubr.msk.bf16.mxu0 %vm1639_vm13, %v15907_v27  ;;  %v3356_v27 = vrot.slane %v3354_v5, 5  ;;  %v3328_v10 = vrot.slane %v3327_v35, 4  ;;  %v3338_v17 = vrot.slane %v3337_v23, 4  ;;  %v3342_v42 = vrot.slane %v3340_v59, 5  ;;  %v19310_v59 = vld [vmem:[#allocation2 + $0x14] sm:$0x1] }
 0x1ae   : > { %v3319_v34 = vsel %vm19581_vm12, %v3314_v49, %v3318_v22  ;;  %v3371_v40 = vrot.slane %v3369_v46, 4  ;;  %v3374_v14 = vrot.slane %v3372_v26, 5  ;;  %v3380_v9 = vrot.slane %v3378_v44, 5  ;;  %v19309_v49 = vld [vmem:[#allocation2 + $0x10] sm:$0xf] }
 0x1af   : > { %v3361_v51 = vor.u32 %v3360_v2, %v3356_v27  ;;  %v15911_v28 = vcombine.low %v3309_v31, %v3319_v34  ;;  %v3384_v43 = vrot.slane %v3382_v32, 4  ;;  %v3352_v45 = vrot.slane %v3351_v56, 4  ;;  %v19311_v35 = vld [vmem:[#allocation2 + $0x1c] sm:$0xf]  ;;  %v3687_v26 = vld [vmem:[#allocation2 + $0x18] sm:$0xe] }
 0x1b0   : > { %v3333_v0 = vsel %vm19581_vm12, %v3328_v10, %v3332_v60  ;;  %v3375_v63 = vor.u32 %v3374_v14, %v3371_v40  ;;  %v3388_v29 = vshll.u32 %v20449_v61, 16  ;;  %v3752_v8 = vrot.slane %v19309_v49, 5  ;;  %v3688_v32 = vld [vmem:[#allocation2 + $0x24] sm:$0xe] }
 0x1b1   : > { %v3362_v58 = vrot.slane %v3361_v51, 4  ;;  %v3385_v54 = vor.u32 %v3384_v43, %v3380_v9  ;;  %v3357_v22 = vsel %vm19581_vm12, %v3352_v45, %v3356_v27  ;;  %v15931_v37 = vrot.slane %v3686_v39, 9 }
 0x1b2   : > { %v3376_v4 = vrot.slane %v3375_v63, 4  ;;  %v3390_v2 = vrot.slane %v3388_v29, 5  ;;  %v3754_v3 = vrot.slane %v3752_v8, 4  ;;  %v3755_v31 = vrot.slane %v19310_v59, 5  ;;  %v4948_v29 = vld [vmem:[#allocation5 + $0x1c] sm:$0xf] }
 0x1b3   : > { %v3386_v19 = vrot.slane %v3385_v54, 4  ;;  %v438_v61 = vsel %vm19524_vm5, 0, %v437_v41  ;;  %v3759_v23 = vrot.slane %v19311_v35, 5  ;;  %v3753_v46 = vsel %vm19956_vm1, %v15931_v37, %v3752_v8  ;;  %v3696_v59 = vld [vmem:[#allocation2 + $0x84] sm:$0xe]  ;;  %v24405_v35 = vld [vmem:[#allocation10_spill] sm:$0xff]  ;;  %vm21192_vm5 = vmand %vm498_vm0, %vm440_vm3 }
 0x1b4   : > { %17671 = vmatmul.mubr.msk.bf16.gmra.mrb[16].mxu0 %vm1639_vm13, %v15908_v21  ;;  %v3364_v21 = vshll.u32 %v20438_v62, 16  ;;  %v3343_v62 = vsel %vm19581_vm12, %v3338_v17, %v3342_v42  ;;  %439 = vst [vmem:[#allocation2 + $0xcc] sm:$0x1] %v438_v61  ;;  %v3381_v27 = vsel %vm19581_vm12, %v3376_v4, %v3380_v9  ;;  %v3756_v1 = vsel %vm19956_vm1, %v3754_v3, %v3755_v31 }
 0x1b5   : > { %17674 = vmatprep.mubr.msk.bf16.mxu0 %vm1639_vm13, %v15909_v47  ;;  %v15912_v47 = vcombine.low %v3333_v0, %v3343_v62  ;;  %v3391_v34 = vsel %vm19581_vm12, %v3386_v19, %v3390_v2  ;;  %v3766_v44 = vrot.slane %v20255_v18, 5  ;;  %v15947_v51 = vcombine.low %v3753_v46, %v3756_v1  ;;  %v3694_v19 = vld [vmem:[#allocation2 + $0x6c] sm:$0xe]  ;;  %v24411_v1 = vld [vmem:[#allocation14_spill] sm:$0xff] }
 0x1b6   : > { %v3366_v5 = vrot.slane %v3364_v21, 5  ;;  %v15914_v56 = vcombine.low %v3381_v27, %v3391_v34  ;;  %v15932_v21 = vrot.slane %v3687_v26, 9  ;;  %v15933_v17 = vrot.slane %v3688_v32, 9  ;;  %v24412_v26 = vld [vmem:[#allocation15_spill] sm:$0xff]  ;;  %v24414_v32 = vld [vmem:[#allocation16_spill] sm:$0xff] }
 0x1b7   : > { %v3768_v42 = vrot.slane %v3766_v44, 4  ;;  %v3769_v40 = vrot.slane %v20286_v6, 5  ;;  %v3780_v45 = vrot.slane %v20359_v38, 5  ;;  %v4320_v0 = vsel %vm1688_vm4, %v20530_v50, 0  ;;  %v3692_v50 = vld [vmem:[#allocation2 + $0x54] sm:$0xe] }
 0x1b8   : > { %v3367_v57 = vsel %vm19581_vm12, %v3362_v58, %v3366_v5  ;;  %v3760_v14 = vsel %vm19956_vm1, %v15932_v21, %v3759_v23  ;;  %v3767_v9 = vsel %vm19956_vm1, %v15933_v17, %v3766_v44  ;;  %v3690_v58 = vld [vmem:[#allocation2 + $0x3c] sm:$0xe]  ;;  %v3783_v54 = vrot.slane %v20464_v48, 5  ;;  %v493_v21 = vld [vmem:[#allocation2 + $0xd4] sm:$0x1] }
 0x1b9   : > { %v15913_v60 = vcombine.low %v3357_v22, %v3367_v57  ;;  %v3770_v43 = vsel %vm19956_vm1, %v3768_v42, %v3769_v40  ;;  %v15935_v62 = vrot.slane %v3690_v58, 9  ;;  %v3782_v63 = vrot.slane %v3780_v45, 4  ;;  %v19081_v40 = vld [vmem:[#allocation2 + $0x18] sm:$0xff]  }
 0x1ba   : > { %v15949_v5 = vcombine.low %v3767_v9, %v3770_v43  ;;  %v3794_v57 = vrot.slane %v20456_v30, 5  ;;  %v15937_v8 = vrot.slane %v3692_v50, 9  ;;  %v3797_v39 = vrot.slane %v20509_v53, 5  ;;  %v19082_v43 = vld [vmem:[#allocation2 + $0x24] sm:$0xff]   ;;  %v19086_v50 = vld [vmem:[#allocation2 + $0x54] sm:$0xff]  }
 0x1bb   : > { %v3781_v22 = vsel %vm19956_vm1, %v15935_v62, %v3780_v45  ;;  %v3784_v38 = vsel %vm19956_vm1, %v3782_v63, %v3783_v54  ;;  %v3808_v4 = vrot.slane %v20520_v16, 5  ;;  %v15939_v41 = vrot.slane %v3694_v19, 9  ;;  %v19083_v45 = vld [vmem:[#allocation2 + $0x30] sm:$0xff]   ;;  %v20747_v62 = vld [vmem:[#allocation2 + $0x58] sm:$0xf] }
 0x1bc   : > { %17675 = vmatmul.mubr.msk.bf16.gmra.mrb[20].mxu0 %vm1639_vm13, %v15910_v33  ;;  %v3761_v33 = vrot.slane %v3759_v23, 4  ;;  %v15951_v49 = vcombine.low %v3781_v22, %v3784_v38  ;;  %v3796_v48 = vrot.slane %v3794_v57, 4  ;;  %v3811_v53 = vrot.slane %v20558_v12, 5  ;;  %v24406_v23 = vld [vmem:[#allocation11_spill] sm:$0xff]  ;;  %v5246_v54 = vld [vmem:[#allocation2 + $0x54] sm:$0xe] }
 0x1bd   : > { %17678 = vmatprep.mubr.msk.bf16.mxu0 %vm1639_vm13, %v15911_v28  ;;  %v19312_v28 = vld [vmem:[#allocation2 + $0x20] sm:$0x1]  ;;  %v3810_v37 = vrot.slane %v3808_v4, 4  ;;  %v3822_v16 = vrot.slane %v20562_v15, 5  ;;  %v15941_v61 = vrot.slane %v3696_v59, 9  ;;  %v3825_v12 = vrot.slane %v20579_v52, 5 }
 0x1be   : > { %v3762_v10 = vrot.slane %v19312_v28, 5  ;;  %v3798_v30 = vsel %vm19956_vm1, %v3796_v48, %v3797_v39  ;;  %v24407_v46 = vcombine.low %v24405_v35, %v24406_v23  ;;  %v24408_v52 = vld [vmem:[#allocation12_spill] sm:$0xff]  ;;  %v24413_v44 = vcombine.low %v24411_v1, %v24412_v26  ;;  %v24418_v28 = vld [vmem:[#allocation19_spill] sm:$0xff] }
 0x1bf   : > { %v3812_v3 = vsel %vm19956_vm1, %v3810_v37, %v3811_v53  ;;  %v3824_v27 = vrot.slane %v3822_v16, 4  ;;  %v494_v42 = vsel %vm19531_vm6, 0, %v493_v21  ;;  %v5046_v58 = vsel %vm1688_vm4, %v4948_v29, 0  ;;  %v20749_v63 = vld [vmem:[#allocation2 + $0x5c] sm:$0x1]  ;;  %v19088_v37 = vld [vmem:[#allocation2 + $0x6c] sm:$0xff]  }
 0x1c0   : > { %v3763_v18 = vsel %vm19956_vm1, %v3761_v33, %v3762_v10  ;;  %v24417_v33 = vld [vmem:[#allocation18_spill] sm:$0xff]  ;;  %495 = vst [vmem:[#allocation2 + $0xd4] sm:$0x1] %v494_v42  ;;  %v5345_v22 = vrot.slane %v20749_v63, 5  ;;  %v16048_v38 = vrot.slane %v5246_v54, 9  ;;  %v19090_v1 = vld [vmem:[#allocation2 + $0x84] sm:$0xff]  }
 0x1c1   : > { %v15948_v6 = vcombine.low %v3760_v14, %v3763_v18  ;;  %v3826_v34 = vsel %vm19956_vm1, %v3824_v27, %v3825_v12  ;;  %v24419_v10 = vcombine.low %v24417_v33, %v24418_v28  ;;  %v24421_v14 = vld [vmem:[#allocation20_spill] sm:$0xff]  ;;  %v24422_v18 = vld [vmem:[#allocation21_spill] sm:$0xff]  ;;  %v20817_v54 = vld [vmem:[#allocation2 + $0xa0] sm:$0xf]  ;;  %v4693_v39 = vshll.u32 %v20747_v62, 16 }
 0x1c2   : > { %v24423_v9 = vcombine.low %v24421_v14, %v24422_v18  ;;  %v20785_v12 = vld [vmem:[#allocation2 + $0x88] sm:$0xf]  ;;  %v4521_v33 = vld [vmem:[#allocation2 + $0x30] sm:$0xf]  ;;  %v20810_v18 = vld [vmem:[#allocation2 + $0x20] sm:$0x1] }
 0x1c3   : > { %vm496_vm6 = vcmask 519168  }
 0x1c4   : > { %17679 = vmatmul.mubr.msk.bf16.gmra.mrb[24].mxu0 %vm1639_vm13, %v15912_v47  ;;  %v24402_v47 = vcombine.low %v20259_v11, %v20264_v36  ;;  %v24403_v11 = vcombine.low %v20284_v25, %v20290_v24  ;;  %v3809_v36 = vsel %vm19956_vm1, %v15939_v41, %v3808_v4  ;;  %v24404_v25 = vcombine.low %v20307_v7, %v20311_v13  ;;  %v24409_v7 = vld [vmem:[#allocation13_spill] sm:$0xff] }
 0x1c5   : > { %17682 = vmatprep.mubr.msk.bf16.mxu0 %vm1639_vm13, %v15913_v60  ;;  %v3795_v60 = vsel %vm19956_vm1, %v15937_v8, %v3794_v57  ;;  %v15955_v31 = vcombine.low %v3809_v36, %v3812_v3  ;;  %v3823_v24 = vsel %vm19956_vm1, %v15941_v61, %v3822_v16  ;;  %v24410_v13 = vcombine.low %v24408_v52, %v24409_v7  ;;  %v19087_v8 = vld [vmem:[#allocation2 + $0x60] sm:$0xff]   ;;  %v4515_v36 = vld [vmem:[#allocation2 + $0x18] sm:$0xf]  ;;  %v20780_v16 = vld [vmem:[#allocation2 + $0x1c] sm:$0xf] }
 0x1c6   : > { %v15953_v2 = vcombine.low %v3795_v60, %v3798_v30  ;;  %v15957_v15 = vcombine.low %v3823_v24, %v3826_v34  ;;  %v20767_v60 = vld [vmem:[#allocation2 + $0x74] sm:$0x1]  ;;  %v5248_v30 = vld [vmem:[#allocation2 + $0x6c] sm:$0xe]  ;;  %v4564_v61 = vshrl.u32 %v4515_v36, 16  ;;  %v4567_v27 = vshll.u32 %v4515_v36, 16 }
 0x1c7   : > { %v5359_v19 = vrot.slane %v20767_v60, 5  ;;  %v4573_v24 = vshll.u32 %v20780_v16, 16  ;;  %v5250_v34 = vld [vmem:[#allocation2 + $0x84] sm:$0xe]  ;;  %v4577_v23 = vshrl.u32 %v20780_v16, 16 }
 0x1c8   : > { %v16052_v7 = vrot.slane %v5250_v34, 9  ;;  %v4566_v26 = vrot.slane %v4564_v61, 4 }
 0x1c9   : > { %v20800_v21 = vrot.slane %v4573_v24, 5  ;;  %v4524_v24 = vld [vmem:[#allocation2 + $0x3c] sm:$0xf] }
 0x1cc   : > { %17683 = vmatmul.mubr.msk.bf16.gmra.mrb[28].mxu0 %vm1639_vm13, %v15914_v56  ;;  %v24415_v56 = vld [vmem:[#allocation17_spill] sm:$0xff] }
 0x1cd   : > { %17688 = vmatprep.mubr.msk.bf16.mxu0 %vm1639_vm13, %v15947_v51  ;;  %v24416_v51 = vcombine.low %v24414_v32, %v24415_v56  ;;  %v20794_v32 = vld [vmem:[#allocation2 + $0x28] sm:$0xf] }
 0x1d4   : > { %17689 = vmatmul.mubr.msk.bf16.vlgmr.msra.gmra.mrb[0].mxu0 %vm1639_vm13, %v15948_v6  ;;  %v20740_v6 = vld [vmem:[#allocation5 + $0x20] sm:$0xf] }
 0x1d5   : > { %17721 = vmatpush3.bf16.msra.mxu0 %v4320_v0  ;;  %17692 = vmatprep.mubr.msk.bf16.mxu0 %vm1639_vm13, %v15949_v5  ;;  %v19084_v5 = vld [vmem:[#allocation2 + $0x3c] sm:$0xff]   ;;  %v19085_v0 = vld [vmem:[#allocation2 + $0x48] sm:$0xff]  }
 0x1d6   : > { %19037 = vmatprep.subr.msk.bf16.mxu0 %vm1688_vm4, %v4948_v29  ;;  %v5342_v29 = vrot.slane %v20747_v62, 5 }
 0x1d8   : > { %v5344_v57 = vrot.slane %v5342_v29, 4 }
 0x1da   : > { %v20760_v48 = vsel %vm19956_vm1, %v5344_v57, %v5345_v22  ;;  %v5252_v57 = vld [vmem:[#allocation2 + $0x9c] sm:$0xe] }
 0x1dc   : > { %17693 = vmatmul.mubr.msk.bf16.gmra.mrb[4].mxu0 %vm1639_vm13, %v24402_v47  ;;  %v20765_v47 = vld [vmem:[#allocation2 + $0x70] sm:$0xf] }
 0x1dd   : > { %17696 = vmatprep.mubr.msk.bf16.mxu0 %vm1639_vm13, %v15951_v49  ;;  %v20756_v49 = vsel %vm19956_vm1, %v16048_v38, %v5342_v29  ;;  %v5356_v4 = vrot.slane %v20765_v47, 5  ;;  %v20819_v29 = vld [vmem:[#allocation2 + $0xa4] sm:$0x1] }
 0x1df   : > { %v5358_v41 = vrot.slane %v5356_v4, 4 }
 0x1e1   : > { %v20778_v3 = vsel %vm19956_vm1, %v5358_v41, %v5359_v19 }
 0x1e2   : > { %24425 = vst [vmem:[#allocation11_spill] sm:$0xff] %v20778_v3 }
 0x1e4   : > { %17697 = vmatmul.mubr.msk.bf16.gmra.mrb[8].mxu0 %vm1639_vm13, %v24403_v11  ;;  %v19089_v11 = vld [vmem:[#allocation2 + $0x78] sm:$0xff]  }
 0x1e5   : > { %17700 = vmatprep.mubr.msk.bf16.mxu0 %vm1639_vm13, %v15953_v2  ;;  %v16050_v2 = vrot.slane %v5248_v30, 9 }
 0x1e7   : > { %v20774_v53 = vsel %vm19956_vm1, %v16050_v2, %v5356_v4  ;;  %v4583_v4 = vshll.u32 %v20810_v18, 16  ;;  %v16054_v2 = vrot.slane %v5252_v57, 9 }
 0x1e8   : > { %24424 = vst [vmem:[#allocation10_spill] sm:$0xff] %v20774_v53 }
 0x1ec   : > { %17701 = vmatmul.mubr.msk.bf16.gmra.mrb[12].mxu0 %vm1639_vm13, %v24404_v25  ;;  %v20787_v25 = vld [vmem:[#allocation2 + $0x8c] sm:$0x1] }
 0x1ed   : > { %17704 = vmatprep.mubr.msk.bf16.mxu0 %vm1639_vm13, %v15955_v31  ;;  %v4518_v31 = vld [vmem:[#allocation2 + $0x24] sm:$0xf]  ;;  %v5373_v35 = vrot.slane %v20787_v25, 5 }
 0x1ee   : > { %v4591_v52 = vshll.u32 %v4518_v31, 16 }
 0x1f0   : > { %v4593_v42 = vrot.slane %v4591_v52, 5 }
 0x1f4   : > { %17705 = vmatmul.mubr.msk.bf16.gmra.mrb[16].mxu0 %vm1639_vm13, %v24407_v46  ;;  %v4588_v46 = vshrl.u32 %v4518_v31, 16  ;;  %v19092_v31 = vld [vmem:[#allocation2 + $0x9c] sm:$0xff]  }
 0x1f5   : > { %17708 = vmatprep.mubr.msk.bf16.mxu0 %vm1639_vm13, %v15957_v15  ;;  %v5370_v15 = vrot.slane %v20785_v12, 5 }
 0x1f6   : > { %v4590_v17 = vrot.slane %v4588_v46, 4 }
 0x1f7   : > { %v20798_v56 = vsel %vm19956_vm1, %v16052_v7, %v5370_v15 }
 0x1f8   : > { %24426 = vst [vmem:[#allocation12_spill] sm:$0xff] %v20798_v56  ;;  %v4594_v19 = vor.u32 %v4593_v42, %v4590_v17  ;;  %v4636_v17 = vshrl.u32 %v4524_v24, 16 }
 0x1fc   : > { %17709 = vmatmul.mubr.msk.bf16.gmra.mrb[20].mxu0 %vm1639_vm13, %v24410_v13  ;;  %v5372_v13 = vrot.slane %v5370_v15, 4  ;;  %v19093_v15 = vld [vmem:[#allocation2 + $0xa8] sm:$0xff]  }
 0x1fd   : > { %17712 = vmatprep.mubr.msk.bf16.mxu0 %vm1639_vm13, %v24413_v44  ;;  %v4569_v44 = vrot.slane %v4567_v27, 5 }
 0x1fe   : > { %v20804_v28 = vsel %vm19956_vm1, %v5372_v13, %v5373_v35  ;;  %v20835_v35 = vld [vmem:[#allocation2 + $0x38] sm:$0x1] }
 0x1ff   : > { %24427 = vst [vmem:[#allocation13_spill] sm:$0xff] %v20804_v28 }
 0x204   : > { %17713 = vmatmul.mubr.msk.bf16.gmra.mrb[24].mxu0 %vm1639_vm13, %v24416_v51  ;;  %v19091_v51 = vld [vmem:[#allocation2 + $0x90] sm:$0xff]  }
 0x205   : > { %17716 = vmatprep.mubr.msk.bf16.mxu0 %vm1639_vm13, %v24419_v10  ;;  %v4579_v10 = vrot.slane %v4577_v23, 4 }
 0x207   : > { %v4580_v30 = vor.u32 %v4579_v10, %v20800_v21  ;;  %v20850_v10 = vld [vmem:[#allocation2 + $0x40] sm:$0xf] }
 0x209   : > { %v4581_v13 = vrot.slane %v4580_v30, 4  ;;  %v4645_v30 = vshll.u32 %v20850_v10, 16 }
 0x20c   : > { %17717 = vmatmul.mubr.msk.bf16.gmra.mrb[28].mxu0 %vm1639_vm13, %v24423_v9  ;;  %v20812_v9 = vld [vmem:[#allocation2 + $0x2c] sm:$0x1] }
 0x20d   : > { %17722 = vmatprep.mubr.msk.bf16.mxu0 %vm1639_vm13, %v19081_v40  ;;  %v20806_v40 = vld [vmem:[#allocation2 + $0x34] sm:$0xf] }
 0x20e   : > { %v4621_v22 = vshll.u32 %v20806_v40, 16  ;;  %v4625_v38 = vshrl.u32 %v20806_v40, 16 }
 0x210   : > { %v20837_v23 = vrot.slane %v4621_v22, 5  ;;  %v4627_v46 = vrot.slane %v4625_v38, 4  ;;  %v4527_v22 = vld [vmem:[#allocation2 + $0x48] sm:$0xf]  ;;  %v5254_v38 = vld [vmem:[#allocation2 + $0xb4] sm:$0xe] }
 0x214   : > { %17723 = vmatmul.mubr.msk.bf16.vlgmr.msra.gmra.mrb[0].mxu0 %vm1639_vm13, %v19082_v43  ;;  %v4597_v43 = vshll.u32 %v20794_v32, 16 }
 0x215   : > { %17755 = vmatpush3.bf16.msra.mxu0 %v5046_v58  ;;  %17726 = vmatprep.mubr.msk.bf16.mxu0 %vm1639_vm13, %v19083_v45  ;;  %v4601_v45 = vshrl.u32 %v20794_v32, 16  ;;  %v4570_v58 = vor.u32 %v4569_v44, %v4566_v26  ;;  %v20845_v44 = vrot.slane %v4594_v19, 4  ;;  %v16056_v19 = vrot.slane %v5254_v38, 9 }
 0x216   : > { %19038 = vmatprep.subr.msk.bf16.mxu0 %vm1688_vm4, %v20740_v6  ;;  %v20828_v41 = vrot.slane %v4597_v43, 5  ;;  %v4631_v43 = vshll.u32 %v20835_v35, 16 }
 0x217   : > { %v4571_v7 = vrot.slane %v4570_v58, 4  ;;  %v20854_v58 = vld [vmem:[#allocation2 + $0xb8] sm:$0xf] }
 0x218   : > { %v5398_v57 = vrot.slane %v20854_v58, 5 }
 0x21c   : > { %17727 = vmatmul.mubr.msk.bf16.gmra.mrb[4].mxu0 %vm1639_vm13, %v19084_v5  ;;  %v4612_v5 = vshrl.u32 %v4521_v33, 16 }
 0x21d   : > { %17730 = vmatprep.mubr.msk.bf16.mxu0 %vm1639_vm13, %v19085_v0  ;;  %v4615_v0 = vshll.u32 %v4521_v33, 16 }
 0x21e   : > { %v4614_v61 = vrot.slane %v4612_v5, 4  ;;  %v20856_v5 = vld [vmem:[#allocation2 + $0xbc] sm:$0x1] }
 0x21f   : > { %v4617_v27 = vrot.slane %v4615_v0, 5  ;;  %v4628_v0 = vor.u32 %v4627_v46, %v20837_v23  ;;  %v20879_v46 = vsel %vm19956_vm1, %v16056_v19, %v5398_v57 }
 0x220   : > { %24430 = vst [vmem:[#allocation16_spill] sm:$0xff] %v20879_v46 }
 0x221   : > { %v4618_v42 = vor.u32 %v4617_v27, %v4614_v61  ;;  %v19094_v61 = vld [vmem:[#allocation2 + $0xb4] sm:$0xff]   ;;  %v20881_v38 = vrot.slane %v4628_v0, 4  ;;  %v4600_v0 = vsel %vm19581_vm12, %v20845_v44, %v20828_v41 }
 0x222   : > { %v20909_v44 = vld [vmem:[#allocation2 + $0xd4] sm:$0x1] }
 0x223   : > { %v20873_v27 = vrot.slane %v4618_v42, 4 }
 0x224   : > { %17731 = vmatmul.mubr.msk.bf16.gmra.mrb[8].mxu0 %vm1639_vm13, %v19086_v50  ;;  %v5384_v50 = vrot.slane %v20817_v54, 5 }
 0x225   : > { %17734 = vmatprep.mubr.msk.bf16.mxu0 %vm1639_vm13, %v19087_v8  ;;  %v5387_v8 = vrot.slane %v20819_v29, 5 }
 0x226   : > { %v5386_v36 = vrot.slane %v5384_v50, 4  ;;  %v20833_v34 = vsel %vm19956_vm1, %v16054_v2, %v5384_v50  ;;  %v5401_v50 = vrot.slane %v20856_v5, 5 }
 0x227   : > { %24428 = vst [vmem:[#allocation14_spill] sm:$0xff] %v20833_v34 }
 0x228   : > { %v20841_v52 = vsel %vm19956_vm1, %v5386_v36, %v5387_v8  ;;  %v4576_v8 = vsel %vm19581_vm12, %v4571_v7, %v20800_v21  ;;  %v20871_v36 = vld [vmem:[#allocation2 + $0x4c] sm:$0xf]  ;;  %v4660_v21 = vshrl.u32 %v4527_v22, 16  ;;  %v19095_v7 = vld [vmem:[#allocation2 + $0xc0] sm:$0xff]  }
 0x229   : > { %24429 = vst [vmem:[#allocation15_spill] sm:$0xff] %v20841_v52  ;;  %v4669_v26 = vshll.u32 %v20871_v36, 16 }
 0x22c   : > { %17735 = vmatmul.mubr.msk.bf16.gmra.mrb[12].mxu0 %vm1639_vm13, %v19088_v37  ;;  %v4603_v37 = vrot.slane %v4601_v45, 4  ;;  %v4639_v45 = vshll.u32 %v4524_v24, 16  ;;  %v20875_v24 = vld [vmem:[#allocation2 + $0x44] sm:$0x1] }
 0x22d   : > { %17738 = vmatprep.mubr.msk.bf16.mxu0 %vm1639_vm13, %v19089_v11  ;;  %v4607_v11 = vshll.u32 %v20812_v9, 16 }
 0x22f   : > { %v20848_v33 = vrot.slane %v4607_v11, 5  ;;  %v4638_v11 = vrot.slane %v4636_v17, 4  ;;  %v20887_v17 = vrot.slane %v4645_v30, 5  ;;  %v4662_v30 = vrot.slane %v4660_v21, 4 }
 0x234   : > { %17739 = vmatmul.mubr.msk.bf16.gmra.mrb[16].mxu0 %vm1639_vm13, %v19090_v1  ;;  %v4585_v1 = vrot.slane %v4583_v4, 5  ;;  %v4649_v4 = vshrl.u32 %v20850_v10, 16 }
 0x235   : > { %17742 = vmatprep.mubr.msk.bf16.mxu0 %vm1639_vm13, %v19091_v51  ;;  %v4604_v51 = vor.u32 %v4603_v37, %v20828_v41  ;;  %v20907_v41 = vld [vmem:[#allocation2 + $0xd0] sm:$0xf] }
 0x236   : > { %v4586_v2 = vsel %vm19581_vm12, %v4581_v13, %v4585_v1  ;;  %v4633_v13 = vrot.slane %v4631_v43, 5  ;;  %v4641_v1 = vrot.slane %v4639_v45, 5  ;;  %v4651_v42 = vrot.slane %v4649_v4, 4 }
 0x237   : > { %v20869_v37 = vrot.slane %v4604_v51, 4  ;;  %v16011_v14 = vcombine.low %v4576_v8, %v4586_v2  ;;  %v4655_v43 = vshll.u32 %v20875_v24, 16  ;;  %v4673_v45 = vshrl.u32 %v20871_v36, 16 }
 0x238   : > { %v4624_v8 = vsel %vm19581_vm12, %v20873_v27, %v20837_v23  ;;  %v4634_v19 = vsel %vm19581_vm12, %v20881_v38, %v4633_v13  ;;  %v4642_v2 = vor.u32 %v4641_v1, %v4638_v11  ;;  %v4652_v23 = vor.u32 %v4651_v42, %v20887_v17  ;;  %v19096_v11 = vld [vmem:[#allocation2 + $0xcc] sm:$0xff]   ;;  %v20924_v1 = vld [vmem:[#allocation2 + $0x64] sm:$0xf] }
 0x239   : > { %v20918_v27 = vrot.slane %v4669_v26, 5  ;;  %v4697_v13 = vshrl.u32 %v20747_v62, 16 }
 0x23a   : > { %v20930_v42 = vrot.slane %v4642_v2, 4  ;;  %v20938_v52 = vrot.slane %v4652_v23, 4  ;;  %v4717_v2 = vshll.u32 %v20924_v1, 16 }
 0x23c   : > { %17743 = vmatmul.mubr.msk.bf16.gmra.mrb[20].mxu0 %vm1639_vm13, %v19092_v31  ;;  %v5400_v31 = vrot.slane %v5398_v57, 4  ;;  %v4530_v57 = vld [vmem:[#allocation2 + $0x54] sm:$0xf] }
 0x23d   : > { %17746 = vmatprep.mubr.msk.bf16.mxu0 %vm1639_vm13, %v19093_v15  ;;  %v4663_v15 = vshll.u32 %v4527_v22, 16  ;;  %v4684_v21 = vshrl.u32 %v4530_v57, 16  ;;  %v20920_v22 = vld [vmem:[#allocation2 + $0x50] sm:$0x1]  ;;  %v4687_v59 = vshll.u32 %v4530_v57, 16 }
 0x23e   : > { %v20885_v51 = vsel %vm19956_vm1, %v5400_v31, %v5401_v50  ;;  %v4610_v50 = vsel %vm19581_vm12, %v20869_v37, %v20848_v33  ;;  %v4533_v31 = vld [vmem:[#allocation2 + $0x60] sm:$0xf]  ;;  %v5256_v33 = vld [vmem:[#allocation2 + $0xcc] sm:$0xe]  ;;  %v5412_v37 = vrot.slane %v20907_v41, 5  ;;  %v4679_v62 = vshll.u32 %v20920_v22, 16 }
 0x23f   : > { %24431 = vst [vmem:[#allocation17_spill] sm:$0xff] %v20885_v51  ;;  %v4665_v4 = vrot.slane %v4663_v15, 5  ;;  %v16058_v15 = vrot.slane %v5256_v33, 9  ;;  %v4708_v51 = vshrl.u32 %v4533_v31, 16  ;;  %v4711_v46 = vshll.u32 %v4533_v31, 16 }
 0x240   : > { %v5414_v38 = vrot.slane %v5412_v37, 4  ;;  %v20932_v33 = vrot.slane %v4655_v43, 5  ;;  %v4686_v34 = vrot.slane %v4684_v21, 4  ;;  %v4721_v43 = vshrl.u32 %v20924_v1, 16 }
 0x241   : > { %v20928_v26 = vsel %vm19956_vm1, %v16058_v15, %v5412_v37  ;;  %v4689_v15 = vrot.slane %v4687_v59, 5  ;;  %v4713_v23 = vrot.slane %v4711_v46, 5  ;;  %v16012_v21 = vcombine.low %v4600_v0, %v4610_v50  ;;  %v4539_v0 = vld [vmem:[#allocation2 + $0x78] sm:$0xf] }
 0x242   : > { %24432 = vst [vmem:[#allocation18_spill] sm:$0xff] %v20928_v26  ;;  %v16013_v31 = vcombine.low %v4624_v8, %v4634_v19  ;;  %v4648_v59 = vsel %vm19581_vm12, %v20930_v42, %v20887_v17  ;;  %v4681_v46 = vrot.slane %v4679_v62, 5  ;;  %v4723_v8 = vrot.slane %v4721_v43, 4  ;;  %v20963_v19 = vld [vmem:[#allocation2 + $0x7c] sm:$0xf] }
 0x244   : > { %17747 = vmatmul.mubr.msk.bf16.gmra.mrb[24].mxu0 %vm1639_vm13, %v19094_v61  ;;  %v5415_v61 = vrot.slane %v20909_v44, 5 }
 0x245   : > { %17750 = vmatprep.mubr.msk.bf16.mxu0 %vm1639_vm13, %v19095_v7  ;;  %v4675_v7 = vrot.slane %v4673_v45, 4  ;;  %v4666_v45 = vor.u32 %v4665_v4, %v4662_v30  ;;  %v20947_v30 = vrot.slane %v4693_v39, 5  ;;  %v4699_v4 = vrot.slane %v4697_v13, 4  ;;  %v20966_v13 = vld [vmem:[#allocation2 + $0x68] sm:$0x1] }
 0x246   : > { %v20936_v57 = vsel %vm19956_vm1, %v5414_v38, %v5415_v61  ;;  %v4710_v61 = vrot.slane %v4708_v51, 4  ;;  %v5516_v38 = vsel %vm1688_vm4, %v20740_v6, 0  ;;  %v4658_v39 = vsel %vm19581_vm12, %v20938_v52, %v20932_v33 }
 0x247   : > { %24433 = vst [vmem:[#allocation19_spill] sm:$0xff] %v20936_v57  ;;  %v4676_v37 = vor.u32 %v4675_v7, %v20918_v27  ;;  %v4536_v7 = vld [vmem:[#allocation2 + $0x6c] sm:$0xf]  ;;  %v4667_v51 = vrot.slane %v4666_v45, 4  ;;  %v20961_v6 = vrot.slane %v4717_v2, 5  ;;  %v4700_v17 = vor.u32 %v4699_v4, %v20947_v30 }
 0x248   : > { %v4714_v42 = vor.u32 %v4713_v23, %v4710_v61  ;;  %v4732_v57 = vshrl.u32 %v4536_v7, 16  ;;  %v4735_v26 = vshll.u32 %v4536_v7, 16  ;;  %v4741_v52 = vshll.u32 %v20765_v47, 16 }
 0x249   : > { %v4677_v50 = vrot.slane %v4676_v37, 4  ;;  %v4745_v33 = vshrl.u32 %v20765_v47, 16  ;;  %v4759_v45 = vshll.u32 %v4539_v0, 16  ;;  %v4765_v37 = vshll.u32 %v20963_v19, 16  ;;  %v4542_v47 = vld [vmem:[#allocation2 + $0x84] sm:$0xf] }
 0x24a   : > { %v4724_v4 = vor.u32 %v4723_v8, %v20961_v6  ;;  %v4727_v61 = vshll.u32 %v20966_v13, 16  ;;  %v4701_v23 = vrot.slane %v4700_v17, 4  ;;  %v4715_v7 = vrot.slane %v4714_v42, 4 }
 0x24b   : > { %v4682_v2 = vsel %vm19581_vm12, %v4677_v50, %v4681_v46  ;;  %v4761_v46 = vrot.slane %v4759_v45, 5  ;;  %v20983_v50 = vrot.slane %v4765_v37, 5  ;;  %v4780_v8 = vshrl.u32 %v4542_v47, 16  ;;  %v4545_v37 = vld [vmem:[#allocation2 + $0x90] sm:$0xf] }
 0x24c   : > { %17751 = vmatmul.mubr.msk.bf16.gmra.mrb[28].mxu0 %vm1639_vm13, %v19096_v11  ;;  %v4690_v11 = vor.u32 %v4689_v15, %v4686_v34  ;;  %v4672_v34 = vsel %vm19581_vm12, %v4667_v51, %v20918_v27  ;;  %v4769_v15 = vshrl.u32 %v20963_v19, 16  ;;  %v4737_v27 = vrot.slane %v4735_v26, 5 }
 0x24d   : > { %17756 = vmatprep.mubr.msk.bf16.mxu0 %vm1639_vm13, %v16011_v14  ;;  %v4703_v14 = vshll.u32 %v20749_v63, 16  ;;  %v4756_v63 = vshrl.u32 %v4539_v0, 16  ;;  %v4734_v0 = vrot.slane %v4732_v57, 4  ;;  %v20981_v51 = vrot.slane %v4741_v52, 5 }
 0x24e   : > { %v4691_v43 = vrot.slane %v4690_v11, 4  ;;  %v4771_v11 = vrot.slane %v4769_v15, 4  ;;  %v4783_v56 = vshll.u32 %v4542_v47, 16  ;;  %v4725_v3 = vrot.slane %v4724_v4, 4  ;;  %v20996_v15 = vld [vmem:[#allocation2 + $0x94] sm:$0xf] }
 0x24f   : > { %v4705_v62 = vrot.slane %v4703_v14, 5  ;;  %v4747_v14 = vrot.slane %v4745_v33, 4  ;;  %v4758_v28 = vrot.slane %v4756_v63, 4  ;;  %v4729_v53 = vrot.slane %v4727_v61, 5 }
 0x250   : > { %v4789_v57 = vshll.u32 %v20785_v12, 16  ;;  %v4793_v26 = vshrl.u32 %v20785_v12, 16  ;;  %v4696_v17 = vsel %vm19581_vm12, %v4691_v43, %v20947_v30  ;;  %v4738_v52 = vor.u32 %v4737_v27, %v4734_v0  ;;  %v4548_v27 = vld [vmem:[#allocation2 + $0x9c] sm:$0xf] }
 0x251   : > { %v4706_v42 = vsel %vm19581_vm12, %v4701_v23, %v4705_v62  ;;  %v4748_v33 = vor.u32 %v4747_v14, %v20981_v51  ;;  %v4751_v63 = vshll.u32 %v20767_v60, 16  ;;  %v4762_v45 = vor.u32 %v4761_v46, %v4758_v28 }
 0x252   : > { %v4772_v12 = vor.u32 %v4771_v11, %v20983_v50  ;;  %v4720_v30 = vsel %vm19581_vm12, %v4715_v7, %v20961_v6  ;;  %v4730_v62 = vsel %vm19581_vm12, %v4725_v3, %v4729_v53  ;;  %v4795_v60 = vrot.slane %v4793_v26, 4 }
 0x253   : > { %v4804_v28 = vshrl.u32 %v4545_v37, 16  ;;  %v4807_v43 = vshll.u32 %v4545_v37, 16  ;;  %v4813_v4 = vshll.u32 %v20996_v15, 16  ;;  %v4817_v61 = vshrl.u32 %v20996_v15, 16 }
 0x254   : > { %17757 = vmatmul.mubr.msk.bf16.vlgmr.msra.gmra.mrb[0].mxu0 %vm1639_vm13, %v16012_v21  ;;  %v20985_v21 = vld [vmem:[#allocation2 + $0x80] sm:$0x1]  ;;  %v4749_v47 = vrot.slane %v4748_v33, 4  ;;  %v4753_v23 = vrot.slane %v4751_v63, 5  ;;  %v4763_v6 = vrot.slane %v4762_v45, 4  ;;  %v4773_v7 = vrot.slane %v4772_v12, 4 }
 0x255   : > { %17789 = vmatpush3.bf16.msra.mxu0 %v5516_v38  ;;  %17760 = vmatprep.mubr.msk.bf16.mxu0 %vm1639_vm13, %v16013_v31  ;;  %v16014_v38 = vcombine.low %v4648_v59, %v4658_v39  ;;  %v16015_v31 = vcombine.low %v4672_v34, %v4682_v2  ;;  %v4775_v59 = vshll.u32 %v20985_v21, 16  ;;  %v4782_v39 = vrot.slane %v4780_v8, 4  ;;  %v21013_v8 = vld [vmem:[#allocation2 + $0x98] sm:$0x1] }
 0x256   : > { %v4785_v34 = vrot.slane %v4783_v56, 5  ;;  %v21005_v2 = vrot.slane %v4789_v57, 5  ;;  %v4739_v56 = vrot.slane %v4738_v52, 4  ;;  %v4799_v3 = vshll.u32 %v20787_v25, 16 }
 0x257   : > { %v4777_v0 = vrot.slane %v4775_v59, 5  ;;  %v16016_v14 = vcombine.low %v4696_v17, %v4706_v42  ;;  %v16017_v46 = vcombine.low %v4720_v30, %v4730_v62  ;;  %v4806_v57 = vrot.slane %v4804_v28, 4  ;;  %v4551_v17 = vld [vmem:[#allocation2 + $0xa8] sm:$0xf]  ;;  %v21022_v42 = vld [vmem:[#allocation2 + $0xac] sm:$0xf] }
 0x258   : > { %v4786_v53 = vor.u32 %v4785_v34, %v4782_v39  ;;  %v4796_v11 = vor.u32 %v4795_v60, %v21005_v2  ;;  %v4809_v26 = vrot.slane %v4807_v43, 5  ;;  %v4744_v52 = vsel %vm19581_vm12, %v4739_v56, %v20981_v51 }
 0x259   : > { %v4754_v33 = vsel %vm19581_vm12, %v4749_v47, %v4753_v23  ;;  %v4828_v25 = vshrl.u32 %v4548_v27, 16  ;;  %v4831_v63 = vshll.u32 %v4548_v27, 16  ;;  %v4768_v45 = vsel %vm19581_vm12, %v4763_v6, %v20983_v50 }
 0x25a   : > { %v4778_v37 = vsel %vm19581_vm12, %v4773_v7, %v4777_v0  ;;  %v4787_v12 = vrot.slane %v4786_v53, 4  ;;  %v4801_v59 = vrot.slane %v4799_v3, 5  ;;  %v4797_v39 = vrot.slane %v4796_v11, 4  ;;  %v21044_v3 = vld [vmem:[#allocation2 + $0xb0] sm:$0x1] }
 0x25b   : > { %v4823_v51 = vshll.u32 %v21013_v8, 16  ;;  %v4837_v34 = vshll.u32 %v20817_v54, 16  ;;  %v4841_v30 = vshrl.u32 %v20817_v54, 16  ;;  %v4852_v62 = vshrl.u32 %v4551_v17, 16 }
 0x25c   : > { %17761 = vmatmul.mubr.msk.bf16.gmra.mrb[4].mxu0 %vm1639_vm13, %v16014_v38  ;;  %v21015_v38 = vrot.slane %v4813_v4, 5  ;;  %v4855_v60 = vshll.u32 %v4551_v17, 16  ;;  %v4861_v28 = vshll.u32 %v21022_v42, 16  ;;  %v4865_v50 = vshrl.u32 %v21022_v42, 16 }
 0x25d   : > { %17764 = vmatprep.mubr.msk.bf16.mxu0 %vm1639_vm13, %v16015_v31  ;;  %v4819_v31 = vrot.slane %v4817_v61, 4  ;;  %v4810_v43 = vor.u32 %v4809_v26, %v4806_v57  ;;  %v4830_v61 = vrot.slane %v4828_v25, 4  ;;  %v4833_v56 = vrot.slane %v4831_v63, 5  ;;  %v4554_v57 = vld [vmem:[#allocation2 + $0xb4] sm:$0xf] }
 0x25e   : > { %v16018_v47 = vcombine.low %v4744_v52, %v4754_v33  ;;  %v16019_v23 = vcombine.low %v4768_v45, %v4778_v37  ;;  %v4792_v54 = vsel %vm19581_vm12, %v4787_v12, %v21005_v2  ;;  %v4802_v6 = vsel %vm19581_vm12, %v4797_v39, %v4801_v59  ;;  %v4557_v37 = vld [vmem:[#allocation2 + $0xc0] sm:$0xf]  ;;  %v21049_v12 = vld [vmem:[#allocation2 + $0xc4] sm:$0xf] }
 0x25f   : > { %v4820_v4 = vor.u32 %v4819_v31, %v21015_v38  ;;  %v4825_v7 = vrot.slane %v4823_v51, 5  ;;  %v21042_v0 = vrot.slane %v4837_v34, 5  ;;  %v4843_v53 = vrot.slane %v4841_v30, 4 }
 0x260   : > { %v4854_v27 = vrot.slane %v4852_v62, 4  ;;  %v4867_v11 = vrot.slane %v4865_v50, 4  ;;  %v4811_v26 = vrot.slane %v4810_v43, 4  ;;  %v4834_v52 = vor.u32 %v4833_v56, %v4830_v61 }
 0x261   : > { %v4821_v31 = vrot.slane %v4820_v4, 4  ;;  %v4847_v33 = vshll.u32 %v20819_v29, 16  ;;  %v4871_v2 = vshll.u32 %v21044_v3, 16  ;;  %v16020_v25 = vcombine.low %v4792_v54, %v4802_v6 }
 0x262   : > { %v4844_v63 = vor.u32 %v4843_v53, %v21042_v0  ;;  %v4876_v17 = vshrl.u32 %v4554_v57, 16  ;;  %v4879_v45 = vshll.u32 %v4554_v57, 16  ;;  %v4885_v51 = vshll.u32 %v20854_v58, 16  ;;  %v4560_v57 = vld [vmem:[#allocation2 + $0xcc] sm:$0xf] }
 0x263   : > { %v4889_v34 = vshrl.u32 %v20854_v58, 16  ;;  %v4816_v29 = vsel %vm19581_vm12, %v4811_v26, %v21015_v38  ;;  %v4826_v30 = vsel %vm19581_vm12, %v4821_v31, %v4825_v7  ;;  %v4835_v62 = vrot.slane %v4834_v52, 4 }
 0x264   : > { %17765 = vmatmul.mubr.msk.bf16.gmra.mrb[8].mxu0 %vm1639_vm13, %v16016_v14  ;;  %v4857_v14 = vrot.slane %v4855_v60, 5  ;;  %v4849_v60 = vrot.slane %v4847_v33, 5  ;;  %v4903_v50 = vshll.u32 %v4557_v37, 16  ;;  %v4909_v43 = vshll.u32 %v21049_v12, 16  ;;  %v21067_v33 = vld [vmem:[#allocation2 + $0xc8] sm:$0x1] }
 0x265   : > { %17768 = vmatprep.mubr.msk.bf16.mxu0 %vm1639_vm13, %v16017_v46  ;;  %v4863_v46 = vrot.slane %v4861_v28, 5  ;;  %v4900_v28 = vshrl.u32 %v4557_v37, 16  ;;  %v4913_v4 = vshrl.u32 %v21049_v12, 16  ;;  %v4845_v61 = vrot.slane %v4844_v63, 4 }
 0x266   : > { %v4858_v59 = vor.u32 %v4857_v14, %v4854_v27  ;;  %v4873_v56 = vrot.slane %v4871_v2, 5  ;;  %v4878_v58 = vrot.slane %v4876_v17, 4  ;;  %v4887_v6 = vrot.slane %v4885_v51, 5 }
 0x267   : > { %v4868_v39 = vor.u32 %v4867_v11, %v4863_v46  ;;  %v4891_v53 = vrot.slane %v4889_v34, 4  ;;  %v16021_v38 = vcombine.low %v4816_v29, %v4826_v30  ;;  %v4902_v27 = vrot.slane %v4900_v28, 4 }
 0x268   : > { %v4905_v14 = vrot.slane %v4903_v50, 5  ;;  %v4911_v7 = vrot.slane %v4909_v43, 5  ;;  %v4915_v11 = vrot.slane %v4913_v4, 4  ;;  %v4840_v26 = vsel %vm19581_vm12, %v4835_v62, %v21042_v0 }
 0x269   : > { %v4869_v54 = vrot.slane %v4868_v39, 4  ;;  %v4850_v31 = vsel %vm19581_vm12, %v4845_v61, %v4849_v60  ;;  %v4892_v17 = vor.u32 %v4891_v53, %v4887_v6  ;;  %v4924_v0 = vshrl.u32 %v4560_v57, 16 }
 0x26a   : > { %v4927_v37 = vshll.u32 %v4560_v57, 16  ;;  %v4937_v39 = vshrl.u32 %v20907_v41, 16  ;;  %v4906_v51 = vor.u32 %v4905_v14, %v4902_v27  ;;  %v4916_v34 = vor.u32 %v4915_v11, %v4911_v7  ;;  %v5241_v14 = vld [vmem:[#allocation2 + $0x18] sm:$0xe] }
 0x26b   : > { %v4874_v63 = vsel %vm19581_vm12, %v4869_v54, %v4873_v56  ;;  %v16022_v29 = vcombine.low %v4840_v26, %v4850_v31  ;;  %v4893_v62 = vrot.slane %v4892_v17, 4  ;;  %v4926_v28 = vrot.slane %v4924_v0, 4  ;;  %v5242_v0 = vld [vmem:[#allocation2 + $0x24] sm:$0xe] }
 0x26c   : > { %17769 = vmatmul.mubr.msk.bf16.gmra.mrb[12].mxu0 %vm1639_vm13, %v16018_v47  ;;  %v4881_v47 = vrot.slane %v4879_v45, 5  ;;  %v4895_v45 = vshll.u32 %v20856_v5, 16  ;;  %v4929_v50 = vrot.slane %v4927_v37, 5  ;;  %v4939_v43 = vrot.slane %v4937_v39, 4  ;;  %v5243_v37 = vld [vmem:[#allocation2 + $0x30] sm:$0xe] }
 0x26d   : > { %17772 = vmatprep.mubr.msk.bf16.mxu0 %vm1639_vm13, %v16019_v23  ;;  %v4859_v23 = vrot.slane %v4858_v59, 4  ;;  %v4933_v59 = vshll.u32 %v20907_v41, 16  ;;  %v4907_v4 = vrot.slane %v4906_v51, 4  ;;  %v4917_v61 = vrot.slane %v4916_v34, 4 }
 0x26e   : > { %v4882_v52 = vor.u32 %v4881_v47, %v4878_v58  ;;  %v4897_v60 = vrot.slane %v4895_v45, 5  ;;  %v4930_v47 = vor.u32 %v4929_v50, %v4926_v28  ;;  %v4943_v54 = vshll.u32 %v20909_v44, 16  ;;  %v5244_v28 = vld [vmem:[#allocation2 + $0x3c] sm:$0xe]  ;;  %v5245_v50 = vld [vmem:[#allocation2 + $0x48] sm:$0xe] }
 0x26f   : > { %v4864_v2 = vsel %vm19581_vm12, %v4859_v23, %v4863_v46  ;;  %v4935_v5 = vrot.slane %v4933_v59, 5  ;;  %v4912_v53 = vsel %vm19581_vm12, %v4907_v4, %v4911_v7  ;;  %v5307_v27 = vrot.slane %v20780_v16, 5 }
 0x270   : > { %v16023_v46 = vcombine.low %v4864_v2, %v4874_v63  ;;  %v4883_v30 = vrot.slane %v4882_v52, 4  ;;  %v4898_v58 = vsel %vm19581_vm12, %v4893_v62, %v4897_v60  ;;  %v4931_v57 = vrot.slane %v4930_v47, 4 }
 0x271   : > { %v4940_v23 = vor.u32 %v4939_v43, %v4935_v5  ;;  %v4945_v31 = vrot.slane %v4943_v54, 5  ;;  %v16043_v52 = vrot.slane %v5241_v14, 9  ;;  %v5309_v2 = vrot.slane %v5307_v27, 4 }
 0x272   : > { %v4888_v41 = vsel %vm19581_vm12, %v4883_v30, %v4887_v6  ;;  %v5310_v63 = vrot.slane %v20810_v18, 5  ;;  %v4936_v44 = vsel %vm19581_vm12, %v4931_v57, %v4935_v5  ;;  %v5314_v7 = vrot.slane %v20794_v32, 5 }
 0x273   : > { %v16024_v11 = vcombine.low %v4888_v41, %v4898_v58  ;;  %v4941_v26 = vrot.slane %v4940_v23, 4  ;;  %v5308_v17 = vsel %vm19956_vm1, %v16043_v52, %v5307_v27  ;;  %v5321_v18 = vrot.slane %v20806_v40, 5 }
 0x274   : > { %17773 = vmatmul.mubr.msk.bf16.gmra.mrb[16].mxu0 %vm1639_vm13, %v16020_v25  ;;  %v4919_v25 = vshll.u32 %v21067_v33, 16  ;;  %v5311_v45 = vsel %vm19956_vm1, %v5309_v2, %v5310_v63  ;;  %v16044_v51 = vrot.slane %v5242_v0, 9  ;;  %v5316_v34 = vrot.slane %v5314_v7, 4 }
 0x275   : > { %17776 = vmatprep.mubr.msk.bf16.mxu0 %vm1639_vm13, %v16021_v38  ;;  %v4946_v16 = vsel %vm19581_vm12, %v4941_v26, %v4945_v31  ;;  %v16059_v39 = vcombine.low %v5308_v17, %v5311_v45  ;;  %v5324_v32 = vrot.slane %v20835_v35, 5  ;;  %v5328_v62 = vrot.slane %v20850_v10, 5 }
 0x276   : > { %v4921_v56 = vrot.slane %v4919_v25, 5  ;;  %v16026_v59 = vcombine.low %v4936_v44, %v4946_v16  ;;  %v5317_v25 = vrot.slane %v20812_v9, 5  ;;  %v5315_v30 = vsel %vm19956_vm1, %v16044_v51, %v5314_v7  ;;  %v5251_v7 = vld [vmem:[#allocation2 + $0x90] sm:$0xe] }
 0x277   : > { %v5335_v35 = vrot.slane %v20871_v36, 5  ;;  %v16046_v4 = vrot.slane %v5244_v28, 9  ;;  %v16047_v41 = vrot.slane %v5245_v50, 9  ;;  %v5338_v10 = vrot.slane %v20920_v22, 5  ;;  %v24442_v50 = vld [vmem:[#allocation15_spill] sm:$0xff] }
 0x278   : > { %v4922_v38 = vsel %vm19581_vm12, %v4917_v61, %v4921_v56  ;;  %v5318_v40 = vsel %vm19956_vm1, %v5316_v34, %v5317_v25  ;;  %v5330_v61 = vrot.slane %v5328_v62, 4  ;;  %v5331_v56 = vrot.slane %v20875_v24, 5 }
 0x279   : > { %v16025_v6 = vcombine.low %v4912_v53, %v4922_v38  ;;  %v16060_v5 = vcombine.low %v5315_v30, %v5318_v40  ;;  %v5337_v58 = vrot.slane %v5335_v35, 4  ;;  %v5329_v47 = vsel %vm19956_vm1, %v16046_v4, %v5328_v62  ;;  %v5247_v53 = vld [vmem:[#allocation2 + $0x60] sm:$0xe] }
 0x27a   : > { %v5332_v36 = vsel %vm19956_vm1, %v5330_v61, %v5331_v56  ;;  %v5336_v23 = vsel %vm19956_vm1, %v16047_v41, %v5335_v35  ;;  %v5349_v54 = vrot.slane %v20924_v1, 5  ;;  %v16049_v27 = vrot.slane %v5247_v53, 9  ;;  %v5249_v1 = vld [vmem:[#allocation2 + $0x78] sm:$0xe]  ;;  %v5255_v62 = vld [vmem:[#allocation2 + $0xc0] sm:$0xe] }
 0x27b   : > { %v5339_v24 = vsel %vm19956_vm1, %v5337_v58, %v5338_v10  ;;  %v16062_v22 = vcombine.low %v5329_v47, %v5332_v36  ;;  %v5363_v26 = vrot.slane %v20963_v19, 5  ;;  %v16051_v52 = vrot.slane %v5249_v1, 9  ;;  %v24441_v35 = vld [vmem:[#allocation14_spill] sm:$0xff]  ;;  %v24444_v61 = vld [vmem:[#allocation16_spill] sm:$0xff]  ;;  %v24445_v56 = vld [vmem:[#allocation17_spill] sm:$0xff] }
 0x27c   : > { %17777 = vmatmul.mubr.msk.bf16.gmra.mrb[20].mxu0 %vm1639_vm13, %v16022_v29  ;;  %v16045_v29 = vrot.slane %v5243_v37, 9  ;;  %v16063_v38 = vcombine.low %v5336_v23, %v5339_v24  ;;  %v5351_v14 = vrot.slane %v5349_v54, 4  ;;  %v5366_v63 = vrot.slane %v20985_v21, 5  ;;  %v24448_v58 = vld [vmem:[#allocation19_spill] sm:$0xff]  ;;  %v539_v36 = vld [vmem:[#allocation3 + $0xc] sm:$0x1] }
 0x27d   : > { %17780 = vmatprep.mubr.msk.bf16.mxu0 %vm1639_vm13, %v16023_v46  ;;  %v5323_v46 = vrot.slane %v5321_v18, 4  ;;  %v5365_v2 = vrot.slane %v5363_v26, 4  ;;  %v5364_v44 = vsel %vm19956_vm1, %v16051_v52, %v5363_v26  ;;  %v5377_v19 = vrot.slane %v20996_v15, 5  ;;  %v508_v53 = vld [vmem:[#allocation3 + $0x8] sm:$0x1] }
 0x27e   : > { %v5322_v60 = vsel %vm19956_vm1, %v16045_v29, %v5321_v18  ;;  %v16053_v45 = vrot.slane %v5251_v7, 9  ;;  %v5380_v21 = vrot.slane %v21013_v8, 5  ;;  %v24435_v18 = vld [vmem:[#allocation10_spill] sm:$0xff]  ;;  %v5391_v15 = vrot.slane %v21022_v42, 5  ;;  %v24438_v29 = vld [vmem:[#allocation12_spill] sm:$0xff] }
 0x27f   : > { %v5325_v9 = vsel %vm19956_vm1, %v5323_v46, %v5324_v32  ;;  %v5367_v16 = vsel %vm19956_vm1, %v5365_v2, %v5366_v63  ;;  %v5379_v0 = vrot.slane %v5377_v19, 4  ;;  %v5394_v8 = vrot.slane %v21044_v3, 5  ;;  %v24439_v46 = vld [vmem:[#allocation13_spill] sm:$0xff]  ;;  %v517_v2 = vld [vmem:[#allocation3 + $0x20] sm:$0x1] }
 0x280   : > { %v16061_v43 = vcombine.low %v5322_v60, %v5325_v9  ;;  %v16067_v17 = vcombine.low %v5364_v44, %v5367_v16  ;;  %v5378_v37 = vsel %vm19956_vm1, %v16053_v45, %v5377_v19  ;;  %v5393_v25 = vrot.slane %v5391_v15, 4  ;;  %v514_v26 = vld [vmem:[#allocation3 + $0x18] sm:$0x1]  ;;  %v520_v16 = vld [vmem:[#allocation3 + $0x28] sm:$0x1] }
 0x281   : > { %v24440_v32 = vcombine.low %v24438_v29, %v24439_v46  ;;  %v5405_v42 = vrot.slane %v21049_v12, 5  ;;  %v16057_v9 = vrot.slane %v5255_v62, 9  ;;  %v5408_v3 = vrot.slane %v21067_v33, 5  ;;  %v24447_v33 = vld [vmem:[#allocation18_spill] sm:$0xff] }
 0x282   : > { %v5395_v40 = vsel %vm19956_vm1, %v5393_v25, %v5394_v8  ;;  %v24446_v41 = vcombine.low %v24444_v61, %v24445_v56  ;;  %v24449_v10 = vcombine.low %v24447_v33, %v24448_v58  ;;  %v24452_v23 = vmov 0  }
 0x283   : > { %v5407_v28 = vrot.slane %v5405_v42, 4  ;;  %499 = vst.msk [vmem:[#allocation3 + $0x4] sm:$0x1] %vm498_vm0, %v24452_v23  ;;  %502 = vst.msk [vmem:[#allocation3 + $0x4c] sm:$0x1] %vm498_vm0, %v24452_v23  ;;  %v540_v24 = vsel %vm21192_vm5, 0, %v539_v36 }
 0x284   : > { %17781 = vmatmul.mubr.msk.bf16.gmra.mrb[24].mxu0 %vm1639_vm13, %v16024_v11  ;;  %v5352_v11 = vrot.slane %v20966_v13, 5  ;;  %v24434_v13 = vcombine.low %v20756_v49, %v20760_v48  ;;  %v24436_v49 = vld [vmem:[#allocation11_spill] sm:$0xff]  ;;  %541 = vst [vmem:[#allocation3 + $0xc] sm:$0x1] %v540_v24  ;;  %497 = vst.msk [vmem:[#allocation3] sm:$0xf] %vm496_vm6, %v24452_v23 }
 0x285   : > { %17784 = vmatprep.mubr.msk.bf16.mxu0 %vm1639_vm13, %v16025_v6  ;;  %v5350_v6 = vsel %vm19956_vm1, %v16049_v27, %v5349_v54  ;;  %v24437_v48 = vcombine.low %v24435_v18, %v24436_v49  ;;  %v5409_v4 = vsel %vm19956_vm1, %v5407_v28, %v5408_v3  ;;  %501 = vst.msk [vmem:[#allocation3 + $0x48] sm:$0xf] %vm496_vm6, %v24452_v23  ;;  %v515_v1 = vsel %vm21201_vm7, 0, %v514_v26  ;;  %v21233_v18 = vld [vmem:[%s24282_s2] ss:$0 sm:$0xff]  ;;  %vm21335_vm0 = vmand %vm496_vm6, %vm440_vm3  ;;  %v19117_v54 = vld [vmem:[%s24283_s3 + $0x78] sm:$0xff]  }
 0x286   : > { %v5353_v57 = vsel %vm19956_vm1, %v5351_v14, %v5352_v11  ;;  %v511_v14 = vld [vmem:[#allocation3 + $0x10] sm:$0x1]  ;;  %516 = vst [vmem:[#allocation3 + $0x18] sm:$0x1] %v515_v1  ;;  %v518_v63 = vsel %vm21201_vm7, 0, %v517_v2  ;;  %v521_v45 = vsel %vm21201_vm7, 0, %v520_v16 }
 0x287   : > { %v16065_v31 = vcombine.low %v5350_v6, %v5353_v57  ;;  %v512_v11 = vsel %vm21201_vm7, 0, %v511_v14  ;;  %v545_v6 = vld [vmem:[#allocation3 + $0x1c] sm:$0x1]  ;;  %519 = vst [vmem:[#allocation3 + $0x20] sm:$0x1] %v518_v63  ;;  %vm7756_vm6 = vcmask 523264  }
 0x288   : > { %513 = vst [vmem:[#allocation3 + $0x10] sm:$0x1] %v512_v11  ;;  %v546_v57 = vsel %vm21192_vm5, 0, %v545_v6  ;;  %v19397_v19 = vmov 1983009808  }
 0x289   : > { %547 = vst [vmem:[#allocation3 + $0x1c] sm:$0x1] %v546_v57  ;;  %v5816_v7 = vunpack.c.l.s4 %v19397_v19  ;;  %522 = vst [vmem:[#allocation3 + $0x28] sm:$0x1] %v521_v45 }
 0x28c   : > { %17785 = vmatmul.mubr.msk.bf16.gmra.mrb[28].mxu0 %vm1639_vm13, %v16026_v59  ;;  %v5381_v59 = vsel %vm19956_vm1, %v5379_v0, %v5380_v21  ;;  %v5817_v0 = vunpack.c.0.s8 %v5816_v7 }
 0x28d   : > { %17790 = vmatprep.mubr.msk.bf16.mxu0 %vm1639_vm13, %v16059_v39  ;;  %v5253_v39 = vld [vmem:[#allocation2 + $0xa8] sm:$0xe]  ;;  %v16069_v51 = vcombine.low %v5378_v37, %v5381_v59 }
 0x28e   : > { %v16055_v34 = vrot.slane %v5253_v39, 9 }
 0x290   : > { %v5392_v30 = vsel %vm19956_vm1, %v16055_v34, %v5391_v15 }
 0x291   : > { %v16071_v60 = vcombine.low %v5392_v30, %v5395_v40 }
 0x294   : > { %17791 = vmatmul.mubr.msk.bf16.vlgmr.msra.gmra.mrb[0].mxu0 %vm1639_vm13, %v16060_v5  ;;  %v24443_v5 = vcombine.low %v24441_v35, %v24442_v50 }
 0x295   : > { %17794 = vmatprep.mubr.msk.bf16.mxu0 %vm1639_vm13, %v16061_v43  ;;  %v5406_v43 = vsel %vm19956_vm1, %v16057_v9, %v5405_v42 }
 0x296   : > { %v16073_v12 = vcombine.low %v5406_v43, %v5409_v4 }
 0x29c   : > { %17795 = vmatmul.mubr.msk.bf16.gmra.mrb[4].mxu0 %vm1639_vm13, %v16062_v22  ;;  %v509_v22 = vsel %vm21201_vm7, 0, %v508_v53 }
 0x29d   : > { %17798 = vmatprep.mubr.msk.bf16.mxu0 %vm1639_vm13, %v16063_v38  ;;  %510 = vst [vmem:[#allocation3 + $0x8] sm:$0x1] %v509_v22  ;;  %v542_v38 = vld [vmem:[#allocation3 + $0x14] sm:$0x1] }
 0x29e   : > { %v543_v27 = vsel %vm21192_vm5, 0, %v542_v38 }
 0x29f   : > { %544 = vst [vmem:[#allocation3 + $0x14] sm:$0x1] %v543_v27 }
 0x2a4   : > { %17799 = vmatmul.mubr.msk.bf16.gmra.mrb[8].mxu0 %vm1639_vm13, %v24434_v13  ;;  %v551_v13 = vld [vmem:[#allocation3 + $0x2c] sm:$0x1] }
 0x2a5   : > { %17802 = vmatprep.mubr.msk.bf16.mxu0 %vm1639_vm13, %v16065_v31  ;;  %v548_v31 = vld [vmem:[#allocation3 + $0x24] sm:$0x1]  ;;  %v552_v44 = vsel %vm21192_vm5, 0, %v551_v13 }
 0x2a6   : > { %v549_v52 = vsel %vm21192_vm5, 0, %v548_v31  ;;  %553 = vst [vmem:[#allocation3 + $0x2c] sm:$0x1] %v552_v44 }
 0x2a7   : > { %550 = vst [vmem:[#allocation3 + $0x24] sm:$0x1] %v549_v52 }
 0x2ac   : > { %17803 = vmatmul.mubr.msk.bf16.gmra.mrb[12].mxu0 %vm1639_vm13, %v24437_v48 }
 0x2ad   : > { %17806 = vmatprep.mubr.msk.bf16.mxu0 %vm1639_vm13, %v16067_v17  ;;  %v24320_v17 = vlaneseq }
 0x2af   : > { %v21228_v21 = vshrl.u32 %v24320_v17, 7 }
 0x2b1   : > { %24455 = vst [vmem:[#allocation8_spill] sm:$0xff] %v21228_v21  ;;  %v21237_v37 = vsub.s32 %v5817_v0, %v21228_v21 }
 0x2b4   : > { %17807 = vmatmul.mubr.msk.bf16.gmra.mrb[16].mxu0 %vm1639_vm13, %v24440_v32 }
 0x2b5   : > { %17810 = vmatprep.mubr.msk.bf16.mxu0 %vm1639_vm13, %v16069_v51 }
 0x2bc   : > { %17811 = vmatmul.mubr.msk.bf16.gmra.mrb[20].mxu0 %vm1639_vm13, %v24443_v5 }
 0x2bd   : > { %17814 = vmatprep.mubr.msk.bf16.mxu0 %vm1639_vm13, %v16071_v60 }
 0x2c4   : > { %17815 = vmatmul.mubr.msk.bf16.gmra.mrb[24].mxu0 %vm1639_vm13, %v24446_v41 }
 0x2c5   : > { %17818 = vmatprep.mubr.msk.bf16.mxu0 %vm1639_vm13, %v16073_v12 }
 0x2cc   : > { %17819 = vmatmul.mubr.msk.bf16.gmra.mrb[28].mxu0 %vm1639_vm13, %v24449_v10  ;;  %vm7393_vm13 = vcmask 1045509  }
 0x367   : > { %v17792_v49 = vpop.f32.mrb[0].mxu0 }
 0x368   : > { %v5720_v48 = vadd.f32 %v17792_v49, %v21233_v18  ;;  %v5552_v59 = vpop.f32.mrb[1].mxu0 }
 0x369   : > { %v5718_v15 = vadd.f32 %v21233_v18, %v5552_v59  ;;  %v17793_v39 = vpop.f32.mrb[2].mxu0 }
 0x36a   : > { %v21240_v51 = vmax.f32 %v5720_v48, 0.0  ;;  %v5721_v34 = vadd.f32 %v17793_v39, %v21233_v18  ;;  %v5555_v25 = vpop.f32.mrb[3].mxu0 }
 0x36b   : > { %v21243_v8 = vmax.f32 %v5718_v15, 0.0  ;;  %v5719_v29 = vadd.f32 %v21233_v18, %v5555_v25 }
 0x36c   : > { %24456 = vst [vmem:[#allocation20_spill] sm:$0xff] %v21240_v51  ;;  %v5848_v46 = vcombine.high %v21240_v51, %v21240_v51  ;;  %v5855_v32 = vrot.slane %v21240_v51, %v21237_v37  ;;  %v21250_v30 = vmax.f32 %v5721_v34, 0.0 }
 0x36d   : > { %24457 = vst [vmem:[#allocation21_spill] sm:$0xff] %v21243_v8  ;;  %v5814_v40 = vcombine.high %v21243_v8, %v21243_v8  ;;  %v5821_v42 = vrot.slane %v21243_v8, %v21237_v37  ;;  %v21256_v62 = vmax.f32 %v5719_v29, 0.0 }
 0x36e   : > { %24458 = vst [vmem:[#allocation10_spill] sm:$0xff] %v21250_v30  ;;  %v5862_v60 = vrot.slane %v5848_v46, %v21237_v37  ;;  %v5863_v9 = vcombine.high %v5855_v32, %v5855_v32  ;;  %v16100_v28 = vrot.slane %v5855_v32, 9  ;;  %v5865_v3 = vcombine.high %v21250_v30, %v21250_v30 }
 0x36f   : > { %24459 = vst [vmem:[#allocation11_spill] sm:$0xff] %v21256_v62  ;;  %v5828_v35 = vrot.slane %v5814_v40, %v21237_v37  ;;  %v5829_v50 = vcombine.high %v5821_v42, %v5821_v42  ;;  %v16092_v5 = vrot.slane %v5821_v42, 9  ;;  %v5872_v43 = vrot.slane %v21250_v30, %v21237_v37  ;;  %v17796_v4 = vpop.f32.mrb[4].mxu0 }
 0x370   : > { %v5864_v12 = vcombine.high %v5862_v60, %v5862_v60  ;;  %v16101_v61 = vrot.slane %v5863_v9, 9  ;;  %v16102_v56 = vrot.slane %v5862_v60, 9  ;;  %v6878_v41 = vmax.f32 %v5855_v32, %v16100_v28  ;;  %v5568_v33 = vpop.f32.mrb[5].mxu0 }
 0x371   : > { %v5830_v58 = vcombine.high %v5828_v35, %v5828_v35  ;;  %v16093_v10 = vrot.slane %v5829_v50, 9  ;;  %v16094_v36 = vrot.slane %v5828_v35, 9  ;;  %v6870_v23 = vmax.f32 %v5821_v42, %v16092_v5  ;;  %v17797_v24 = vpop.f32.mrb[6].mxu0 }
 0x372   : > { %v16103_v53 = vrot.slane %v5864_v12, 9  ;;  %v6879_v22 = vmax.f32 %v5863_v9, %v16101_v61  ;;  %v6880_v38 = vmax.f32 %v5862_v60, %v16102_v56  ;;  %v5879_v27 = vrot.slane %v5865_v3, %v21237_v37  ;;  %v21265_v14 = vpop.f32.mrb[7].mxu0 }
 0x373   : > { %v16095_v11 = vrot.slane %v5830_v58, 9  ;;  %v6871_v6 = vmax.f32 %v5829_v50, %v16093_v10  ;;  %v6872_v57 = vmax.f32 %v5828_v35, %v16094_v36  ;;  %v6998_v26 = vmax.f32 %v6870_v23, %v6878_v41 }
 0x374   : > { %v6881_v1 = vmax.f32 %v5864_v12, %v16103_v53  ;;  %v5880_v31 = vcombine.high %v5872_v43, %v5872_v43  ;;  %v5881_v52 = vcombine.high %v5879_v27, %v5879_v27  ;;  %v16104_v2 = vrot.slane %v5872_v43, 9 }
 0x375   : > { %v6873_v63 = vmax.f32 %v5830_v58, %v16095_v11  ;;  %v6999_v13 = vmax.f32 %v6871_v6, %v6879_v22  ;;  %v7000_v44 = vmax.f32 %v6872_v57, %v6880_v38  ;;  %v16951_v16 = vpack.c.bf16 %v6998_v26, %v6998_v26 }
 0x376   : > { %v16105_v19 = vrot.slane %v5880_v31, 9  ;;  %v16106_v7 = vrot.slane %v5879_v27, 9  ;;  %v16107_v45 = vrot.slane %v5881_v52, 9  ;;  %v6882_v0 = vmax.f32 %v5872_v43, %v16104_v2 }
 0x377   : > { %v7001_v49 = vmax.f32 %v6873_v63, %v6881_v1  ;;  %v16952_v48 = vpack.c.bf16 %v6999_v13, %v6999_v13  ;;  %v16953_v59 = vpack.c.bf16 %v7000_v44, %v7000_v44  ;;  %v7318_v15 = vunpack.c.l.b16 %v16951_v16  ;;  %v21267_v39 = vpop.f32.mrb[8].mxu0 }
 0x378   : > { %v6883_v34 = vmax.f32 %v5880_v31, %v16105_v19  ;;  %v6884_v25 = vmax.f32 %v5879_v27, %v16106_v7  ;;  %v6885_v29 = vmax.f32 %v5881_v52, %v16107_v45  ;;  %v5831_v46 = vcombine.high %v21256_v62, %v21256_v62  ;;  %v21271_v32 = vpop.f32.mrb[9].mxu0 }
 0x379   : > { %v16954_v40 = vpack.c.bf16 %v7001_v49, %v7001_v49  ;;  %v7319_v42 = vunpack.c.l.b16 %v16952_v48  ;;  %v7320_v60 = vunpack.c.l.b16 %v16953_v59  ;;  %v7382_v9 = vrot.slane %v7318_v15, 7  ;;  %v21273_v28 = vpop.f32.mrb[10].mxu0 }
 0x37a   : > { %v5838_v3 = vrot.slane %v21256_v62, %v21237_v37  ;;  %v5845_v35 = vrot.slane %v5831_v46, %v21237_v37  ;;  %v5724_v50 = vadd.f32 %v17796_v4, %v21233_v18  ;;  %v5722_v5 = vadd.f32 %v21233_v18, %v5568_v33  ;;  %v21280_v43 = vpop.f32.mrb[11].mxu0 }
 0x37b   : > { %v7321_v12 = vunpack.c.l.b16 %v16954_v40  ;;  %v7383_v61 = vrot.slane %v7319_v42, 6  ;;  %v7386_v56 = vrot.slane %v7320_v60, 5  ;;  %v21283_v41 = vadd.f32 %v17797_v24, %v21233_v18  ;;  %v7530_v42 = vld [vmem:[#allocation3 + $0xc] sm:$0x1] }
 0x37c   : > { %v5846_v58 = vcombine.high %v5838_v3, %v5838_v3  ;;  %v5847_v10 = vcombine.high %v5845_v35, %v5845_v35  ;;  %v16096_v36 = vrot.slane %v5838_v3, 9  ;;  %v16098_v23 = vrot.slane %v5845_v35, 9 }
 0x37d   : > { %v7385_v53 = vsel %vm7384_vm8, %v7383_v61, %v7382_v9  ;;  %v7389_v22 = vrot.slane %v7321_v12, 4  ;;  %v21286_v38 = vmax.f32 %v5724_v50, 0.0  ;;  %v21288_v4 = vmax.f32 %v5722_v5, 0.0 }
 0x37e   : > { %v7388_v33 = vsel %vm7387_vm9, %v7386_v56, %v7385_v53  ;;  %v16097_v27 = vrot.slane %v5846_v58, 9  ;;  %v16099_v11 = vrot.slane %v5847_v10, 9  ;;  %v6874_v6 = vmax.f32 %v5838_v3, %v16096_v36 }
 0x37f   : > { %24460 = vst [vmem:[#allocation12_spill] sm:$0xff] %v21286_v38  ;;  %24461 = vst [vmem:[#allocation13_spill] sm:$0xff] %v21288_v4  ;;  %v6876_v57 = vmax.f32 %v5845_v35, %v16098_v23  ;;  %v7391_v24 = vsel %vm7390_vm10, %v7389_v22, %v7388_v33  ;;  %v5916_v26 = vcombine.high %v21286_v38, %v21286_v38  ;;  %v21296_v31 = vpop.f32.mrb[12].mxu0 }
 0x380   : > { %v5923_v1 = vrot.slane %v21286_v38, %v21237_v37  ;;  %v6875_v52 = vmax.f32 %v5846_v58, %v16097_v27  ;;  %v6877_v2 = vmax.f32 %v5847_v10, %v16099_v11  ;;  %v7002_v63 = vmax.f32 %v6874_v6, %v6882_v0  ;;  %v21300_v44 = vpop.f32.mrb[13].mxu0 }
 0x381   : > { %v5882_v13 = vcombine.high %v21288_v4, %v21288_v4  ;;  %v7004_v16 = vmax.f32 %v6876_v57, %v6884_v25  ;;  %v5930_v19 = vrot.slane %v5916_v26, %v21237_v37  ;;  %v21303_v49 = vpop.f32.mrb[14].mxu0  ;;  %v5889_v46 = vrot.slane %v21288_v4, %v21237_v37 }
 0x382   : > { %v5931_v7 = vcombine.high %v5923_v1, %v5923_v1  ;;  %v16116_v45 = vrot.slane %v5923_v1, 9  ;;  %v7003_v48 = vmax.f32 %v6875_v52, %v6883_v34  ;;  %v7005_v59 = vmax.f32 %v6877_v2, %v6885_v29  ;;  %v21307_v0 = vpop.f32.mrb[15].mxu0  ;;  %v19097_v34 = vld [vmem:[%s24283_s3 + $0x20] sm:$0xff]  }
 0x383   : > { %v16955_v15 = vpack.c.bf16 %v7002_v63, %v7002_v63  ;;  %v16957_v40 = vpack.c.bf16 %v7004_v16, %v7004_v16  ;;  %v5932_v60 = vcombine.high %v5930_v19, %v5930_v19  ;;  %v16118_v3 = vrot.slane %v5930_v19, 9  ;;  %17822 = vmatprep.subr.bf16.mxu1 %v19097_v34 }
 0x384   : > { %v16117_v9 = vrot.slane %v5931_v7, 9  ;;  %v16956_v25 = vpack.c.bf16 %v7003_v48, %v7003_v48  ;;  %v17015_v50 = vpack.c.bf16 %v7005_v59, %v7005_v59  ;;  %v6894_v5 = vmax.f32 %v5923_v1, %v16116_v45  ;;  %17823 = vmatpush3.bf16.msra.mxu1 %v19097_v34 }
 0x385   : > { %v7322_v35 = vunpack.c.l.b16 %v16955_v15  ;;  %v7324_v29 = vunpack.c.l.b16 %v16957_v40  ;;  %v16119_v12 = vrot.slane %v5932_v60, 9  ;;  %v6896_v56 = vmax.f32 %v5930_v19, %v16118_v3 }
 0x386   : > { %v6895_v61 = vmax.f32 %v5931_v7, %v16117_v9  ;;  %v7323_v58 = vunpack.c.l.b16 %v16956_v25  ;;  %v7531_v36 = vsel %vm21201_vm7, %v17015_v50, %v7530_v42  ;;  %v5896_v23 = vrot.slane %v5882_v13, %v21237_v37 }
 0x387   : > { %v7392_v10 = vrot.slane %v7322_v35, 3  ;;  %v7398_v53 = vrot.slane %v7324_v29, 1  ;;  %7532 = vst [vmem:[#allocation3 + $0xc] sm:$0x1] %v7531_v36  ;;  %v6897_v22 = vmax.f32 %v5932_v60, %v16119_v12  ;;  %v5897_v33 = vcombine.high %v5889_v46, %v5889_v46  ;;  %v21315_v11 = vpop.f32.mrb[16].mxu0 }
 0x388   : > { %v16108_v27 = vrot.slane %v5889_v46, 9  ;;  %v7395_v57 = vrot.slane %v7323_v58, 2  ;;  %v5898_v26 = vcombine.high %v5896_v23, %v5896_v23  ;;  %v16110_v1 = vrot.slane %v5896_v23, 9  ;;  %v21318_v52 = vpop.f32.mrb[17].mxu0 }
 0x389   : > { %v7394_v6 = vsel %vm7393_vm13, %v7392_v10, %v7391_v24  ;;  %v16109_v2 = vrot.slane %v5897_v33, 9  ;;  %v21321_v13 = vmax.f32 %v21283_v41, 0.0  ;;  %v5723_v16 = vadd.f32 %v21233_v18, %v21265_v14  ;;  %v21325_v19 = vpop.f32.mrb[18].mxu0  ;;  %v7527_v14 = vld [vmem:[#allocation3 + $0x8] sm:$0xf]  ;;  %v19105_v41 = vld [vmem:[%s24283_s3 + $0x18] sm:$0xff]  }
 0x38a   : > { %v6886_v63 = vmax.f32 %v5889_v46, %v16108_v27  ;;  %v7397_v7 = vsel %vm7396_vm14, %v7395_v57, %v7394_v6  ;;  %v16111_v45 = vrot.slane %v5898_v26, 9  ;;  %v6888_v48 = vmax.f32 %v5896_v23, %v16110_v1  ;;  %v21330_v59 = vpop.f32.mrb[19].mxu0 }
 0x38b   : > { %24462 = vst [vmem:[#allocation14_spill] sm:$0xff] %v21321_v13  ;;  %v5728_v24 = vadd.f32 %v21267_v39, %v21233_v18  ;;  %v7400_v15 = vsel %vm7399_vm15, %v7398_v53, %v7397_v7  ;;  %v6887_v46 = vmax.f32 %v5897_v33, %v16109_v2  ;;  %v5933_v42 = vcombine.high %v21321_v13, %v21321_v13 }
 0x38c   : > { %v7006_v40 = vmax.f32 %v6886_v63, %v6894_v5  ;;  %v7492_v60 = vpack.c.b16 %v7400_v15, %v7400_v15  ;;  %v6889_v9 = vmax.f32 %v5898_v26, %v16111_v45  ;;  %v7008_v3 = vmax.f32 %v6888_v48, %v6896_v56 }
 0x38d   : > { %v5940_v39 = vrot.slane %v21321_v13, %v21237_v37  ;;  %v7007_v25 = vmax.f32 %v6887_v46, %v6895_v61  ;;  %v5947_v50 = vrot.slane %v5933_v42, %v21237_v37  ;;  %v21344_v34 = vmax.f32 %v5723_v16, 0.0 }
 0x38e   : > { %v16959_v35 = vpack.c.bf16 %v7006_v40, %v7006_v40  ;;  %v7528_v29 = vsel %vm21335_vm0, %v7492_v60, %v7527_v14  ;;  %v7009_v12 = vmax.f32 %v6889_v9, %v6897_v22  ;;  %v16961_v5 = vpack.c.bf16 %v7008_v3, %v7008_v3 }
 0x38f   : > { %24465 = vst [vmem:[#allocation15_spill] sm:$0xff] %v21344_v34  ;;  %v5948_v58 = vcombine.high %v5940_v39, %v5940_v39  ;;  %7529 = vst [vmem:[#allocation3 + $0x8] sm:$0xf] %v7528_v29  ;;  %v16960_v10 = vpack.c.bf16 %v7007_v25, %v7007_v25  ;;  %v5949_v23 = vcombine.high %v5947_v50, %v5947_v50  ;;  %v16120_v56 = vrot.slane %v5940_v39, 9  ;;  %v21348_v53 = vpop.f32.mrb[20].mxu0 }
 0x390   : > { %v7326_v36 = vunpack.c.l.b16 %v16959_v35  ;;  %v16962_v33 = vpack.c.bf16 %v7009_v12, %v7009_v12  ;;  %v7328_v61 = vunpack.c.l.b16 %v16961_v5  ;;  %v16122_v6 = vrot.slane %v5947_v50, 9  ;;  %v21350_v57 = vpop.f32.mrb[21].mxu0 }
 0x391   : > { %v16121_v27 = vrot.slane %v5948_v58, 9  ;;  %v7327_v26 = vunpack.c.l.b16 %v16960_v10  ;;  %v16123_v2 = vrot.slane %v5949_v23, 9  ;;  %v6898_v63 = vmax.f32 %v5940_v39, %v16120_v56  ;;  %v21352_v22 = vpop.f32.mrb[22].mxu0 }
 0x392   : > { %v7401_v1 = vrot.slane %v7326_v36, 7  ;;  %v7329_v16 = vunpack.c.l.b16 %v16962_v33  ;;  %v7404_v7 = vrot.slane %v7328_v61, 5  ;;  %v6900_v48 = vmax.f32 %v5947_v50, %v16122_v6  ;;  %v21354_v15 = vpop.f32.mrb[23].mxu0 }
 0x393   : > { %v6899_v45 = vmax.f32 %v5948_v58, %v16121_v27  ;;  %v7402_v14 = vrot.slane %v7327_v26, 6  ;;  %v6901_v46 = vmax.f32 %v5949_v23, %v16123_v2  ;;  %v5899_v40 = vcombine.high %v21344_v34, %v21344_v34 }
 0x394   : > { %v5906_v42 = vrot.slane %v21344_v34, %v21237_v37  ;;  %v7406_v60 = vrot.slane %v7329_v16, 4  ;;  %v21360_v9 = vmax.f32 %v5728_v24, 0.0  ;;  %v5726_v3 = vadd.f32 %v21233_v18, %v21271_v32 }
 0x395   : > { %v5729_v39 = vadd.f32 %v21273_v28, %v21233_v18  ;;  %v7403_v25 = vsel %vm7384_vm8, %v7402_v14, %v7401_v1  ;;  %v5913_v35 = vrot.slane %v5899_v40, %v21237_v37 }
 0x396   : > { %24466 = vst [vmem:[#allocation16_spill] sm:$0xff] %v21360_v9  ;;  %v5914_v50 = vcombine.high %v5906_v42, %v5906_v42  ;;  %v16112_v29 = vrot.slane %v5906_v42, 9  ;;  %v7405_v12 = vsel %vm7387_vm9, %v7404_v7, %v7403_v25  ;;  %v5984_v5 = vcombine.high %v21360_v9, %v21360_v9 }
 0x397   : > { %v5991_v24 = vrot.slane %v21360_v9, %v21237_v37  ;;  %v21373_v58 = vmax.f32 %v5726_v3, 0.0  ;;  %v5915_v32 = vcombine.high %v5913_v35, %v5913_v35  ;;  %v16114_v36 = vrot.slane %v5913_v35, 9  ;;  %v21375_v23 = vpop.f32.mrb[24].mxu0 }
 0x398   : > { %v16113_v10 = vrot.slane %v5914_v50, 9  ;;  %v6890_v28 = vmax.f32 %v5906_v42, %v16112_v29  ;;  %v7407_v56 = vsel %vm7390_vm10, %v7406_v60, %v7405_v12  ;;  %v5998_v33 = vrot.slane %v5984_v5, %v21237_v37  ;;  %v21379_v6 = vpop.f32.mrb[25].mxu0 }
 0x399   : > { %24467 = vst [vmem:[#allocation17_spill] sm:$0xff] %v21373_v58  ;;  %v5999_v61 = vcombine.high %v5991_v24, %v5991_v24  ;;  %v16132_v27 = vrot.slane %v5991_v24, 9  ;;  %v16115_v26 = vrot.slane %v5915_v32, 9  ;;  %v6892_v2 = vmax.f32 %v5913_v35, %v16114_v36  ;;  %v21381_v7 = vpop.f32.mrb[26].mxu0  ;;  %v7536_v36 = vld [vmem:[#allocation3 + $0x14] sm:$0x1] }
 0x39a   : > { %v6891_v1 = vmax.f32 %v5914_v50, %v16113_v10  ;;  %v7010_v16 = vmax.f32 %v6890_v28, %v6898_v63  ;;  %v6000_v14 = vcombine.high %v5998_v33, %v5998_v33  ;;  %v16134_v3 = vrot.slane %v5998_v33, 9  ;;  %v21385_v34 = vpop.f32.mrb[27].mxu0 }
 0x39b   : > { %v16133_v40 = vrot.slane %v5999_v61, 9  ;;  %v6910_v42 = vmax.f32 %v5991_v24, %v16132_v27  ;;  %v6893_v25 = vmax.f32 %v5915_v32, %v16115_v26  ;;  %v7012_v17 = vmax.f32 %v6892_v2, %v6900_v48 }
 0x39c   : > { %v7011_v29 = vmax.f32 %v6891_v1, %v6899_v45  ;;  %v16963_v60 = vpack.c.bf16 %v7010_v16, %v7010_v16  ;;  %v16135_v12 = vrot.slane %v6000_v14, 9  ;;  %v6912_v21 = vmax.f32 %v5998_v33, %v16134_v3 }
 0x39d   : > { %v6911_v5 = vmax.f32 %v5999_v61, %v16133_v40  ;;  %v5950_v9 = vcombine.high %v21373_v58, %v21373_v58  ;;  %v7013_v35 = vmax.f32 %v6893_v25, %v6901_v46  ;;  %v16965_v50 = vpack.c.bf16 %v7012_v17, %v7012_v17 }
 0x39e   : > { %v16964_v63 = vpack.c.bf16 %v7011_v29, %v7011_v29  ;;  %v7330_v10 = vunpack.c.l.b16 %v16963_v60  ;;  %v6913_v28 = vmax.f32 %v6000_v14, %v16135_v12  ;;  %v5957_v24 = vrot.slane %v21373_v58, %v21237_v37 }
 0x39f   : > { %v5964_v45 = vrot.slane %v5950_v9, %v21237_v37  ;;  %v21390_v48 = vmax.f32 %v5729_v39, 0.0  ;;  %v7332_v33 = vunpack.c.l.b16 %v16965_v50  ;;  %v17016_v27 = vpack.c.bf16 %v7013_v35, %v7013_v35 }
 0x3a0   : > { %v7331_v32 = vunpack.c.l.b16 %v16964_v63  ;;  %v7408_v61 = vrot.slane %v7330_v10, 3  ;;  %v5965_v26 = vcombine.high %v5957_v24, %v5957_v24  ;;  %v16124_v2 = vrot.slane %v5957_v24, 9  ;;  %v7533_v63 = vld [vmem:[#allocation3 + $0x10] sm:$0xf] }
 0x3a1   : > { %24468 = vst [vmem:[#allocation18_spill] sm:$0xff] %v21390_v48  ;;  %v5966_v1 = vcombine.high %v5964_v45, %v5964_v45  ;;  %v16126_v46 = vrot.slane %v5964_v45, 9  ;;  %v7412_v40 = vrot.slane %v7332_v33, 1  ;;  %v7537_v14 = vsel %vm21201_vm7, %v17016_v27, %v7536_v36 }
 0x3a2   : > { %v7409_v17 = vsel %vm7393_vm13, %v7408_v61, %v7407_v56  ;;  %v7410_v16 = vrot.slane %v7331_v32, 2  ;;  %7538 = vst [vmem:[#allocation3 + $0x14] sm:$0x1] %v7537_v14  ;;  %v16125_v3 = vrot.slane %v5965_v26, 9  ;;  %v6902_v39 = vmax.f32 %v5957_v24, %v16124_v2 }
 0x3a3   : > { %v16127_v9 = vrot.slane %v5966_v1, 9  ;;  %v6904_v25 = vmax.f32 %v5964_v45, %v16126_v46  ;;  %v6001_v60 = vcombine.high %v21390_v48, %v21390_v48  ;;  %v6008_v12 = vrot.slane %v21390_v48, %v21237_v37 }
 0x3a4   : > { %v7411_v29 = vsel %vm7396_vm14, %v7410_v16, %v7409_v17  ;;  %v5727_v56 = vadd.f32 %v21233_v18, %v21280_v43  ;;  %v6903_v50 = vmax.f32 %v5965_v26, %v16125_v3  ;;  %v7014_v36 = vmax.f32 %v6902_v39, %v6910_v42 }
 0x3a5   : > { %v7413_v35 = vsel %vm7399_vm15, %v7412_v40, %v7411_v29  ;;  %v6905_v10 = vmax.f32 %v5966_v1, %v16127_v9  ;;  %v7016_v24 = vmax.f32 %v6904_v25, %v6912_v21  ;;  %v6015_v45 = vrot.slane %v6001_v60, %v21237_v37 }
 0x3a6   : > { %v7494_v32 = vpack.c.b16 %v7413_v35, %v7413_v35  ;;  %v6016_v33 = vcombine.high %v6008_v12, %v6008_v12  ;;  %v7015_v61 = vmax.f32 %v6903_v50, %v6911_v5  ;;  %v16967_v2 = vpack.c.bf16 %v7014_v36, %v7014_v36  ;;  %v19098_v5 = vld [vmem:[%s24283_s3 + $0x28] sm:$0xff]  }
 0x3a7   : > { %v7017_v27 = vmax.f32 %v6905_v10, %v6913_v28  ;;  %v16136_v46 = vrot.slane %v6008_v12, 9  ;;  %v16969_v16 = vpack.c.bf16 %v7016_v24, %v7016_v24  ;;  %v6017_v43 = vcombine.high %v6015_v45, %v6015_v45  ;;  %17824 = vmatprep.subr.bf16.mxu1 %v19098_v5 }
 0x3a8   : > { %v7534_v17 = vsel %vm21335_vm0, %v7494_v32, %v7533_v63  ;;  %v16137_v14 = vrot.slane %v6016_v33, 9  ;;  %v16968_v40 = vpack.c.bf16 %v7015_v61, %v7015_v61  ;;  %v7334_v1 = vunpack.c.l.b16 %v16967_v2  ;;  %17825 = vmatpush3.bf16.msra.mxu1 %v19098_v5  ;;  %v21427_v61 = vpop.f32.mrb[28].mxu0 }
 0x3a9   : > { %7535 = vst [vmem:[#allocation3 + $0x10] sm:$0xf] %v7534_v17  ;;  %v16970_v26 = vpack.c.bf16 %v7017_v27, %v7017_v27  ;;  %v16138_v42 = vrot.slane %v6015_v45, 9  ;;  %v7336_v3 = vunpack.c.l.b16 %v16969_v16  ;;  %v16139_v21 = vrot.slane %v6017_v43, 9  ;;  %v21441_v17 = vpop.f32.mrb[29].mxu0 }
 0x3aa   : > { %v6914_v9 = vmax.f32 %v6008_v12, %v16136_v46  ;;  %v6915_v39 = vmax.f32 %v6016_v33, %v16137_v14  ;;  %v7335_v28 = vunpack.c.l.b16 %v16968_v40  ;;  %v7414_v29 = vrot.slane %v7334_v1, 7  ;;  %v21445_v40 = vpop.f32.mrb[30].mxu0 }
 0x3ab   : > { %v7337_v25 = vunpack.c.l.b16 %v16970_v26  ;;  %v6916_v60 = vmax.f32 %v6015_v45, %v16138_v42  ;;  %v7417_v35 = vrot.slane %v7336_v3, 5  ;;  %v6917_v63 = vmax.f32 %v6017_v43, %v16139_v21  ;;  %v21454_v3 = vpop.f32.mrb[31].mxu0 }
 0x3ac   : > { %v21409_v50 = vmax.f32 %v5727_v56, 0.0  ;;  %v5732_v10 = vadd.f32 %v21296_v31, %v21233_v18  ;;  %v7415_v36 = vrot.slane %v7335_v28, 6  ;;  %v5730_v12 = vadd.f32 %v21233_v18, %v21300_v44  ;;  %v19099_v44 = vld [vmem:[%s24283_s3 + $0x30] sm:$0xff]  }
 0x3ad   : > { %v7419_v32 = vrot.slane %v7337_v25, 4  ;;  %v5733_v24 = vadd.f32 %v21303_v49, %v21233_v18  ;;  %v21425_v31 = vadd.f32 %v21233_v18, %v21307_v0  ;;  %v21439_v46 = vadd.f32 %v21315_v11, %v21233_v18  ;;  %17826 = vmatprep.subr.bf16.mxu1 %v19099_v44 }
 0x3ae   : > { %24469 = vst [vmem:[#allocation19_spill] sm:$0xff] %v21409_v50  ;;  %v5967_v45 = vcombine.high %v21409_v50, %v21409_v50  ;;  %v5974_v56 = vrot.slane %v21409_v50, %v21237_v37  ;;  %v21421_v33 = vmax.f32 %v5732_v10, 0.0  ;;  %v7416_v49 = vsel %vm7384_vm8, %v7415_v36, %v7414_v29  ;;  %17827 = vmatpush3.bf16.msra.mxu1 %v19099_v44  ;;  %v19100_v29 = vld [vmem:[%s24283_s3 + $0x38] sm:$0xff]  }
 0x3af   : > { %v21433_v27 = vmax.f32 %v5730_v12, 0.0  ;;  %v21435_v2 = vmax.f32 %v5733_v24, 0.0  ;;  %v7418_v0 = vsel %vm7387_vm9, %v7417_v35, %v7416_v49  ;;  %17828 = vmatprep.subr.bf16.mxu1 %v19100_v29 }
 0x3b0   : > { %24470 = vst [vmem:[#allocation22_spill] sm:$0xff] %v21421_v33  ;;  %v5981_v16 = vrot.slane %v5967_v45, %v21237_v37  ;;  %v5982_v43 = vcombine.high %v5974_v56, %v5974_v56  ;;  %v16128_v14 = vrot.slane %v5974_v56, 9  ;;  %v7420_v26 = vsel %vm7390_vm10, %v7419_v32, %v7418_v0 }
 0x3b1   : > { %24471 = vst [vmem:[#allocation23_spill] sm:$0xff] %v21433_v27  ;;  %24472 = vst [vmem:[#allocation24_spill] sm:$0xff] %v21435_v2  ;;  %v6052_v1 = vcombine.high %v21421_v33, %v21421_v33  ;;  %v6059_v11 = vrot.slane %v21421_v33, %v21237_v37  ;;  %v6018_v42 = vcombine.high %v21433_v27, %v21433_v27 }
 0x3b2   : > { %v5983_v21 = vcombine.high %v5981_v16, %v5981_v16  ;;  %v16129_v5 = vrot.slane %v5982_v43, 9  ;;  %v16130_v28 = vrot.slane %v5981_v16, 9  ;;  %v6906_v25 = vmax.f32 %v5974_v56, %v16128_v14  ;;  %17829 = vmatpush3.bf16.msra.mxu1 %v19100_v29 }
 0x3b3   : > { %v6066_v35 = vrot.slane %v6052_v1, %v21237_v37  ;;  %v6067_v10 = vcombine.high %v6059_v11, %v6059_v11  ;;  %v16148_v36 = vrot.slane %v6059_v11, 9  ;;  %v6025_v32 = vrot.slane %v21433_v27, %v21237_v37 }
 0x3b4   : > { %v16131_v12 = vrot.slane %v5983_v21, 9  ;;  %v6907_v24 = vmax.f32 %v5982_v43, %v16129_v5  ;;  %v6908_v45 = vmax.f32 %v5981_v16, %v16130_v28  ;;  %v7018_v49 = vmax.f32 %v6906_v25, %v6914_v9  ;;  %v7542_v9 = vld [vmem:[#allocation3 + $0x1c] sm:$0x1] }
 0x3b5   : > { %v6068_v44 = vcombine.high %v6066_v35, %v6066_v35  ;;  %v16149_v0 = vrot.slane %v6067_v10, 9  ;;  %v16150_v33 = vrot.slane %v6066_v35, 9  ;;  %v6926_v56 = vmax.f32 %v6059_v11, %v16148_v36 }
 0x3b6   : > { %v6909_v14 = vmax.f32 %v5983_v21, %v16131_v12  ;;  %v7019_v50 = vmax.f32 %v6907_v24, %v6915_v39  ;;  %v7020_v48 = vmax.f32 %v6908_v45, %v6916_v60  ;;  %v16971_v58 = vpack.c.bf16 %v7018_v49, %v7018_v49  ;;  %v7539_v45 = vld [vmem:[#allocation3 + $0x18] sm:$0xf] }
 0x3b7   : > { %v16151_v1 = vrot.slane %v6068_v44, 9  ;;  %v6927_v13 = vmax.f32 %v6067_v10, %v16149_v0  ;;  %v6928_v4 = vmax.f32 %v6066_v35, %v16150_v33  ;;  %v6032_v38 = vrot.slane %v6018_v42, %v21237_v37 }
 0x3b8   : > { %v7021_v27 = vmax.f32 %v6909_v14, %v6917_v63  ;;  %v16972_v62 = vpack.c.bf16 %v7019_v50, %v7019_v50  ;;  %v16973_v43 = vpack.c.bf16 %v7020_v48, %v7020_v48  ;;  %v7338_v16 = vunpack.c.l.b16 %v16971_v58 }
 0x3b9   : > { %v6929_v5 = vmax.f32 %v6068_v44, %v16151_v1  ;;  %v6033_v28 = vcombine.high %v6025_v32, %v6025_v32  ;;  %v6034_v25 = vcombine.high %v6032_v38, %v6032_v38  ;;  %v16140_v30 = vrot.slane %v6025_v32, 9 }
 0x3ba   : > { %v7339_v11 = vunpack.c.l.b16 %v16972_v62  ;;  %v7340_v29 = vunpack.c.l.b16 %v16973_v43  ;;  %v7421_v21 = vrot.slane %v7338_v16, 3  ;;  %v17017_v39 = vpack.c.bf16 %v7021_v27, %v7021_v27 }
 0x3bb   : > { %v16141_v60 = vrot.slane %v6033_v28, 9  ;;  %v16142_v36 = vrot.slane %v6032_v38, 9  ;;  %v16143_v12 = vrot.slane %v6034_v25, 9  ;;  %v6918_v10 = vmax.f32 %v6025_v32, %v16140_v30 }
 0x3bc   : > { %v7422_v33 = vsel %vm7393_vm13, %v7421_v21, %v7420_v26  ;;  %v7423_v42 = vrot.slane %v7339_v11, 2  ;;  %v7425_v63 = vrot.slane %v7340_v29, 1  ;;  %v7543_v58 = vsel %vm21201_vm7, %v17017_v39, %v7542_v9 }
 0x3bd   : > { %7544 = vst [vmem:[#allocation3 + $0x1c] sm:$0x1] %v7543_v58  ;;  %v6919_v48 = vmax.f32 %v6033_v28, %v16141_v60  ;;  %v6920_v50 = vmax.f32 %v6032_v38, %v16142_v36  ;;  %v6921_v35 = vmax.f32 %v6034_v25, %v16143_v12  ;;  %v7022_v24 = vmax.f32 %v6918_v10, %v6926_v56 }
 0x3be   : > { %v7424_v62 = vsel %vm7396_vm14, %v7423_v42, %v7422_v33  ;;  %v6069_v27 = vcombine.high %v21435_v2, %v21435_v2  ;;  %v6076_v30 = vrot.slane %v21435_v2, %v21237_v37  ;;  %v21472_v26 = vmax.f32 %v21425_v31, 0.0 }
 0x3bf   : > { %v7426_v32 = vsel %vm7399_vm15, %v7425_v63, %v7424_v62  ;;  %v7023_v49 = vmax.f32 %v6919_v48, %v6927_v13  ;;  %v7024_v44 = vmax.f32 %v6920_v50, %v6928_v4  ;;  %v7025_v0 = vmax.f32 %v6921_v35, %v6929_v5 }
 0x3c0   : > { %24473 = vst [vmem:[#allocation25_spill] sm:$0xff] %v21472_v26  ;;  %v7496_v38 = vpack.c.b16 %v7426_v32, %v7426_v32  ;;  %v16975_v14 = vpack.c.bf16 %v7022_v24, %v7022_v24  ;;  %v6083_v56 = vrot.slane %v6069_v27, %v21237_v37  ;;  %v6084_v1 = vcombine.high %v6076_v30, %v6076_v30 }
 0x3c1   : > { %v16976_v43 = vpack.c.bf16 %v7023_v49, %v7023_v49  ;;  %v16977_v16 = vpack.c.bf16 %v7024_v44, %v7024_v44  ;;  %v16978_v9 = vpack.c.bf16 %v7025_v0, %v7025_v0  ;;  %v16152_v28 = vrot.slane %v6076_v30, 9 }
 0x3c2   : > { %v7540_v25 = vsel %vm21335_vm0, %v7496_v38, %v7539_v45  ;;  %v7342_v31 = vunpack.c.l.b16 %v16975_v14  ;;  %v6085_v11 = vcombine.high %v6083_v56, %v6083_v56  ;;  %v16153_v29 = vrot.slane %v6084_v1, 9 }
 0x3c3   : > { %7541 = vst [vmem:[#allocation3 + $0x18] sm:$0xf] %v7540_v25  ;;  %v7343_v21 = vunpack.c.l.b16 %v16976_v43  ;;  %v7344_v13 = vunpack.c.l.b16 %v16977_v16  ;;  %v7345_v4 = vunpack.c.l.b16 %v16978_v9  ;;  %v16154_v5 = vrot.slane %v6083_v56, 9 }
 0x3c4   : > { %v7427_v39 = vrot.slane %v7342_v31, 7  ;;  %v16155_v60 = vrot.slane %v6085_v11, 9  ;;  %v6930_v36 = vmax.f32 %v6076_v30, %v16152_v28  ;;  %v6931_v12 = vmax.f32 %v6084_v1, %v16153_v29  ;;  %v19101_v1 = vld [vmem:[%s24283_s3] sm:$0xff]  }
 0x3c5   : > { %v7428_v10 = vrot.slane %v7343_v21, 6  ;;  %v7430_v33 = vrot.slane %v7344_v13, 5  ;;  %v7432_v42 = vrot.slane %v7345_v4, 4  ;;  %v6932_v63 = vmax.f32 %v6083_v56, %v16154_v5  ;;  %17838 = vmatprep.subr.bf16.mxu1 %v19101_v1 }
 0x3c6   : > { %v6933_v58 = vmax.f32 %v6085_v11, %v16155_v60  ;;  %v6035_v48 = vcombine.high %v21472_v26, %v21472_v26  ;;  %v6042_v50 = vrot.slane %v21472_v26, %v21237_v37  ;;  %v21483_v35 = vmax.f32 %v21439_v46, 0.0 }
 0x3c7   : > { %v7429_v24 = vsel %vm7384_vm8, %v7428_v10, %v7427_v39  ;;  %v5734_v62 = vadd.f32 %v21233_v18, %v21318_v52  ;;  %v21490_v27 = vadd.f32 %v21325_v19, %v21233_v18  ;;  %v21494_v30 = vadd.f32 %v21233_v18, %v21330_v59 }
 0x3c8   : > { %24474 = vst [vmem:[#allocation26_spill] sm:$0xff] %v21483_v35  ;;  %v7431_v32 = vsel %vm7387_vm9, %v7430_v33, %v7429_v24  ;;  %v6049_v45 = vrot.slane %v6035_v48, %v21237_v37  ;;  %v6050_v49 = vcombine.high %v6042_v50, %v6042_v50  ;;  %v16144_v46 = vrot.slane %v6042_v50, 9 }
 0x3c9   : > { %v7433_v44 = vsel %vm7390_vm10, %v7432_v42, %v7431_v32  ;;  %v6120_v0 = vcombine.high %v21483_v35, %v21483_v35  ;;  %v6127_v52 = vrot.slane %v21483_v35, %v21237_v37  ;;  %v21503_v19 = vmax.f32 %v5734_v62, 0.0 }
 0x3ca   : > { %v6051_v38 = vcombine.high %v6049_v45, %v6049_v45  ;;  %v16145_v14 = vrot.slane %v6050_v49, 9  ;;  %v16146_v59 = vrot.slane %v6049_v45, 9  ;;  %v6922_v56 = vmax.f32 %v6042_v50, %v16144_v46 }
 0x3cb   : > { %24475 = vst [vmem:[#allocation27_spill] sm:$0xff] %v21503_v19  ;;  %v6134_v43 = vrot.slane %v6120_v0, %v21237_v37  ;;  %v6135_v16 = vcombine.high %v6127_v52, %v6127_v52  ;;  %v16164_v9 = vrot.slane %v6127_v52, 9  ;;  %v6086_v28 = vcombine.high %v21503_v19, %v21503_v19 }
 0x3cc   : > { %v16147_v25 = vrot.slane %v6051_v38, 9  ;;  %v6923_v31 = vmax.f32 %v6050_v49, %v16145_v14  ;;  %v6924_v11 = vmax.f32 %v6049_v45, %v16146_v59  ;;  %v7026_v29 = vmax.f32 %v6922_v56, %v6930_v36  ;;  %v7548_v36 = vld [vmem:[#allocation3 + $0x24] sm:$0x1] }
 0x3cd   : > { %v6136_v21 = vcombine.high %v6134_v43, %v6134_v43  ;;  %v16165_v13 = vrot.slane %v6135_v16, 9  ;;  %v16166_v4 = vrot.slane %v6134_v43, 9  ;;  %v6942_v5 = vmax.f32 %v6127_v52, %v16164_v9 }
 0x3ce   : > { %v6925_v39 = vmax.f32 %v6051_v38, %v16147_v25  ;;  %v7027_v60 = vmax.f32 %v6923_v31, %v6931_v12  ;;  %v7028_v10 = vmax.f32 %v6924_v11, %v6932_v63  ;;  %v16979_v33 = vpack.c.bf16 %v7026_v29, %v7026_v29 }
 0x3cf   : > { %v16167_v42 = vrot.slane %v6136_v21, 9  ;;  %v6943_v48 = vmax.f32 %v6135_v16, %v16165_v13  ;;  %v6944_v50 = vmax.f32 %v6134_v43, %v16166_v4  ;;  %v6093_v24 = vrot.slane %v21503_v19, %v21237_v37 }
 0x3d0   : > { %v7029_v62 = vmax.f32 %v6925_v39, %v6933_v58  ;;  %v16980_v32 = vpack.c.bf16 %v7027_v60, %v7027_v60  ;;  %v16981_v49 = vpack.c.bf16 %v7028_v10, %v7028_v10  ;;  %v7346_v45 = vunpack.c.l.b16 %v16979_v33  ;;  %v7545_v10 = vld [vmem:[#allocation3 + $0x20] sm:$0xf] }
 0x3d1   : > { %v6945_v46 = vmax.f32 %v6136_v21, %v16167_v42  ;;  %v6100_v0 = vrot.slane %v6086_v28, %v21237_v37  ;;  %v6101_v14 = vcombine.high %v6093_v24, %v6093_v24  ;;  %v16156_v52 = vrot.slane %v6093_v24, 9 }
 0x3d2   : > { %v7347_v38 = vunpack.c.l.b16 %v16980_v32  ;;  %v7348_v12 = vunpack.c.l.b16 %v16981_v49  ;;  %v7434_v63 = vrot.slane %v7346_v45, 3  ;;  %v17018_v59 = vpack.c.bf16 %v7029_v62, %v7029_v62 }
 0x3d3   : > { %v6102_v56 = vcombine.high %v6100_v0, %v6100_v0  ;;  %v16157_v1 = vrot.slane %v6101_v14, 9  ;;  %v16158_v43 = vrot.slane %v6100_v0, 9  ;;  %v6934_v16 = vmax.f32 %v6093_v24, %v16156_v52 }
 0x3d4   : > { %v7435_v9 = vsel %vm7393_vm13, %v7434_v63, %v7433_v44  ;;  %v7436_v58 = vrot.slane %v7347_v38, 2  ;;  %v7438_v25 = vrot.slane %v7348_v12, 1  ;;  %v7549_v31 = vsel %vm21201_vm7, %v17018_v59, %v7548_v36 }
 0x3d5   : > { %7550 = vst [vmem:[#allocation3 + $0x24] sm:$0x1] %v7549_v31  ;;  %v16159_v11 = vrot.slane %v6102_v56, 9  ;;  %v6935_v28 = vmax.f32 %v6101_v14, %v16157_v1  ;;  %v6936_v29 = vmax.f32 %v6100_v0, %v16158_v43  ;;  %v7030_v21 = vmax.f32 %v6934_v16, %v6942_v5 }
 0x3d6   : > { %v7437_v13 = vsel %vm7396_vm14, %v7436_v58, %v7435_v9  ;;  %v21519_v4 = vmax.f32 %v21490_v27, 0.0  ;;  %v21522_v39 = vmax.f32 %v21494_v30, 0.0  ;;  %v5740_v44 = vadd.f32 %v21348_v53, %v21233_v18 }
 0x3d7   : > { %v7439_v60 = vsel %vm7399_vm15, %v7438_v25, %v7437_v13  ;;  %v6937_v33 = vmax.f32 %v6102_v56, %v16159_v11  ;;  %v7031_v42 = vmax.f32 %v6935_v28, %v6943_v48  ;;  %v7032_v24 = vmax.f32 %v6936_v29, %v6944_v50 }
 0x3d8   : > { %24476 = vst [vmem:[#allocation28_spill] sm:$0xff] %v21519_v4  ;;  %24477 = vst [vmem:[#allocation29_spill] sm:$0xff] %v21522_v39  ;;  %v7498_v62 = vpack.c.b16 %v7439_v60, %v7439_v60  ;;  %v16983_v32 = vpack.c.bf16 %v7030_v21, %v7030_v21  ;;  %v6137_v5 = vcombine.high %v21519_v4, %v21519_v4  ;;  %v21540_v21 = vmax.f32 %v5740_v44, 0.0  ;;  %v21551_v44 = vld [vmem:[%s24282_s2] ss:$0 sm:$0xff] }
 0x3d9   : > { %v6144_v27 = vrot.slane %v21519_v4, %v21237_v37  ;;  %v7033_v49 = vmax.f32 %v6937_v33, %v6945_v46  ;;  %v16984_v30 = vpack.c.bf16 %v7031_v42, %v7031_v42  ;;  %v16985_v45 = vpack.c.bf16 %v7032_v24, %v7032_v24 }
 0x3da   : > { %v6103_v18 = vcombine.high %v21522_v39, %v21522_v39  ;;  %v7546_v53 = vsel %vm21335_vm0, %v7498_v62, %v7545_v10  ;;  %v7350_v36 = vunpack.c.l.b16 %v16983_v32  ;;  %v6151_v48 = vrot.slane %v6137_v5, %v21237_v37  ;;  %24478 = vst [vmem:[#allocation30_spill] sm:$0xff] %v21540_v21 }
 0x3db   : > { %v6152_v50 = vcombine.high %v6144_v27, %v6144_v27  ;;  %7547 = vst [vmem:[#allocation3 + $0x20] sm:$0xf] %v7546_v53  ;;  %v16986_v0 = vpack.c.bf16 %v7033_v49, %v7033_v49  ;;  %v7351_v14 = vunpack.c.l.b16 %v16984_v30  ;;  %v7352_v52 = vunpack.c.l.b16 %v16985_v45 }
 0x3dc   : > { %v16168_v38 = vrot.slane %v6144_v27, 9  ;;  %v7440_v12 = vrot.slane %v7350_v36, 7  ;;  %v6153_v63 = vcombine.high %v6151_v48, %v6151_v48  ;;  %v16170_v59 = vrot.slane %v6151_v48, 9 }
 0x3dd   : > { %v16169_v46 = vrot.slane %v6152_v50, 9  ;;  %v7353_v56 = vunpack.c.l.b16 %v16986_v0  ;;  %v7441_v1 = vrot.slane %v7351_v14, 6  ;;  %v7443_v43 = vrot.slane %v7352_v52, 5 }
 0x3de   : > { %v6946_v16 = vmax.f32 %v6144_v27, %v16168_v38  ;;  %v16171_v9 = vrot.slane %v6153_v63, 9  ;;  %v6948_v25 = vmax.f32 %v6151_v48, %v16170_v59  ;;  %v6110_v31 = vrot.slane %v21522_v39, %v21237_v37 }
 0x3df   : > { %v6947_v58 = vmax.f32 %v6152_v50, %v16169_v46  ;;  %v7442_v11 = vsel %vm7384_vm8, %v7441_v1, %v7440_v12  ;;  %v7445_v28 = vrot.slane %v7353_v56, 4  ;;  %v6117_v29 = vrot.slane %v6103_v18, %v21237_v37 }
 0x3e0   : > { %v7444_v13 = vsel %vm7387_vm9, %v7443_v43, %v7442_v11  ;;  %v6949_v60 = vmax.f32 %v6153_v63, %v16171_v9  ;;  %v6118_v10 = vcombine.high %v6110_v31, %v6110_v31  ;;  %v16160_v33 = vrot.slane %v6110_v31, 9 }
 0x3e1   : > { %v6119_v42 = vcombine.high %v6117_v29, %v6117_v29  ;;  %v16162_v24 = vrot.slane %v6117_v29, 9  ;;  %v7446_v62 = vsel %vm7390_vm10, %v7445_v28, %v7444_v13  ;;  %v6188_v32 = vcombine.high %v21540_v21, %v21540_v21 }
 0x3e2   : > { %v16161_v5 = vrot.slane %v6118_v10, 9  ;;  %v6938_v27 = vmax.f32 %v6110_v31, %v16160_v33  ;;  %v6195_v49 = vrot.slane %v21540_v21, %v21237_v37  ;;  %v5738_v30 = vadd.f32 %v21551_v44, %v21350_v57 }
 0x3e3   : > { %v16163_v45 = vrot.slane %v6119_v42, 9  ;;  %v6940_v18 = vmax.f32 %v6117_v29, %v16162_v24  ;;  %v6202_v53 = vrot.slane %v6188_v32, %v21237_v37  ;;  %v5741_v36 = vadd.f32 %v21551_v44, %v21352_v22  ;;  %v7554_v29 = vld [vmem:[#allocation3 + $0x2c] sm:$0x1] }
 0x3e4   : > { %v6939_v48 = vmax.f32 %v6118_v10, %v16161_v5  ;;  %v7034_v50 = vmax.f32 %v6938_v27, %v6946_v16  ;;  %v6203_v0 = vcombine.high %v6195_v49, %v6195_v49  ;;  %v16180_v14 = vrot.slane %v6195_v49, 9 }
 0x3e5   : > { %v6941_v52 = vmax.f32 %v6119_v42, %v16163_v45  ;;  %v7036_v38 = vmax.f32 %v6940_v18, %v6948_v25  ;;  %v6204_v12 = vcombine.high %v6202_v53, %v6202_v53  ;;  %v16182_v63 = vrot.slane %v6202_v53, 9 }
 0x3e6   : > { %v7035_v46 = vmax.f32 %v6939_v48, %v6947_v58  ;;  %v16987_v59 = vpack.c.bf16 %v7034_v50, %v7034_v50  ;;  %v16181_v56 = vrot.slane %v6203_v0, 9  ;;  %v6958_v1 = vmax.f32 %v6195_v49, %v16180_v14 }
 0x3e7   : > { %v7037_v57 = vmax.f32 %v6941_v52, %v6949_v60  ;;  %v16989_v43 = vpack.c.bf16 %v7036_v38, %v7036_v38  ;;  %v16183_v9 = vrot.slane %v6204_v12, 9  ;;  %v6960_v31 = vmax.f32 %v6202_v53, %v16182_v63 }
 0x3e8   : > { %v16988_v11 = vpack.c.bf16 %v7035_v46, %v7035_v46  ;;  %v7354_v28 = vunpack.c.l.b16 %v16987_v59  ;;  %v6959_v22 = vmax.f32 %v6203_v0, %v16181_v56  ;;  %v21558_v13 = vmax.f32 %v5738_v30, 0.0  ;;  %v7551_v46 = vld [vmem:[#allocation3 + $0x28] sm:$0xf] }
 0x3e9   : > { %v7356_v16 = vunpack.c.l.b16 %v16989_v43  ;;  %v17019_v10 = vpack.c.bf16 %v7037_v57, %v7037_v57  ;;  %v6961_v33 = vmax.f32 %v6204_v12, %v16183_v9  ;;  %v21560_v25 = vmax.f32 %v5741_v36, 0.0 }
 0x3ea   : > { %24479 = vst [vmem:[#allocation31_spill] sm:$0xff] %v21558_v13  ;;  %v7355_v42 = vunpack.c.l.b16 %v16988_v11  ;;  %v7447_v58 = vrot.slane %v7354_v28, 3  ;;  %v6154_v24 = vcombine.high %v21558_v13, %v21558_v13  ;;  %v6161_v60 = vrot.slane %v21558_v13, %v21237_v37 }
 0x3eb   : > { %24480 = vst [vmem:[#allocation32_spill] sm:$0xff] %v21560_v25  ;;  %v7451_v32 = vrot.slane %v7356_v16, 1  ;;  %v7555_v5 = vsel %vm21201_vm7, %v17019_v10, %v7554_v29  ;;  %v6205_v27 = vcombine.high %v21560_v25, %v21560_v25  ;;  %v6212_v49 = vrot.slane %v21560_v25, %v21237_v37 }
 0x3ec   : > { %v7448_v30 = vsel %vm7393_vm13, %v7447_v58, %v7446_v62  ;;  %v7449_v45 = vrot.slane %v7355_v42, 2  ;;  %7556 = vst [vmem:[#allocation3 + $0x2c] sm:$0x1] %v7555_v5  ;;  %v6168_v18 = vrot.slane %v6154_v24, %v21237_v37  ;;  %v6169_v53 = vcombine.high %v6161_v60, %v6161_v60  ;;  %v523_v42 = vld [vmem:[#allocation3 + $0x30] sm:$0x1] }
 0x3ed   : > { %v16172_v36 = vrot.slane %v6161_v60, 9  ;;  %v6219_v48 = vrot.slane %v6205_v27, %v21237_v37  ;;  %v6220_v50 = vcombine.high %v6212_v49, %v6212_v49  ;;  %v16184_v0 = vrot.slane %v6212_v49, 9 }
 0x3ee   : > { %v7450_v14 = vsel %vm7396_vm14, %v7449_v45, %v7448_v30  ;;  %v6170_v52 = vcombine.high %v6168_v18, %v6168_v18  ;;  %v16173_v38 = vrot.slane %v6169_v53, 9  ;;  %v16174_v12 = vrot.slane %v6168_v18, 9 }
 0x3ef   : > { %v7452_v63 = vsel %vm7399_vm15, %v7451_v32, %v7450_v14  ;;  %v6950_v59 = vmax.f32 %v6161_v60, %v16172_v36  ;;  %v6221_v62 = vcombine.high %v6219_v48, %v6219_v48  ;;  %v16185_v56 = vrot.slane %v6220_v50, 9  ;;  %v554_v32 = vld [vmem:[#allocation3 + $0x34] sm:$0x1] }
 0x3f0   : > { %v7500_v57 = vpack.c.b16 %v7452_v63, %v7452_v63  ;;  %v16175_v43 = vrot.slane %v6170_v52, 9  ;;  %v6951_v9 = vmax.f32 %v6169_v53, %v16173_v38  ;;  %v6952_v11 = vmax.f32 %v6168_v18, %v16174_v12 }
 0x3f1   : > { %v7038_v28 = vmax.f32 %v6950_v59, %v6958_v1  ;;  %v16186_v29 = vrot.slane %v6219_v48, 9  ;;  %v16187_v16 = vrot.slane %v6221_v62, 9  ;;  %v6962_v10 = vmax.f32 %v6212_v49, %v16184_v0 }
 0x3f2   : > { %v7552_v58 = vsel %vm21335_vm0, %v7500_v57, %v7551_v46  ;;  %v6953_v24 = vmax.f32 %v6170_v52, %v16175_v43  ;;  %v7039_v5 = vmax.f32 %v6951_v9, %v6959_v22  ;;  %v7040_v27 = vmax.f32 %v6952_v11, %v6960_v31 }
 0x3f3   : > { %7553 = vst [vmem:[#allocation3 + $0x28] sm:$0xf] %v7552_v58  ;;  %v16991_v60 = vpack.c.bf16 %v7038_v28, %v7038_v28  ;;  %v6963_v30 = vmax.f32 %v6220_v50, %v16185_v56  ;;  %v6964_v45 = vmax.f32 %v6219_v48, %v16186_v29  ;;  %v21579_v36 = vmax.f32 %v6221_v62, %v16187_v16 }
 0x3f4   : > { %v7041_v53 = vmax.f32 %v6953_v24, %v6961_v33  ;;  %v16992_v18 = vpack.c.bf16 %v7039_v5, %v7039_v5  ;;  %v16993_v1 = vpack.c.bf16 %v7040_v27, %v7040_v27  ;;  %v524_v49 = vsel %vm21201_vm7, 0, %v523_v42 }
 0x3f5   : > { %v7358_v0 = vunpack.c.l.b16 %v16991_v60  ;;  %525 = vst [vmem:[#allocation3 + $0x30] sm:$0x1] %v524_v49  ;;  %v555_v14 = vsel %vm21192_vm5, 0, %v554_v32  ;;  %v5739_v31 = vadd.f32 %v21551_v44, %v21354_v15  ;;  %v5744_v22 = vadd.f32 %v21551_v44, %v21375_v23 }
 0x3f6   : > { %v16994_v48 = vpack.c.bf16 %v7041_v53, %v7041_v53  ;;  %v7359_v50 = vunpack.c.l.b16 %v16992_v18  ;;  %v7360_v52 = vunpack.c.l.b16 %v16993_v1  ;;  %556 = vst [vmem:[#allocation3 + $0x34] sm:$0x1] %v555_v14  ;;  %v5742_v33 = vadd.f32 %v21551_v44, %v21379_v6 }
 0x3f7   : > { %v7453_v38 = vrot.slane %v7358_v0, 7  ;;  %v21591_v12 = vmax.f32 %v5739_v31, 0.0  ;;  %v21593_v63 = vmax.f32 %v5744_v22, 0.0  ;;  %v21597_v46 = vadd.f32 %v21551_v44, %v21381_v7 }
 0x3f8   : > { %v7361_v15 = vunpack.c.l.b16 %v16994_v48  ;;  %v7454_v59 = vrot.slane %v7359_v50, 6  ;;  %v7456_v62 = vrot.slane %v7360_v52, 5  ;;  %v21599_v23 = vmax.f32 %v5742_v33, 0.0 }
 0x3f9   : > { %24481 = vst [vmem:[#allocation33_spill] sm:$0xff] %v21591_v12  ;;  %24482 = vst [vmem:[#allocation34_spill] sm:$0xff] %v21593_v63  ;;  %v6171_v56 = vcombine.high %v21591_v12, %v21591_v12  ;;  %v6178_v6 = vrot.slane %v21591_v12, %v21237_v37  ;;  %v6256_v57 = vcombine.high %v21593_v63, %v21593_v63 }
 0x3fa   : > { %24483 = vst [vmem:[#allocation35_spill] sm:$0xff] %v21599_v23  ;;  %v6263_v43 = vrot.slane %v21593_v63, %v21237_v37  ;;  %v7455_v7 = vsel %vm7384_vm8, %v7454_v59, %v7453_v38  ;;  %v7458_v9 = vrot.slane %v7361_v15, 4  ;;  %v6222_v11 = vcombine.high %v21599_v23, %v21599_v23 }
 0x3fb   : > { %v6229_v28 = vrot.slane %v21599_v23, %v21237_v37  ;;  %v7457_v29 = vsel %vm7387_vm9, %v7456_v62, %v7455_v7  ;;  %v6185_v16 = vrot.slane %v6171_v56, %v21237_v37  ;;  %v6186_v42 = vcombine.high %v6178_v6, %v6178_v6 }
 0x3fc   : > { %v16176_v58 = vrot.slane %v6178_v6, 9  ;;  %v7459_v24 = vsel %vm7390_vm10, %v7458_v9, %v7457_v29  ;;  %v6270_v5 = vrot.slane %v6256_v57, %v21237_v37  ;;  %v6271_v27 = vcombine.high %v6263_v43, %v6263_v43 }
 0x3fd   : > { %v16196_v32 = vrot.slane %v6263_v43, 9  ;;  %v6187_v60 = vcombine.high %v6185_v16, %v6185_v16  ;;  %v16177_v53 = vrot.slane %v6186_v42, 9  ;;  %v16178_v18 = vrot.slane %v6185_v16, 9 }
 0x3fe   : > { %v6954_v1 = vmax.f32 %v6178_v6, %v16176_v58  ;;  %v6272_v49 = vcombine.high %v6270_v5, %v6270_v5  ;;  %v16197_v0 = vrot.slane %v6271_v27, 9  ;;  %v16198_v14 = vrot.slane %v6270_v5, 9 }
 0x3ff   : > { %v6974_v31 = vmax.f32 %v6263_v43, %v16196_v32  ;;  %v16179_v22 = vrot.slane %v6187_v60, 9  ;;  %v6955_v48 = vmax.f32 %v6186_v42, %v16177_v53  ;;  %v6956_v50 = vmax.f32 %v6185_v16, %v16178_v18  ;;  %v7560_v16 = vld [vmem:[#allocation3 + $0x34] sm:$0x1] }
 0x400   : > { %v7042_v52 = vmax.f32 %v6954_v1, %v6962_v10  ;;  %v16199_v33 = vrot.slane %v6272_v49, 9  ;;  %v6975_v38 = vmax.f32 %v6271_v27, %v16197_v0  ;;  %v6976_v15 = vmax.f32 %v6270_v5, %v16198_v14  ;;  %v505_v14 = vld [vmem:[#allocation3] sm:$0x1] }
 0x401   : > { %v6236_v59 = vrot.slane %v6222_v11, %v21237_v37  ;;  %v6957_v62 = vmax.f32 %v6187_v60, %v16179_v22  ;;  %v7043_v56 = vmax.f32 %v6955_v48, %v6963_v30  ;;  %v7044_v57 = vmax.f32 %v6956_v50, %v6964_v45  ;;  %v536_v22 = vld [vmem:[#allocation3 + $0x4] sm:$0x1] }
 0x402   : > { %v16995_v7 = vpack.c.bf16 %v7042_v52, %v7042_v52  ;;  %v6977_v9 = vmax.f32 %v6272_v49, %v16199_v33  ;;  %v6237_v29 = vcombine.high %v6229_v28, %v6229_v28  ;;  %v16188_v58 = vrot.slane %v6229_v28, 9 }
 0x403   : > { %v6238_v6 = vcombine.high %v6236_v59, %v6236_v59  ;;  %v7045_v23 = vmax.f32 %v6957_v62, %v21579_v36  ;;  %v16996_v43 = vpack.c.bf16 %v7043_v56, %v7043_v56  ;;  %v16997_v32 = vpack.c.bf16 %v7044_v57, %v7044_v57  ;;  %v21631_v57 = vld [vmem:[#allocation3 + $0x8] sm:$0xf] }
 0x404   : > { %v7362_v42 = vunpack.c.l.b16 %v16995_v7  ;;  %v16189_v10 = vrot.slane %v6237_v29, 9  ;;  %v16190_v53 = vrot.slane %v6236_v59, 9  ;;  %v6966_v5 = vmax.f32 %v6229_v28, %v16188_v58 }
 0x405   : > { %v16191_v27 = vrot.slane %v6238_v6, 9  ;;  %v7363_v18 = vunpack.c.l.b16 %v16996_v43  ;;  %v7364_v11 = vunpack.c.l.b16 %v16997_v32  ;;  %v17020_v30 = vpack.c.bf16 %v7045_v23, %v7045_v23 }
 0x406   : > { %v7460_v60 = vrot.slane %v7362_v42, 3  ;;  %v6967_v45 = vmax.f32 %v6237_v29, %v16189_v10  ;;  %v6968_v1 = vmax.f32 %v6236_v59, %v16190_v53  ;;  %v7046_v0 = vmax.f32 %v6966_v5, %v6974_v31  ;;  %v7557_v29 = vld [vmem:[#allocation3 + $0x30] sm:$0xf] }
 0x407   : > { %v6969_v49 = vmax.f32 %v6238_v6, %v16191_v27  ;;  %v7462_v48 = vrot.slane %v7363_v18, 2  ;;  %v7464_v50 = vrot.slane %v7364_v11, 1  ;;  %v7561_v52 = vsel %vm21201_vm7, %v17020_v30, %v7560_v16  ;;  %v21642_v18 = vld [vmem:[#allocation3 + $0xc] sm:$0x1] }
 0x408   : > { %v7461_v36 = vsel %vm7393_vm13, %v7460_v60, %v7459_v24  ;;  %7562 = vst [vmem:[#allocation3 + $0x34] sm:$0x1] %v7561_v52  ;;  %v7047_v33 = vmax.f32 %v6967_v45, %v6975_v38  ;;  %v7048_v28 = vmax.f32 %v6968_v1, %v6976_v15  ;;  %v16999_v56 = vpack.c.bf16 %v7046_v0, %v7046_v0 }
 0x409   : > { %v7049_v62 = vmax.f32 %v6969_v49, %v6977_v9  ;;  %v7463_v23 = vsel %vm7396_vm14, %v7462_v48, %v7461_v36  ;;  %v21625_v59 = vmax.f32 %v21597_v46, 0.0  ;;  %v506_v31 = vsel %vm21201_vm7, 0, %v505_v14 }
 0x40a   : > { %v537_v24 = vsel %vm21192_vm5, 0, %v536_v22  ;;  %v7465_v7 = vsel %vm7399_vm15, %v7464_v50, %v7463_v23  ;;  %v17000_v38 = vpack.c.bf16 %v7047_v33, %v7047_v33  ;;  %v17001_v15 = vpack.c.bf16 %v7048_v28, %v7048_v28  ;;  %507 = vst [vmem:[#allocation3] sm:$0x1] %v506_v31  ;;  %v526_v50 = vld [vmem:[#allocation3 + $0x38] sm:$0x1] }
 0x40b   : > { %24484 = vst [vmem:[#allocation36_spill] sm:$0xff] %v21625_v59  ;;  %v17002_v9 = vpack.c.bf16 %v7049_v62, %v7049_v62  ;;  %538 = vst [vmem:[#allocation3 + $0x4] sm:$0x1] %v537_v24  ;;  %v7502_v6 = vpack.c.b16 %v7465_v7, %v7465_v7  ;;  %v7366_v58 = vunpack.c.l.b16 %v16999_v56  ;;  %v6273_v46 = vcombine.high %v21625_v59, %v21625_v59 }
 0x40c   : > { %v6280_v43 = vrot.slane %v21625_v59, %v21237_v37  ;;  %v7367_v32 = vunpack.c.l.b16 %v17000_v38  ;;  %v7368_v42 = vunpack.c.l.b16 %v17001_v15  ;;  %v7614_v16 = vshrl.u32 %v21631_v57, 16  ;;  %v557_v38 = vld [vmem:[#allocation3 + $0x3c] sm:$0x1] }
 0x40d   : > { %v7558_v10 = vsel %vm21335_vm0, %v7502_v6, %v7557_v29  ;;  %v7369_v53 = vunpack.c.l.b16 %v17002_v9  ;;  %v6287_v27 = vrot.slane %v6273_v46, %v21237_v37  ;;  %v7466_v11 = vrot.slane %v7366_v58, 7 }
 0x40e   : > { %v6288_v5 = vcombine.high %v6280_v43, %v6280_v43  ;;  %7559 = vst [vmem:[#allocation3 + $0x30] sm:$0xf] %v7558_v10  ;;  %v7467_v60 = vrot.slane %v7367_v32, 6  ;;  %v7469_v30 = vrot.slane %v7368_v42, 5  ;;  %v16200_v45 = vrot.slane %v6280_v43, 9 }
 0x40f   : > { %v6289_v1 = vcombine.high %v6287_v27, %v6287_v27  ;;  %v16202_v0 = vrot.slane %v6287_v27, 9  ;;  %v7616_v22 = vrot.slane %v7614_v16, 4  ;;  %v7617_v36 = vshll.u32 %v21631_v57, 16  ;;  %v529_v42 = vld [vmem:[#allocation3 + $0x40] sm:$0x1] }
 0x410   : > { %v16201_v49 = vrot.slane %v6288_v5, 9  ;;  %v7468_v14 = vsel %vm7384_vm8, %v7467_v60, %v7466_v11  ;;  %v7623_v48 = vshll.u32 %v21642_v18, 16  ;;  %v7471_v33 = vrot.slane %v7369_v53, 4 }
 0x411   : > { %v7470_v52 = vsel %vm7387_vm9, %v7469_v30, %v7468_v14  ;;  %v16203_v28 = vrot.slane %v6289_v1, 9  ;;  %v21648_v62 = vmax.f32 %v6280_v43, %v16200_v45  ;;  %v21650_v56 = vld [vmem:[#allocation3] sm:$0xf]  ;;  %v7619_v29 = vrot.slane %v7617_v36, 5 }
 0x412   : > { %v21652_v23 = vld [vmem:[#allocation3 + $0x4] sm:$0x1]  ;;  %v7600_v31 = vshrl.u32 %v21650_v56, 16  ;;  %v7603_v24 = vshll.u32 %v21650_v56, 16  ;;  %v21657_v15 = vmax.f32 %v6288_v5, %v16201_v49  ;;  %v21659_v9 = vmax.f32 %v6287_v27, %v16202_v0 }
 0x413   : > { %v7609_v7 = vshll.u32 %v21652_v23, 16  ;;  %v21661_v6 = vmax.f32 %v6289_v1, %v16203_v28  ;;  %v7625_v58 = vrot.slane %v7623_v48, 5  ;;  %v7620_v32 = vor.u32 %v7619_v29, %v7616_v22  ;;  %v560_v27 = vld [vmem:[#allocation3 + $0x44] sm:$0x1] }
 0x414   : > { %v7602_v46 = vrot.slane %v7600_v31, 4  ;;  %v7605_v43 = vrot.slane %v7603_v24, 5  ;;  %v527_v10 = vsel %vm21201_vm7, 0, %v526_v50  ;;  %v558_v53 = vsel %vm21192_vm5, 0, %v557_v38 }
 0x415   : > { %v7611_v16 = vrot.slane %v7609_v7, 5  ;;  %v5743_v5 = vadd.f32 %v21551_v44, %v21385_v34  ;;  %v7621_v60 = vrot.slane %v7620_v32, 4  ;;  %528 = vst [vmem:[#allocation3 + $0x38] sm:$0x1] %v527_v10  ;;  %559 = vst [vmem:[#allocation3 + $0x3c] sm:$0x1] %v558_v53  ;;  %v21670_v30 = vsel %vm7390_vm10, %v7471_v33, %v7470_v52 }
 0x416   : > { %v7606_v11 = vor.u32 %v7605_v43, %v7602_v46  ;;  %v5748_v45 = vadd.f32 %v21551_v44, %v21427_v61  ;;  %v5746_v49 = vadd.f32 %v21551_v44, %v21441_v17  ;;  %v5749_v0 = vadd.f32 %v21551_v44, %v21445_v40 }
 0x417   : > { %v21674_v1 = vmax.f32 %v5743_v5, 0.0  ;;  %v530_v34 = vsel %vm21201_vm7, 0, %v529_v42  ;;  %v7626_v22 = vsel %vm19581_vm12, %v7621_v60, %v7625_v58  ;;  %v561_v61 = vsel %vm21192_vm5, 0, %v560_v27 }
 0x418   : > { %v7607_v14 = vrot.slane %v7606_v11, 4  ;;  %v21684_v36 = vmax.f32 %v5748_v45, 0.0  ;;  %531 = vst [vmem:[#allocation3 + $0x40] sm:$0x1] %v530_v34  ;;  %v21692_v40 = vmax.f32 %v5746_v49, 0.0  ;;  %v21694_v50 = vmax.f32 %v5749_v0, 0.0 }
 0x419   : > { %24485 = vst [vmem:[#allocation37_spill] sm:$0xff] %v21674_v1  ;;  %v6239_v48 = vcombine.high %v21674_v1, %v21674_v1  ;;  %v6246_v17 = vrot.slane %v21674_v1, %v21237_v37  ;;  %562 = vst [vmem:[#allocation3 + $0x44] sm:$0x1] %v561_v61  ;;  %v21704_v31 = vadd.f32 %v21551_v44, %v21454_v3 }
 0x41a   : > { %24486 = vst [vmem:[#allocation38_spill] sm:$0xff] %v21684_v36  ;;  %24487 = vst [vmem:[#allocation39_spill] sm:$0xff] %v21692_v40  ;;  %v7612_v52 = vsel %vm19581_vm12, %v7607_v14, %v7611_v16  ;;  %v6324_v33 = vcombine.high %v21684_v36, %v21684_v36  ;;  %v6331_v28 = vrot.slane %v21684_v36, %v21237_v37 }
 0x41b   : > { %24488 = vst [vmem:[#allocation40_spill] sm:$0xff] %v21694_v50  ;;  %v16300_v24 = vcombine.low %v7612_v52, %v7626_v22  ;;  %v6253_v7 = vrot.slane %v6239_v48, %v21237_v37  ;;  %v6254_v29 = vcombine.high %v6246_v17, %v6246_v17  ;;  %v16192_v38 = vrot.slane %v6246_v17, 9 }
 0x41c   : > { %v6338_v58 = vrot.slane %v6324_v33, %v21237_v37  ;;  %v6339_v46 = vcombine.high %v6331_v28, %v6331_v28  ;;  %v16212_v43 = vrot.slane %v6331_v28, 9  ;;  %v6290_v32 = vcombine.high %v21692_v40, %v21692_v40 }
 0x41d   : > { %17830 = vmatprep.mubr.msk.bf16.mxu1 %vm7756_vm6, %v16300_v24  ;;  %v6255_v42 = vcombine.high %v6253_v7, %v6253_v7  ;;  %v16193_v16 = vrot.slane %v6254_v29, 9  ;;  %v16194_v10 = vrot.slane %v6253_v7, 9  ;;  %v6970_v53 = vmax.f32 %v6246_v17, %v16192_v38 }
 0x41e   : > { %v6340_v3 = vcombine.high %v6338_v58, %v6338_v58  ;;  %v16213_v44 = vrot.slane %v6339_v46, 9  ;;  %v16214_v5 = vrot.slane %v6338_v58, 9  ;;  %v6990_v27 = vmax.f32 %v6331_v28, %v16212_v43 }
 0x41f   : > { %v16195_v11 = vrot.slane %v6255_v42, 9  ;;  %v6971_v60 = vmax.f32 %v6254_v29, %v16193_v16  ;;  %v6972_v45 = vmax.f32 %v6253_v7, %v16194_v10  ;;  %v7050_v49 = vmax.f32 %v6970_v53, %v21648_v62 }
 0x420   : > { %v16215_v0 = vrot.slane %v6340_v3, 9  ;;  %v6991_v34 = vmax.f32 %v6339_v46, %v16213_v44  ;;  %v6992_v14 = vmax.f32 %v6338_v58, %v16214_v5  ;;  %v6297_v22 = vrot.slane %v21692_v40, %v21237_v37  ;;  %v7566_v58 = vld [vmem:[#allocation3 + $0x3c] sm:$0x1] }
 0x421   : > { %v6973_v61 = vmax.f32 %v6255_v42, %v16195_v11  ;;  %v7051_v48 = vmax.f32 %v6971_v60, %v21657_v15  ;;  %v7052_v17 = vmax.f32 %v6972_v45, %v21659_v9  ;;  %v17003_v52 = vpack.c.bf16 %v7050_v49, %v7050_v49 }
 0x422   : > { %v6993_v33 = vmax.f32 %v6340_v3, %v16215_v0  ;;  %v6304_v28 = vrot.slane %v6290_v32, %v21237_v37  ;;  %v6305_v24 = vcombine.high %v6297_v22, %v6297_v22  ;;  %v16204_v29 = vrot.slane %v6297_v22, 9 }
 0x423   : > { %v7053_v7 = vmax.f32 %v6973_v61, %v21661_v6  ;;  %v17004_v62 = vpack.c.bf16 %v7051_v48, %v7051_v48  ;;  %v17005_v38 = vpack.c.bf16 %v7052_v17, %v7052_v17  ;;  %v7370_v46 = vunpack.c.l.b16 %v17003_v52 }
 0x424   : > { %v6306_v43 = vcombine.high %v6304_v28, %v6304_v28  ;;  %v16205_v16 = vrot.slane %v6305_v24, 9  ;;  %v16206_v10 = vrot.slane %v6304_v28, 9  ;;  %v6982_v42 = vmax.f32 %v6297_v22, %v16204_v29 }
 0x425   : > { %v7371_v53 = vunpack.c.l.b16 %v17004_v62  ;;  %v7372_v15 = vunpack.c.l.b16 %v17005_v38  ;;  %v7473_v44 = vrot.slane %v7370_v46, 3  ;;  %v17021_v9 = vpack.c.bf16 %v7053_v7, %v7053_v7 }
 0x426   : > { %v16207_v5 = vrot.slane %v6306_v43, 9  ;;  %v6983_v3 = vmax.f32 %v6305_v24, %v16205_v16  ;;  %v6984_v11 = vmax.f32 %v6304_v28, %v16206_v10  ;;  %v7054_v32 = vmax.f32 %v6982_v42, %v6990_v27  ;;  %v7563_v24 = vld [vmem:[#allocation3 + $0x38] sm:$0xf] }
 0x427   : > { %v7474_v60 = vsel %vm7393_vm13, %v7473_v44, %v21670_v30  ;;  %v7475_v6 = vrot.slane %v7371_v53, 2  ;;  %v7477_v45 = vrot.slane %v7372_v15, 1  ;;  %v7567_v49 = vsel %vm21201_vm7, %v17021_v9, %v7566_v58 }
 0x428   : > { %7568 = vst [vmem:[#allocation3 + $0x3c] sm:$0x1] %v7567_v49  ;;  %v6985_v0 = vmax.f32 %v6306_v43, %v16207_v5  ;;  %v7055_v61 = vmax.f32 %v6983_v3, %v6991_v34  ;;  %v7056_v22 = vmax.f32 %v6984_v11, %v6992_v14  ;;  %v17007_v48 = vpack.c.bf16 %v7054_v32, %v7054_v32  ;;  %v21734_v3 = vld [vmem:[#allocation3 + $0x10] sm:$0xf] }
 0x429   : > { %v7476_v17 = vsel %vm7396_vm14, %v7475_v6, %v7474_v60  ;;  %v6341_v52 = vcombine.high %v21694_v50, %v21694_v50  ;;  %v6348_v27 = vrot.slane %v21694_v50, %v21237_v37  ;;  %v21728_v30 = vmax.f32 %v21704_v31, 0.0 }
 0x42a   : > { %v7478_v28 = vsel %vm7399_vm15, %v7477_v45, %v7476_v17  ;;  %v7057_v29 = vmax.f32 %v6985_v0, %v6993_v33  ;;  %v17008_v7 = vpack.c.bf16 %v7055_v61, %v7055_v61  ;;  %v17009_v62 = vpack.c.bf16 %v7056_v22, %v7056_v22 }
 0x42b   : > { %24489 = vst [vmem:[#allocation41_spill] sm:$0xff] %v21728_v30  ;;  %v7504_v34 = vpack.c.b16 %v7478_v28, %v7478_v28  ;;  %v7374_v14 = vunpack.c.l.b16 %v17007_v48  ;;  %v6355_v38 = vrot.slane %v6341_v52, %v21237_v37  ;;  %v6356_v46 = vcombine.high %v6348_v27, %v6348_v27  ;;  %v21742_v48 = vld [vmem:[#allocation3 + $0x18] sm:$0xf] }
 0x42c   : > { %v17010_v58 = vpack.c.bf16 %v7057_v29, %v7057_v29  ;;  %v7375_v43 = vunpack.c.l.b16 %v17008_v7  ;;  %v7376_v16 = vunpack.c.l.b16 %v17009_v62  ;;  %v16216_v10 = vrot.slane %v6348_v27, 9  ;;  %v21746_v29 = vld [vmem:[#allocation3 + $0x14] sm:$0x1] }
 0x42d   : > { %v7564_v42 = vsel %vm21335_vm0, %v7504_v34, %v7563_v24  ;;  %v7479_v31 = vrot.slane %v7374_v14, 7  ;;  %v6357_v53 = vcombine.high %v6355_v38, %v6355_v38  ;;  %v16217_v15 = vrot.slane %v6356_v46, 9 }
 0x42e   : > { %7565 = vst [vmem:[#allocation3 + $0x38] sm:$0xf] %v7564_v42  ;;  %v7377_v44 = vunpack.c.l.b16 %v17010_v58  ;;  %v7480_v33 = vrot.slane %v7375_v43, 6  ;;  %v7482_v9 = vrot.slane %v7376_v16, 5  ;;  %v16218_v5 = vrot.slane %v6355_v38, 9 }
 0x42f   : > { %v16219_v11 = vrot.slane %v6357_v53, 9  ;;  %v6307_v32 = vcombine.high %v21728_v30, %v21728_v30  ;;  %v6994_v6 = vmax.f32 %v6348_v27, %v16216_v10  ;;  %v6995_v45 = vmax.f32 %v6356_v46, %v16217_v15  ;;  %v21749_v58 = vld [vmem:[#allocation3 + $0x1c] sm:$0x1] }
 0x430   : > { %v7481_v60 = vsel %vm7384_vm8, %v7480_v33, %v7479_v31  ;;  %v6314_v49 = vrot.slane %v21728_v30, %v21237_v37  ;;  %v7484_v0 = vrot.slane %v7377_v44, 4  ;;  %v6996_v61 = vmax.f32 %v6355_v38, %v16218_v5  ;;  %vm22319_vm8 = vmand %vm1688_vm4, %vm440_vm3 }
 0x431   : > { %v6321_v22 = vrot.slane %v6307_v32, %v21237_v37  ;;  %v7628_v17 = vshrl.u32 %v21734_v3, 16  ;;  %v7483_v52 = vsel %vm7387_vm9, %v7482_v9, %v7481_v60  ;;  %v7631_v27 = vshll.u32 %v21734_v3, 16 }
 0x432   : > { %v6322_v28 = vcombine.high %v6314_v49, %v6314_v49  ;;  %v16208_v24 = vrot.slane %v6314_v49, 9  ;;  %v6997_v7 = vmax.f32 %v6357_v53, %v16219_v11  ;;  %v7642_v43 = vshrl.u32 %v21742_v48, 16 }
 0x433   : > { %v6323_v62 = vcombine.high %v6321_v22, %v6321_v22  ;;  %v16210_v34 = vrot.slane %v6321_v22, 9  ;;  %v7630_v14 = vrot.slane %v7628_v17, 4  ;;  %v7633_v37 = vrot.slane %v7631_v27, 5 }
 0x434   : > { %v16209_v46 = vrot.slane %v6322_v28, 9  ;;  %v6986_v38 = vmax.f32 %v6314_v49, %v16208_v24  ;;  %v7637_v42 = vshll.u32 %v21746_v29, 16  ;;  %v7645_v31 = vshll.u32 %v21742_v48, 16  ;;  %v21755_v24 = vld [vmem:[#allocation3 + $0x20] sm:$0xf] }
 0x435   : > { %v16211_v16 = vrot.slane %v6323_v62, 9  ;;  %v6988_v10 = vmax.f32 %v6321_v22, %v16210_v34  ;;  %v7634_v33 = vor.u32 %v7633_v37, %v7630_v14  ;;  %v7644_v53 = vrot.slane %v7642_v43, 4 }
 0x436   : > { %v6987_v15 = vmax.f32 %v6322_v28, %v16209_v46  ;;  %v7058_v44 = vmax.f32 %v6986_v38, %v6994_v6  ;;  %v7647_v11 = vrot.slane %v7645_v31, 5  ;;  %v7651_v32 = vshll.u32 %v21749_v58, 16  ;;  %v7572_v6 = vld [vmem:[#allocation3 + $0x44] sm:$0x1] }
 0x437   : > { %v6989_v9 = vmax.f32 %v6323_v62, %v16211_v16  ;;  %v7060_v5 = vmax.f32 %v6988_v10, %v6996_v61  ;;  %v7635_v17 = vrot.slane %v7634_v33, 4  ;;  %v7485_v34 = vsel %vm7390_vm10, %v7484_v0, %v7483_v52  ;;  %v21758_v62 = vld [vmem:[#allocation3 + $0x24] sm:$0x1]  ;;  %v21763_v10 = vld [vmem:[#allocation3 + $0x28] sm:$0xf] }
 0x438   : > { %v7059_v60 = vmax.f32 %v6987_v15, %v6995_v45  ;;  %v17011_v49 = vpack.c.bf16 %v7058_v44, %v7058_v44  ;;  %v7648_v30 = vor.u32 %v7647_v11, %v7644_v53  ;;  %v7639_v14 = vrot.slane %v7637_v42, 5  ;;  %v21765_v0 = vld [vmem:[#allocation3 + $0x2c] sm:$0x1] }
 0x439   : > { %v7061_v27 = vmax.f32 %v6989_v9, %v6997_v7  ;;  %v17013_v22 = vpack.c.bf16 %v7060_v5, %v7060_v5  ;;  %v7653_v46 = vrot.slane %v7651_v32, 5  ;;  %v7656_v45 = vshrl.u32 %v21755_v24, 16  ;;  %v19102_v5 = vld [vmem:[%s24283_s3 + $0x8] sm:$0xff]  }
 0x43a   : > { %v17012_v50 = vpack.c.bf16 %v7059_v60, %v7059_v60  ;;  %v7378_v28 = vunpack.c.l.b16 %v17011_v49  ;;  %v7649_v37 = vrot.slane %v7648_v30, 4  ;;  %v7640_v7 = vsel %vm19581_vm12, %v7635_v17, %v7639_v14  ;;  %v7569_v14 = vld [vmem:[#allocation3 + $0x40] sm:$0xf] }
 0x43b   : > { %v7380_v61 = vunpack.c.l.b16 %v17013_v22  ;;  %v17022_v38 = vpack.c.bf16 %v7061_v27, %v7061_v27  ;;  %v7659_v52 = vshll.u32 %v21755_v24, 16  ;;  %v7658_v30 = vrot.slane %v7656_v45, 4  ;;  %v21784_v22 = vld [vmem:[#allocation3 + $0x38] sm:$0xf] }
 0x43c   : > { %v7379_v43 = vunpack.c.l.b16 %v17012_v50  ;;  %v7486_v16 = vrot.slane %v7378_v28, 3  ;;  %v7654_v31 = vsel %vm19581_vm12, %v7649_v37, %v7653_v46  ;;  %v7665_v15 = vshll.u32 %v21758_v62, 16  ;;  %v21773_v50 = vld [vmem:[#allocation3 + $0x30] sm:$0xf]  ;;  %v21792_v37 = vld [vmem:[#allocation3 + $0x34] sm:$0x1] }
 0x43d   : > { %v7573_v42 = vsel %vm21201_vm7, %v17022_v38, %v7572_v6  ;;  %v16301_v53 = vcombine.low %v7640_v7, %v7654_v31  ;;  %v7661_v9 = vrot.slane %v7659_v52, 5  ;;  %v7490_v11 = vrot.slane %v7380_v61, 1  ;;  %v19314_v38 = vld [vmem:[%s24283_s3] sm:$0xff]  }
 0x43e   : > { %v7487_v44 = vsel %vm7393_vm13, %v7486_v16, %v7485_v34  ;;  %v7488_v33 = vrot.slane %v7379_v43, 2  ;;  %7574 = vst [vmem:[#allocation3 + $0x44] sm:$0x1] %v7573_v42  ;;  %v7670_v32 = vshrl.u32 %v21763_v10, 16  ;;  %v7673_v60 = vshll.u32 %v21763_v10, 16  ;;  %v19103_v42 = vld [vmem:[%s24283_s3 + $0x10] sm:$0xff]  }
 0x43f   : > { %v7679_v49 = vshll.u32 %v21765_v0, 16  ;;  %17831 = vmatmul.mubr.msk.bf16.vlgmr.msra.gmra.mrb[0].mxu1 %vm7756_vm6, %v16301_v53  ;;  %v7662_v27 = vor.u32 %v7661_v9, %v7658_v30  ;;  %v7684_v34 = vshrl.u32 %v21773_v50, 16  ;;  %v7687_v28 = vshll.u32 %v21773_v50, 16  ;;  %v21794_v16 = vld [vmem:[#allocation3 + $0x3c] sm:$0x1] }
 0x440   : > { %v7489_v17 = vsel %vm7396_vm14, %v7488_v33, %v7487_v44  ;;  %v7672_v46 = vrot.slane %v7670_v32, 4  ;;  %v7675_v61 = vrot.slane %v7673_v60, 5  ;;  %17839 = vmatpush3.bf16.msra.mxu1 %v19314_v38  ;;  %v7667_v43 = vrot.slane %v7665_v15, 5  ;;  %v7955_v32 = vld [vmem:[#allocation3] sm:$0xe] }
 0x441   : > { %v7491_v6 = vsel %vm7399_vm15, %v7490_v11, %v7489_v17  ;;  %17840 = vmatprep.subr.bf16.mxu1 %v19102_v5  ;;  %v7686_v7 = vrot.slane %v7684_v34, 4  ;;  %v7689_v52 = vrot.slane %v7687_v28, 5  ;;  %v7663_v31 = vrot.slane %v7662_v27, 4  ;;  %v7956_v28 = vld [vmem:[#allocation3 + $0x8] sm:$0xe] }
 0x442   : > { %v7506_v45 = vpack.c.b16 %v7491_v6, %v7491_v6  ;;  %v7676_v30 = vor.u32 %v7675_v61, %v7672_v46  ;;  %v7698_v44 = vshrl.u32 %v21784_v22, 16  ;;  %v7701_v33 = vshll.u32 %v21784_v22, 16 }
 0x443   : > { %v7681_v9 = vrot.slane %v7679_v49, 5  ;;  %v7690_v15 = vor.u32 %v7689_v52, %v7686_v7  ;;  %v7693_v11 = vshll.u32 %v21792_v37, 16  ;;  %v7707_v27 = vshll.u32 %v21794_v16, 16 }
 0x444   : > { %v7570_v53 = vsel %vm21335_vm0, %v7506_v45, %v7569_v14  ;;  %v7677_v60 = vrot.slane %v7676_v30, 4  ;;  %17841 = vmatpush3.bf16.msra.mxu1 %v19102_v5  ;;  %v7700_v17 = vrot.slane %v7698_v44, 4  ;;  %v7703_v34 = vrot.slane %v7701_v33, 5 }
 0x445   : > { %7571 = vst [vmem:[#allocation3 + $0x40] sm:$0xf] %v7570_v53  ;;  %v7981_v6 = vrot.slane %v21652_v23, 5  ;;  %17842 = vmatprep.subr.bf16.mxu1 %v19103_v42  ;;  %v7668_v49 = vsel %vm19581_vm12, %v7663_v31, %v7667_v43  ;;  %v7691_v46 = vrot.slane %v7690_v15, 4  ;;  %v7985_v61 = vrot.slane %v21642_v18, 5  ;;  %v19107_v43 = vld [vmem:[%s24283_s3 + $0x40] sm:$0xff]  }
 0x446   : > { %v7682_v14 = vsel %vm19581_vm12, %v7677_v60, %v7681_v9  ;;  %v7704_v5 = vor.u32 %v7703_v34, %v7700_v17  ;;  %v16324_v45 = vrot.slane %v7955_v32, 9  ;;  %v16325_v7 = vrot.slane %v7956_v28, 9  ;;  %v7959_v17 = vld [vmem:[#allocation3 + $0x20] sm:$0xe] }
 0x447   : > { %v16302_v38 = vcombine.low %v7668_v49, %v7682_v14  ;;  %v7695_v52 = vrot.slane %v7693_v11, 5  ;;  %v7709_v30 = vrot.slane %v7707_v27, 5  ;;  %v16312_v9 = vcombine.low %v21650_v56, %v21631_v57  ;;  %v19109_v11 = vld [vmem:[%s24283_s3 + $0x48] sm:$0xff]   ;;  %v19111_v57 = vld [vmem:[%s24283_s3 + $0x50] sm:$0xff]  }
 0x448   : > { %v7705_v23 = vrot.slane %v7704_v5, 4  ;;  %17843 = vmatpush3.bf16.msra.mxu1 %v19103_v42  ;;  %v7982_v31 = vsel %vm19956_vm1, %v16324_v45, %v7981_v6  ;;  %v7986_v18 = vsel %vm19956_vm1, %v16325_v7, %v7985_v61  ;;  %v16313_v15 = vcombine.low %v21734_v3, %v21742_v48  ;;  %v7958_v56 = vld [vmem:[#allocation3 + $0x18] sm:$0xe]  ;;  %v7960_v3 = vld [vmem:[#allocation3 + $0x28] sm:$0xe] }
 0x449   : > { %17834 = vmatprep.mubr.msk.bf16.mxu1 %vm7756_vm6, %v16302_v38  ;;  %17844 = vmatprep.subr.bf16.mxu1 %v19105_v41  ;;  %v7696_v44 = vsel %vm19581_vm12, %v7691_v46, %v7695_v52  ;;  %v16340_v42 = vcombine.low %v7982_v31, %v7986_v18  ;;  %v16314_v32 = vcombine.low %v21755_v24, %v21763_v10  ;;  %v19112_v24 = vld [vmem:[%s24283_s3 + $0x58] sm:$0xff]   ;;  %v7957_v10 = vld [vmem:[#allocation3 + $0x10] sm:$0xe]  ;;  %v16327_v60 = vrot.slane %v7958_v56, 9  ;;  %v7962_v46 = vld [vmem:[#allocation3 + $0x38] sm:$0xe] }
 0x44a   : > { %v7710_v33 = vsel %vm19581_vm12, %v7705_v23, %v7709_v30  ;;  %v16315_v48 = vcombine.low %v21773_v50, %v21784_v22  ;;  %v16329_v34 = vrot.slane %v7960_v3, 9  ;;  %v7993_v27 = vrot.slane %v21749_v58, 5  ;;  %v19113_v50 = vld [vmem:[%s24283_s3 + $0x60] sm:$0xff]   ;;  %v7961_v38 = vld [vmem:[#allocation3 + $0x30] sm:$0xe] }
 0x44b   : > { %v16303_v53 = vcombine.low %v7696_v44, %v7710_v33  ;;  %v16326_v28 = vrot.slane %v7957_v10, 9  ;;  %v16328_v22 = vrot.slane %v7959_v17, 9  ;;  %v8001_v6 = vrot.slane %v21765_v0, 5  ;;  %v532_v7 = vld [vmem:[#allocation3 + $0x48] sm:$0x1] }
 0x44c   : > { %17845 = vmatpush3.bf16.msra.mxu1 %v19105_v41  ;;  %v7989_v41 = vrot.slane %v21746_v29, 5  ;;  %v7994_v49 = vsel %vm19956_vm1, %v16327_v60, %v7993_v27  ;;  %v7997_v14 = vrot.slane %v21758_v62, 5  ;;  %v19114_v29 = vld [vmem:[%s24283_s3 + $0x68] sm:$0xff]   ;;  %v16331_v62 = vrot.slane %v7962_v46, 9  ;;  %v8287_v33 = vld [vmem:[#allocation3 + $0x8] sm:$0xf] }
 0x44d   : > { %17835 = vmatmul.mubr.msk.bf16.gmra.mrb[4].mxu1 %vm7756_vm6, %v16303_v53  ;;  %17854 = vmatprep.subr.bf16.mxu1 %v19107_v43  ;;  %v8002_v58 = vsel %vm19956_vm1, %v16329_v34, %v8001_v6  ;;  %v16330_v52 = vrot.slane %v7961_v38, 9  ;;  %v8009_v23 = vrot.slane %v21794_v16, 5  ;;  %v8289_v30 = vld [vmem:[#allocation3 + $0x10] sm:$0xf]  ;;  %v533_v31 = vsel %vm21201_vm7, 0, %v532_v7 }
 0x44e   : > { %17846 = vmatprep.mubr.msk.bf16.mxu1 %vm7756_vm6, %v16312_v9  ;;  %v7990_v5 = vsel %vm19956_vm1, %v16326_v28, %v7989_v41  ;;  %v7998_v0 = vsel %vm19956_vm1, %v16328_v22, %v7997_v14  ;;  %v8005_v18 = vrot.slane %v21792_v37, 5  ;;  %534 = vst [vmem:[#allocation3 + $0x48] sm:$0x1] %v533_v31  ;;  %v8321_v53 = vshll.u32 %v8289_v30, 16  ;;  %v19116_v37 = vld [vmem:[#allocation3 + $0x8] ss:$8 sps:$4 sm:$0xff]  }
 0x44f   : > { %v16341_v61 = vcombine.low %v7990_v5, %v7994_v49  ;;  %v16342_v45 = vcombine.low %v7998_v0, %v8002_v58  ;;  %v8010_v44 = vsel %vm19956_vm1, %v16331_v62, %v8009_v23  ;;  %v8293_v56 = vld [vmem:[#allocation3 + $0x20] sm:$0xf]  ;;  %v8291_v3 = vld [vmem:[#allocation3 + $0x18] sm:$0xf]  ;;  %v21888_v17 = vld [vmem:[#allocation3 + $0x14] sm:$0x1] }
 0x450   : > { %v8006_v16 = vsel %vm19956_vm1, %v16330_v52, %v8005_v18  ;;  %v8346_v34 = vshrl.u32 %v8293_v56, 16  ;;  %v8349_v27 = vshll.u32 %v8293_v56, 16  ;;  %v8295_v28 = vld [vmem:[#allocation3 + $0x28] sm:$0xf]  ;;  %v563_v41 = vld [vmem:[#allocation3 + $0x4c] sm:$0x1] }
 0x451   : > { %v16343_v9 = vcombine.low %v8006_v16, %v8010_v44  ;;  %v21890_v49 = vld [vmem:[#allocation3 + $0xc] sm:$0x1]  ;;  %v8332_v14 = vshrl.u32 %v8291_v3, 16  ;;  %v8335_v58 = vshll.u32 %v8291_v3, 16  ;;  %v19118_v46 = vld [vmem:[#allocation3 + $0x18] ss:$8 sps:$4 sm:$0xff]  }
 0x452   : > { %v19121_v5 = vld [vmem:[%s24283_s3 + $0x88] sm:$0xff]   ;;  %v8327_v0 = vshll.u32 %v21888_v17, 16  ;;  %v8363_v38 = vshll.u32 %v8295_v28, 16  ;;  %v8348_v62 = vrot.slane %v8346_v34, 4  ;;  %v8351_v7 = vrot.slane %v8349_v27, 5  ;;  %v19123_v44 = vld [vmem:[%s24283_s3 + $0x90] sm:$0xff]  }
 0x453   : > { %v564_v52 = vsel %vm21192_vm5, 0, %v563_v41  ;;  %v8313_v23 = vshll.u32 %v21890_v49, 16  ;;  %v8301_v18 = vld [vmem:[#allocation3 + $0x40] sm:$0xf]  ;;  %v8334_v47 = vrot.slane %v8332_v14, 4  ;;  %vm573_vm5 = vcmask 1040384  }
 0x454   : > { %565 = vst [vmem:[#allocation3 + $0x4c] sm:$0x1] %v564_v52  ;;  %v8329_v16 = vrot.slane %v8327_v0, 5  ;;  %v8405_v56 = vshll.u32 %v8301_v18, 16  ;;  %v21913_v34 = vld [vmem:[#allocation3 + $0x2c] sm:$0x1]  ;;  %vm22104_vm7 = vmand %vm573_vm5, %vm384_vm2 }
 0x455   : > { %17847 = vmatmul.mubr.msk.bf16.vlgmr.msra.gmra.mrb[0].mxu1 %vm7756_vm6, %v16313_v15  ;;  %v8304_v15 = vshrl.u32 %v8287_v33, 16  ;;  %v8315_v3 = vrot.slane %v8313_v23, 5  ;;  %v19125_v23 = vld [vmem:[%s24283_s3 + $0xa0] sm:$0xff]   ;;  %vm22193_vm2 = vmand %vm573_vm5, %vm440_vm3  ;;  %vm15497_vm3 = vcmask 130112   ;;  %vm15504_vm4 = vcmask 195712  }
 0x456   : > { %17850 = vmatprep.mubr.msk.bf16.mxu1 %vm7756_vm6, %v16314_v32  ;;  %17855 = vmatpush3.bf16.msra.mxu1 %v19107_v43  ;;  %v19115_v43 = vld [vmem:[%s24283_s3 + $0x70] sm:$0xff]   ;;  %v8407_v0 = vrot.slane %v8405_v56, 5  ;;  %vm15532_vm9 = vcmask 458112   ;;  %vm15539_vm10 = vcmask 523712   ;;  %vm15546_vm13 = vcmask 589312  }
 0x457   : > { %17856 = vmatprep.subr.bf16.mxu1 %v19109_v11  ;;  %v8306_v10 = vrot.slane %v8304_v15, 4  ;;  %v8299_v15 = vld [vmem:[#allocation3 + $0x38] sm:$0xf]  ;;  %vm15553_vm14 = vcmask 654912   ;;  %vm15560_vm15 = vcmask 720512   ;;  %vm15567_vm0 = vcmask 786112  }
 0x458   : > { %v8388_v27 = vshrl.u32 %v8299_v15, 16  ;;  %vm15581_vm5 = vcmask 917312  }
 0x45a   : > { %17857 = vmatpush3.bf16.msra.mxu1 %v19109_v11  ;;  %v8307_v11 = vshll.u32 %v8287_v33, 16  ;;  %v21904_v33 = vld [vmem:[#allocation3 + $0x24] sm:$0x1] }
 0x45b   : > { %17858 = vmatprep.subr.bf16.mxu1 %v19111_v57 }
 0x45c   : > { %v8309_v60 = vrot.slane %v8307_v11, 5  ;;  %v21906_v11 = vld [vmem:[#allocation3 + $0x1c] sm:$0x1] }
 0x45d   : > { %17851 = vmatmul.mubr.msk.bf16.gmra.mrb[4].mxu1 %vm7756_vm6, %v16315_v48  ;;  %v8297_v48 = vld [vmem:[#allocation3 + $0x30] sm:$0xf]  ;;  %v8341_v41 = vshll.u32 %v21906_v11, 16 }
 0x45e   : > { %17859 = vmatpush3.bf16.msra.mxu1 %v19111_v57  ;;  %17862 = vmatprep.mubr.msk.bf16.mxu1 %vm7756_vm6, %v16340_v42  ;;  %v8318_v42 = vshrl.u32 %v8289_v30, 16  ;;  %v8323_v57 = vrot.slane %v8321_v53, 5  ;;  %v8374_v22 = vshrl.u32 %v8297_v48, 16  ;;  %v8377_v6 = vshll.u32 %v8297_v48, 16 }
 0x45f   : > { %17860 = vmatprep.subr.bf16.mxu1 %v19112_v24 }
 0x460   : > { %v8320_v32 = vrot.slane %v8318_v42, 4  ;;  %v8379_v31 = vrot.slane %v8377_v6, 5  ;;  %v8337_v42 = vrot.slane %v8335_v58, 5  ;;  %v19124_v6 = vld [vmem:[%s24283_s3 + $0x98] sm:$0xff]  }
 0x462   : > { %17861 = vmatpush3.bf16.msra.mxu1 %v19112_v24  ;;  %v19119_v24 = vld [vmem:[%s24283_s3 + $0x80] sm:$0xff]  }
 0x463   : > { %17870 = vmatprep.subr.bf16.mxu1 %v19113_v50 }
 0x465   : > { %17863 = vmatmul.mubr.msk.bf16.vlgmr.msra.gmra.mrb[0].mxu1 %vm7756_vm6, %v16341_v61  ;;  %v8310_v61 = vor.u32 %v8309_v60, %v8306_v10  ;;  %v8338_v10 = vor.u32 %v8337_v42, %v8334_v47  ;;  %v8355_v60 = vshll.u32 %v21904_v33, 16 }
 0x466   : > { %17866 = vmatprep.mubr.msk.bf16.mxu1 %vm7756_vm6, %v16342_v45  ;;  %17871 = vmatpush3.bf16.msra.mxu1 %v19113_v50  ;;  %v8324_v50 = vor.u32 %v8323_v57, %v8320_v32  ;;  %v19120_v45 = vld [vmem:[#allocation3 + $0x28] ss:$8 sps:$4 sm:$0xff]   ;;  %v21908_v32 = vld [vmem:[#allocation3 + $0x34] sm:$0x1]  ;;  %v8402_v57 = vshrl.u32 %v8301_v18, 16  ;;  %v8343_v18 = vrot.slane %v8341_v41, 5 }
 0x467   : > { %17872 = vmatprep.subr.bf16.mxu1 %v19114_v29  ;;  %v8311_v53 = vrot.slane %v8310_v61, 4  ;;  %v8383_v58 = vshll.u32 %v21908_v32, 16  ;;  %v8575_v41 = vrot.slane %v21888_v17, 5 }
 0x468   : > { %v8325_v30 = vrot.slane %v8324_v50, 4  ;;  %v19122_v50 = vld [vmem:[#allocation3 + $0x38] ss:$8 sps:$4 sm:$0xff]   ;;  %v8404_v61 = vrot.slane %v8402_v57, 4 }
 0x46a   : > { %17873 = vmatpush3.bf16.msra.mxu1 %v19114_v29  ;;  %v8360_v29 = vshrl.u32 %v8295_v28, 16  ;;  %v8330_v48 = vsel %vm19581_vm12, %v8325_v30, %v8329_v16  ;;  %v8391_v28 = vshll.u32 %v8299_v15, 16  ;;  %v21934_v16 = vld [vmem:[#allocation3 + $0x3c] sm:$0x1] }
 0x46b   : > { %17874 = vmatprep.subr.bf16.mxu1 %v19115_v43 }
 0x46c   : > { %v8393_v52 = vrot.slane %v8391_v28, 5 }
 0x46d   : > { %17867 = vmatmul.mubr.msk.bf16.gmra.mrb[4].mxu1 %vm7756_vm6, %v16343_v9  ;;  %v8362_v9 = vrot.slane %v8360_v29, 4  ;;  %v8369_v29 = vshll.u32 %v21913_v34, 16 }
 0x46e   : > { %17875 = vmatpush3.bf16.msra.mxu1 %v19115_v43  ;;  %17878 = vmatprep.mubr.msk.bf16.mxu1 %vm7756_vm6, %v19116_v37  ;;  %v8376_v43 = vrot.slane %v8374_v22, 4  ;;  %v8352_v37 = vor.u32 %v8351_v7, %v8348_v62  ;;  %v8316_v22 = vsel %vm19581_vm12, %v8311_v53, %v8315_v3  ;;  %v8357_v62 = vrot.slane %v8355_v60, 5  ;;  %v19126_v3 = vld [vmem:[%s24283_s3 + $0xa8] sm:$0xff]   ;;  %v8545_v60 = vld [vmem:[#allocation3 + $0x8] sm:$0xe] }
 0x46f   : > { %17876 = vmatprep.subr.bf16.mxu1 %v19117_v54  ;;  %v8390_v7 = vrot.slane %v8388_v27, 4  ;;  %v8371_v42 = vrot.slane %v8369_v29, 5  ;;  %v8550_v29 = vld [vmem:[#allocation3 + $0x30] sm:$0xe] }
 0x472   : > { %17877 = vmatpush3.bf16.msra.mxu1 %v19117_v54  ;;  %v8365_v54 = vrot.slane %v8363_v38, 5 }
 0x473   : > { %17886 = vmatprep.subr.bf16.mxu1 %v19119_v24 }
 0x474   : > { %v8366_v14 = vor.u32 %v8365_v54, %v8362_v9  ;;  %v8394_v54 = vor.u32 %v8393_v52, %v8390_v7  ;;  %v8549_v52 = vld [vmem:[#allocation3 + $0x28] sm:$0xe] }
 0x475   : > { %17879 = vmatmul.mubr.msk.bf16.vlgmr.msra.gmra.mrb[0].mxu1 %vm7756_vm6, %v19118_v46  ;;  %v16380_v46 = vcombine.low %v8316_v22, %v8330_v48  ;;  %v19127_v22 = vld [vmem:[%s24283_s3 + $0xb0] sm:$0xff]  }
 0x476   : > { %17882 = vmatprep.mubr.msk.bf16.mxu1 %vm7756_vm6, %v19120_v45  ;;  %17887 = vmatpush3.bf16.msra.mxu1 %v19119_v24  ;;  %v8380_v24 = vor.u32 %v8379_v31, %v8376_v43  ;;  %v8339_v45 = vrot.slane %v8338_v10, 4  ;;  %v8367_v30 = vrot.slane %v8366_v14, 4  ;;  %v8385_v43 = vrot.slane %v8383_v58, 5  ;;  %v21928_v31 = vld [vmem:[#allocation3 + $0x44] sm:$0x1] }
 0x477   : > { %17888 = vmatprep.subr.bf16.mxu1 %v19121_v5  ;;  %v8411_v15 = vshll.u32 %v21928_v31, 16  ;;  %v8395_v28 = vrot.slane %v8394_v54, 4 }
 0x478   : > { %v8381_v38 = vrot.slane %v8380_v24, 4  ;;  %v8344_v9 = vsel %vm19581_vm12, %v8339_v45, %v8343_v18  ;;  %v8372_v56 = vsel %vm19581_vm12, %v8367_v30, %v8371_v42  ;;  %v8397_v24 = vshll.u32 %v21934_v16, 16  ;;  %v19128_v45 = vld [vmem:[%s24283_s3 + $0xb8] sm:$0xff]   ;;  %v19129_v18 = vld [vmem:[%s24283_s3 + $0xc0] sm:$0xff]  }
 0x479   : > { %v8579_v42 = vrot.slane %v21906_v11, 5  ;;  %v19130_v11 = vld [vmem:[%s24283_s3 + $0xc8] sm:$0xff]  }
 0x47a   : > { %17889 = vmatpush3.bf16.msra.mxu1 %v19121_v5  ;;  %v8353_v5 = vrot.slane %v8352_v37, 4  ;;  %v8386_v53 = vsel %vm19581_vm12, %v8381_v38, %v8385_v43  ;;  %v8546_v37 = vld [vmem:[#allocation3 + $0x10] sm:$0xe]  ;;  %v8399_v14 = vrot.slane %v8397_v24, 5  ;;  %v8583_v43 = vrot.slane %v21904_v33, 5 }
 0x47b   : > { %17890 = vmatprep.subr.bf16.mxu1 %v19123_v44  ;;  %v16382_v48 = vcombine.low %v8372_v56, %v8386_v53  ;;  %v16393_v27 = vrot.slane %v8546_v37, 9  ;;  %v8599_v24 = vrot.slane %v21928_v31, 5 }
 0x47c   : > { %v8358_v47 = vsel %vm19581_vm12, %v8353_v5, %v8357_v62  ;;  %v8547_v62 = vld [vmem:[#allocation3 + $0x18] sm:$0xe] }
 0x47d   : > { %17883 = vmatmul.mubr.msk.bf16.gmra.mrb[4].mxu1 %vm7756_vm6, %v19122_v50  ;;  %v16381_v57 = vcombine.low %v8344_v9, %v8358_v47  ;;  %v8413_v50 = vrot.slane %v8411_v15, 5  ;;  %v8576_v5 = vsel %vm19956_vm1, %v16393_v27, %v8575_v41  ;;  %v16394_v30 = vrot.slane %v8547_v62, 9  ;;  %v8552_v15 = vld [vmem:[#allocation3 + $0x40] sm:$0xe]  ;;  %v8888_v62 = vld [vmem:[#allocation3 + $0x38] sm:$0xf] }
 0x47e   : > { %17891 = vmatpush3.bf16.msra.mxu1 %v19123_v44  ;;  %17894 = vmatprep.mubr.msk.bf16.mxu1 %vm7756_vm6, %v16380_v46  ;;  %v8408_v44 = vor.u32 %v8407_v0, %v8404_v61  ;;  %v8571_v46 = vrot.slane %v21890_v49, 5  ;;  %v8548_v61 = vld [vmem:[#allocation3 + $0x20] sm:$0xe]  ;;  %v8400_v0 = vsel %vm19581_vm12, %v8395_v28, %v8399_v14  ;;  %v16396_v47 = vrot.slane %v8549_v52, 9 }
 0x47f   : > { %17892 = vmatprep.subr.bf16.mxu1 %v19124_v6  ;;  %v16395_v7 = vrot.slane %v8548_v61, 9  ;;  %v8587_v9 = vrot.slane %v21913_v34, 5  ;;  %v8580_v33 = vsel %vm19956_vm1, %v16394_v30, %v8579_v42  ;;  %v16399_v34 = vrot.slane %v8552_v15, 9  ;;  %v8884_v61 = vld [vmem:[#allocation3 + $0x28] sm:$0xf] }
 0x480   : > { %v8409_v10 = vrot.slane %v8408_v44, 4  ;;  %v8591_v44 = vrot.slane %v21908_v32, 5  ;;  %v8882_v52 = vld [vmem:[#allocation3 + $0x20] sm:$0xf]  ;;  %v8886_v30 = vld [vmem:[#allocation3 + $0x30] sm:$0xf] }
 0x481   : > { %v8584_v53 = vsel %vm19956_vm1, %v16395_v7, %v8583_v43  ;;  %v8588_v32 = vsel %vm19956_vm1, %v16396_v47, %v8587_v9  ;;  %v8965_v47 = vshrl.u32 %v8888_v62, 16  ;;  %v19134_v42 = vld [vmem:[#allocation3 + $0x20] ss:$8 sps:$4 sm:$0xff]   ;;  %v8923_v9 = vshrl.u32 %v8882_v52, 16 }
 0x482   : > { %17893 = vmatpush3.bf16.msra.mxu1 %v19124_v6  ;;  %v16392_v6 = vrot.slane %v8545_v60, 9  ;;  %v8414_v58 = vsel %vm19581_vm12, %v8409_v10, %v8413_v50  ;;  %v16409_v37 = vcombine.low %v8580_v33, %v8584_v53  ;;  %v19131_v10 = vld [vmem:[%s24283_s3 + $0xd0] sm:$0xff]   ;;  %v8878_v60 = vld [vmem:[#allocation3 + $0x10] sm:$0xf]  ;;  %v8595_v50 = vrot.slane %v21934_v16, 5 }
 0x483   : > { %17902 = vmatprep.subr.bf16.mxu1 %v19125_v23  ;;  %v16383_v38 = vcombine.low %v8400_v0, %v8414_v58  ;;  %v8895_v41 = vshrl.u32 %v8878_v60, 16  ;;  %v8898_v14 = vshll.u32 %v8878_v60, 16  ;;  %v19133_v58 = vld [vmem:[%s24283_s3 + $0xd8] sm:$0xff]   ;;  %v19132_v0 = vld [vmem:[#allocation3 + $0x10] ss:$8 sps:$4 sm:$0xff]  }
 0x484   : > { %v8572_v17 = vsel %vm19956_vm1, %v16392_v6, %v8571_v46  ;;  %v21998_v16 = vld [vmem:[#allocation3 + $0x14] sm:$0x1] }
 0x485   : > { %17895 = vmatmul.mubr.msk.bf16.vlgmr.msra.gmra.mrb[0].mxu1 %vm7756_vm6, %v16381_v57  ;;  %v16408_v49 = vcombine.low %v8572_v17, %v8576_v5  ;;  %v8551_v57 = vld [vmem:[#allocation3 + $0x38] sm:$0xe]  ;;  %v8900_v17 = vrot.slane %v8898_v14, 5  ;;  %v8904_v43 = vshll.u32 %v21998_v16, 16  ;;  %v19137_v33 = vld [vmem:[%s24283_s3 + $0xe8] sm:$0xff]  }
 0x486   : > { %17898 = vmatprep.mubr.msk.bf16.mxu1 %vm7756_vm6, %v16382_v48  ;;  %17903 = vmatpush3.bf16.msra.mxu1 %v19125_v23  ;;  %v16397_v23 = vrot.slane %v8550_v29, 9  ;;  %v16398_v48 = vrot.slane %v8551_v57, 9  ;;  %v22000_v29 = vld [vmem:[#allocation3 + $0x1c] sm:$0x1]  ;;  %v8954_v57 = vshll.u32 %v8886_v30, 16 }
 0x487   : > { %17904 = vmatprep.subr.bf16.mxu1 %v19126_v3  ;;  %v22020_v14 = vld [vmem:[#allocation3 + $0x2c] sm:$0x1] }
 0x488   : > { %v8592_v54 = vsel %vm19956_vm1, %v16397_v23, %v8591_v44  ;;  %v8596_v6 = vsel %vm19956_vm1, %v16398_v48, %v8595_v50  ;;  %v8940_v23 = vshll.u32 %v8884_v61, 16  ;;  %v8968_v44 = vshll.u32 %v8888_v62, 16 }
 0x489   : > { %v16410_v56 = vcombine.low %v8588_v32, %v8592_v54  ;;  %v8926_v54 = vshll.u32 %v8882_v52, 16  ;;  %v8967_v48 = vrot.slane %v8965_v47, 4  ;;  %v8925_v50 = vrot.slane %v8923_v9, 4 }
 0x48a   : > { %17905 = vmatpush3.bf16.msra.mxu1 %v19126_v3  ;;  %v8880_v3 = vld [vmem:[#allocation3 + $0x18] sm:$0xf]  ;;  %v8942_v32 = vrot.slane %v8940_v23, 5  ;;  %v8946_v52 = vshll.u32 %v22020_v14, 16  ;;  %v22028_v23 = vld [vmem:[#allocation3 + $0x34] sm:$0x1] }
 0x48b   : > { %17906 = vmatprep.subr.bf16.mxu1 %v19127_v22  ;;  %v8909_v27 = vshrl.u32 %v8880_v3, 16  ;;  %v8912_v28 = vshll.u32 %v8880_v3, 16 }
 0x48d   : > { %17899 = vmatmul.mubr.msk.bf16.gmra.mrb[4].mxu1 %vm7756_vm6, %v16383_v38  ;;  %v8911_v46 = vrot.slane %v8909_v27, 4  ;;  %v8914_v5 = vrot.slane %v8912_v28, 5  ;;  %v8897_v38 = vrot.slane %v8895_v41, 4  ;;  %v8906_v27 = vrot.slane %v8904_v43, 5  ;;  %v22013_v28 = vld [vmem:[#allocation3 + $0x24] sm:$0x1] }
 0x48e   : > { %17907 = vmatpush3.bf16.msra.mxu1 %v19127_v22  ;;  %17910 = vmatprep.mubr.msk.bf16.mxu1 %vm7756_vm6, %v16408_v49  ;;  %v8600_v22 = vsel %vm19956_vm1, %v16399_v34, %v8599_v24  ;;  %v19135_v49 = vld [vmem:[%s24283_s3 + $0xe0] sm:$0xff]   ;;  %v8890_v34 = vld [vmem:[#allocation3 + $0x40] sm:$0xf]  ;;  %v8970_v24 = vrot.slane %v8968_v44, 5 }
 0x48f   : > { %17908 = vmatprep.subr.bf16.mxu1 %v19128_v45  ;;  %v16411_v31 = vcombine.low %v8596_v6, %v8600_v22  ;;  %v8915_v7 = vor.u32 %v8914_v5, %v8911_v46  ;;  %v8901_v53 = vor.u32 %v8900_v17, %v8897_v38  ;;  %v8928_v22 = vrot.slane %v8926_v54, 5  ;;  %v19139_v6 = vld [vmem:[%s24283_s3 + $0xf0] sm:$0xff]  }
 0x490   : > { %v8956_v46 = vrot.slane %v8954_v57, 5  ;;  %v22022_v5 = vld [vmem:[#allocation3 + $0x3c] sm:$0x1]  ;;  %v22037_v57 = vld [vmem:[#allocation3 + $0x44] sm:$0x1] }
 0x491   : > { %v8902_v60 = vrot.slane %v8901_v53, 4 }
 0x492   : > { %17909 = vmatpush3.bf16.msra.mxu1 %v19128_v45  ;;  %v8937_v45 = vshrl.u32 %v8884_v61, 16  ;;  %v8979_v61 = vshrl.u32 %v8890_v34, 16 }
 0x493   : > { %17918 = vmatprep.subr.bf16.mxu1 %v19129_v18  ;;  %v8907_v62 = vsel %vm19581_vm12, %v8902_v60, %v8906_v27 }
 0x494   : > { %v8939_v15 = vrot.slane %v8937_v45, 4  ;;  %v8971_v45 = vor.u32 %v8970_v24, %v8967_v48  ;;  %v8981_v53 = vrot.slane %v8979_v61, 4  ;;  %v22042_v24 = vld [vmem:[#allocation3 + $0x4c] sm:$0x1] }
 0x495   : > { %17911 = vmatmul.mubr.msk.bf16.vlgmr.msra.gmra.mrb[0].mxu1 %vm7756_vm6, %v16409_v37  ;;  %v8916_v37 = vrot.slane %v8915_v7, 4  ;;  %v8932_v7 = vshll.u32 %v22013_v28, 16 }
 0x496   : > { %17914 = vmatprep.mubr.msk.bf16.mxu1 %vm7756_vm6, %v16410_v56  ;;  %17919 = vmatpush3.bf16.msra.mxu1 %v19129_v18  ;;  %v8918_v18 = vshll.u32 %v22000_v29, 16  ;;  %v19136_v56 = vld [vmem:[#allocation3 + $0x30] ss:$8 sps:$4 sm:$0xff]  }
 0x497   : > { %17920 = vmatprep.subr.bf16.mxu1 %v19130_v11 }
 0x498   : > { %v8920_v3 = vrot.slane %v8918_v18, 5  ;;  %v19140_v18 = vld [vmem:[%s24283_s3 + $0xf8] sm:$0xff]  }
 0x49a   : > { %17921 = vmatpush3.bf16.msra.mxu1 %v19130_v11  ;;  %v8951_v11 = vshrl.u32 %v8886_v30, 16  ;;  %v8921_v41 = vsel %vm19581_vm12, %v8916_v37, %v8920_v3  ;;  %v19138_v30 = vld [vmem:[#allocation3 + $0x40] ss:$8 sps:$4 sm:$0xff]   ;;  %v8972_v37 = vrot.slane %v8971_v45, 4 }
 0x49b   : > { %17922 = vmatprep.subr.bf16.mxu1 %v19131_v10  ;;  %v16448_v43 = vcombine.low %v8907_v62, %v8921_v41 }
 0x49d   : > { %17915 = vmatmul.mubr.msk.bf16.gmra.mrb[4].mxu1 %vm7756_vm6, %v16411_v31  ;;  %v8943_v31 = vor.u32 %v8942_v32, %v8939_v15 }
 0x49e   : > { %17923 = vmatpush3.bf16.msra.mxu1 %v19131_v10  ;;  %17926 = vmatprep.mubr.msk.bf16.mxu1 %vm7756_vm6, %v19132_v0  ;;  %v8892_v10 = vld [vmem:[#allocation3 + $0x48] sm:$0xf]  ;;  %v8982_v0 = vshll.u32 %v8890_v34, 16 }
 0x49f   : > { %17924 = vmatprep.subr.bf16.mxu1 %v19133_v58  ;;  %v8993_v38 = vshrl.u32 %v8892_v10, 16  ;;  %v8996_v17 = vshll.u32 %v8892_v10, 16  ;;  %v8944_v47 = vrot.slane %v8943_v31, 4  ;;  %v19141_v34 = vld [vmem:[%s24283_s3 + $0x100] sm:$0xff]   ;;  %v8988_v31 = vshll.u32 %v22037_v57, 16 }
 0x4a0   : > { %v8984_v9 = vrot.slane %v8982_v0, 5  ;;  %v19142_v0 = vld [vmem:[%s24283_s3 + $0x108] sm:$0xff]  }
 0x4a1   : > { %v8995_v54 = vrot.slane %v8993_v38, 4  ;;  %v8998_v15 = vrot.slane %v8996_v17, 5 }
 0x4a2   : > { %17925 = vmatpush3.bf16.msra.mxu1 %v19133_v58  ;;  %v8953_v58 = vrot.slane %v8951_v11, 4  ;;  %v8948_v11 = vrot.slane %v8946_v52, 5  ;;  %v8985_v60 = vor.u32 %v8984_v9, %v8981_v53  ;;  %v8990_v52 = vrot.slane %v8988_v31, 5  ;;  %v9139_v9 = vld [vmem:[#allocation3 + $0x28] sm:$0xe] }
 0x4a3   : > { %17934 = vmatprep.subr.bf16.mxu1 %v19135_v49  ;;  %v8999_v27 = vor.u32 %v8998_v15, %v8995_v54  ;;  %v9141_v54 = vld [vmem:[#allocation3 + $0x38] sm:$0xe] }
 0x4a4   : > { %v8957_v44 = vor.u32 %v8956_v46, %v8953_v58  ;;  %v8949_v10 = vsel %vm19581_vm12, %v8944_v47, %v8948_v11  ;;  %v9137_v58 = vld [vmem:[#allocation3 + $0x18] sm:$0xe]  ;;  %v8986_v17 = vrot.slane %v8985_v60, 4  ;;  %v16463_v11 = vrot.slane %v9139_v9, 9 }
 0x4a5   : > { %17927 = vmatmul.mubr.msk.bf16.vlgmr.msra.gmra.mrb[0].mxu1 %vm7756_vm6, %v19134_v42  ;;  %v8974_v42 = vshll.u32 %v22022_v5, 16  ;;  %v9000_v45 = vrot.slane %v8999_v27, 4  ;;  %v9170_v60 = vrot.slane %v22013_v28, 5 }
 0x4a6   : > { %17930 = vmatprep.mubr.msk.bf16.mxu1 %vm7756_vm6, %v19136_v56  ;;  %17935 = vmatpush3.bf16.msra.mxu1 %v19135_v49  ;;  %v8929_v49 = vor.u32 %v8928_v22, %v8925_v50  ;;  %v8934_v56 = vrot.slane %v8932_v7, 5  ;;  %v8958_v3 = vrot.slane %v8957_v44, 4  ;;  %v9002_v50 = vshll.u32 %v22042_v24, 16 }
 0x4a7   : > { %17936 = vmatprep.subr.bf16.mxu1 %v19137_v33  ;;  %v8976_v48 = vrot.slane %v8974_v42, 5  ;;  %v16461_v7 = vrot.slane %v9137_v58, 9  ;;  %v8991_v47 = vsel %vm19581_vm12, %v8986_v17, %v8990_v52  ;;  %v9162_v42 = vrot.slane %v21998_v16, 5 }
 0x4a8   : > { %v8930_v32 = vrot.slane %v8929_v49, 4  ;;  %v9004_v62 = vrot.slane %v9002_v50, 5  ;;  %v9136_v49 = vld [vmem:[#allocation3 + $0x10] sm:$0xe]  ;;  %v16465_v16 = vrot.slane %v9141_v54, 9  ;;  %v9178_v50 = vrot.slane %v22028_v23, 5 }
 0x4aa   : > { %17937 = vmatpush3.bf16.msra.mxu1 %v19137_v33  ;;  %v8960_v33 = vshll.u32 %v22028_v23, 16  ;;  %v8935_v41 = vsel %vm19581_vm12, %v8930_v32, %v8934_v56  ;;  %v9005_v44 = vsel %vm19581_vm12, %v9000_v45, %v9004_v62  ;;  %v9140_v56 = vld [vmem:[#allocation3 + $0x30] sm:$0xe]  ;;  %v9186_v23 = vrot.slane %v22037_v57, 5  ;;  %v19145_v45 = vld [vmem:[%s24287_s7] sm:$0xff]  }
 0x4ab   : > { %17938 = vmatprep.subr.bf16.mxu1 %v19139_v6  ;;  %v16449_v46 = vcombine.low %v8935_v41, %v8949_v10  ;;  %v16451_v15 = vcombine.low %v8991_v47, %v9005_v44  ;;  %v9182_v10 = vrot.slane %v22022_v5, 5  ;;  %v9143_v41 = vld [vmem:[#allocation3 + $0x48] sm:$0xe] }
 0x4ac   : > { %v8962_v22 = vrot.slane %v8960_v33, 5 }
 0x4ad   : > { %17931 = vmatmul.mubr.msk.bf16.gmra.mrb[4].mxu1 %vm7756_vm6, %v19138_v30  ;;  %v19143_v30 = vld [vmem:[%s24283_s3 + $0x110] sm:$0xff]  }
 0x4ae   : > { %17939 = vmatpush3.bf16.msra.mxu1 %v19139_v6  ;;  %17942 = vmatprep.mubr.msk.bf16.mxu1 %vm7756_vm6, %v16448_v43  ;;  %v8977_v6 = vsel %vm19581_vm12, %v8972_v37, %v8976_v48  ;;  %v8963_v61 = vsel %vm19581_vm12, %v8958_v3, %v8962_v22  ;;  %v16460_v43 = vrot.slane %v9136_v49, 9  ;;  %v9138_v37 = vld [vmem:[#allocation3 + $0x20] sm:$0xe]  ;;  %v9174_v3 = vrot.slane %v22020_v14, 5  ;;  %v16488_v49 = vld [vmem:[%s24284_s4] ss:$0 sm:$0xff] }
 0x4af   : > { %17940 = vmatprep.subr.bf16.mxu1 %v19140_v18  ;;  %v16450_v38 = vcombine.low %v8963_v61, %v8977_v6  ;;  %v16464_v48 = vrot.slane %v9140_v56, 9  ;;  %v9183_v22 = vsel %vm19956_vm1, %v16465_v16, %v9182_v10  ;;  %v9142_v6 = vld [vmem:[#allocation3 + $0x40] sm:$0xe]  ;;  %v9190_v61 = vrot.slane %v22042_v24, 5  ;;  %v581_v24 = vld [vmem:[#allocation4 + $0x18] sm:$0x1] }
 0x4b0   : > { %v9163_v33 = vsel %vm19956_vm1, %v16460_v43, %v9162_v42  ;;  %v9175_v27 = vsel %vm19956_vm1, %v16463_v11, %v9174_v3  ;;  %v16466_v28 = vrot.slane %v9142_v6, 9  ;;  %v582_v62 = vsel %vm22104_vm7, 0, %v581_v24  ;;  %v19153_v24 = vld [vmem:[%s24287_s7 + $0x40] sm:$0xff]  }
 0x4b1   : > { %v9179_v5 = vsel %vm19956_vm1, %v16464_v48, %v9178_v50  ;;  %583 = vst [vmem:[#allocation4 + $0x18] sm:$0x1] %v582_v62  ;;  %v19154_v62 = vld [vmem:[%s24287_s7 + $0x48] sm:$0xff]  }
 0x4b2   : > { %17941 = vmatpush3.bf16.msra.mxu1 %v19140_v18  ;;  %v9166_v18 = vrot.slane %v22000_v29, 5  ;;  %v19144_v29 = vld [vmem:[%s24283_s3 + $0x118] sm:$0xff]   ;;  %v16478_v58 = vcombine.low %v9179_v5, %v9183_v22  ;;  %v19162_v5 = vld [vmem:[%s24285_s5 + $0x8] sm:$0xff]  }
 0x4b3   : > { %17950 = vmatprep.subr.bf16.mxu1 %v19141_v34 }
 0x4b4   : > { %v9167_v53 = vsel %vm19956_vm1, %v16461_v7, %v9166_v18 }
 0x4b5   : > { %17943 = vmatmul.mubr.msk.bf16.vlgmr.msra.gmra.mrb[0].mxu1 %vm7756_vm6, %v16449_v46  ;;  %v16476_v32 = vcombine.low %v9163_v33, %v9167_v53  ;;  %v16467_v46 = vrot.slane %v9143_v41, 9  ;;  %v19161_v41 = vld [vmem:[%s24285_s5] sm:$0xff]  }
 0x4b6   : > { %17946 = vmatprep.mubr.msk.bf16.mxu1 %vm7756_vm6, %v16450_v38  ;;  %17951 = vmatpush3.bf16.msra.mxu1 %v19141_v34  ;;  %v16462_v34 = vrot.slane %v9138_v37, 9 }
 0x4b7   : > { %17952 = vmatprep.subr.bf16.mxu1 %v19142_v0  ;;  %v9191_v38 = vsel %vm19956_vm1, %v16467_v46, %v9190_v61  ;;  %v19149_v46 = vld [vmem:[%s24287_s7 + $0x20] sm:$0xff]   ;;  %v19164_v61 = vld [vmem:[%s24285_s5 + $0x18] sm:$0xff]  }
 0x4b8   : > { %v9171_v14 = vsel %vm19956_vm1, %v16462_v34, %v9170_v60 }
 0x4b9   : > { %v16477_v31 = vcombine.low %v9171_v14, %v9175_v27  ;;  %v19146_v14 = vld [vmem:[%s24287_s7 + $0x8] sm:$0xff]  }
 0x4ba   : > { %17953 = vmatpush3.bf16.msra.mxu1 %v19142_v0  ;;  %v9187_v0 = vsel %vm19956_vm1, %v16466_v28, %v9186_v23  ;;  %v19148_v28 = vld [vmem:[%s24287_s7 + $0x18] sm:$0xff]   ;;  %v19165_v23 = vld [vmem:[%s24285_s5 + $0x20] sm:$0xff]  }
 0x4bb   : > { %17954 = vmatprep.subr.bf16.mxu1 %v19143_v30  ;;  %v16479_v17 = vcombine.low %v9187_v0, %v9191_v38  ;;  %v19150_v0 = vld [vmem:[%s24287_s7 + $0x28] sm:$0xff]   ;;  %v19151_v38 = vld [vmem:[%s24287_s7 + $0x30] sm:$0xff]  }
 0x4bd   : > { %17947 = vmatmul.mubr.msk.bf16.gmra.mrb[4].mxu1 %vm7756_vm6, %v16451_v15 }
 0x4be   : > { %17955 = vmatpush3.bf16.msra.mxu1 %v19143_v30  ;;  %17958 = vmatprep.mubr.msk.bf16.mxu1 %vm7756_vm6, %v16476_v32 }
 0x4bf   : > { %17956 = vmatprep.subr.bf16.mxu1 %v19144_v29 }
 0x4c2   : > { %17957 = vmatpush3.bf16.msra.mxu1 %v19144_v29 }
 0x4c5   : > { %17959 = vmatmul.mubr.msk.bf16.vlgmr.msra.gmra.mrb[0].mxu1 %vm7756_vm6, %v16477_v31  ;;  %v19147_v31 = vld [vmem:[%s24287_s7 + $0x10] sm:$0xff]  }
 0x4c6   : > { %17962 = vmatprep.mubr.msk.bf16.mxu1 %vm7756_vm6, %v16478_v58  ;;  %v19163_v58 = vld [vmem:[%s24285_s5 + $0x10] sm:$0xff]  }
 0x4cd   : > { %17963 = vmatmul.mubr.msk.bf16.gmra.mrb[4].mxu1 %vm7756_vm6, %v16479_v17  ;;  %v19166_v17 = vld [vmem:[%s24285_s5 + $0x28] sm:$0xff]  }
 0x4ce   : > { %17974 = vmatprep.mubr.msk.bf16.mxu1 %vm7756_vm6, %v19145_v45  ;;  %v19152_v45 = vld [vmem:[%s24287_s7 + $0x38] sm:$0xff]  }
 0x598   : > { %v17960_v7 = vpop.f32.mrb[0].mxu1 }
 0x599   : > { %v9331_v52 = vadd.f32 %v17960_v7, %v16488_v49  ;;  %v9283_v30 = vpop.f32.mrb[1].mxu1  ;;  %v19156_v7 = vld [vmem:[%s24287_s7 + $0x58] sm:$0xff]  }
 0x59a   : > { %v9329_v43 = vadd.f32 %v16488_v49, %v9283_v30  ;;  %v17961_v18 = vpop.f32.mrb[2].mxu1  ;;  %v19158_v30 = vld [vmem:[%s24287_s7 + $0x68] sm:$0xff]  }
 0x59b   : > { %v9332_v47 = vadd.f32 %v17961_v18, %v16488_v49  ;;  %v9286_v44 = vpop.f32.mrb[3].mxu1  ;;  %v9339_v53 = vmax.f32 %v9331_v52, 0.0  ;;  %v19157_v52 = vld [vmem:[%s24287_s7 + $0x60] sm:$0xff]   ;;  %v19160_v18 = vld [vmem:[%s24287_s7 + $0x78] sm:$0xff]  }
 0x59c   : > { %v9330_v42 = vadd.f32 %v16488_v49, %v9286_v44  ;;  %v9337_v54 = vmax.f32 %v9329_v43, 0.0  ;;  %v19159_v43 = vld [vmem:[%s24287_s7 + $0x70] sm:$0xff]   ;;  %v19167_v44 = vld [vmem:[%s24285_s5 + $0x40] sm:$0xff]  }
 0x59d   : > { %v9340_v9 = vmax.f32 %v9332_v47, 0.0  ;;  %v24492_v47 = vmov 0  ;;  %18006 = vmatprep.subr.bf16.mxu0 %v19167_v44 }
 0x59e   : > { %v9338_v15 = vmax.f32 %v9330_v42, 0.0  ;;  %v24493_v47 = vsel %vm22193_vm2, 4294967295, %v24492_v47  ;;  %v578_v42 = vld [vmem:[#allocation4 + $0xc] sm:$0x1]  ;;  %18007 = vmatpush3.bf16.msra.mxu0 %v19167_v44 }
 0x59f   : > { %v9378_v33 = vpack.c.bf16 %v9340_v9, %v9339_v53  ;;  %24494 = vst [vmem:[#allocation42_spill] sm:$0xff] %v24493_v47  ;;  %v579_v53 = vsel %vm22104_vm7, 0, %v578_v42  ;;  %v636_v9 = vld [vmem:[#allocation4 + $0x20] sm:$0x1] }
 0x5a0   : > { %v9377_v29 = vpack.c.bf16 %v9338_v15, %v9337_v54  ;;  %v17964_v37 = vpop.f32.mrb[4].mxu1  ;;  %580 = vst [vmem:[#allocation4 + $0xc] sm:$0x1] %v579_v53  ;;  %v637_v54 = vsel %vm22193_vm2, 0, %v636_v9  ;;  %v633_v15 = vld [vmem:[#allocation4 + $0x14] sm:$0x1] }
 0x5a1   : > { %v9335_v32 = vadd.f32 %v17964_v37, %v16488_v49  ;;  %v9299_v11 = vpop.f32.mrb[5].mxu1  ;;  %638 = vst [vmem:[#allocation4 + $0x20] sm:$0x1] %v637_v54  ;;  %v19169_v37 = vld [vmem:[%s24285_s5 + $0x30] sm:$0xff]   ;;  %v19180_v54 = vld [vmem:[%s24285_s5 + $0x78] sm:$0xff]  }
 0x5a2   : > { %v9333_v56 = vadd.f32 %v16488_v49, %v9299_v11  ;;  %v17965_v16 = vpop.f32.mrb[6].mxu1  ;;  %17966 = vmatprep.subr.bf16.mxu1 %v9377_v29 }
 0x5a3   : > { %v9336_v34 = vadd.f32 %v17965_v16, %v16488_v49  ;;  %v9302_v3 = vpop.f32.mrb[7].mxu1  ;;  %17967 = vmatpush3.bf16.msra.mxu1 %v9377_v29  ;;  %v9343_v10 = vmax.f32 %v9335_v32, 0.0  ;;  %v19168_v29 = vld [vmem:[%s24285_s5 + $0x48] sm:$0xff]   ;;  %v587_v32 = vld [vmem:[#allocation4 + $0x30] sm:$0x1] }
 0x5a4   : > { %v9334_v48 = vadd.f32 %v16488_v49, %v9302_v3  ;;  %17968 = vmatprep.subr.bf16.mxu1 %v9378_v33  ;;  %v9341_v27 = vmax.f32 %v9333_v56, 0.0  ;;  %v19155_v49 = vld [vmem:[%s24287_s7 + $0x50] sm:$0xff]   ;;  %v588_v11 = vsel %vm22104_vm7, 0, %v587_v32  ;;  %18008 = vmatprep.subr.bf16.mxu0 %v19168_v29  ;;  %v584_v16 = vld [vmem:[#allocation4 + $0x24] sm:$0x1] }
 0x5a5   : > { %v9344_v60 = vmax.f32 %v9336_v34, 0.0  ;;  %589 = vst [vmem:[#allocation4 + $0x30] sm:$0x1] %v588_v11  ;;  %18009 = vmatpush3.bf16.msra.mxu0 %v19168_v29  ;;  %v19170_v56 = vld [vmem:[%s24285_s5 + $0x50] sm:$0xff]   ;;  %v585_v34 = vsel %vm22104_vm7, 0, %v584_v16 }
 0x5a6   : > { %v9342_v50 = vmax.f32 %v9334_v48, 0.0  ;;  %v642_v3 = vld [vmem:[#allocation4 + $0x38] sm:$0x1]  ;;  %18010 = vmatprep.subr.bf16.mxu0 %v19170_v56  ;;  %586 = vst [vmem:[#allocation4 + $0x24] sm:$0x1] %v585_v34 }
 0x5a7   : > { %v9380_v22 = vpack.c.bf16 %v9344_v60, %v9343_v10  ;;  %17969 = vmatpush3.bf16.msra.mxu1 %v9378_v33  ;;  %v634_v33 = vsel %vm22193_vm2, 0, %v633_v15  ;;  %v643_v48 = vsel %vm22193_vm2, 0, %v642_v3  ;;  %v639_v10 = vld [vmem:[#allocation4 + $0x2c] sm:$0x1]  ;;  %v630_v15 = vld [vmem:[#allocation4 + $0x8] sm:$0x1] }
 0x5a8   : > { %v9379_v6 = vpack.c.bf16 %v9342_v50, %v9341_v27  ;;  %635 = vst [vmem:[#allocation4 + $0x14] sm:$0x1] %v634_v33  ;;  %644 = vst [vmem:[#allocation4 + $0x38] sm:$0x1] %v643_v48  ;;  %v640_v60 = vsel %vm22193_vm2, 0, %v639_v10  ;;  %v19171_v27 = vld [vmem:[%s24285_s5 + $0x58] sm:$0xff]  }
 0x5a9   : > { %18011 = vmatpush3.bf16.msra.mxu0 %v19170_v56  ;;  %v19172_v50 = vld [vmem:[%s24285_s5 + $0x38] sm:$0xff]   ;;  %641 = vst [vmem:[#allocation4 + $0x2c] sm:$0x1] %v640_v60  ;;  %v631_v29 = vsel %vm22193_vm2, 0, %v630_v15  ;;  %v605_v16 = vld [vmem:[#allocation4 + $0x78] sm:$0x1] }
 0x5aa   : > { %17970 = vmatprep.subr.bf16.mxu1 %v9379_v6  ;;  %18012 = vmatprep.subr.bf16.mxu0 %v19171_v27  ;;  %632 = vst [vmem:[#allocation4 + $0x8] sm:$0x1] %v631_v29  ;;  %v606_v3 = vsel %vm22104_vm7, 0, %v605_v16  ;;  %v675_v16 = vld [vmem:[#allocation4 + $0xbc] sm:$0x1] }
 0x5ab   : > { %17971 = vmatpush3.bf16.msra.mxu1 %v9379_v6  ;;  %607 = vst [vmem:[#allocation4 + $0x78] sm:$0x1] %v606_v3  ;;  %v22314_v3 = vld [vmem:[%s24285_s5 + $0x200] sm:$0xff]  }
 0x5ac   : > { %17972 = vmatprep.subr.bf16.mxu1 %v9380_v22 }
 0x5ad   : > { %18013 = vmatpush3.bf16.msra.mxu0 %v19171_v27 }
 0x5af   : > { %17973 = vmatpush3.bf16.msra.mxu1 %v9380_v22  ;;  %v593_v22 = vld [vmem:[#allocation4 + $0x48] sm:$0x1] }
 0x5b0   : > { %18054 = vmatprep.subr.bf16.mxu1 %v19161_v41  ;;  %v594_v6 = vsel %vm22104_vm7, 0, %v593_v22 }
 0x5b1   : > { %595 = vst [vmem:[#allocation4 + $0x48] sm:$0x1] %v594_v6  ;;  %v22274_v27 = vld [vmem:[#allocation4 + $0x8] sm:$0x1] }
 0x5b2   : > { %17975 = vmatmul.mubr.msk.bf16.vlgmr.msra.gmra.mrb[8].mxu1 %vm7756_vm6, %v19146_v14  ;;  %v590_v14 = vld [vmem:[#allocation4 + $0x3c] sm:$0x1]  ;;  %v10285_v6 = vshll.u32 %v22274_v27, 16 }
 0x5b3   : > { %17978 = vmatprep.mubr.msk.bf16.mxu1 %vm7756_vm6, %v19147_v31  ;;  %18055 = vmatpush3.bf16.msra.mxu1 %v19161_v41  ;;  %v19173_v41 = vld [vmem:[%s24285_s5 + $0x60] sm:$0xff]   ;;  %v591_v31 = vsel %vm22104_vm7, 0, %v590_v14 }
 0x5b4   : > { %18056 = vmatprep.subr.bf16.mxu1 %v19162_v5  ;;  %18014 = vmatprep.subr.bf16.mxu0 %v19173_v41  ;;  %592 = vst [vmem:[#allocation4 + $0x3c] sm:$0x1] %v591_v31  ;;  %v10287_v31 = vrot.slane %v10285_v6, 5 }
 0x5b5   : > { %18015 = vmatpush3.bf16.msra.mxu0 %v19173_v41 }
 0x5b7   : > { %18057 = vmatpush3.bf16.msra.mxu1 %v19162_v5  ;;  %v648_v5 = vld [vmem:[#allocation4 + $0x50] sm:$0x1] }
 0x5b8   : > { %18058 = vmatprep.subr.bf16.mxu1 %v19163_v58 }
 0x5ba   : > { %17979 = vmatmul.mubr.msk.bf16.gmra.mrb[12].mxu1 %vm7756_vm6, %v19148_v28  ;;  %v645_v28 = vld [vmem:[#allocation4 + $0x44] sm:$0x1] }
 0x5bb   : > { %17982 = vmatprep.mubr.msk.bf16.mxu1 %vm7756_vm6, %v19149_v46  ;;  %18059 = vmatpush3.bf16.msra.mxu1 %v19163_v58  ;;  %v649_v58 = vsel %vm22193_vm2, 0, %v648_v5  ;;  %v646_v46 = vsel %vm22193_vm2, 0, %v645_v28  ;;  %v660_v28 = vld [vmem:[#allocation4 + $0x80] sm:$0x1] }
 0x5bc   : > { %18060 = vmatprep.subr.bf16.mxu1 %v19164_v61  ;;  %650 = vst [vmem:[#allocation4 + $0x50] sm:$0x1] %v649_v58  ;;  %647 = vst [vmem:[#allocation4 + $0x44] sm:$0x1] %v646_v46  ;;  %v657_v46 = vld [vmem:[#allocation4 + $0x74] sm:$0x1] }
 0x5bf   : > { %18061 = vmatpush3.bf16.msra.mxu1 %v19164_v61  ;;  %v19174_v61 = vld [vmem:[%s24285_s5 + $0x68] sm:$0xff]  }
 0x5c0   : > { %18062 = vmatprep.subr.bf16.mxu1 %v19165_v23  ;;  %18016 = vmatprep.subr.bf16.mxu0 %v19174_v61 }
 0x5c1   : > { %18017 = vmatpush3.bf16.msra.mxu0 %v19174_v61  ;;  %v661_v61 = vsel %vm22193_vm2, 0, %v660_v28 }
 0x5c2   : > { %17983 = vmatmul.mubr.msk.bf16.gmra.mrb[16].mxu1 %vm7756_vm6, %v19150_v0  ;;  %662 = vst [vmem:[#allocation4 + $0x80] sm:$0x1] %v661_v61 }
 0x5c3   : > { %17986 = vmatprep.mubr.msk.bf16.mxu1 %vm7756_vm6, %v19151_v38  ;;  %18063 = vmatpush3.bf16.msra.mxu1 %v19165_v23  ;;  %v575_v23 = vld [vmem:[#allocation4] sm:$0x1]  ;;  %v22248_v38 = vld [vmem:[%s24285_s5 + $0x80] sm:$0xff]  }
 0x5c4   : > { %18064 = vmatprep.subr.bf16.mxu1 %v19166_v17  ;;  %v576_v0 = vsel %vm22104_vm7, 0, %v575_v23  ;;  %v658_v23 = vsel %vm22193_vm2, 0, %v657_v46  ;;  %v10096_v46 = vld [vmem:[#allocation4 + $0x18] sm:$0xf] }
 0x5c5   : > { %577 = vst [vmem:[#allocation4] sm:$0x1] %v576_v0  ;;  %v611_v0 = vld [vmem:[#allocation4 + $0x90] sm:$0x1]  ;;  %659 = vst [vmem:[#allocation4 + $0x74] sm:$0x1] %v658_v23 }
 0x5c7   : > { %18065 = vmatpush3.bf16.msra.mxu1 %v19166_v17  ;;  %v599_v17 = vld [vmem:[#allocation4 + $0x60] sm:$0x1] }
 0x5c8   : > { %18066 = vmatprep.subr.bf16.mxu1 %v19169_v37 }
 0x5ca   : > { %17987 = vmatmul.mubr.msk.bf16.gmra.mrb[20].mxu1 %vm7756_vm6, %v19152_v45  ;;  %v600_v45 = vsel %vm22104_vm7, 0, %v599_v17  ;;  %v612_v17 = vsel %vm22104_vm7, 0, %v611_v0 }
 0x5cb   : > { %17990 = vmatprep.mubr.msk.bf16.mxu1 %vm7756_vm6, %v19153_v24  ;;  %18067 = vmatpush3.bf16.msra.mxu1 %v19169_v37  ;;  %601 = vst [vmem:[#allocation4 + $0x60] sm:$0x1] %v600_v45  ;;  %v22253_v24 = vld [vmem:[#allocation4 + $0x4] sm:$0xf]  ;;  %613 = vst [vmem:[#allocation4 + $0x90] sm:$0x1] %v612_v17 }
 0x5cc   : > { %18068 = vmatprep.subr.bf16.mxu1 %v19172_v50  ;;  %v10275_v37 = vshll.u32 %v22253_v24, 16  ;;  %v608_v45 = vld [vmem:[#allocation4 + $0x84] sm:$0x1] }
 0x5ce   : > { %v10277_v34 = vrot.slane %v10275_v37, 5  ;;  %v620_v37 = vld [vmem:[#allocation4 + $0xb4] sm:$0x1] }
 0x5cf   : > { %18069 = vmatpush3.bf16.msra.mxu1 %v19172_v50  ;;  %v602_v50 = vld [vmem:[#allocation4 + $0x6c] sm:$0x1] }
 0x5d0   : > { %18102 = vmatprep.subr.bf16.mxu1 %v22248_v38  ;;  %v603_v41 = vsel %vm22104_vm7, 0, %v602_v50 }
 0x5d1   : > { %604 = vst [vmem:[#allocation4 + $0x6c] sm:$0x1] %v603_v41 }
 0x5d2   : > { %17991 = vmatmul.mubr.msk.bf16.gmra.mrb[24].mxu1 %vm7756_vm6, %v19154_v62  ;;  %v19178_v62 = vld [vmem:[%s24285_s5 + $0x70] sm:$0xff]  }
 0x5d3   : > { %17994 = vmatprep.mubr.msk.bf16.mxu1 %vm7756_vm6, %v19155_v49  ;;  %v596_v49 = vld [vmem:[#allocation4 + $0x54] sm:$0x1]  ;;  %18018 = vmatprep.subr.bf16.mxu0 %v19178_v62 }
 0x5d4   : > { %18019 = vmatpush3.bf16.msra.mxu0 %v19178_v62  ;;  %v609_v62 = vsel %vm22104_vm7, 0, %v608_v45  ;;  %v10089_v45 = vld [vmem:[#allocation4 + $0xc] sm:$0xf] }
 0x5d5   : > { %18020 = vmatprep.subr.bf16.mxu0 %v19180_v54  ;;  %610 = vst [vmem:[#allocation4 + $0x84] sm:$0x1] %v609_v62 }
 0x5d8   : > { %18021 = vmatpush3.bf16.msra.mxu0 %v19180_v54 }
 0x5d9   : > { %18390 = vmatprep.subr.bf16.mxu0 %v22314_v3 }
 0x5da   : > { %17995 = vmatmul.mubr.msk.bf16.gmra.mrb[28].mxu1 %vm7756_vm6, %v19156_v7  ;;  %v597_v7 = vsel %vm22104_vm7, 0, %v596_v49  ;;  %v666_v49 = vld [vmem:[#allocation4 + $0x98] sm:$0x1] }
 0x5db   : > { %17998 = vmatprep.mubr.msk.bf16.mxu1 %vm7756_vm6, %v19157_v52  ;;  %v10279_v52 = vshrl.u32 %v22253_v24, 16  ;;  %598 = vst [vmem:[#allocation4 + $0x54] sm:$0x1] %v597_v7  ;;  %v667_v7 = vsel %vm22193_vm2, 0, %v666_v49 }
 0x5dc   : > { %668 = vst [vmem:[#allocation4 + $0x98] sm:$0x1] %v667_v7 }
 0x5dd   : > { %v10281_v56 = vrot.slane %v10279_v52, 4  ;;  %v663_v52 = vld [vmem:[#allocation4 + $0x8c] sm:$0x1] }
 0x5df   : > { %v10282_v10 = vor.u32 %v10281_v56, %v10277_v34 }
 0x5e1   : > { %v10283_v22 = vrot.slane %v10282_v10, 4 }
 0x5e2   : > { %17999 = vmatmul.mubr.msk.bf16.gmra.mrb[32].mxu1 %vm7756_vm6, %v19158_v30  ;;  %v10201_v30 = vld [vmem:[#allocation4] sm:$0xf] }
 0x5e3   : > { %18002 = vmatprep.mubr.msk.bf16.mxu1 %vm7756_vm6, %v19159_v43  ;;  %v654_v43 = vld [vmem:[#allocation4 + $0x68] sm:$0x1]  ;;  %v10266_v44 = vshrl.u32 %v10201_v30, 16  ;;  %v10269_v42 = vshll.u32 %v10201_v30, 16  ;;  %v16593_v53 = vcombine.low %v10201_v30, %v22253_v24  ;;  %v10288_v5 = vsel %vm19581_vm12, %v10283_v22, %v10287_v31 }
 0x5e4   : > { %v655_v9 = vsel %vm22193_vm2, 0, %v654_v43  ;;  %v664_v30 = vsel %vm22193_vm2, 0, %v663_v52  ;;  %v617_v43 = vld [vmem:[#allocation4 + $0xa8] sm:$0x1] }
 0x5e5   : > { %656 = vst [vmem:[#allocation4 + $0x68] sm:$0x1] %v655_v9  ;;  %v10268_v32 = vrot.slane %v10266_v44, 4  ;;  %v10271_v11 = vrot.slane %v10269_v42, 5  ;;  %665 = vst [vmem:[#allocation4 + $0x8c] sm:$0x1] %v664_v30 }
 0x5e6   : > { %v614_v44 = vld [vmem:[#allocation4 + $0x9c] sm:$0x1]  ;;  %v669_v9 = vld [vmem:[#allocation4 + $0xa4] sm:$0x1] }
 0x5e7   : > { %v10272_v48 = vor.u32 %v10271_v11, %v10268_v32  ;;  %v615_v42 = vsel %vm22104_vm7, 0, %v614_v44  ;;  %v670_v15 = vsel %vm22193_vm2, 0, %v669_v9  ;;  %v621_v32 = vsel %vm22104_vm7, 0, %v620_v37  ;;  %v678_v11 = vld [vmem:[#allocation4 + $0xc8] sm:$0x1] }
 0x5e8   : > { %616 = vst [vmem:[#allocation4 + $0x9c] sm:$0x1] %v615_v42  ;;  %671 = vst [vmem:[#allocation4 + $0xa4] sm:$0x1] %v670_v15  ;;  %v679_v56 = vsel %vm22193_vm2, 0, %v678_v11  ;;  %v11294_v15 = vrot.slane %v22253_v24, 5 }
 0x5e9   : > { %v10273_v60 = vrot.slane %v10272_v48, 4  ;;  %622 = vst [vmem:[#allocation4 + $0xb4] sm:$0x1] %v621_v32  ;;  %680 = vst [vmem:[#allocation4 + $0xc8] sm:$0x1] %v679_v56 }
 0x5ea   : > { %18003 = vmatmul.mubr.msk.bf16.gmra.mrb[36].mxu1 %vm7756_vm6, %v19160_v18  ;;  %v651_v18 = vld [vmem:[#allocation4 + $0x5c] sm:$0x1]  ;;  %v10093_v32 = vld [vmem:[#allocation4 + $0x14] sm:$0x1] }
 0x5eb   : > { %v652_v33 = vsel %vm22193_vm2, 0, %v651_v18  ;;  %18070 = vmatprep.mubr.bf16.mxu1 %v16593_v53  ;;  %v10278_v14 = vsel %vm19581_vm12, %v10273_v60, %v10277_v34  ;;  %v618_v18 = vsel %vm22104_vm7, 0, %v617_v43  ;;  %v672_v53 = vld [vmem:[#allocation4 + $0xb0] sm:$0x1]  ;;  %v676_v34 = vsel %vm22193_vm2, 0, %v675_v16 }
 0x5ec   : > { %653 = vst [vmem:[#allocation4 + $0x5c] sm:$0x1] %v652_v33  ;;  %v16569_v58 = vcombine.low %v10278_v14, %v10288_v5  ;;  %619 = vst [vmem:[#allocation4 + $0xa8] sm:$0x1] %v618_v18  ;;  %v673_v54 = vsel %vm22193_vm2, 0, %v672_v53 }
 0x5ed   : > { %674 = vst [vmem:[#allocation4 + $0xb0] sm:$0x1] %v673_v54  ;;  %v623_v33 = vld [vmem:[#allocation4 + $0xc0] sm:$0x1]  ;;  %677 = vst [vmem:[#allocation4 + $0xbc] sm:$0x1] %v676_v34 }
 0x5ee   : > { %18022 = vmatprep.mubr.bf16.mxu0 %v16569_v58  ;;  %v624_v29 = vsel %vm22104_vm7, 0, %v623_v33  ;;  %v10100_v43 = vld [vmem:[#allocation4 + $0x20] sm:$0x1]  ;;  %v11244_v54 = vld [vmem:[#allocation4] sm:$0xe] }
 0x5ef   : > { %625 = vst [vmem:[#allocation4 + $0xc0] sm:$0x1] %v624_v29 }
 0x685   : > { %v17976_v48 = vpop.f32.mrb[8].mxu1 }
 0x686   : > { %v17025_v10 = vpack.c.bf16 %v17976_v48, %v17976_v48  ;;  %v9543_v60 = vpop.f32.mrb[9].mxu1 }
 0x687   : > { %v17023_v50 = vpack.c.bf16 %v9543_v60, %v9543_v60  ;;  %v17977_v22 = vpop.f32.mrb[10].mxu1 }
 0x688   : > { %v9784_v6 = vshrl.u32 %v17025_v10, 16  ;;  %v17026_v41 = vpack.c.bf16 %v17977_v22, %v17977_v22  ;;  %v9546_v14 = vpop.f32.mrb[11].mxu1  ;;  %v9787_v28 = vshll.u32 %v17025_v10, 16 }
 0x689   : > { %v9767_v31 = vshrl.u32 %v17023_v50, 16  ;;  %v17024_v5 = vpack.c.bf16 %v9546_v14, %v9546_v14  ;;  %v9770_v17 = vshll.u32 %v17023_v50, 16  ;;  %v16617_v14 = vrot.slane %v11244_v54, 9 }
 0x68a   : > { %v9786_v58 = vrot.slane %v9784_v6, 7  ;;  %v9792_v61 = vshrl.u32 %v17026_v41, 16  ;;  %v9795_v62 = vshll.u32 %v17026_v41, 16 }
 0x68b   : > { %v9769_v0 = vrot.slane %v9767_v31, 7  ;;  %v9775_v49 = vshrl.u32 %v17024_v5, 16  ;;  %v9778_v18 = vshll.u32 %v17024_v5, 16 }
 0x68c   : > { %v9789_v7 = vor.u32 %v9787_v28, %v9786_v58  ;;  %v9790_v52 = vrot.slane %v9786_v58, 4  ;;  %v9794_v30 = vrot.slane %v9792_v61, 7 }
 0x68d   : > { %v9772_v44 = vor.u32 %v9770_v17, %v9769_v0  ;;  %v9773_v42 = vrot.slane %v9769_v0, 4  ;;  %v9777_v53 = vrot.slane %v9775_v49, 7  ;;  %v17980_v9 = vpop.f32.mrb[12].mxu1  ;;  %v10110_v17 = vld [vmem:[#allocation4 + $0x30] sm:$0xf]  ;;  %v11296_v49 = vrot.slane %v11294_v15, 4 }
 0x68e   : > { %v10097_v33 = vsel %vm22319_vm8, %v9789_v7, %v10096_v46  ;;  %v9797_v29 = vor.u32 %v9795_v62, %v9794_v30  ;;  %v9799_v37 = vrot.slane %v9794_v30, 4  ;;  %v17029_v11 = vpack.c.bf16 %v17980_v9, %v17980_v9  ;;  %v9559_v56 = vpop.f32.mrb[13].mxu1 }
 0x68f   : > { %10098 = vst [vmem:[#allocation4 + $0x18] sm:$0xf] %v10097_v33  ;;  %v10090_v16 = vsel %vm22319_vm8, %v9772_v44, %v10089_v45  ;;  %v9780_v34 = vor.u32 %v9778_v18, %v9777_v53  ;;  %v9782_v48 = vrot.slane %v9777_v53, 4  ;;  %v17027_v10 = vpack.c.bf16 %v9559_v56, %v9559_v56  ;;  %v17981_v60 = vpop.f32.mrb[14].mxu1 }
 0x690   : > { %10091 = vst [vmem:[#allocation4 + $0xc] sm:$0xf] %v10090_v16  ;;  %v9798_v24 = vsel %vm19573_vm11, %v9790_v52, %v9797_v29  ;;  %v10101_v22 = vsel %vm22104_vm7, %v9799_v37, %v10100_v43  ;;  %v9818_v6 = vshrl.u32 %v17029_v11, 16  ;;  %v9562_v41 = vpop.f32.mrb[15].mxu1  ;;  %v9821_v46 = vshll.u32 %v17029_v11, 16 }
 0x691   : > { %10099 = vst [vmem:[#allocation4 + $0x1c] sm:$0xf] %v9798_v24  ;;  %10102 = vst [vmem:[#allocation4 + $0x20] sm:$0x1] %v10101_v22  ;;  %v9781_v31 = vsel %vm19573_vm11, %v9773_v42, %v9780_v34  ;;  %v10094_v5 = vsel %vm22104_vm7, %v9782_v48, %v10093_v32  ;;  %v9801_v58 = vshrl.u32 %v17027_v10, 16  ;;  %v17030_v61 = vpack.c.bf16 %v17981_v60, %v17981_v60 }
 0x692   : > { %10092 = vst [vmem:[#allocation4 + $0x10] sm:$0xf] %v9781_v31  ;;  %10095 = vst [vmem:[#allocation4 + $0x14] sm:$0x1] %v10094_v5  ;;  %v9820_v28 = vrot.slane %v9818_v6, 7  ;;  %v17028_v0 = vpack.c.bf16 %v9562_v41, %v9562_v41  ;;  %v9804_v62 = vshll.u32 %v17027_v10, 16  ;;  %v22339_v44 = vsel %vm19956_vm1, %v16617_v14, %v11294_v15 }
 0x693   : > { %v9803_v45 = vrot.slane %v9801_v58, 7  ;;  %v11297_v7 = vrot.slane %v22274_v27, 5  ;;  %v10103_v43 = vld [vmem:[#allocation4 + $0x24] sm:$0xf]  ;;  %v9826_v18 = vshrl.u32 %v17030_v61, 16  ;;  %v9829_v9 = vshll.u32 %v17030_v61, 16 }
 0x694   : > { %v9823_v52 = vor.u32 %v9821_v46, %v9820_v28  ;;  %v9824_v30 = vrot.slane %v9820_v28, 4  ;;  %v9809_v54 = vshrl.u32 %v17028_v0, 16  ;;  %v9812_v32 = vshll.u32 %v17028_v0, 16  ;;  %v10114_v16 = vld [vmem:[#allocation4 + $0x38] sm:$0x1] }
 0x695   : > { %v9806_v42 = vor.u32 %v9804_v62, %v9803_v45  ;;  %v9807_v53 = vrot.slane %v9803_v45, 4  ;;  %v17984_v33 = vpop.f32.mrb[16].mxu1  ;;  %v9828_v37 = vrot.slane %v9826_v18, 7  ;;  %v22347_v10 = vsel %vm19956_vm1, %v11296_v49, %v11297_v7  ;;  %v10107_v22 = vld [vmem:[#allocation4 + $0x2c] sm:$0x1] }
 0x696   : > { %v10111_v29 = vsel %vm22319_vm8, %v9823_v52, %v10110_v17  ;;  %v17033_v11 = vpack.c.bf16 %v17984_v33, %v17984_v33  ;;  %v9575_v27 = vpop.f32.mrb[17].mxu1  ;;  %v9811_v34 = vrot.slane %v9809_v54, 7  ;;  %v22349_v46 = vld [vmem:[#allocation4 + $0x18] sm:$0xf]  ;;  %v10124_v45 = vld [vmem:[#allocation4 + $0x48] sm:$0xf] }
 0x697   : > { %10112 = vst [vmem:[#allocation4 + $0x30] sm:$0xf] %v10111_v29  ;;  %v10104_v56 = vsel %vm22319_vm8, %v9806_v42, %v10103_v43  ;;  %v17031_v15 = vpack.c.bf16 %v9575_v27, %v9575_v27  ;;  %v17985_v48 = vpop.f32.mrb[18].mxu1  ;;  %v9831_v60 = vor.u32 %v9829_v9, %v9828_v37  ;;  %v9833_v24 = vrot.slane %v9828_v37, 4  ;;  %v10117_v43 = vld [vmem:[#allocation4 + $0x3c] sm:$0xf] }
 0x698   : > { %10105 = vst [vmem:[#allocation4 + $0x24] sm:$0xf] %v10104_v56  ;;  %v9852_v6 = vshrl.u32 %v17033_v11, 16  ;;  %v9855_v41 = vshll.u32 %v17033_v11, 16  ;;  %v9578_v14 = vpop.f32.mrb[19].mxu1  ;;  %v9814_v31 = vor.u32 %v9812_v32, %v9811_v34  ;;  %v9816_v5 = vrot.slane %v9811_v34, 4 }
 0x699   : > { %v9835_v58 = vshrl.u32 %v17031_v15, 16  ;;  %v9838_v28 = vshll.u32 %v17031_v15, 16  ;;  %v9832_v61 = vsel %vm19573_vm11, %v9824_v30, %v9831_v60  ;;  %v10115_v0 = vsel %vm22104_vm7, %v9833_v24, %v10114_v16  ;;  %v10203_v42 = vld [vmem:[#allocation4 + $0xc] sm:$0xf]  ;;  %v22359_v33 = vld [vmem:[#allocation4 + $0x10] sm:$0xf] }
 0x69a   : > { %v9854_v17 = vrot.slane %v9852_v6, 7  ;;  %v17034_v62 = vpack.c.bf16 %v17985_v48, %v17985_v48  ;;  %10113 = vst [vmem:[#allocation4 + $0x34] sm:$0xf] %v9832_v61  ;;  %10116 = vst [vmem:[#allocation4 + $0x38] sm:$0x1] %v10115_v0  ;;  %v9815_v49 = vsel %vm19573_vm11, %v9807_v53, %v9814_v31  ;;  %v10108_v7 = vsel %vm22104_vm7, %v9816_v5, %v10107_v22  ;;  %v19182_v5 = vld [vmem:[%s24285_s5 + $0x88] sm:$0xff]  }
 0x69b   : > { %v9837_v52 = vrot.slane %v9835_v58, 7  ;;  %v17032_v18 = vpack.c.bf16 %v9578_v14, %v9578_v14  ;;  %10106 = vst [vmem:[#allocation4 + $0x28] sm:$0xf] %v9815_v49  ;;  %10109 = vst [vmem:[#allocation4 + $0x2c] sm:$0x1] %v10108_v7  ;;  %v10314_v29 = vshrl.u32 %v22349_v46, 16  ;;  %v16594_v14 = vcombine.low %v10203_v42, %v22359_v33 }
 0x69c   : > { %v9857_v30 = vor.u32 %v9855_v41, %v9854_v17  ;;  %v9858_v9 = vrot.slane %v9854_v17, 4  ;;  %v9860_v54 = vshrl.u32 %v17034_v62, 16  ;;  %v9863_v11 = vshll.u32 %v17034_v62, 16  ;;  %v10128_v34 = vld [vmem:[#allocation4 + $0x50] sm:$0x1] }
 0x69d   : > { %v9840_v37 = vor.u32 %v9838_v28, %v9837_v52  ;;  %v9841_v32 = vrot.slane %v9837_v52, 4  ;;  %v9843_v53 = vshrl.u32 %v17032_v18, 16  ;;  %v17988_v27 = vpop.f32.mrb[20].mxu1  ;;  %v10290_v15 = vshrl.u32 %v10203_v42, 16  ;;  %v10121_v41 = vld [vmem:[#allocation4 + $0x44] sm:$0x1]  ;;  %18071 = vmatmul.mubr.bf16.vlgmr.msra.gmra.mrb[40].mxu1 %v16594_v14 }
 0x69e   : > { %v10125_v56 = vsel %vm22319_vm8, %v9857_v30, %v10124_v45  ;;  %v9862_v16 = vrot.slane %v9860_v54, 7  ;;  %v10293_v48 = vshll.u32 %v10203_v42, 16  ;;  %v9591_v60 = vpop.f32.mrb[21].mxu1  ;;  %v9846_v6 = vshll.u32 %v17032_v18, 16  ;;  %v22373_v17 = vld [vmem:[#allocation4 + $0x1c] sm:$0xf]  ;;  %18103 = vmatpush3.bf16.msra.mxu1 %v22248_v38 }
 0x69f   : > { %10126 = vst [vmem:[#allocation4 + $0x48] sm:$0xf] %v10125_v56  ;;  %v10118_v24 = vsel %vm22319_vm8, %v9840_v37, %v10117_v43  ;;  %v9845_v22 = vrot.slane %v9843_v53, 7  ;;  %v17989_v31 = vpop.f32.mrb[22].mxu1  ;;  %v22370_v61 = vrot.slane %v10290_v15, 4  ;;  %v17037_v52 = vpack.c.bf16 %v17988_v27, %v17988_v27  ;;  %18104 = vmatprep.subr.bf16.mxu1 %v19182_v5 }
 0x6a0   : > { %10119 = vst [vmem:[#allocation4 + $0x3c] sm:$0xf] %v10118_v24  ;;  %v9865_v58 = vor.u32 %v9863_v11, %v9862_v16  ;;  %v9867_v28 = vrot.slane %v9862_v16, 4  ;;  %v9594_v45 = vpop.f32.mrb[23].mxu1  ;;  %v22375_v7 = vrot.slane %v10293_v48, 5  ;;  %v22381_v42 = vrot.slane %v10314_v29, 4 }
 0x6a1   : > { %v9848_v62 = vor.u32 %v9846_v6, %v9845_v22  ;;  %v9850_v49 = vrot.slane %v9845_v22, 4  ;;  %v10317_v30 = vshll.u32 %v22349_v46, 16  ;;  %v10207_v54 = vld [vmem:[#allocation4 + $0x24] sm:$0xf]  ;;  %v9886_v53 = vshrl.u32 %v17037_v52, 16  ;;  %v19185_v29 = vld [vmem:[%s24285_s5 + $0x90] sm:$0xff]  }
 0x6a2   : > { %v9866_v43 = vsel %vm19573_vm11, %v9858_v9, %v9865_v58  ;;  %v10129_v18 = vsel %vm22104_vm7, %v9867_v28, %v10128_v34  ;;  %v9889_v38 = vshll.u32 %v17037_v52, 16  ;;  %v10138_v27 = vld [vmem:[#allocation4 + $0x60] sm:$0xf]  ;;  %v16595_v56 = vcombine.low %v22349_v46, %v22373_v17  ;;  %v22395_v48 = vld [vmem:[#allocation4 + $0x28] sm:$0xf]  ;;  %18105 = vmatpush3.bf16.msra.mxu1 %v19182_v5 }
 0x6a3   : > { %10127 = vst [vmem:[#allocation4 + $0x4c] sm:$0xf] %v9866_v43  ;;  %10130 = vst [vmem:[#allocation4 + $0x50] sm:$0x1] %v10129_v18  ;;  %v9849_v37 = vsel %vm19573_vm11, %v9841_v32, %v9848_v62  ;;  %v10122_v11 = vsel %vm22104_vm7, %v9850_v49, %v10121_v41  ;;  %v17035_v16 = vpack.c.bf16 %v9591_v60, %v9591_v60  ;;  %v9888_v34 = vrot.slane %v9886_v53, 7 }
 0x6a4   : > { %10120 = vst [vmem:[#allocation4 + $0x40] sm:$0xf] %v9849_v37  ;;  %10123 = vst [vmem:[#allocation4 + $0x44] sm:$0x1] %v10122_v11  ;;  %v17038_v32 = vpack.c.bf16 %v17989_v31, %v17989_v31  ;;  %v17036_v15 = vpack.c.bf16 %v9594_v45, %v9594_v45  ;;  %v10338_v24 = vshrl.u32 %v10207_v54, 16  ;;  %v10341_v22 = vshll.u32 %v10207_v54, 16  ;;  %18074 = vmatprep.mubr.bf16.mxu1 %v16595_v56 }
 0x6a5   : > { %v17992_v6 = vpop.f32.mrb[24].mxu1  ;;  %v22397_v41 = vrot.slane %v10317_v30, 5  ;;  %v9869_v14 = vshrl.u32 %v17035_v16, 16  ;;  %v9872_v58 = vshll.u32 %v17035_v16, 16  ;;  %v9891_v49 = vor.u32 %v9889_v38, %v9888_v34  ;;  %18106 = vmatprep.subr.bf16.mxu1 %v19185_v29  ;;  %v19188_v45 = vld [vmem:[%s24285_s5 + $0x98] sm:$0xff]  }
 0x6a6   : > { %v9894_v28 = vshrl.u32 %v17038_v32, 16  ;;  %v22399_v62 = vpop.f32.mrb[25].mxu1  ;;  %v9892_v46 = vrot.slane %v9888_v34, 4  ;;  %v9897_v60 = vshll.u32 %v17038_v32, 16  ;;  %v9877_v31 = vshrl.u32 %v17036_v15, 16  ;;  %18107 = vmatpush3.bf16.msra.mxu1 %v19185_v29 }
 0x6a7   : > { %v22401_v52 = vpop.f32.mrb[26].mxu1  ;;  %v9871_v43 = vrot.slane %v9869_v14, 7  ;;  %v9880_v30 = vshll.u32 %v17036_v15, 16  ;;  %v22406_v37 = vrot.slane %v10338_v24, 4  ;;  %v10139_v5 = vsel %vm22319_vm8, %v9891_v49, %v10138_v27  ;;  %v10131_v53 = vld [vmem:[#allocation4 + $0x54] sm:$0xf]  ;;  %18108 = vmatprep.subr.bf16.mxu1 %v19188_v45 }
 0x6a8   : > { %v9896_v18 = vrot.slane %v9894_v28, 7  ;;  %v22408_v11 = vpop.f32.mrb[27].mxu1  ;;  %v10142_v38 = vld [vmem:[#allocation4 + $0x68] sm:$0x1]  ;;  %v9879_v56 = vrot.slane %v9877_v31, 7  ;;  %v22412_v16 = vrot.slane %v10341_v22, 5  ;;  %v16596_v32 = vcombine.low %v10207_v54, %v22395_v48 }
 0x6a9   : > { %10140 = vst [vmem:[#allocation4 + $0x60] sm:$0xf] %v10139_v5  ;;  %v9874_v34 = vor.u32 %v9872_v58, %v9871_v43  ;;  %v9875_v9 = vrot.slane %v9871_v43, 4  ;;  %v10135_v15 = vld [vmem:[#allocation4 + $0x5c] sm:$0x1]  ;;  %v17041_v40 = vpack.c.bf16 %v17992_v6, %v17992_v6  ;;  %v10296_v27 = vor.u32 %v22375_v7, %v22370_v61 }
 0x6aa   : > { %v9899_v14 = vor.u32 %v9897_v60, %v9896_v18  ;;  %v9901_v28 = vrot.slane %v9896_v18, 4  ;;  %v9882_v24 = vor.u32 %v9880_v30, %v9879_v56  ;;  %v9884_v0 = vrot.slane %v9879_v56, 4  ;;  %18075 = vmatmul.mubr.bf16.gmra.mrb[44].mxu1 %v16596_v32  ;;  %v10250_v36 = vld [vmem:[#allocation4 + $0x14] sm:$0x1]  ;;  %v19191_v54 = vld [vmem:[%s24285_s5 + $0xa0] sm:$0xff]  }
 0x6ab   : > { %v10132_v22 = vsel %vm22319_vm8, %v9874_v34, %v10131_v53  ;;  %v10299_v6 = vshll.u32 %v22359_v33, 16  ;;  %v10209_v49 = vld [vmem:[#allocation4 + $0x30] sm:$0xf]  ;;  %v9920_v31 = vshrl.u32 %v17041_v40, 16  ;;  %v22432_v43 = vld [vmem:[#allocation4 + $0x34] sm:$0xf]  ;;  %18109 = vmatpush3.bf16.msra.mxu1 %v19188_v45 }
 0x6ac   : > { %v9900_v58 = vsel %vm19573_vm11, %v9892_v46, %v9899_v14  ;;  %v10143_v29 = vsel %vm22104_vm7, %v9901_v28, %v10142_v38  ;;  %10133 = vst [vmem:[#allocation4 + $0x54] sm:$0xf] %v10132_v22  ;;  %v9883_v61 = vsel %vm19573_vm11, %v9875_v9, %v9882_v24  ;;  %v10136_v7 = vsel %vm22104_vm7, %v9884_v0, %v10135_v15  ;;  %v19194_v28 = vld [vmem:[%s24285_s5 + $0xa8] sm:$0xff]   ;;  %v10152_v15 = vld [vmem:[#allocation4 + $0x78] sm:$0xf] }
 0x6ad   : > { %10141 = vst [vmem:[#allocation4 + $0x64] sm:$0xf] %v9900_v58  ;;  %10144 = vst [vmem:[#allocation4 + $0x68] sm:$0x1] %v10143_v29  ;;  %v22434_v46 = vpop.f32.mrb[28].mxu1  ;;  %v10297_v18 = vrot.slane %v10296_v27, 4  ;;  %18110 = vmatprep.subr.bf16.mxu1 %v19191_v54  ;;  %v16597_v45 = vcombine.low %v10209_v49, %v22432_v43 }
 0x6ae   : > { %10134 = vst [vmem:[#allocation4 + $0x58] sm:$0xf] %v9883_v61  ;;  %10137 = vst [vmem:[#allocation4 + $0x5c] sm:$0x1] %v10136_v7  ;;  %v10301_v30 = vrot.slane %v10299_v6, 5  ;;  %v24498_v5 = vshrl.u32 %v22359_v33, 16  ;;  %v17039_v7 = vpack.c.bf16 %v22399_v62, %v22399_v62 }
 0x6af   : > { %v10309_v38 = vshll.u32 %v10250_v36, 16  ;;  %v22438_v56 = vpop.f32.mrb[29].mxu1  ;;  %v22440_v9 = vrot.slane %v9920_v31, 7  ;;  %v9923_v0 = vshll.u32 %v17041_v40, 16  ;;  %v10362_v32 = vshrl.u32 %v10209_v49, 16  ;;  %18078 = vmatprep.mubr.bf16.mxu1 %v16597_v45  ;;  %18111 = vmatpush3.bf16.msra.mxu1 %v19191_v54 }
 0x6b0   : > { %v10305_v53 = vrot.slane %v24498_v5, 4  ;;  %v10365_v34 = vshll.u32 %v10209_v49, 16  ;;  %v22442_v14 = vpop.f32.mrb[30].mxu1  ;;  %v10302_v33 = vsel %vm19581_vm12, %v10297_v18, %v10301_v30  ;;  %v10251_v27 = vld [vmem:[#allocation4 + $0x20] sm:$0x1]  ;;  %v10320_v31 = vor.u32 %v22397_v41, %v22381_v42  ;;  %18112 = vmatprep.subr.bf16.mxu1 %v19194_v28  ;;  %v19199_v42 = vld [vmem:[%s24285_s5 + $0xb0] sm:$0xff]  }
 0x6b1   : > { %v22451_v40 = vpop.f32.mrb[31].mxu1  ;;  %v9925_v22 = vor.u32 %v9923_v0, %v22440_v9  ;;  %v10311_v29 = vrot.slane %v10309_v38, 5  ;;  %v22455_v6 = vrot.slane %v10362_v32, 4  ;;  %v10323_v49 = vshll.u32 %v22373_v17, 16  ;;  %v22468_v0 = vld [vmem:[#allocation4 + $0x3c] sm:$0xf] }
 0x6b2   : > { %v10306_v36 = vor.u32 %v10305_v53, %v10301_v30  ;;  %v24499_v30 = vshrl.u32 %v22373_v17, 16  ;;  %v10333_v53 = vshll.u32 %v10251_v27, 16  ;;  %v17042_v38 = vpack.c.bf16 %v22401_v52, %v22401_v52  ;;  %v10156_v24 = vld [vmem:[#allocation4 + $0x80] sm:$0x1]  ;;  %v22509_v63 = vld [vmem:[#allocation4 + $0x2c] sm:$0x1] }
 0x6b3   : > { %v10153_v18 = vsel %vm22319_vm8, %v9925_v22, %v10152_v15  ;;  %v22475_v62 = vrot.slane %v10365_v34, 5  ;;  %v9903_v54 = vshrl.u32 %v17039_v7, 16  ;;  %v10321_v17 = vrot.slane %v10320_v31, 4  ;;  %v19197_v22 = vld [vmem:[%s24285_s5 + $0x208] sm:$0xff]   ;;  %18113 = vmatpush3.bf16.msra.mxu1 %v19194_v28 }
 0x6b4   : > { %v10307_v61 = vrot.slane %v10306_v36, 4  ;;  %v10329_v5 = vrot.slane %v24499_v30, 4  ;;  %10154 = vst [vmem:[#allocation4 + $0x78] sm:$0xf] %v10153_v18  ;;  %v9906_v15 = vshll.u32 %v17039_v7, 16  ;;  %v10325_v45 = vrot.slane %v10323_v49, 5  ;;  %18114 = vmatprep.subr.bf16.mxu1 %v19199_v42 }
 0x6b5   : > { %v10145_v36 = vld [vmem:[#allocation4 + $0x6c] sm:$0xf]  ;;  %v9928_v52 = vshrl.u32 %v17042_v38, 16  ;;  %v22477_v27 = vpop.f32.mrb[32].mxu1  ;;  %v9905_v30 = vrot.slane %v9903_v54, 7  ;;  %v10335_v18 = vrot.slane %v10333_v53, 5  ;;  %v17040_v34 = vpack.c.bf16 %v22408_v11, %v22408_v11 }
 0x6b6   : > { %v10312_v41 = vsel %vm19581_vm12, %v10307_v61, %v10311_v29  ;;  %v10386_v29 = vshrl.u32 %v22468_v0, 16  ;;  %v22485_v61 = vpop.f32.mrb[33].mxu1  ;;  %v9931_v31 = vshll.u32 %v17042_v38, 16  ;;  %v10389_v49 = vshll.u32 %v22468_v0, 16  ;;  %v19204_v53 = vld [vmem:[%s24285_s5 + $0xb8] sm:$0xff]  }
 0x6b7   : > { %v16570_v32 = vcombine.low %v10302_v33, %v10312_v41  ;;  %v10330_v33 = vor.u32 %v10329_v5, %v10325_v45  ;;  %v9930_v7 = vrot.slane %v9928_v52, 7  ;;  %v22488_v41 = vpop.f32.mrb[34].mxu1  ;;  %v9908_v54 = vor.u32 %v9906_v15, %v9905_v30  ;;  %v22495_v28 = vld [vmem:[#allocation4 + $0x40] sm:$0xf]  ;;  %v19201_v15 = vld [vmem:[%s24285_s5 + $0x210] sm:$0xff]   ;;  %18115 = vmatpush3.bf16.msra.mxu1 %v19199_v42  ;;  %v22524_v42 = vld [vmem:[%s24285_s5 + $0xc0] sm:$0xff]  }
 0x6b8   : > { %v9909_v11 = vrot.slane %v9905_v30, 4  ;;  %v10326_v60 = vsel %vm19581_vm12, %v10321_v17, %v10325_v45  ;;  %v9911_v58 = vshrl.u32 %v17040_v34, 16  ;;  %v22497_v5 = vpop.f32.mrb[35].mxu1  ;;  %v9914_v1 = vshll.u32 %v17040_v34, 16  ;;  %18116 = vmatprep.subr.bf16.mxu1 %v19204_v53 }
 0x6b9   : > { %18023 = vmatmul.mubr.bf16.vlgmr.msra.gmra.mrb[32].mxu0 %v16570_v32  ;;  %v10331_v38 = vrot.slane %v10330_v33, 4  ;;  %v9933_v32 = vor.u32 %v9931_v31, %v9930_v7  ;;  %v9935_v52 = vrot.slane %v9930_v7, 4  ;;  %v10146_v30 = vsel %vm22319_vm8, %v9908_v54, %v10145_v36 }
 0x6ba   : > { %18391 = vmatpush3.bf16.msra.mxu0 %v22314_v3  ;;  %v9913_v17 = vrot.slane %v9911_v58, 7  ;;  %v22505_v45 = vrot.slane %v10386_v29, 4  ;;  %v22507_v59 = vrot.slane %v10389_v49, 5  ;;  %10147 = vst [vmem:[#allocation4 + $0x6c] sm:$0xf] %v10146_v30  ;;  %v24500_v34 = vrot.slane %v22440_v9, 4 }
 0x6bb   : > { %18392 = vmatprep.subr.bf16.mxu0 %v19197_v22  ;;  %v10336_v3 = vsel %vm19581_vm12, %v10331_v38, %v10335_v18  ;;  %v10157_v36 = vsel %vm22104_vm7, %v9935_v52, %v10156_v24  ;;  %v10149_v58 = vld [vmem:[#allocation4 + $0x74] sm:$0x1]  ;;  %v16598_v29 = vcombine.low %v22468_v0, %v22495_v28  ;;  %v17045_v31 = vpack.c.bf16 %v22434_v46, %v22434_v46  ;;  %v10213_v49 = vld [vmem:[#allocation4 + $0x48] sm:$0xf] }
 0x6bc   : > { %v9934_v33 = vsel %vm19573_vm11, %v24500_v34, %v9933_v32  ;;  %v16571_v7 = vcombine.low %v10326_v60, %v10336_v3  ;;  %10158 = vst [vmem:[#allocation4 + $0x80] sm:$0x1] %v10157_v36  ;;  %v9916_v9 = vor.u32 %v9914_v1, %v9913_v17  ;;  %v9918_v18 = vrot.slane %v9913_v17, 4  ;;  %v19202_v24 = vld [vmem:[%s24285_s5 + $0x218] sm:$0xff]   ;;  %v22537_v32 = vld [vmem:[#allocation4 + $0x4c] sm:$0xf]  ;;  %18117 = vmatpush3.bf16.msra.mxu1 %v19204_v53 }
 0x6bd   : > { %10155 = vst [vmem:[#allocation4 + $0x7c] sm:$0xf] %v9934_v33  ;;  %18079 = vmatmul.mubr.bf16.gmra.mrb[48].mxu1 %v16598_v29  ;;  %v10344_v0 = vor.u32 %v22412_v16, %v22406_v37  ;;  %v10347_v54 = vshll.u32 %v22395_v48, 16  ;;  %v24501_v60 = vshrl.u32 %v22395_v48, 16  ;;  %v10357_v1 = vshll.u32 %v22509_v63, 16  ;;  %v22539_v46 = vpop.f32.mrb[36].mxu1  ;;  %18150 = vmatprep.subr.bf16.mxu1 %v22524_v42 }
 0x6be   : > { %18393 = vmatpush3.bf16.msra.mxu0 %v19197_v22  ;;  %18026 = vmatprep.mubr.bf16.mxu0 %v16571_v7  ;;  %v9917_v22 = vsel %vm19573_vm11, %v9909_v11, %v9916_v9  ;;  %v10150_v52 = vsel %vm22104_vm7, %v9918_v18, %v10149_v58  ;;  %v9954_v16 = vshrl.u32 %v17045_v31, 16  ;;  %v22546_v30 = vpop.f32.mrb[37].mxu1  ;;  %v9957_v48 = vshll.u32 %v17045_v31, 16  ;;  %v10166_v36 = vld [vmem:[#allocation4 + $0x90] sm:$0xf] }
 0x6bf   : > { %v10353_v38 = vrot.slane %v24501_v60, 4  ;;  %18394 = vmatprep.subr.bf16.mxu0 %v19201_v15  ;;  %10148 = vst [vmem:[#allocation4 + $0x70] sm:$0xf] %v9917_v22  ;;  %10151 = vst [vmem:[#allocation4 + $0x74] sm:$0x1] %v10150_v52  ;;  %v10345_v17 = vrot.slane %v10344_v0, 4  ;;  %v16599_v7 = vcombine.low %v10213_v49, %v22537_v32  ;;  %v17043_v0 = vpack.c.bf16 %v22438_v56, %v22438_v56 }
 0x6c0   : > { %v10349_v3 = vrot.slane %v10347_v54, 5  ;;  %v10410_v34 = vshrl.u32 %v10213_v49, 16  ;;  %v22548_v33 = vpop.f32.mrb[38].mxu1  ;;  %v22551_v11 = vrot.slane %v9954_v16, 7  ;;  %v10359_v58 = vrot.slane %v10357_v1, 5  ;;  %v19205_v60 = vld [vmem:[%s24285_s5 + $0x220] sm:$0xff]  }
 0x6c1   : > { %v10413_v29 = vshll.u32 %v10213_v49, 16  ;;  %v22554_v9 = vpop.f32.mrb[39].mxu1  ;;  %v22561_v54 = vld [vmem:[#allocation4 + $0x38] sm:$0x1]  ;;  %18082 = vmatprep.mubr.bf16.mxu1 %v16599_v7  ;;  %v9937_v52 = vshrl.u32 %v17043_v0, 16  ;;  %v9940_v56 = vshll.u32 %v17043_v0, 16 }
 0x6c2   : > { %18395 = vmatpush3.bf16.msra.mxu0 %v19201_v15  ;;  %v10350_v53 = vsel %vm19581_vm12, %v10345_v17, %v10349_v3  ;;  %v10354_v18 = vor.u32 %v10353_v38, %v10349_v3  ;;  %v9959_v49 = vor.u32 %v9957_v48, %v22551_v11  ;;  %v22568_v1 = vrot.slane %v10410_v34, 4  ;;  %v22573_v17 = vld [vmem:[#allocation4 + $0x54] sm:$0xf] }
 0x6c3   : > { %18396 = vmatprep.subr.bf16.mxu0 %v19202_v24  ;;  %v10368_v38 = vor.u32 %v22475_v62, %v22455_v6  ;;  %v10371_v16 = vshll.u32 %v22432_v43, 16  ;;  %v24502_v48 = vshrl.u32 %v22432_v43, 16  ;;  %v10381_v34 = vshll.u32 %v22561_v54, 16 }
 0x6c4   : > { %v10355_v22 = vrot.slane %v10354_v18, 4  ;;  %v10167_v3 = vsel %vm22319_vm8, %v9959_v49, %v10166_v36  ;;  %v9939_v62 = vrot.slane %v9937_v52, 7  ;;  %v17046_v18 = vpack.c.bf16 %v22442_v14, %v22442_v14  ;;  %v10159_v36 = vld [vmem:[#allocation4 + $0x84] sm:$0xf] }
 0x6c5   : > { %v10369_v31 = vrot.slane %v10368_v38, 4  ;;  %v10377_v37 = vrot.slane %v24502_v48, 4  ;;  %10168 = vst [vmem:[#allocation4 + $0x90] sm:$0xf] %v10167_v3  ;;  %v10373_v7 = vrot.slane %v10371_v16, 5  ;;  %v22584_v15 = vrot.slane %v10413_v29, 5 }
 0x6c6   : > { %18397 = vmatpush3.bf16.msra.mxu0 %v19202_v24  ;;  %v10360_v6 = vsel %vm19581_vm12, %v10355_v22, %v10359_v58  ;;  %v17044_v43 = vpack.c.bf16 %v22451_v40, %v22451_v40  ;;  %v10434_v49 = vshrl.u32 %v22573_v17, 16  ;;  %v19206_v24 = vld [vmem:[%s24285_s5 + $0x228] sm:$0xff]   ;;  %v9942_v58 = vor.u32 %v9940_v56, %v9939_v62  ;;  %v22592_v16 = vld [vmem:[#allocation4 + $0x58] sm:$0xf] }
 0x6c7   : > { %18398 = vmatprep.subr.bf16.mxu0 %v19205_v60  ;;  %v16572_v0 = vcombine.low %v10350_v53, %v10360_v6  ;;  %v9943_v38 = vrot.slane %v9939_v62, 4  ;;  %v10378_v22 = vor.u32 %v10377_v37, %v10373_v7  ;;  %v10383_v52 = vrot.slane %v10381_v34, 5  ;;  %v10170_v6 = vld [vmem:[#allocation4 + $0x98] sm:$0x1]  ;;  %v10163_v34 = vld [vmem:[#allocation4 + $0x8c] sm:$0x1] }
 0x6c8   : > { %v10374_v14 = vsel %vm19581_vm12, %v10369_v31, %v10373_v7  ;;  %v9962_v29 = vshrl.u32 %v17046_v18, 16  ;;  %v9965_v53 = vshll.u32 %v17046_v18, 16  ;;  %v9945_v3 = vshrl.u32 %v17044_v43, 16  ;;  %v22603_v7 = vld [vmem:[#allocation4 + $0x44] sm:$0x1]  ;;  %v19208_v18 = vld [vmem:[%s24285_s5 + $0x230] sm:$0xff]  }
 0x6c9   : > { %18027 = vmatmul.mubr.bf16.gmra.mrb[36].mxu0 %v16572_v0  ;;  %v10160_v40 = vsel %vm22319_vm8, %v9942_v58, %v10159_v36  ;;  %v10379_v48 = vrot.slane %v10378_v22, 4  ;;  %v9948_v12 = vshll.u32 %v17044_v43, 16  ;;  %v22598_v25 = vrot.slane %v10434_v49, 4 }
 0x6ca   : > { %18399 = vmatpush3.bf16.msra.mxu0 %v19205_v60  ;;  %10161 = vst [vmem:[#allocation4 + $0x84] sm:$0xf] %v10160_v40  ;;  %v9964_v37 = vrot.slane %v9962_v29, 7  ;;  %v9947_v56 = vrot.slane %v9945_v3, 7  ;;  %v10437_v62 = vshll.u32 %v22573_v17, 16  ;;  %v16600_v31 = vcombine.low %v22573_v17, %v22592_v16 }
 0x6cb   : > { %18400 = vmatprep.subr.bf16.mxu0 %v19206_v24  ;;  %v10384_v0 = vsel %vm19581_vm12, %v10379_v48, %v10383_v52  ;;  %v10447_v60 = vshrl.u32 %v22592_v16, 16  ;;  %v17049_v36 = vpack.c.bf16 %v22477_v27, %v22477_v27  ;;  %v10392_v43 = vor.u32 %v22507_v59, %v22505_v45  ;;  %v10217_v29 = vld [vmem:[#allocation4 + $0x60] sm:$0xf]  ;;  %v22615_v3 = vld [vmem:[#allocation4 + $0x64] sm:$0xf] }
 0x6cc   : > { %v16573_v49 = vcombine.low %v10374_v14, %v10384_v0  ;;  %v9967_v17 = vor.u32 %v9965_v53, %v9964_v37  ;;  %v9969_v58 = vrot.slane %v9964_v37, 4  ;;  %v9950_v22 = vor.u32 %v9948_v12, %v9947_v56  ;;  %18083 = vmatmul.mubr.bf16.gmra.mrb[52].mxu1 %v16600_v31  ;;  %v10180_v45 = vld [vmem:[#allocation4 + $0xa8] sm:$0xf]  ;;  %v12877_v2 = vld [vmem:[#allocation4 + $0x90] sm:$0xe] }
 0x6cd   : > { %v9952_v40 = vrot.slane %v9947_v56, 4  ;;  %v9988_v13 = vshrl.u32 %v17049_v36, 16  ;;  %v9991_v21 = vshll.u32 %v17049_v36, 16  ;;  %v10393_v52 = vrot.slane %v10392_v43, 4 }
 0x6ce   : > { %18401 = vmatpush3.bf16.msra.mxu0 %v19206_v24  ;;  %18030 = vmatprep.mubr.bf16.mxu0 %v16573_v49  ;;  %v24503_v48 = vrot.slane %v22551_v11, 4  ;;  %v10171_v59 = vsel %vm22104_vm7, %v9969_v58, %v10170_v6  ;;  %v9951_v12 = vsel %vm19573_vm11, %v9943_v38, %v9950_v22  ;;  %v10395_v14 = vshll.u32 %v22495_v28, 16  ;;  %v19209_v24 = vld [vmem:[%s24285_s5 + $0x238] sm:$0xff]  }
 0x6cf   : > { %18402 = vmatprep.subr.bf16.mxu0 %v19208_v18  ;;  %10172 = vst [vmem:[#allocation4 + $0x98] sm:$0x1] %v10171_v59  ;;  %10162 = vst [vmem:[#allocation4 + $0x88] sm:$0xf] %v9951_v12  ;;  %v10164_v11 = vsel %vm22104_vm7, %v9952_v40, %v10163_v34  ;;  %v22631_v53 = vrot.slane %v9988_v13, 7  ;;  %v24504_v6 = vshrl.u32 %v22495_v28, 16  ;;  %v16601_v13 = vcombine.low %v10217_v29, %v22615_v3 }
 0x6d0   : > { %v9968_v27 = vsel %vm19573_vm11, %v24503_v48, %v9967_v17  ;;  %v10405_v38 = vshll.u32 %v22603_v7, 16  ;;  %10165 = vst [vmem:[#allocation4 + $0x8c] sm:$0x1] %v10164_v11  ;;  %v22636_v56 = vrot.slane %v10437_v62, 5  ;;  %v10397_v31 = vrot.slane %v10395_v14, 5 }
 0x6d1   : > { %10169 = vst [vmem:[#allocation4 + $0x94] sm:$0xf] %v9968_v27  ;;  %v10401_v37 = vrot.slane %v24504_v6, 4  ;;  %v10458_v0 = vshrl.u32 %v10217_v29, 16  ;;  %v10461_v36 = vshll.u32 %v10217_v29, 16  ;;  %v9993_v43 = vor.u32 %v9991_v21, %v22631_v53  ;;  %18086 = vmatprep.mubr.bf16.mxu1 %v16601_v13 }
 0x6d2   : > { %v9994_v49 = vrot.slane %v22631_v53, 4  ;;  %v10471_v17 = vshrl.u32 %v22615_v3, 16  ;;  %v22642_v34 = vld [vmem:[#allocation4 + $0x50] sm:$0x1]  ;;  %18403 = vmatpush3.bf16.msra.mxu0 %v19208_v18  ;;  %v10398_v28 = vsel %vm19581_vm12, %v10393_v52, %v10397_v31  ;;  %v10407_v62 = vrot.slane %v10405_v38, 5 }
 0x6d3   : > { %v10402_v58 = vor.u32 %v10401_v37, %v10397_v31  ;;  %v22646_v22 = vrot.slane %v10458_v0, 4  ;;  %18404 = vmatprep.subr.bf16.mxu0 %v19209_v24  ;;  %v10181_v21 = vsel %vm22319_vm8, %v9993_v43, %v10180_v45  ;;  %v17047_v40 = vpack.c.bf16 %v22485_v61, %v22485_v61  ;;  %v10219_v48 = vld [vmem:[#allocation4 + $0x6c] sm:$0xf]  ;;  %v22664_v43 = vld [vmem:[#allocation4 + $0x70] sm:$0xf] }
 0x6d4   : > { %v10416_v29 = vor.u32 %v22584_v15, %v22568_v1  ;;  %v10419_v18 = vshll.u32 %v22537_v32, 16  ;;  %10182 = vst [vmem:[#allocation4 + $0xa8] sm:$0xf] %v10181_v21  ;;  %v24505_v27 = vshrl.u32 %v22537_v32, 16  ;;  %v10429_v12 = vshll.u32 %v22642_v34, 16 }
 0x6d5   : > { %v10403_v52 = vrot.slane %v10402_v58, 4  ;;  %v17050_v45 = vpack.c.bf16 %v22488_v41, %v22488_v41  ;;  %v22660_v14 = vrot.slane %v10461_v36, 5  ;;  %v9971_v11 = vshrl.u32 %v17047_v40, 16  ;;  %v10173_v13 = vld [vmem:[#allocation4 + $0x9c] sm:$0xf] }
 0x6d6   : > { %v10425_v59 = vrot.slane %v24505_v27, 4  ;;  %v10417_v61 = vrot.slane %v10416_v29, 4  ;;  %v10421_v53 = vrot.slane %v10419_v18, 5  ;;  %18405 = vmatpush3.bf16.msra.mxu0 %v19209_v24  ;;  %v9974_v1 = vshll.u32 %v17047_v40, 16  ;;  %v10184_v29 = vld [vmem:[#allocation4 + $0xb0] sm:$0x1] }
 0x6d7   : > { %v10408_v15 = vsel %vm19581_vm12, %v10403_v52, %v10407_v62  ;;  %v10431_v6 = vrot.slane %v10429_v12, 5  ;;  %v9996_v37 = vshrl.u32 %v17050_v45, 16  ;;  %v9973_v32 = vrot.slane %v9971_v11, 7 }
 0x6d8   : > { %v16574_v38 = vcombine.low %v10398_v28, %v10408_v15  ;;  %v10426_v31 = vor.u32 %v10425_v59, %v10421_v53  ;;  %v9999_v0 = vshll.u32 %v17050_v45, 16  ;;  %v10422_v41 = vsel %vm19581_vm12, %v10417_v61, %v10421_v53  ;;  %v22677_v53 = vld [vmem:[#allocation4 + $0x5c] sm:$0x1]  ;;  %v10221_v15 = vld [vmem:[#allocation4 + $0x78] sm:$0xf] }
 0x6d9   : > { %v9998_v36 = vrot.slane %v9996_v37, 7  ;;  %v17048_v24 = vpack.c.bf16 %v22497_v5, %v22497_v5  ;;  %v10482_v58 = vshrl.u32 %v10219_v48, 16  ;;  %v9976_v62 = vor.u32 %v9974_v1, %v9973_v32  ;;  %v10177_v5 = vld [vmem:[#allocation4 + $0xa4] sm:$0x1] }
 0x6da   : > { %18031 = vmatmul.mubr.bf16.gmra.mrb[40].mxu0 %v16574_v38  ;;  %v9977_v21 = vrot.slane %v9973_v32, 4  ;;  %v10427_v40 = vrot.slane %v10426_v31, 4  ;;  %v10485_v28 = vshll.u32 %v10219_v48, 16  ;;  %v10495_v59 = vshrl.u32 %v22664_v43, 16 }
 0x6db   : > { %v10001_v18 = vor.u32 %v9999_v0, %v9998_v36  ;;  %v10003_v52 = vrot.slane %v9998_v36, 4  ;;  %v9979_v27 = vshrl.u32 %v17048_v24, 16  ;;  %v10174_v12 = vsel %vm22319_vm8, %v9976_v62, %v10173_v13 }
 0x6dc   : > { %v10432_v45 = vsel %vm19581_vm12, %v10427_v40, %v10431_v6  ;;  %v9982_v11 = vshll.u32 %v17048_v24, 16  ;;  %v22675_v61 = vrot.slane %v10482_v58, 4  ;;  %10175 = vst [vmem:[#allocation4 + $0x9c] sm:$0xf] %v10174_v12  ;;  %v16602_v6 = vcombine.low %v10219_v48, %v22664_v43  ;;  %v10194_v12 = vld [vmem:[#allocation4 + $0xc0] sm:$0xf] }
 0x6dd   : > { %v16575_v1 = vcombine.low %v10422_v41, %v10432_v45  ;;  %v10002_v37 = vsel %vm19573_vm11, %v9994_v49, %v10001_v18  ;;  %v10185_v38 = vsel %vm22104_vm7, %v10003_v52, %v10184_v29  ;;  %v9981_v32 = vrot.slane %v9979_v27, 7  ;;  %v22689_v41 = vld [vmem:[#allocation4 + $0x7c] sm:$0xf] }
 0x6de   : > { %10183 = vst [vmem:[#allocation4 + $0xac] sm:$0xf] %v10002_v37  ;;  %10186 = vst [vmem:[#allocation4 + $0xb0] sm:$0x1] %v10185_v38  ;;  %v17053_v31 = vpack.c.bf16 %v22539_v46, %v22539_v46  ;;  %v10440_v0 = vor.u32 %v22636_v56, %v22598_v25  ;;  %v10443_v13 = vshll.u32 %v22592_v16, 16  ;;  %v10449_v24 = vrot.slane %v10447_v60, 4  ;;  %18087 = vmatmul.mubr.bf16.gmra.mrb[56].mxu1 %v16602_v6 }
 0x6df   : > { %18034 = vmatprep.mubr.bf16.mxu0 %v16575_v1  ;;  %v9984_v49 = vor.u32 %v9982_v11, %v9981_v32  ;;  %v9986_v36 = vrot.slane %v9981_v32, 4  ;;  %v10453_v58 = vshll.u32 %v22677_v53, 16  ;;  %v22694_v62 = vrot.slane %v10485_v28, 5  ;;  %v22709_v1 = vld [vmem:[#allocation4 + $0x68] sm:$0x1] }
 0x6e0   : > { %v10022_v48 = vshrl.u32 %v17053_v31, 16  ;;  %v10441_v46 = vrot.slane %v10440_v0, 4  ;;  %v10445_v40 = vrot.slane %v10443_v13, 5  ;;  %v10025_v29 = vshll.u32 %v17053_v31, 16 }
 0x6e1   : > { %v9985_v25 = vsel %vm19573_vm11, %v9977_v21, %v9984_v49  ;;  %v10178_v56 = vsel %vm22104_vm7, %v9986_v36, %v10177_v5  ;;  %v10506_v18 = vshrl.u32 %v10221_v15, 16  ;;  %v10455_v27 = vrot.slane %v10453_v58, 5  ;;  %v10223_v49 = vld [vmem:[#allocation4 + $0x84] sm:$0xf] }
 0x6e2   : > { %10176 = vst [vmem:[#allocation4 + $0xa0] sm:$0xf] %v9985_v25  ;;  %10179 = vst [vmem:[#allocation4 + $0xa4] sm:$0x1] %v10178_v56  ;;  %v22700_v52 = vrot.slane %v10022_v48, 7  ;;  %v10446_v60 = vsel %vm19581_vm12, %v10441_v46, %v10445_v40  ;;  %v10450_v28 = vor.u32 %v10449_v24, %v10445_v40  ;;  %v10509_v11 = vshll.u32 %v10221_v15, 16 }
 0x6e3   : > { %v22704_v45 = vrot.slane %v10506_v18, 4  ;;  %v16603_v21 = vcombine.low %v10221_v15, %v22689_v41  ;;  %v17051_v5 = vpack.c.bf16 %v22546_v30, %v22546_v30  ;;  %v10519_v6 = vshrl.u32 %v22689_v41, 16  ;;  %v14516_v55 = vld [vmem:[#allocation4 + $0x9c] sm:$0xe] }
 0x6e4   : > { %v10027_v37 = vor.u32 %v10025_v29, %v22700_v52  ;;  %v10028_v38 = vrot.slane %v22700_v52, 4  ;;  %v10451_v32 = vrot.slane %v10450_v28, 4  ;;  %v10464_v13 = vor.u32 %v22660_v14, %v22646_v22  ;;  %v10187_v14 = vld [vmem:[#allocation4 + $0xb4] sm:$0xf] }
 0x6e5   : > { %18090 = vmatprep.mubr.bf16.mxu1 %v16603_v21  ;;  %v10005_v31 = vshrl.u32 %v17051_v5, 16  ;;  %v10008_v0 = vshll.u32 %v17051_v5, 16  ;;  %v10467_v15 = vshll.u32 %v22615_v3, 16  ;;  %v10473_v24 = vrot.slane %v10471_v17, 4  ;;  %v23281_v35 = vld [vmem:[#allocation4 + $0xac] sm:$0xf] }
 0x6e6   : > { %v10195_v30 = vsel %vm22319_vm8, %v10027_v37, %v10194_v12  ;;  %v10456_v36 = vsel %vm19581_vm12, %v10451_v32, %v10455_v27  ;;  %v10477_v58 = vshll.u32 %v22709_v1, 16  ;;  %v10465_v40 = vrot.slane %v10464_v13, 4  ;;  %v22730_v12 = vld [vmem:[#allocation4 + $0x88] sm:$0xf] }
 0x6e7   : > { %10196 = vst [vmem:[#allocation4 + $0xc0] sm:$0xf] %v10195_v30  ;;  %v16576_v48 = vcombine.low %v10446_v60, %v10456_v36  ;;  %v10007_v46 = vrot.slane %v10005_v31, 7  ;;  %v10469_v25 = vrot.slane %v10467_v15, 5  ;;  %v22724_v22 = vrot.slane %v10509_v11, 5 }
 0x6e8   : > { %v17054_v56 = vpack.c.bf16 %v22548_v33, %v22548_v33  ;;  %v17052_v29 = vpack.c.bf16 %v22554_v9, %v22554_v9  ;;  %v10530_v18 = vshrl.u32 %v10223_v49, 16  ;;  %v10479_v27 = vrot.slane %v10477_v58, 5 }
 0x6e9   : > { %18035 = vmatmul.mubr.bf16.gmra.mrb[44].mxu0 %v16576_v48  ;;  %v10010_v52 = vor.u32 %v10008_v0, %v10007_v46  ;;  %v10011_v17 = vrot.slane %v10007_v46, 4  ;;  %v10474_v28 = vor.u32 %v10473_v24, %v10469_v25  ;;  %v10470_v60 = vsel %vm19581_vm12, %v10465_v40, %v10469_v25  ;;  %v10198_v0 = vld [vmem:[#allocation4 + $0xc8] sm:$0x1]  ;;  %v10191_v24 = vld [vmem:[#allocation4 + $0xbc] sm:$0x1] }
 0x6ea   : > { %v10030_v11 = vshrl.u32 %v17054_v56, 16  ;;  %v10033_v21 = vshll.u32 %v17054_v56, 16  ;;  %v10013_v5 = vshrl.u32 %v17052_v29, 16  ;;  %v10016_v32 = vshll.u32 %v17052_v29, 16  ;;  %v22742_v48 = vld [vmem:[#allocation4 + $0x74] sm:$0x1] }
 0x6eb   : > { %v10188_v33 = vsel %vm22319_vm8, %v10010_v52, %v10187_v14  ;;  %v10475_v37 = vrot.slane %v10474_v28, 4  ;;  %v22736_v9 = vrot.slane %v10530_v18, 4  ;;  %v10533_v15 = vshll.u32 %v10223_v49, 16  ;;  %v10225_v29 = vld [vmem:[#allocation4 + $0x90] sm:$0xf] }
 0x6ec   : > { %10189 = vst [vmem:[#allocation4 + $0xb4] sm:$0xf] %v10188_v33  ;;  %v10032_v31 = vrot.slane %v10030_v11, 7  ;;  %v10015_v13 = vrot.slane %v10013_v5, 7  ;;  %v16604_v30 = vcombine.low %v10223_v49, %v22730_v12  ;;  %v10543_v58 = vshrl.u32 %v22730_v12, 16 }
 0x6ed   : > { %v10480_v36 = vsel %vm19581_vm12, %v10475_v37, %v10479_v27  ;;  %v10488_v23 = vor.u32 %v22694_v62, %v22675_v61  ;;  %v10491_v46 = vshll.u32 %v22664_v43, 16  ;;  %v10497_v28 = vrot.slane %v10495_v59, 4  ;;  %v22749_v27 = vld [vmem:[#allocation4 + $0x94] sm:$0xf]  ;;  %v22760_v37 = vld [vmem:[#allocation4 + $0x80] sm:$0x1] }
 0x6ee   : > { %v16577_v40 = vcombine.low %v10470_v60, %v10480_v36  ;;  %v10035_v25 = vor.u32 %v10033_v21, %v10032_v31  ;;  %v10037_v14 = vrot.slane %v10032_v31, 4  ;;  %v10018_v56 = vor.u32 %v10016_v32, %v10015_v13  ;;  %18091 = vmatmul.mubr.bf16.gmra.mrb[60].mxu1 %v16604_v30  ;;  %v22769_v36 = vld [vmem:[#allocation4 + $0x8c] sm:$0x1]  ;;  %v23279_v19 = vld [vmem:[#allocation4 + $0xa4] sm:$0x1] }
 0x6ef   : > { %v10020_v49 = vrot.slane %v10015_v13, 4  ;;  %v10489_v18 = vrot.slane %v10488_v23, 4  ;;  %v10493_v52 = vrot.slane %v10491_v46, 5  ;;  %v10501_v11 = vshll.u32 %v22742_v48, 16 }
 0x6f0   : > { %18038 = vmatprep.mubr.bf16.mxu0 %v16577_v40  ;;  %v10036_v61 = vsel %vm19573_vm11, %v10028_v38, %v10035_v25  ;;  %v10199_v62 = vsel %vm22104_vm7, %v10037_v14, %v10198_v0  ;;  %v10019_v60 = vsel %vm19573_vm11, %v10011_v17, %v10018_v56  ;;  %v10535_v21 = vrot.slane %v10533_v15, 5  ;;  %v10227_v38 = vld [vmem:[#allocation4 + $0x9c] sm:$0xf]  ;;  %v22774_v40 = vld [vmem:[#allocation4 + $0xa0] sm:$0xf] }
 0x6f1   : > { %10197 = vst [vmem:[#allocation4 + $0xc4] sm:$0xf] %v10036_v61  ;;  %10200 = vst [vmem:[#allocation4 + $0xc8] sm:$0x1] %v10199_v62  ;;  %v10192_v59 = vsel %vm22104_vm7, %v10020_v49, %v10191_v24  ;;  %v10498_v5 = vor.u32 %v10497_v28, %v10493_v52  ;;  %v10554_v33 = vshrl.u32 %v10225_v29, 16  ;;  %v10494_v32 = vsel %vm19581_vm12, %v10489_v18, %v10493_v52 }
 0x6f2   : > { %10190 = vst [vmem:[#allocation4 + $0xb8] sm:$0xf] %v10019_v60  ;;  %10193 = vst [vmem:[#allocation4 + $0xbc] sm:$0x1] %v10192_v59  ;;  %v10503_v50 = vrot.slane %v10501_v11, 5  ;;  %v10557_v17 = vshll.u32 %v10225_v29, 16  ;;  %v16605_v31 = vcombine.low %v10225_v29, %v22749_v27  ;;  %v10512_v30 = vor.u32 %v22724_v22, %v22704_v45 }
 0x6f3   : > { %v10499_v0 = vrot.slane %v10498_v5, 4  ;;  %v10567_v13 = vshrl.u32 %v22749_v27, 16  ;;  %v10515_v15 = vshll.u32 %v22689_v41, 16  ;;  %v10556_v24 = vrot.slane %v10554_v33, 4  ;;  %v10229_v28 = vld [vmem:[#allocation4 + $0xa8] sm:$0xf] }
 0x6f4   : > { %18094 = vmatprep.mubr.bf16.mxu1 %v16605_v31  ;;  %v10521_v23 = vrot.slane %v10519_v6, 4  ;;  %v10525_v46 = vshll.u32 %v22760_v37, 16  ;;  %v10578_v25 = vshrl.u32 %v10227_v38, 16  ;;  %v10513_v56 = vrot.slane %v10512_v30, 4  ;;  %v22782_v11 = vld [vmem:[#allocation4 + $0xac] sm:$0xf] }
 0x6f5   : > { %v10504_v14 = vsel %vm19581_vm12, %v10499_v0, %v10503_v50  ;;  %v10517_v29 = vrot.slane %v10515_v15, 5  ;;  %v10581_v45 = vshll.u32 %v10227_v38, 16  ;;  %v10559_v49 = vrot.slane %v10557_v17, 5  ;;  %v22787_v50 = vld [vmem:[#allocation4 + $0x98] sm:$0x1] }
 0x6f6   : > { %v16578_v22 = vcombine.low %v10494_v32, %v10504_v14  ;;  %v10527_v18 = vrot.slane %v10525_v46, 5  ;;  %v10580_v52 = vrot.slane %v10578_v25, 4  ;;  %v10591_v62 = vshrl.u32 %v22774_v40, 16  ;;  %v10231_v15 = vld [vmem:[#allocation4 + $0xb4] sm:$0xf] }
 0x6f7   : > { %v10518_v61 = vsel %vm19581_vm12, %v10513_v56, %v10517_v29  ;;  %v10522_v6 = vor.u32 %v10521_v23, %v10517_v29  ;;  %v16606_v60 = vcombine.low %v10227_v38, %v22774_v40  ;;  %v10536_v59 = vor.u32 %v10535_v21, %v22736_v9 }
 0x6f8   : > { %18039 = vmatmul.mubr.bf16.gmra.mrb[48].mxu0 %v16578_v22  ;;  %v10539_v5 = vshll.u32 %v22730_v12, 16  ;;  %v10545_v33 = vrot.slane %v10543_v58, 4  ;;  %v10549_v32 = vshll.u32 %v22769_v36, 16  ;;  %v10583_v31 = vrot.slane %v10581_v45, 5 }
 0x6f9   : > { %v10523_v17 = vrot.slane %v10522_v6, 4  ;;  %18095 = vmatmul.mubr.bf16.gmra.mrb[64].mxu1 %v16606_v60  ;;  %v10602_v0 = vshrl.u32 %v10229_v28, 16  ;;  %v10605_v30 = vshll.u32 %v10229_v28, 16  ;;  %v10537_v23 = vrot.slane %v10536_v59, 4  ;;  %v22794_v6 = vld [vmem:[#allocation4 + $0xb8] sm:$0xf] }
 0x6fa   : > { %v10541_v38 = vrot.slane %v10539_v5, 5  ;;  %v10615_v46 = vshrl.u32 %v22782_v11, 16  ;;  %v16607_v25 = vcombine.low %v10229_v28, %v22782_v11  ;;  %v10551_v58 = vrot.slane %v10549_v32, 5 }
 0x6fb   : > { %v10528_v9 = vsel %vm19581_vm12, %v10523_v17, %v10527_v18  ;;  %v10604_v21 = vrot.slane %v10602_v0, 4  ;;  %v10560_v14 = vor.u32 %v10559_v49, %v10556_v24  ;;  %v10607_v22 = vrot.slane %v10605_v30, 5  ;;  %v22801_v0 = vld [vmem:[#allocation4 + $0xa4] sm:$0x1] }
 0x6fc   : > { %v16579_v56 = vcombine.low %v10518_v61, %v10528_v9  ;;  %v10546_v29 = vor.u32 %v10545_v33, %v10541_v38  ;;  %18098 = vmatprep.mubr.bf16.mxu1 %v16607_v25  ;;  %v10563_v45 = vshll.u32 %v22749_v27, 16  ;;  %v10542_v60 = vsel %vm19581_vm12, %v10537_v23, %v10541_v38  ;;  %v22805_v9 = vld [vmem:[#allocation4 + $0xb0] sm:$0x1] }
 0x6fd   : > { %v10569_v59 = vrot.slane %v10567_v13, 4  ;;  %v10573_v28 = vshll.u32 %v22787_v50, 16  ;;  %v10626_v5 = vshrl.u32 %v10231_v15, 16  ;;  %v10561_v32 = vrot.slane %v10560_v14, 4 }
 0x6fe   : > { %18042 = vmatprep.mubr.bf16.mxu0 %v16579_v56  ;;  %v10547_v18 = vrot.slane %v10546_v29, 4  ;;  %v10565_v17 = vrot.slane %v10563_v45, 5  ;;  %v10629_v24 = vshll.u32 %v10231_v15, 16  ;;  %v10639_v61 = vshrl.u32 %v22794_v6, 16 }
 0x6ff   : > { %v10575_v49 = vrot.slane %v10573_v28, 5  ;;  %v16608_v33 = vcombine.low %v10231_v15, %v22794_v6  ;;  %v10584_v30 = vor.u32 %v10583_v31, %v10580_v52  ;;  %v10628_v38 = vrot.slane %v10626_v5, 4 }
 0x700   : > { %v10552_v23 = vsel %vm19581_vm12, %v10547_v18, %v10551_v58  ;;  %v10570_v13 = vor.u32 %v10569_v59, %v10565_v17  ;;  %v10631_v25 = vrot.slane %v10629_v24, 5  ;;  %v10587_v29 = vshll.u32 %v22774_v40, 16 }
 0x701   : > { %v16580_v56 = vcombine.low %v10542_v60, %v10552_v23  ;;  %18099 = vmatmul.mubr.bf16.gmra.mrb[68].mxu1 %v16608_v33  ;;  %v10585_v14 = vrot.slane %v10584_v30, 4  ;;  %v10593_v45 = vrot.slane %v10591_v62, 4  ;;  %v10597_v15 = vshll.u32 %v22801_v0, 16  ;;  %v11245_v33 = vld [vmem:[#allocation4 + $0xc] sm:$0xe] }
 0x702   : > { %v10571_v28 = vrot.slane %v10570_v13, 4  ;;  %v10608_v39 = vor.u32 %v10607_v22, %v10604_v21  ;;  %v10611_v52 = vshll.u32 %v22782_v11, 16  ;;  %v10589_v31 = vrot.slane %v10587_v29, 5  ;;  %v19315_v13 = vld [vmem:[#allocation4 + $0x10] sm:$0xf] }
 0x703   : > { %18043 = vmatmul.mubr.bf16.gmra.mrb[52].mxu0 %v16580_v56  ;;  %v10617_v58 = vrot.slane %v10615_v46, 4  ;;  %v10621_v59 = vshll.u32 %v22805_v9, 16  ;;  %v16649_v5 = vcombine.low %v22339_v44, %v22347_v10  ;;  %v10566_v60 = vsel %vm19581_vm12, %v10561_v32, %v10565_v17  ;;  %v22821_v17 = vld [vmem:[#allocation4 + $0xbc] sm:$0x1] }
 0x704   : > { %v10576_v62 = vsel %vm19581_vm12, %v10571_v28, %v10575_v49  ;;  %v10609_v18 = vrot.slane %v10608_v39, 4  ;;  %v10613_v24 = vrot.slane %v10611_v52, 5  ;;  %v10590_v22 = vsel %vm19581_vm12, %v10585_v14, %v10589_v31 }
 0x705   : > { %v16581_v21 = vcombine.low %v10566_v60, %v10576_v62  ;;  %v10594_v30 = vor.u32 %v10593_v45, %v10589_v31  ;;  %v10599_v46 = vrot.slane %v10597_v15, 5  ;;  %18118 = vmatprep.mubr.bf16.mxu1 %v16649_v5  ;;  %v10623_v10 = vrot.slane %v10621_v59, 5  ;;  %v19316_v45 = vld [vmem:[#allocation4 + $0x14] sm:$0x1]  ;;  %v11246_v60 = vld [vmem:[#allocation4 + $0x18] sm:$0xe] }
 0x706   : > { %v10614_v23 = vsel %vm19581_vm12, %v10609_v18, %v10613_v24  ;;  %v10618_v44 = vor.u32 %v10617_v58, %v10613_v24  ;;  %v11301_v32 = vrot.slane %v19315_v13, 5  ;;  %v16618_v49 = vrot.slane %v11245_v33, 9  ;;  %v13752_v24 = vld [vmem:[#allocation4 + $0x1c] sm:$0xf] }
 0x707   : > { %18046 = vmatprep.mubr.bf16.mxu0 %v16581_v21  ;;  %v10595_v39 = vrot.slane %v10594_v30, 4  ;;  %v10632_v56 = vor.u32 %v10631_v25, %v10628_v38  ;;  %v10635_v29 = vshll.u32 %v22794_v6, 16  ;;  %v11304_v15 = vrot.slane %v19316_v45, 5 }
 0x708   : > { %v10619_v28 = vrot.slane %v10618_v44, 4  ;;  %v11303_v14 = vrot.slane %v11301_v32, 4  ;;  %v10641_v52 = vrot.slane %v10639_v61, 4  ;;  %v10645_v5 = vshll.u32 %v22821_v17, 16  ;;  %v14505_v61 = vld [vmem:[#allocation4 + $0x18] sm:$0xe] }
 0x709   : > { %v10600_v31 = vsel %vm19581_vm12, %v10595_v39, %v10599_v46  ;;  %v10633_v58 = vrot.slane %v10632_v56, 4  ;;  %v10637_v59 = vrot.slane %v10635_v29, 5  ;;  %v11302_v38 = vsel %vm19956_vm1, %v16618_v49, %v11301_v32  ;;  %v13753_v46 = vld [vmem:[#allocation4 + $0x20] sm:$0x1]  ;;  %v11247_v44 = vld [vmem:[#allocation4 + $0x24] sm:$0xe] }
 0x70a   : > { %v16582_v62 = vcombine.low %v10590_v22, %v10600_v31  ;;  %v10624_v18 = vsel %vm19581_vm12, %v10619_v28, %v10623_v10  ;;  %v11305_v25 = vsel %vm19956_vm1, %v11303_v14, %v11304_v15  ;;  %v19210_v22 = vld [vmem:[%s24285_s5 + $0xc8] sm:$0xff]   ;;  %v10647_v13 = vrot.slane %v10645_v5, 5  ;;  %v19317_v39 = vld [vmem:[#allocation4 + $0x1c] sm:$0xf]  ;;  %v19319_v31 = vld [vmem:[#allocation4 + $0x28] sm:$0xf] }
 0x70b   : > { %v16583_v33 = vcombine.low %v10614_v23, %v10624_v18  ;;  %v16650_v21 = vcombine.low %v11302_v38, %v11305_v25  ;;  %v10642_v30 = vor.u32 %v10641_v52, %v10637_v59  ;;  %v10638_v10 = vsel %vm19581_vm12, %v10633_v58, %v10637_v59  ;;  %v19318_v23 = vld [vmem:[#allocation4 + $0x20] sm:$0x1]  ;;  %v11248_v18 = vld [vmem:[#allocation4 + $0x30] sm:$0xe]  ;;  %v13755_v38 = vld [vmem:[#allocation4 + $0x28] sm:$0xf] }
 0x70c   : > { %18047 = vmatmul.mubr.bf16.gmra.mrb[56].mxu0 %v16582_v62  ;;  %v16619_v32 = vrot.slane %v11246_v60, 9  ;;  %v11308_v49 = vrot.slane %v19317_v39, 5  ;;  %v11311_v29 = vrot.slane %v19318_v23, 5  ;;  %v16889_v28 = vrot.slane %v14505_v61, 9  ;;  %v13758_v39 = vld [vmem:[#allocation4 + $0x34] sm:$0xf] }
 0x70d   : > { %18050 = vmatprep.mubr.bf16.mxu0 %v16583_v33  ;;  %18119 = vmatmul.mubr.bf16.vlgmr.msra.gmra.mrb[40].mxu1 %v16650_v21  ;;  %v10643_v56 = vrot.slane %v10642_v30, 4  ;;  %v14571_v14 = vrot.slane %v13752_v24, 5  ;;  %v14574_v15 = vrot.slane %v13753_v46, 5  ;;  %v16620_v52 = vrot.slane %v11247_v44, 9  ;;  %v14506_v21 = vld [vmem:[#allocation4 + $0x24] sm:$0xe] }
 0x70e   : > { %v11310_v45 = vrot.slane %v11308_v49, 4  ;;  %18151 = vmatpush3.bf16.msra.mxu1 %v22524_v42  ;;  %v11315_v62 = vrot.slane %v19319_v31, 5  ;;  %v11309_v59 = vsel %vm19956_vm1, %v16619_v32, %v11308_v49  ;;  %v11318_v60 = vrot.slane %v22509_v63, 5  ;;  %v19211_v42 = vld [vmem:[%s24285_s5 + $0xd0] sm:$0xff]   ;;  %v19320_v44 = vld [vmem:[#allocation4 + $0x34] sm:$0xf] }
 0x70f   : > { %v10648_v58 = vsel %vm19581_vm12, %v10643_v56, %v10647_v13  ;;  %v14573_v5 = vrot.slane %v14571_v14, 4  ;;  %18152 = vmatprep.subr.bf16.mxu1 %v19210_v22  ;;  %v14572_v61 = vsel %vm19956_vm1, %v16889_v28, %v14571_v14  ;;  %v16621_v63 = vrot.slane %v11248_v18, 9  ;;  %v13756_v32 = vld [vmem:[#allocation4 + $0x2c] sm:$0x1]  ;;  %v14507_v28 = vld [vmem:[#allocation4 + $0x30] sm:$0xe] }
 0x710   : > { %v16584_v25 = vcombine.low %v10638_v10, %v10648_v58  ;;  %v11312_v24 = vsel %vm19956_vm1, %v11310_v45, %v11311_v29  ;;  %v11317_v33 = vrot.slane %v11315_v62, 4  ;;  %v11322_v13 = vrot.slane %v19320_v44, 5  ;;  %v13759_v29 = vld [vmem:[#allocation4 + $0x38] sm:$0x1]  ;;  %v11249_v18 = vld [vmem:[#allocation4 + $0x3c] sm:$0xe] }
 0x711   : > { %v16651_v30 = vcombine.low %v11309_v59, %v11312_v24  ;;  %v14575_v46 = vsel %vm19956_vm1, %v14573_v5, %v14574_v15  ;;  %v11316_v10 = vsel %vm19956_vm1, %v16620_v52, %v11315_v62  ;;  %v11325_v56 = vrot.slane %v22561_v54, 5  ;;  %v19212_v52 = vld [vmem:[%s24285_s5 + $0xd8] sm:$0xff]   ;;  %v11250_v59 = vld [vmem:[#allocation4 + $0x48] sm:$0xe]  ;;  %v19321_v24 = vld [vmem:[#allocation4 + $0x40] sm:$0xf] }
 0x712   : > { %v11319_v49 = vsel %vm19956_vm1, %v11317_v33, %v11318_v60  ;;  %18153 = vmatpush3.bf16.msra.mxu1 %v19210_v22  ;;  %v14578_v23 = vrot.slane %v13755_v38, 5  ;;  %v16921_v14 = vcombine.low %v14572_v61, %v14575_v46  ;;  %v11324_v15 = vrot.slane %v11322_v13, 4  ;;  %v22865_v33 = vld [vmem:[#allocation4 + $0x40] sm:$0xf]  ;;  %v14508_v44 = vld [vmem:[#allocation4 + $0x3c] sm:$0xe] }
 0x713   : > { %18122 = vmatprep.mubr.bf16.mxu1 %v16651_v30  ;;  %v16652_v45 = vcombine.low %v11316_v10, %v11319_v49  ;;  %v16890_v31 = vrot.slane %v14506_v21, 9  ;;  %18154 = vmatprep.subr.bf16.mxu1 %v19211_v42  ;;  %v11323_v62 = vsel %vm19956_vm1, %v16621_v63, %v11322_v13  ;;  %v14581_v22 = vrot.slane %v13756_v32, 5  ;;  %v13764_v13 = vld [vmem:[#allocation4 + $0x4c] sm:$0xf]  ;;  %v13762_v49 = vld [vmem:[#allocation4 + $0x44] sm:$0x1] }
 0x714   : > { %18051 = vmatmul.mubr.bf16.gmra.mrb[60].mxu0 %v16584_v25  ;;  %v14580_v54 = vrot.slane %v14578_v23, 4  ;;  %v14585_v58 = vrot.slane %v13758_v39, 5  ;;  %v11326_v5 = vsel %vm19956_vm1, %v11324_v15, %v11325_v56  ;;  %v16891_v60 = vrot.slane %v14507_v28, 9  ;;  %v19213_v25 = vld [vmem:[%s24285_s5 + $0xe0] sm:$0xff]   ;;  %v14509_v15 = vld [vmem:[#allocation4 + $0x48] sm:$0xe] }
 0x715   : > { %18406 = vmatprep.mubr.bf16.mxu0 %v16921_v14  ;;  %18123 = vmatmul.mubr.bf16.gmra.mrb[44].mxu1 %v16652_v45  ;;  %v14588_v38 = vrot.slane %v13759_v29, 5  ;;  %v11329_v61 = vrot.slane %v19321_v24, 5  ;;  %v16653_v21 = vcombine.low %v11323_v62, %v11326_v5  ;;  %v16622_v63 = vrot.slane %v11249_v18, 9  ;;  %v19322_v14 = vld [vmem:[#allocation4 + $0x4c] sm:$0xf] }
 0x716   : > { %v14582_v30 = vsel %vm19956_vm1, %v14580_v54, %v14581_v22  ;;  %v14587_v46 = vrot.slane %v14585_v58, 4  ;;  %18155 = vmatpush3.bf16.msra.mxu1 %v19211_v42  ;;  %v14579_v32 = vsel %vm19956_vm1, %v16890_v31, %v14578_v23  ;;  %v11332_v10 = vrot.slane %v22603_v7, 5  ;;  %v13765_v45 = vld [vmem:[#allocation4 + $0x50] sm:$0x1]  ;;  %v11251_v5 = vld [vmem:[#allocation4 + $0x54] sm:$0xe] }
 0x717   : > { %v11331_v39 = vrot.slane %v11329_v61, 4  ;;  %18156 = vmatprep.subr.bf16.mxu1 %v19212_v52  ;;  %18126 = vmatprep.mubr.bf16.mxu1 %v16653_v21  ;;  %v16922_v56 = vcombine.low %v14579_v32, %v14582_v30  ;;  %v14586_v29 = vsel %vm19956_vm1, %v16891_v60, %v14585_v58  ;;  %v11336_v42 = vrot.slane %v19322_v14, 5  ;;  %v19214_v60 = vld [vmem:[%s24285_s5 + $0xe8] sm:$0xff]   ;;  %v22890_v30 = vld [vmem:[#allocation4 + $0x58] sm:$0xf] }
 0x718   : > { %v14589_v28 = vsel %vm19956_vm1, %v14587_v46, %v14588_v38  ;;  %v11330_v23 = vsel %vm19956_vm1, %v16622_v63, %v11329_v61  ;;  %v16623_v31 = vrot.slane %v11250_v59, 9  ;;  %v14592_v18 = vrot.slane %v22865_v33, 5  ;;  %v11252_v59 = vld [vmem:[#allocation4 + $0x60] sm:$0xe] }
 0x719   : > { %v11333_v7 = vsel %vm19956_vm1, %v11331_v39, %v11332_v10  ;;  %v16923_v62 = vcombine.low %v14586_v29, %v14589_v28  ;;  %v11338_v54 = vrot.slane %v11336_v42, 4  ;;  %v11339_v22 = vrot.slane %v22642_v34, 5  ;;  %v22895_v39 = vld [vmem:[#allocation4 + $0x64] sm:$0xf]  ;;  %v19215_v28 = vld [vmem:[%s24285_s5 + $0xf0] sm:$0xff]  }
 0x71a   : > { %v16892_v58 = vrot.slane %v14508_v44, 9  ;;  %18157 = vmatpush3.bf16.msra.mxu1 %v19212_v52  ;;  %v16654_v38 = vcombine.low %v11330_v23, %v11333_v7  ;;  %v11337_v24 = vsel %vm19956_vm1, %v16623_v31, %v11336_v42  ;;  %v14594_v61 = vrot.slane %v14592_v18, 4  ;;  %v13768_v42 = vld [vmem:[#allocation4 + $0x5c] sm:$0x1] }
 0x71b   : > { %v14599_v21 = vrot.slane %v13764_v13, 5  ;;  %18158 = vmatprep.subr.bf16.mxu1 %v19213_v25  ;;  %v11340_v34 = vsel %vm19956_vm1, %v11338_v54, %v11339_v22  ;;  %v14595_v33 = vrot.slane %v13762_v49, 5  ;;  %v16893_v52 = vrot.slane %v14509_v15, 9 }
 0x71c   : > { %18407 = vmatmul.mubr.bf16.vlgmr.msra.gmra.mrb[64].mxu0 %v16922_v56  ;;  %v11343_v46 = vrot.slane %v22592_v16, 5  ;;  %v16655_v63 = vcombine.low %v11337_v24, %v11340_v34  ;;  %v14602_v32 = vrot.slane %v13765_v45, 5  ;;  %v11346_v10 = vrot.slane %v22677_v53, 5  ;;  %v14510_v45 = vld [vmem:[#allocation4 + $0x54] sm:$0xe] }
 0x71d   : > { %18410 = vmatprep.mubr.bf16.mxu0 %v16923_v62  ;;  %18127 = vmatmul.mubr.bf16.gmra.mrb[48].mxu1 %v16654_v38  ;;  %v14601_v44 = vrot.slane %v14599_v21, 4  ;;  %v14596_v56 = vsel %vm19956_vm1, %v14594_v61, %v14595_v33  ;;  %v16624_v29 = vrot.slane %v11251_v5, 9  ;;  %v11350_v16 = vrot.slane %v22615_v3, 5  ;;  %v13771_v62 = vld [vmem:[#allocation4 + $0x68] sm:$0x1] }
 0x71e   : > { %v11345_v13 = vrot.slane %v11343_v46, 4  ;;  %18159 = vmatpush3.bf16.msra.mxu1 %v19213_v25  ;;  %18130 = vmatprep.mubr.bf16.mxu1 %v16655_v63  ;;  %v14593_v14 = vsel %vm19956_vm1, %v16892_v58, %v14592_v18  ;;  %v16625_v25 = vrot.slane %v11252_v59, 9  ;;  %v14606_v15 = vrot.slane %v22890_v30, 5  ;;  %v14511_v58 = vld [vmem:[#allocation4 + $0x60] sm:$0xe] }
 0x71f   : > { %v14603_v49 = vsel %vm19956_vm1, %v14601_v44, %v14602_v32  ;;  %18160 = vmatprep.subr.bf16.mxu1 %v19214_v60  ;;  %v14600_v23 = vsel %vm19956_vm1, %v16893_v52, %v14599_v21  ;;  %v11344_v3 = vsel %vm19956_vm1, %v16624_v29, %v11343_v46  ;;  %v11352_v7 = vrot.slane %v11350_v16, 4  ;;  %v11253_v38 = vld [vmem:[#allocation4 + $0x6c] sm:$0xe]  ;;  %v22922_v30 = vld [vmem:[#allocation4 + $0x70] sm:$0xf] }
 0x720   : > { %v11347_v53 = vsel %vm19956_vm1, %v11345_v13, %v11346_v10  ;;  %v11353_v31 = vrot.slane %v22709_v1, 5  ;;  %v16924_v54 = vcombine.low %v14593_v14, %v14596_v56  ;;  %v16925_v18 = vcombine.low %v14600_v23, %v14603_v49  ;;  %v19216_v1 = vld [vmem:[%s24285_s5 + $0xf8] sm:$0xff]   ;;  %v22927_v52 = vld [vmem:[#allocation4 + $0x7c] sm:$0xf] }
 0x721   : > { %v16656_v22 = vcombine.low %v11344_v3, %v11347_v53  ;;  %v14613_v5 = vrot.slane %v22895_v39, 5  ;;  %v11351_v24 = vsel %vm19956_vm1, %v16625_v25, %v11350_v16  ;;  %v14608_v21 = vrot.slane %v14606_v15, 4 }
 0x722   : > { %18161 = vmatpush3.bf16.msra.mxu1 %v19214_v60  ;;  %v11354_v61 = vsel %vm19956_vm1, %v11352_v7, %v11353_v31  ;;  %v11357_v59 = vrot.slane %v22664_v43, 5  ;;  %v11254_v60 = vld [vmem:[#allocation4 + $0x78] sm:$0xe]  ;;  %v16894_v46 = vrot.slane %v14510_v45, 9  ;;  %v14609_v63 = vrot.slane %v13768_v42, 5 }
 0x723   : > { %18162 = vmatprep.subr.bf16.mxu1 %v19215_v28  ;;  %v16657_v34 = vcombine.low %v11351_v24, %v11354_v61  ;;  %v14615_v33 = vrot.slane %v14613_v5, 4  ;;  %v22932_v43 = vld [vmem:[%s24285_s5 + $0x100] sm:$0xff]   ;;  %v16895_v32 = vrot.slane %v14511_v58, 9  ;;  %v14616_v39 = vrot.slane %v13771_v62, 5  ;;  %v13774_v31 = vld [vmem:[#allocation4 + $0x74] sm:$0x1] }
 0x724   : > { %18411 = vmatmul.mubr.bf16.gmra.mrb[68].mxu0 %v16924_v54  ;;  %v11359_v44 = vrot.slane %v11357_v59, 4  ;;  %v11360_v13 = vrot.slane %v22742_v48, 5  ;;  %v11364_v10 = vrot.slane %v22689_v41, 5  ;;  %v14610_v56 = vsel %vm19956_vm1, %v14608_v21, %v14609_v63  ;;  %v14513_v42 = vld [vmem:[#allocation4 + $0x78] sm:$0xe] }
 0x725   : > { %18414 = vmatprep.mubr.bf16.mxu0 %v16925_v18  ;;  %18131 = vmatmul.mubr.bf16.gmra.mrb[52].mxu1 %v16656_v22  ;;  %v16626_v49 = vrot.slane %v11253_v38, 9  ;;  %v14620_v29 = vrot.slane %v22922_v30, 5  ;;  %v14617_v16 = vsel %vm19956_vm1, %v14615_v33, %v14616_v39  ;;  %v11367_v25 = vrot.slane %v22760_v37, 5  ;;  %v14512_v62 = vld [vmem:[#allocation4 + $0x6c] sm:$0xe] }
 0x726   : > { %18134 = vmatprep.mubr.bf16.mxu1 %v16657_v34  ;;  %18163 = vmatpush3.bf16.msra.mxu1 %v19215_v28  ;;  %v11361_v14 = vsel %vm19956_vm1, %v11359_v44, %v11360_v13  ;;  %v11366_v53 = vrot.slane %v11364_v10, 4  ;;  %v14607_v41 = vsel %vm19956_vm1, %v16894_v46, %v14606_v15  ;;  %v14614_v48 = vsel %vm19956_vm1, %v16895_v32, %v14613_v5  ;;  %v13777_v58 = vld [vmem:[#allocation4 + $0x80] sm:$0x1]  ;;  %v11256_v61 = vld [vmem:[#allocation4 + $0x90] sm:$0xe] }
 0x727   : > { %18164 = vmatprep.subr.bf16.mxu1 %v19216_v1  ;;  %v16627_v28 = vrot.slane %v11254_v60, 9  ;;  %v14627_v45 = vrot.slane %v22927_v52, 5  ;;  %v16926_v23 = vcombine.low %v14607_v41, %v14610_v56  ;;  %v11358_v3 = vsel %vm19956_vm1, %v16626_v49, %v11357_v59  ;;  %v13779_v21 = vld [vmem:[#allocation4 + $0x88] sm:$0xf] }
 0x728   : > { %v11368_v7 = vsel %vm19956_vm1, %v11366_v53, %v11367_v25  ;;  %v11371_v37 = vrot.slane %v22730_v12, 5  ;;  %v16927_v15 = vcombine.low %v14614_v48, %v14617_v16  ;;  %v16658_v54 = vcombine.low %v11358_v3, %v11361_v14  ;;  %v13780_v53 = vld [vmem:[#allocation4 + $0x8c] sm:$0x1] }
 0x729   : > { %v11365_v18 = vsel %vm19956_vm1, %v16627_v28, %v11364_v10  ;;  %v14622_v22 = vrot.slane %v14620_v29, 4  ;;  %v14629_v38 = vrot.slane %v14627_v45, 4  ;;  %v16896_v59 = vrot.slane %v14512_v62, 9  ;;  %v14514_v28 = vld [vmem:[#allocation4 + $0x84] sm:$0xe] }
 0x72a   : > { %18165 = vmatpush3.bf16.msra.mxu1 %v19216_v1  ;;  %v16659_v5 = vcombine.low %v11365_v18, %v11368_v7  ;;  %v11373_v24 = vrot.slane %v11371_v37, 4  ;;  %v14623_v12 = vrot.slane %v13774_v31, 5  ;;  %v16897_v30 = vrot.slane %v14513_v42, 9  ;;  %v11255_v1 = vld [vmem:[#allocation4 + $0x84] sm:$0xe] }
 0x72b   : > { %18198 = vmatprep.subr.bf16.mxu1 %v22932_v43  ;;  %v11378_v34 = vrot.slane %v22749_v27, 5  ;;  %v14630_v33 = vrot.slane %v13777_v58, 5  ;;  %v11374_v60 = vrot.slane %v22769_v36, 5  ;;  %v11381_v63 = vrot.slane %v22787_v50, 5  ;;  %v11258_v7 = vld [vmem:[#allocation4 + $0xa8] sm:$0xe] }
 0x72c   : > { %18415 = vmatmul.mubr.bf16.gmra.mrb[72].mxu0 %v16926_v23  ;;  %v14624_v52 = vsel %vm19956_vm1, %v14622_v22, %v14623_v12  ;;  %v14634_v44 = vrot.slane %v13779_v21, 5  ;;  %v16628_v39 = vrot.slane %v11255_v1, 9  ;;  %v11385_v27 = vrot.slane %v22774_v40, 5  ;;  %v11257_v23 = vld [vmem:[#allocation4 + $0x9c] sm:$0xe] }
 0x72d   : > { %18418 = vmatprep.mubr.bf16.mxu0 %v16927_v15  ;;  %18135 = vmatmul.mubr.bf16.gmra.mrb[56].mxu1 %v16658_v54  ;;  %v11380_v46 = vrot.slane %v11378_v34, 4  ;;  %v14631_v32 = vsel %vm19956_vm1, %v14629_v38, %v14630_v33  ;;  %v11375_v13 = vsel %vm19956_vm1, %v11373_v24, %v11374_v60  ;;  %v14621_v10 = vsel %vm19956_vm1, %v16896_v59, %v14620_v29  ;;  %v19217_v33 = vld [vmem:[#allocation4 + $0xc] sm:$0xff]   ;;  %v19218_v60 = vld [vmem:[#allocation4 + $0x18] sm:$0xff]  }
 0x72e   : > { %18138 = vmatprep.mubr.bf16.mxu1 %v16659_v5  ;;  %v16629_v36 = vrot.slane %v11256_v61, 9  ;;  %v11392_v49 = vrot.slane %v22782_v11, 5  ;;  %v16928_v50 = vcombine.low %v14621_v10, %v14624_v52  ;;  %v14628_v16 = vsel %vm19956_vm1, %v16897_v30, %v14627_v45  ;;  %v19222_v52 = vld [vmem:[%s24285_s5 + $0x108] sm:$0xff]  }
 0x72f   : > { %v11382_v56 = vsel %vm19956_vm1, %v11380_v46, %v11381_v63  ;;  %v11372_v14 = vsel %vm19956_vm1, %v16628_v39, %v11371_v37  ;;  %v16929_v25 = vcombine.low %v14628_v16, %v14631_v32  ;;  %v14636_v29 = vrot.slane %v14634_v44, 4  ;;  %v19220_v46 = vld [vmem:[#allocation4 + $0x24] sm:$0xff]   ;;  %v12112_v63 = vld [vmem:[#allocation4 + $0xc] sm:$0xf]  ;;  %v19221_v32 = vld [vmem:[#allocation4 + $0x30] sm:$0xff]  }
 0x730   : > { %v16660_v41 = vcombine.low %v11372_v14, %v11375_v13  ;;  %v11379_v40 = vsel %vm19956_vm1, %v16629_v36, %v11378_v34  ;;  %v11387_v42 = vrot.slane %v11385_v27, 4  ;;  %v14637_v11 = vrot.slane %v13780_v53, 5  ;;  %v19228_v39 = vld [vmem:[%s24285_s5 + $0x118] sm:$0xff]  }
 0x731   : > { %v16661_v48 = vcombine.low %v11379_v40, %v11382_v56  ;;  %v11394_v3 = vrot.slane %v11392_v49, 4  ;;  %v11388_v45 = vrot.slane %v22801_v0, 5  ;;  %v16898_v31 = vrot.slane %v14514_v28, 9  ;;  %v19223_v56 = vld [vmem:[#allocation4 + $0x3c] sm:$0xff]  }
 0x732   : > { %v14638_v62 = vsel %vm19956_vm1, %v14636_v29, %v14637_v11  ;;  %v11395_v37 = vrot.slane %v22805_v9, 5  ;;  %v16630_v15 = vrot.slane %v11257_v23, 9  ;;  %v11399_v18 = vrot.slane %v22794_v6, 5  ;;  %v11259_v6 = vld [vmem:[#allocation4 + $0xb4] sm:$0xe]  ;;  %v19234_v28 = vld [vmem:[%s24285_s5 + $0x128] sm:$0xff]  }
 0x733   : > { %v11389_v54 = vsel %vm19956_vm1, %v11387_v42, %v11388_v45  ;;  %v14635_v22 = vsel %vm19956_vm1, %v16898_v31, %v14634_v44  ;;  %v16631_v58 = vrot.slane %v11258_v7, 9  ;;  %v11402_v59 = vrot.slane %v22821_v17, 5  ;;  %v19225_v17 = vld [vmem:[%s24285_s5 + $0x110] sm:$0xff]   ;;  %v12113_v44 = vld [vmem:[#allocation4 + $0x10] sm:$0xf]  ;;  %v19226_v23 = vld [vmem:[#allocation4 + $0x54] sm:$0xff]  }
 0x734   : > { %18419 = vmatmul.mubr.bf16.gmra.mrb[76].mxu0 %v16928_v50  ;;  %v11396_v0 = vsel %vm19956_vm1, %v11394_v3, %v11395_v37  ;;  %v16930_v5 = vcombine.low %v14635_v22, %v14638_v62  ;;  %v11386_v38 = vsel %vm19956_vm1, %v16630_v15, %v11385_v27  ;;  %v11401_v21 = vrot.slane %v11399_v18, 4  ;;  %v12116_v40 = vld [vmem:[#allocation4 + $0x1c] sm:$0xf]  ;;  %v23013_v29 = vld [vmem:[#allocation4 + $0x14] sm:$0x1] }
 0x735   : > { %18422 = vmatprep.mubr.bf16.mxu0 %v16929_v25  ;;  %18139 = vmatmul.mubr.bf16.gmra.mrb[60].mxu1 %v16660_v41  ;;  %v16662_v24 = vcombine.low %v11386_v38, %v11389_v54  ;;  %v11393_v9 = vsel %vm19956_vm1, %v16631_v58, %v11392_v49  ;;  %v16632_v12 = vrot.slane %v11259_v6, 9  ;;  %v12161_v13 = vshrl.u32 %v12112_v63, 16  ;;  %v19231_v49 = vld [vmem:[%s24285_s5 + $0x120] sm:$0xff]   ;;  %v23020_v37 = vld [vmem:[#allocation4 + $0x20] sm:$0x1]  ;;  %v19237_v54 = vld [vmem:[%s24285_s5 + $0x130] sm:$0xff]  }
 0x736   : > { %18142 = vmatprep.mubr.bf16.mxu1 %v16661_v48  ;;  %v16663_v61 = vcombine.low %v11393_v9, %v11396_v0  ;;  %v11403_v30 = vsel %vm19956_vm1, %v11401_v21, %v11402_v59  ;;  %v12164_v27 = vshll.u32 %v12112_v63, 16  ;;  %v12170_v10 = vshll.u32 %v12113_v44, 16  ;;  %v19224_v48 = vld [vmem:[#allocation4 + $0x48] sm:$0xff]   ;;  %v12118_v15 = vld [vmem:[#allocation4 + $0x24] sm:$0xf] }
 0x737   : > { %v11400_v1 = vsel %vm19956_vm1, %v16632_v12, %v11399_v18  ;;  %v12174_v36 = vshrl.u32 %v12113_v44, 16  ;;  %v12163_v50 = vrot.slane %v12161_v13, 4  ;;  %v12194_v7 = vshll.u32 %v12116_v40, 16  ;;  %v23025_v58 = vld [vmem:[#allocation4 + $0x28] sm:$0xf]  ;;  %v19227_v59 = vld [vmem:[#allocation4 + $0x60] sm:$0xff]  }
 0x738   : > { %v16664_v34 = vcombine.low %v11400_v1, %v11403_v30  ;;  %v12166_v16 = vrot.slane %v12164_v27, 5  ;;  %v23011_v14 = vrot.slane %v12170_v10, 5  ;;  %v12198_v31 = vshrl.u32 %v12116_v40, 16  ;;  %v23030_v9 = vld [vmem:[#allocation4 + $0x34] sm:$0xf] }
 0x739   : > { %v12176_v53 = vrot.slane %v12174_v36, 4  ;;  %v12180_v62 = vshll.u32 %v23013_v29, 16  ;;  %v12209_v21 = vshrl.u32 %v12118_v15, 16  ;;  %v12212_v6 = vshll.u32 %v12118_v15, 16  ;;  %v12121_v1 = vld [vmem:[#allocation4 + $0x30] sm:$0xf] }
 0x73a   : > { %v12167_v42 = vor.u32 %v12166_v16, %v12163_v50  ;;  %v12200_v38 = vrot.slane %v12198_v31, 4  ;;  %v12218_v12 = vshll.u32 %v23025_v58, 16  ;;  %v12222_v30 = vshrl.u32 %v23025_v58, 16  ;;  %v12124_v13 = vld [vmem:[#allocation4 + $0x3c] sm:$0xf] }
 0x73b   : > { %v12177_v11 = vor.u32 %v12176_v53, %v23011_v14  ;;  %v23051_v27 = vld [vmem:[#allocation4 + $0x40] sm:$0xf]  ;;  %v12211_v10 = vrot.slane %v12209_v21, 4  ;;  %v12214_v36 = vrot.slane %v12212_v6, 5  ;;  %v12257_v15 = vshrl.u32 %v12124_v13, 16 }
 0x73c   : > { %18423 = vmatmul.mubr.bf16.gmra.mrb[80].mxu0 %v16930_v5  ;;  %v12168_v18 = vrot.slane %v12167_v42, 4  ;;  %v23027_v5 = vrot.slane %v12194_v7, 5  ;;  %v23057_v16 = vrot.slane %v12218_v12, 5  ;;  %v12270_v42 = vshrl.u32 %v23051_v27, 16 }
 0x73d   : > { %18143 = vmatmul.mubr.bf16.gmra.mrb[64].mxu1 %v16662_v24  ;;  %v12178_v22 = vrot.slane %v12177_v11, 4  ;;  %v12204_v24 = vshll.u32 %v23020_v37, 16  ;;  %vm15511_vm11 = vcmask 261312   ;;  %vm15676_vm8 = vcmask 1041409  }
 0x73e   : > { %18146 = vmatprep.mubr.bf16.mxu1 %v16663_v61  ;;  %v12182_v61 = vrot.slane %v12180_v62, 5  ;;  %v12173_v63 = vsel %vm19581_vm12, %v12168_v18, %v23011_v14  ;;  %v12224_v14 = vrot.slane %v12222_v30, 4  ;;  %v12130_v18 = vld [vmem:[#allocation4 + $0x54] sm:$0xf]  ;;  %v12272_v12 = vrot.slane %v12270_v42, 4 }
 0x73f   : > { %v23083_v30 = vld [vmem:[#allocation4 + $0x44] sm:$0x1] }
 0x745   : > { %18147 = vmatmul.mubr.bf16.gmra.mrb[68].mxu1 %v16664_v34  ;;  %v19229_v34 = vld [vmem:[#allocation4 + $0x6c] sm:$0xff]  }
 0x746   : > { %18166 = vmatprep.mubr.bf16.mxu1 %v19217_v33  ;;  %v19240_v33 = vld [vmem:[%s24285_s5 + $0x138] sm:$0xff]  }
 0x74d   : > { %18167 = vmatmul.mubr.bf16.vlgmr.msra.gmra.mrb[40].mxu1 %v19218_v60  ;;  %v12183_v60 = vsel %vm19581_vm12, %v12178_v22, %v12182_v61  ;;  %v12215_v22 = vor.u32 %v12214_v36, %v12211_v10  ;;  %v19230_v61 = vld [vmem:[#allocation4 + $0x78] sm:$0xff]  }
 0x74e   : > { %18170 = vmatprep.mubr.bf16.mxu1 %v19220_v46  ;;  %18199 = vmatpush3.bf16.msra.mxu1 %v22932_v43  ;;  %v12115_v43 = vld [vmem:[#allocation4 + $0x18] sm:$0xf]  ;;  %v12242_v46 = vshll.u32 %v23030_v9, 16  ;;  %v23055_v50 = vcombine.low %v12173_v63, %v12183_v60  ;;  %v12308_v60 = vshll.u32 %v12130_v18, 16  ;;  %v12259_v63 = vrot.slane %v12257_v15, 4 }
 0x74f   : > { %18200 = vmatprep.subr.bf16.mxu1 %v19222_v52  ;;  %v12185_v25 = vshrl.u32 %v12115_v43, 16  ;;  %v12188_v41 = vshll.u32 %v12115_v43, 16  ;;  %v12236_v43 = vshll.u32 %v12121_v1, 16  ;;  %v12133_v15 = vld [vmem:[#allocation4 + $0x60] sm:$0xf] }
 0x750   : > { %v23065_v40 = vrot.slane %v12242_v46, 5 }
 0x751   : > { %v12187_v3 = vrot.slane %v12185_v25, 4  ;;  %v12190_v45 = vrot.slane %v12188_v41, 5  ;;  %v12127_v25 = vld [vmem:[#allocation4 + $0x48] sm:$0xf]  ;;  %v23063_v41 = vld [vmem:[%s24285_s5 + $0x140] sm:$0xff]   ;;  %v12238_v62 = vrot.slane %v12236_v43, 5 }
 0x752   : > { %18201 = vmatpush3.bf16.msra.mxu1 %v19222_v52  ;;  %v23039_v52 = vld [vmem:[#allocation4 + $0x2c] sm:$0x1] }
 0x753   : > { %18202 = vmatprep.subr.bf16.mxu1 %v19225_v17  ;;  %v12191_v0 = vor.u32 %v12190_v45, %v12187_v3  ;;  %v12228_v53 = vshll.u32 %v23039_v52, 16  ;;  %v23073_v3 = vld [vmem:[#allocation4 + $0x38] sm:$0x1] }
 0x754   : > { %v12252_v6 = vshll.u32 %v23073_v3, 16 }
 0x755   : > { %18171 = vmatmul.mubr.bf16.gmra.mrb[44].mxu1 %v19221_v32  ;;  %v23046_v44 = vrot.slane %v12191_v0, 4  ;;  %v12201_v32 = vor.u32 %v12200_v38, %v23027_v5  ;;  %v12225_v0 = vor.u32 %v12224_v14, %v23057_v16  ;;  %v12281_v38 = vshrl.u32 %v12127_v25, 16 }
 0x756   : > { %18174 = vmatprep.mubr.bf16.mxu1 %v19223_v56  ;;  %18203 = vmatpush3.bf16.msra.mxu1 %v19225_v17  ;;  %v12246_v17 = vshrl.u32 %v23030_v9, 16  ;;  %v12233_v56 = vshrl.u32 %v12121_v1, 16  ;;  %v12230_v46 = vrot.slane %v12228_v53, 5  ;;  %v23094_v53 = vld [vmem:[#allocation4 + $0x50] sm:$0x1] }
 0x757   : > { %18204 = vmatprep.subr.bf16.mxu1 %v19228_v39  ;;  %v12197_v11 = vsel %vm19581_vm12, %v23046_v44, %v23027_v5  ;;  %v19232_v5 = vld [vmem:[#allocation4 + $0x84] sm:$0xff]   ;;  %v12283_v10 = vrot.slane %v12281_v38, 4  ;;  %v12226_v43 = vrot.slane %v12225_v0, 4  ;;  %v12300_v0 = vshll.u32 %v23094_v53, 16  ;;  %v19233_v38 = vld [vmem:[#allocation4 + $0x90] sm:$0xff]  }
 0x758   : > { %v12235_v31 = vrot.slane %v12233_v56, 4  ;;  %v23090_v56 = vld [vmem:[#allocation4 + $0x58] sm:$0xf] }
 0x75a   : > { %18205 = vmatpush3.bf16.msra.mxu1 %v19228_v39  ;;  %v23049_v39 = vrot.slane %v12204_v24, 5  ;;  %v12284_v24 = vshll.u32 %v12127_v25, 16 }
 0x75b   : > { %18206 = vmatprep.subr.bf16.mxu1 %v19231_v49 }
 0x75c   : > { %v12286_v36 = vrot.slane %v12284_v24, 5  ;;  %v12231_v24 = vsel %vm19581_vm12, %v12226_v43, %v12230_v46 }
 0x75d   : > { %18175 = vmatmul.mubr.bf16.gmra.mrb[48].mxu1 %v19224_v48  ;;  %v12248_v48 = vrot.slane %v12246_v17, 4  ;;  %v12239_v17 = vor.u32 %v12238_v62, %v12235_v31  ;;  %v12318_v62 = vshrl.u32 %v23090_v56, 16 }
 0x75e   : > { %18178 = vmatprep.mubr.bf16.mxu1 %v19226_v23  ;;  %18207 = vmatpush3.bf16.msra.mxu1 %v19231_v49  ;;  %v23053_v49 = vld [vmem:[#allocation4 + $0x4c] sm:$0xf]  ;;  %v12202_v23 = vrot.slane %v12201_v32, 4 }
 0x75f   : > { %18208 = vmatprep.subr.bf16.mxu1 %v19234_v28  ;;  %v12290_v45 = vshll.u32 %v23053_v49, 16  ;;  %v12294_v7 = vshrl.u32 %v23053_v49, 16  ;;  %v12249_v21 = vor.u32 %v12248_v48, %v23065_v40  ;;  %v12276_v48 = vshll.u32 %v23083_v30, 16 }
 0x760   : > { %v12207_v32 = vsel %vm19581_vm12, %v12202_v23, %v23049_v39  ;;  %v12240_v31 = vrot.slane %v12239_v17, 4  ;;  %v12314_v23 = vshll.u32 %v23090_v56, 16 }
 0x761   : > { %v23085_v1 = vrot.slane %v12290_v45, 5  ;;  %v12250_v14 = vrot.slane %v12249_v21, 4  ;;  %v12278_v21 = vrot.slane %v12276_v48, 5 }
 0x762   : > { %18209 = vmatpush3.bf16.msra.mxu1 %v19234_v28  ;;  %v12266_v28 = vshll.u32 %v23051_v27, 16  ;;  %v12245_v17 = vsel %vm19581_vm12, %v12240_v31, %v23065_v40 }
 0x763   : > { %18210 = vmatprep.subr.bf16.mxu1 %v19237_v54 }
 0x765   : > { %18179 = vmatmul.mubr.bf16.gmra.mrb[52].mxu1 %v19227_v59  ;;  %v23081_v59 = vrot.slane %v12266_v28, 5  ;;  %v12254_v28 = vrot.slane %v12252_v6, 5  ;;  %v23109_v6 = vld [vmem:[#allocation4 + $0x64] sm:$0xf] }
 0x766   : > { %18182 = vmatprep.mubr.bf16.mxu1 %v19229_v34  ;;  %18211 = vmatpush3.bf16.msra.mxu1 %v19237_v54  ;;  %v12260_v54 = vshll.u32 %v12124_v13, 16  ;;  %v12296_v34 = vrot.slane %v12294_v7, 4  ;;  %v12216_v13 = vrot.slane %v12215_v22, 4  ;;  %v12310_v7 = vrot.slane %v12308_v60, 5 }
 0x767   : > { %18212 = vmatprep.subr.bf16.mxu1 %v19240_v33  ;;  %v12273_v25 = vor.u32 %v12272_v12, %v23081_v59  ;;  %v12287_v22 = vor.u32 %v12286_v36, %v12283_v10  ;;  %v12332_v60 = vshll.u32 %v12133_v15, 16  ;;  %v12302_v10 = vrot.slane %v12300_v0, 5 }
 0x768   : > { %v12262_v44 = vrot.slane %v12260_v54, 5  ;;  %v12297_v42 = vor.u32 %v12296_v34, %v23085_v1  ;;  %v23099_v54 = vcombine.low %v12197_v11, %v12207_v32  ;;  %v19235_v11 = vld [vmem:[#allocation4 + $0x9c] sm:$0xff]   ;;  %v12136_v32 = vld [vmem:[#allocation4 + $0x6c] sm:$0xf]  ;;  %v12338_v36 = vshll.u32 %v23109_v6, 16 }
 0x769   : > { %v23111_v34 = vld [vmem:[#allocation4 + $0x5c] sm:$0x1]  ;;  %v12342_v43 = vshrl.u32 %v23109_v6, 16  ;;  %v23135_v31 = vrot.slane %v12332_v60, 5  ;;  %v12873_v60 = vld [vmem:[#allocation4 + $0x60] sm:$0xe] }
 0x76a   : > { %18213 = vmatpush3.bf16.msra.mxu1 %v19240_v33  ;;  %v12305_v33 = vshrl.u32 %v12130_v18, 16  ;;  %v12263_v39 = vor.u32 %v12262_v44, %v12259_v63  ;;  %v12221_v18 = vsel %vm19581_vm12, %v12216_v13, %v23057_v16  ;;  %v12298_v12 = vrot.slane %v12297_v42, 4 }
 0x76b   : > { %18246 = vmatprep.subr.bf16.mxu1 %v23063_v41  ;;  %v12329_v16 = vshrl.u32 %v12133_v15, 16  ;;  %v23116_v63 = vrot.slane %v12314_v23, 5  ;;  %v12320_v44 = vrot.slane %v12318_v62, 4  ;;  %v12288_v13 = vrot.slane %v12287_v22, 4  ;;  %v23138_v23 = vld [vmem:[#allocation4 + $0x68] sm:$0x1] }
 0x76c   : > { %v12307_v45 = vrot.slane %v12305_v33, 4  ;;  %v12264_v46 = vrot.slane %v12263_v39, 4  ;;  %v12303_v42 = vsel %vm19581_vm12, %v12298_v12, %v12302_v10  ;;  %v12353_v62 = vshrl.u32 %v12136_v32, 16 }
 0x76d   : > { %18183 = vmatmul.mubr.bf16.gmra.mrb[56].mxu1 %v19230_v61  ;;  %v12255_v61 = vsel %vm19581_vm12, %v12250_v14, %v12254_v28  ;;  %v23120_v14 = vld [vmem:[#allocation4 + $0x70] sm:$0xf]  ;;  %v12324_v28 = vshll.u32 %v23111_v34, 16  ;;  %v12321_v39 = vor.u32 %v12320_v44, %v23116_v63  ;;  %v12356_v15 = vshll.u32 %v12136_v32, 16 }
 0x76e   : > { %18186 = vmatprep.mubr.bf16.mxu1 %v19232_v5  ;;  %v12274_v5 = vrot.slane %v12273_v25, 4  ;;  %v12311_v33 = vor.u32 %v12310_v7, %v12307_v45  ;;  %v23122_v25 = vcombine.low %v12221_v18, %v12231_v24  ;;  %v23124_v48 = vcombine.low %v12245_v17, %v12255_v61  ;;  %v19236_v61 = vld [vmem:[#allocation4 + $0xa8] sm:$0xff]   ;;  %v23165_v17 = vld [vmem:[#allocation4 + $0x7c] sm:$0xf]  ;;  %v12869_v44 = vld [vmem:[#allocation4 + $0x30] sm:$0xe] }
 0x76f   : > { %v23133_v7 = vrot.slane %v12329_v16, 4  ;;  %v12362_v18 = vshll.u32 %v23120_v14, 16  ;;  %v12269_v22 = vsel %vm19581_vm12, %v12264_v46, %v23081_v59  ;;  %v12293_v0 = vsel %vm19581_vm12, %v12288_v13, %v23085_v1  ;;  %v12868_v16 = vld [vmem:[#allocation4 + $0x24] sm:$0xe]  ;;  %v12874_v59 = vld [vmem:[#allocation4 + $0x6c] sm:$0xe] }
 0x770   : > { %v12279_v40 = vsel %vm19581_vm12, %v12274_v5, %v12278_v21  ;;  %v23131_v45 = vrot.slane %v12311_v33, 4  ;;  %v23149_v24 = vrot.slane %v12342_v43, 4  ;;  %v19238_v5 = vld [vmem:[#allocation4 + $0xb4] sm:$0xff]   ;;  %v23155_v12 = vrot.slane %v12324_v28, 5  ;;  %v12870_v43 = vld [vmem:[#allocation4 + $0x3c] sm:$0xe] }
 0x771   : > { %v23151_v21 = vcombine.low %v12269_v22, %v12279_v40  ;;  %v12366_v33 = vshrl.u32 %v23120_v14, 16  ;;  %v12946_v46 = vrot.slane %v23025_v58, 5  ;;  %v23168_v32 = vrot.slane %v12321_v39, 4  ;;  %v23256_v40 = vld [vmem:[#allocation4 + $0x94] sm:$0xf] }
 0x772   : > { %v23170_v13 = vrot.slane %v12353_v62, 4  ;;  %v23172_v10 = vrot.slane %v12356_v15, 5  ;;  %v16755_v28 = vrot.slane %v12868_v16, 9  ;;  %v12949_v22 = vrot.slane %v23039_v52, 5  ;;  %v12871_v16 = vld [vmem:[#allocation4 + $0x48] sm:$0xe] }
 0x773   : > { %v23179_v58 = vrot.slane %v12366_v33, 4  ;;  %v12953_v62 = vrot.slane %v23030_v9, 5  ;;  %v23266_v1 = vld [vmem:[#allocation4 + $0xa0] sm:$0xf] }
 0x774   : > { %v23185_v15 = vsel %vm19956_vm1, %v16755_v28, %v12946_v46 }
 0x775   : > { %18187 = vmatmul.mubr.bf16.gmra.mrb[60].mxu1 %v19233_v38  ;;  %v23147_v38 = vrot.slane %v12338_v36, 5  ;;  %v23174_v36 = vrot.slane %v12362_v18, 5  ;;  %v12955_v9 = vrot.slane %v12953_v62, 4 }
 0x776   : > { %18190 = vmatprep.mubr.bf16.mxu1 %v19235_v11  ;;  %v23153_v11 = vcombine.low %v12293_v0, %v12303_v42  ;;  %v12948_v42 = vrot.slane %v12946_v46, 4  ;;  %v16756_v0 = vrot.slane %v12869_v44, 9  ;;  %v12956_v44 = vrot.slane %v23073_v3, 5  ;;  %v12872_v46 = vld [vmem:[#allocation4 + $0x54] sm:$0xe] }
 0x777   : > { %v12974_v3 = vrot.slane %v23090_v56, 5 }
 0x778   : > { %v23189_v18 = vsel %vm19956_vm1, %v12948_v42, %v12949_v22  ;;  %v23196_v33 = vsel %vm19956_vm1, %v16756_v0, %v12953_v62  ;;  %v19239_v22 = vld [vmem:[#allocation4 + $0xc0] sm:$0xff]   ;;  %v23207_v52 = vsel %vm19956_vm1, %v12955_v9, %v12956_v44  ;;  %v16758_v0 = vrot.slane %v12871_v16, 9  ;;  %v23225_v44 = vld [vmem:[#allocation4 + $0x74] sm:$0x1] }
 0x779   : > { %v12970_v62 = vrot.slane %v23094_v53, 5  ;;  %v12976_v56 = vrot.slane %v12974_v3, 4  ;;  %v12977_v16 = vrot.slane %v23111_v34, 5  ;;  %v16761_v9 = vrot.slane %v12874_v59, 9 }
 0x77b   : > { %v23244_v34 = vsel %vm19956_vm1, %v12976_v56, %v12977_v16  ;;  %v12991_v56 = vrot.slane %v23225_v44, 5  ;;  %v12995_v16 = vrot.slane %v23165_v17, 5 }
 0x77c   : > { %24508 = vst [vmem:[#allocation44_spill] sm:$0xff] %v23244_v34 }
 0x77d   : > { %18191 = vmatmul.mubr.bf16.gmra.mrb[64].mxu1 %v19236_v61  ;;  %v16757_v61 = vrot.slane %v12870_v43, 9  ;;  %v12963_v43 = vrot.slane %v23083_v30, 5 }
 0x77e   : > { %18194 = vmatprep.mubr.bf16.mxu1 %v19238_v5  ;;  %v12960_v5 = vrot.slane %v23051_v27, 5  ;;  %v12967_v27 = vrot.slane %v23053_v49, 5  ;;  %v16759_v49 = vrot.slane %v12872_v46, 9 }
 0x780   : > { %v23201_v28 = vsel %vm19956_vm1, %v16757_v61, %v12960_v5  ;;  %v12962_v42 = vrot.slane %v12960_v5, 4  ;;  %v12969_v30 = vrot.slane %v12967_v27, 4  ;;  %v23221_v53 = vsel %vm19956_vm1, %v16758_v0, %v12967_v27  ;;  %v23238_v0 = vld [vmem:[#allocation4 + $0x88] sm:$0xf]  ;;  %v23247_v61 = vld [vmem:[#allocation4 + $0x8c] sm:$0x1] }
 0x781   : > { %v12981_v27 = vrot.slane %v23109_v6, 5  ;;  %v13002_v4 = vrot.slane %v23238_v0, 5  ;;  %v13005_v34 = vrot.slane %v23247_v61, 5 }
 0x782   : > { %v23215_v5 = vsel %vm19956_vm1, %v12962_v42, %v12963_v43  ;;  %v23227_v42 = vld [vmem:[#allocation4 + $0x80] sm:$0x1]  ;;  %v23231_v46 = vsel %vm19956_vm1, %v12969_v30, %v12970_v62  ;;  %v23235_v43 = vsel %vm19956_vm1, %v16759_v49, %v12974_v3  ;;  %v12988_v62 = vrot.slane %v23120_v14, 5  ;;  %v12875_v30 = vld [vmem:[#allocation4 + $0x78] sm:$0xe] }
 0x783   : > { %24506 = vst [vmem:[#allocation9_spill] sm:$0xff] %v23231_v46  ;;  %24507 = vst [vmem:[#allocation43_spill] sm:$0xff] %v23235_v43  ;;  %v12983_v3 = vrot.slane %v12981_v27, 4  ;;  %v12984_v49 = vrot.slane %v23138_v23, 5  ;;  %v12998_v39 = vrot.slane %v23227_v42, 5  ;;  %v13004_v47 = vrot.slane %v13002_v4, 4 }
 0x784   : > { %v23260_v59 = vsel %vm19956_vm1, %v16761_v9, %v12988_v62  ;;  %v12990_v14 = vrot.slane %v12988_v62, 4  ;;  %v19242_v9 = vld [vmem:[%s24285_s5 + $0x148] sm:$0xff]   ;;  %v12878_v43 = vld [vmem:[#allocation4 + $0x9c] sm:$0xe] }
 0x785   : > { %18195 = vmatmul.mubr.bf16.gmra.mrb[68].mxu1 %v19239_v22  ;;  %v16760_v22 = vrot.slane %v12873_v60, 9  ;;  %24510 = vst [vmem:[#allocation46_spill] sm:$0xff] %v23260_v59  ;;  %v23264_v60 = vld [vmem:[#allocation4 + $0x98] sm:$0x1]  ;;  %v23340_v59 = vld [vmem:[#allocation4 + $0xc4] sm:$0xf] }
 0x786   : > { %18214 = vmatprep.mubr.bf16.mxu1 %v23055_v50  ;;  %v12876_v50 = vld [vmem:[#allocation4 + $0x84] sm:$0xe] }
 0x787   : > { %v23253_v6 = vsel %vm19956_vm1, %v16760_v22, %v12981_v27  ;;  %v23270_v22 = vsel %vm19956_vm1, %v12983_v3, %v12984_v49  ;;  %v16762_v27 = vrot.slane %v12875_v30, 9  ;;  %v23287_v30 = vsel %vm19956_vm1, %v12990_v14, %v12991_v56  ;;  %v23298_v14 = vld [vmem:[#allocation4 + $0xb0] sm:$0x1]  ;;  %v23300_v56 = vld [vmem:[#allocation4 + $0xb8] sm:$0xf] }
 0x788   : > { %24509 = vst [vmem:[#allocation45_spill] sm:$0xff] %v23253_v6  ;;  %24511 = vst [vmem:[#allocation47_spill] sm:$0xff] %v23270_v22  ;;  %v12997_v3 = vrot.slane %v12995_v16, 4  ;;  %v16763_v49 = vrot.slane %v12876_v50, 9 }
 0x789   : > { %24513 = vst [vmem:[#allocation49_spill] sm:$0xff] %v23287_v30  ;;  %v23304_v50 = vsel %vm19956_vm1, %v16762_v27, %v12995_v16  ;;  %v23323_v27 = vsel %vm19956_vm1, %v13004_v47, %v13005_v34  ;;  %v13012_v16 = vrot.slane %v23264_v60, 5  ;;  %v13019_v34 = vrot.slane %v23279_v19, 5  ;;  %v12139_v30 = vld [vmem:[#allocation4 + $0x78] sm:$0xf] }
 0x78a   : > { %24516 = vst [vmem:[#allocation52_spill] sm:$0xff] %v23304_v50  ;;  %v23308_v51 = vsel %vm19956_vm1, %v12997_v3, %v12998_v39  ;;  %24520 = vst [vmem:[#allocation56_spill] sm:$0xff] %v23323_v27  ;;  %v16764_v39 = vrot.slane %v12877_v2, 9  ;;  %v13016_v3 = vrot.slane %v23266_v1, 5  ;;  %v12880_v50 = vld [vmem:[#allocation4 + $0xb4] sm:$0xe] }
 0x78b   : > { %24517 = vst [vmem:[#allocation53_spill] sm:$0xff] %v23308_v51  ;;  %v13023_v51 = vrot.slane %v23281_v35, 5  ;;  %v12380_v46 = vshll.u32 %v12139_v30, 16 }
 0x78c   : > { %v23277_v62 = vpop.f32.mrb[32].mxu0  ;;  %v13018_v47 = vrot.slane %v13016_v3, 4 }
 0x78d   : > { %24512 = vst [vmem:[#allocation48_spill] sm:$0xff] %v23277_v62  ;;  %v23289_v8 = vpop.f32.mrb[33].mxu0  ;;  %18215 = vmatmul.mubr.bf16.vlgmr.msra.gmra.mrb[40].mxu1 %v23099_v54  ;;  %v23312_v62 = vsel %vm19956_vm1, %v16763_v49, %v13002_v4  ;;  %v13009_v54 = vrot.slane %v23256_v40, 5  ;;  %v12879_v4 = vld [vmem:[#allocation4 + $0xa8] sm:$0xe]  ;;  %v13025_v6 = vrot.slane %v13023_v51, 4 }
 0x78e   : > { %24514 = vst [vmem:[#allocation50_spill] sm:$0xff] %v23289_v8  ;;  %v23296_v26 = vpop.f32.mrb[34].mxu0  ;;  %24518 = vst [vmem:[#allocation54_spill] sm:$0xff] %v23312_v62  ;;  %18218 = vmatprep.mubr.bf16.mxu1 %v23122_v25  ;;  %18247 = vmatpush3.bf16.msra.mxu1 %v23063_v41  ;;  %v19243_v25 = vld [vmem:[%s24285_s5 + $0x150] sm:$0xff]   ;;  %v23329_v49 = vld [vmem:[#allocation4 + $0xbc] sm:$0x1]  ;;  %v23357_v22 = vsel %vm19956_vm1, %v13018_v47, %v13019_v34 }
 0x78f   : > { %24515 = vst [vmem:[#allocation51_spill] sm:$0xff] %v23296_v26  ;;  %v23317_v26 = vpop.f32.mrb[35].mxu0  ;;  %18248 = vmatprep.subr.bf16.mxu1 %v19242_v9  ;;  %v16765_v8 = vrot.slane %v12878_v43, 9  ;;  %v23336_v2 = vsel %vm19956_vm1, %v16764_v39, %v13009_v54  ;;  %v16766_v27 = vrot.slane %v12879_v4, 9  ;;  %v23351_v39 = vld [vmem:[#allocation4 + $0xc8] sm:$0x1] }
 0x790   : > { %24519 = vst [vmem:[#allocation55_spill] sm:$0xff] %v23317_v26  ;;  %v13011_v26 = vrot.slane %v13009_v54, 4  ;;  %24521 = vst [vmem:[#allocation57_spill] sm:$0xff] %v23336_v2  ;;  %v13030_v54 = vrot.slane %v23300_v56, 5  ;;  %v13033_v4 = vrot.slane %v23329_v49, 5  ;;  %v13037_v2 = vrot.slane %v23340_v59, 5 }
 0x791   : > { %v23348_v43 = vsel %vm19956_vm1, %v16765_v8, %v13016_v3  ;;  %v19244_v8 = vld [vmem:[%s24285_s5 + $0x158] sm:$0xff]   ;;  %v12881_v62 = vld [vmem:[#allocation4 + $0xc0] sm:$0xe]  ;;  %v23368_v47 = vsel %vm19956_vm1, %v16766_v27, %v13023_v51 }
 0x792   : > { %v23344_v41 = vsel %vm19956_vm1, %v13011_v26, %v13012_v16  ;;  %18249 = vmatpush3.bf16.msra.mxu1 %v19242_v9  ;;  %v13026_v26 = vrot.slane %v23298_v14, 5  ;;  %v16767_v16 = vrot.slane %v12880_v50, 9  ;;  %v13032_v3 = vrot.slane %v13030_v54, 4 }
 0x793   : > { %24522 = vst [vmem:[#allocation58_spill] sm:$0xff] %v23344_v41  ;;  %18250 = vmatprep.subr.bf16.mxu1 %v19243_v25  ;;  %v12377_v41 = vshrl.u32 %v12139_v30, 16  ;;  %v16768_v27 = vrot.slane %v12881_v62, 9  ;;  %v13040_v30 = vrot.slane %v23351_v39, 5  ;;  %v19245_v62 = vld [vmem:[%s24285_s5 + $0x160] sm:$0xff]   ;;  %v12414_v50 = vshrl.u32 %v23238_v0, 16 }
 0x794   : > { %v23372_v34 = vsel %vm19956_vm1, %v13025_v6, %v13026_v26  ;;  %v23380_v9 = vsel %vm19956_vm1, %v16767_v16, %v13030_v54  ;;  %v23384_v51 = vsel %vm19956_vm1, %v13032_v3, %v13033_v4  ;;  %v12359_v26 = vor.u32 %v23172_v10, %v23170_v13  ;;  %v12142_v4 = vld [vmem:[#allocation4 + $0x84] sm:$0xf] }
 0x795   : > { %18219 = vmatmul.mubr.bf16.gmra.mrb[44].mxu1 %v23124_v48  ;;  %v13039_v48 = vrot.slane %v13037_v2, 4  ;;  %v12369_v54 = vor.u32 %v23179_v58, %v23174_v36  ;;  %v24523_v16 = vshll.u32 %v23165_v17, 16  ;;  %v12327_v13 = vsel %vm19581_vm12, %v23168_v32, %v23155_v12 }
 0x796   : > { %18222 = vmatprep.mubr.bf16.mxu1 %v23151_v21  ;;  %18251 = vmatpush3.bf16.msra.mxu1 %v19243_v25  ;;  %v24524_v21 = vshrl.u32 %v23165_v17, 16  ;;  %v24525_v10 = vor.u32 %v23135_v31, %v23133_v7  ;;  %v12410_v6 = vshll.u32 %v23238_v0, 16  ;;  %v12379_v7 = vrot.slane %v12377_v41, 4  ;;  %v19246_v0 = vld [vmem:[%s24285_s5 + $0x168] sm:$0xff]  }
 0x797   : > { %18252 = vmatprep.subr.bf16.mxu1 %v19244_v8  ;;  %v23396_v3 = vrot.slane %v24523_v16, 5  ;;  %v23412_v16 = vsel %vm19956_vm1, %v16768_v27, %v13037_v2  ;;  %v23416_v17 = vsel %vm19956_vm1, %v13039_v48, %v13040_v30  ;;  %v12382_v31 = vrot.slane %v12380_v46, 5 }
 0x798   : > { %v12392_v25 = vrot.slane %v24524_v21, 4  ;;  %v12336_v58 = vrot.slane %v24525_v10, 4  ;;  %24526 = vst [vmem:[#allocation59_spill] sm:$0xff] %v23416_v17  ;;  %v12372_v21 = vshll.u32 %v23225_v44, 16  ;;  %v12401_v32 = vshrl.u32 %v12142_v4, 16 }
 0x799   : > { %v12404_v10 = vshll.u32 %v12142_v4, 16  ;;  %v24527_v2 = vor.u32 %v23149_v24, %v23147_v38  ;;  %v12360_v48 = vrot.slane %v12359_v26, 4  ;;  %v12370_v30 = vrot.slane %v12369_v54, 4  ;;  %v12145_v26 = vld [vmem:[#allocation4 + $0x90] sm:$0xf] }
 0x79a   : > { %18253 = vmatpush3.bf16.msra.mxu1 %v19244_v8  ;;  %v12393_v44 = vor.u32 %v12392_v25, %v23396_v3  ;;  %v24528_v46 = vsel %vm19581_vm12, %v23131_v45, %v23116_v63  ;;  %v24529_v8 = vshll.u32 %v23138_v23, 16  ;;  %v12374_v54 = vrot.slane %v12372_v21, 5 }
 0x79b   : > { %v12346_v27 = vrot.slane %v24527_v2, 4  ;;  %18254 = vmatprep.subr.bf16.mxu1 %v19245_v62  ;;  %v16735_v41 = vcombine.low %v24528_v46, %v12327_v13  ;;  %v12396_v25 = vshll.u32 %v23227_v42, 16  ;;  %v23441_v2 = vrot.slane %v12410_v6, 5 }
 0x79c   : > { %v12350_v4 = vrot.slane %v24529_v8, 5  ;;  %v23437_v24 = vpop.f32.mrb[36].mxu0  ;;  %v12416_v12 = vrot.slane %v12414_v50, 4  ;;  %v12341_v63 = vsel %vm19581_vm12, %v12336_v58, %v23147_v38  ;;  %v12383_v45 = vor.u32 %v12382_v31, %v12379_v7  ;;  %v19247_v38 = vld [vmem:[%s24285_s5 + $0x170] sm:$0xff]  }
 0x79d   : > { %18223 = vmatmul.mubr.bf16.gmra.mrb[48].mxu1 %v23153_v11  ;;  %v23443_v17 = vpop.f32.mrb[37].mxu0  ;;  %v12403_v23 = vrot.slane %v12401_v32, 4  ;;  %v12406_v13 = vrot.slane %v12404_v10, 5  ;;  %v12365_v42 = vsel %vm19581_vm12, %v12360_v48, %v23174_v36  ;;  %v12375_v50 = vsel %vm19581_vm12, %v12370_v30, %v12374_v54  ;;  %v12148_v32 = vld [vmem:[#allocation4 + $0x9c] sm:$0xf] }
 0x79e   : > { %18226 = vmatprep.mubr.bf16.mxu1 %v16735_v41  ;;  %18255 = vmatpush3.bf16.msra.mxu1 %v19245_v62  ;;  %v23448_v46 = vpop.f32.mrb[38].mxu0  ;;  %v12351_v11 = vsel %vm19581_vm12, %v12346_v27, %v12350_v4  ;;  %v12394_v6 = vrot.slane %v12393_v44, 4  ;;  %v12425_v62 = vshrl.u32 %v12145_v26, 16  ;;  %v12428_v58 = vshll.u32 %v12145_v26, 16 }
 0x79f   : > { %v23457_v21 = vpop.f32.mrb[39].mxu0  ;;  %18256 = vmatprep.subr.bf16.mxu1 %v19246_v0  ;;  %v12434_v7 = vshll.u32 %v23256_v40, 16  ;;  %v12438_v31 = vshrl.u32 %v23256_v40, 16  ;;  %v12398_v10 = vrot.slane %v12396_v25, 5  ;;  %v12417_v36 = vor.u32 %v12416_v12, %v23441_v2  ;;  %v19248_v12 = vld [vmem:[%s24285_s5 + $0x178] sm:$0xff]  }
 0x7a0   : > { %24530 = vst [vmem:[#allocation60_spill] sm:$0xff] %v23457_v21  ;;  %v12458_v27 = vshll.u32 %v23266_v1, 16  ;;  %v12462_v48 = vshrl.u32 %v23266_v1, 16  ;;  %v16736_v30 = vcombine.low %v12341_v63, %v12351_v11  ;;  %v16737_v44 = vcombine.low %v12365_v42, %v12375_v50 }
 0x7a1   : > { %v12384_v41 = vrot.slane %v12383_v45, 4  ;;  %v12407_v8 = vor.u32 %v12406_v13, %v12403_v23  ;;  %v12399_v4 = vsel %vm19581_vm12, %v12394_v6, %v12398_v10  ;;  %v12420_v26 = vshll.u32 %v23247_v61, 16  ;;  %v12154_v10 = vld [vmem:[#allocation4 + $0xb4] sm:$0xf] }
 0x7a2   : > { %18257 = vmatpush3.bf16.msra.mxu1 %v19246_v0  ;;  %v12449_v54 = vshrl.u32 %v12148_v32, 16  ;;  %v12452_v40 = vshll.u32 %v12148_v32, 16  ;;  %v12427_v25 = vrot.slane %v12425_v62, 4  ;;  %v12430_v21 = vrot.slane %v12428_v58, 5  ;;  %v12151_v62 = vld [vmem:[#allocation4 + $0xa8] sm:$0xf] }
 0x7a3   : > { %18258 = vmatprep.subr.bf16.mxu1 %v19247_v38  ;;  %v23473_v1 = vrot.slane %v12434_v7, 5  ;;  %v12440_v63 = vrot.slane %v12438_v31, 4  ;;  %v12418_v45 = vrot.slane %v12417_v36, 4  ;;  %v23475_v0 = vrot.slane %v12458_v27, 5  ;;  %v23483_v58 = vld [vmem:[%s24285_s5 + $0x180] sm:$0xff]  }
 0x7a4   : > { %v12464_v23 = vrot.slane %v12462_v48, 4  ;;  %v12389_v61 = vsel %vm19581_vm12, %v12384_v41, %v23396_v3  ;;  %v12408_v13 = vrot.slane %v12407_v8, 4  ;;  %v12422_v42 = vrot.slane %v12420_v26, 5 }
 0x7a5   : > { %18227 = vmatmul.mubr.bf16.gmra.mrb[52].mxu1 %v16736_v30  ;;  %v16738_v11 = vcombine.low %v12389_v61, %v12399_v4  ;;  %v12451_v50 = vrot.slane %v12449_v54, 4  ;;  %v12454_v6 = vrot.slane %v12452_v40, 5  ;;  %v12431_v7 = vor.u32 %v12430_v21, %v12427_v25 }
 0x7a6   : > { %18230 = vmatprep.mubr.bf16.mxu1 %v16737_v44  ;;  %18259 = vmatpush3.bf16.msra.mxu1 %v19247_v38  ;;  %v12441_v31 = vor.u32 %v12440_v63, %v23473_v1  ;;  %v12482_v32 = vshll.u32 %v23281_v35, 16  ;;  %v12486_v3 = vshrl.u32 %v23281_v35, 16  ;;  %v12423_v38 = vsel %vm19581_vm12, %v12418_v45, %v12422_v42  ;;  %v12157_v42 = vld [vmem:[#allocation4 + $0xc0] sm:$0xf] }
 0x7a7   : > { %18260 = vmatprep.subr.bf16.mxu1 %v19248_v12  ;;  %v12465_v36 = vor.u32 %v12464_v23, %v23475_v0  ;;  %v12506_v27 = vshll.u32 %v23300_v56, 16  ;;  %v12510_v48 = vshrl.u32 %v23300_v56, 16  ;;  %v12413_v21 = vsel %vm19581_vm12, %v12408_v13, %v23441_v2 }
 0x7a8   : > { %v12444_v30 = vshll.u32 %v23264_v60, 16  ;;  %v12473_v44 = vshrl.u32 %v12151_v62, 16  ;;  %v12476_v41 = vshll.u32 %v12151_v62, 16  ;;  %v12455_v35 = vor.u32 %v12454_v6, %v12451_v50 }
 0x7a9   : > { %v12468_v8 = vshll.u32 %v23279_v19, 16  ;;  %v12497_v4 = vshrl.u32 %v12154_v10, 16  ;;  %v12500_v26 = vshll.u32 %v12154_v10, 16  ;;  %v16739_v54 = vcombine.low %v12413_v21, %v12423_v38 }
 0x7aa   : > { %18261 = vmatpush3.bf16.msra.mxu1 %v19248_v12  ;;  %v12442_v40 = vrot.slane %v12441_v31, 4  ;;  %v12484_v25 = vrot.slane %v12482_v32, 5  ;;  %v12488_v56 = vrot.slane %v12486_v3, 4  ;;  %v12432_v63 = vrot.slane %v12431_v7, 4 }
 0x7ab   : > { %18294 = vmatprep.subr.bf16.mxu1 %v23483_v58  ;;  %v12466_v45 = vrot.slane %v12465_v36, 4  ;;  %v12508_v60 = vrot.slane %v12506_v27, 5  ;;  %v12512_v23 = vrot.slane %v12510_v48, 4  ;;  %v12446_v12 = vrot.slane %v12444_v30, 5 }
 0x7ac   : > { %v12475_v19 = vrot.slane %v12473_v44, 4  ;;  %v12478_v13 = vrot.slane %v12476_v41, 5  ;;  %v12456_v50 = vrot.slane %v12455_v35, 4  ;;  %v12470_v6 = vrot.slane %v12468_v8, 5 }
 0x7ad   : > { %18231 = vmatmul.mubr.bf16.gmra.mrb[56].mxu1 %v16738_v11  ;;  %v23499_v2 = vpop.f32.mrb[40].mxu0  ;;  %v12499_v31 = vrot.slane %v12497_v4, 4  ;;  %v12502_v32 = vrot.slane %v12500_v26, 5  ;;  %v12447_v11 = vsel %vm19581_vm12, %v12442_v40, %v12446_v12  ;;  %v12489_v3 = vor.u32 %v12488_v56, %v12484_v25 }
 0x7ae   : > { %18234 = vmatprep.mubr.bf16.mxu1 %v16739_v54  ;;  %v23501_v61 = vpop.f32.mrb[41].mxu0  ;;  %v12530_v10 = vshll.u32 %v23340_v59, 16  ;;  %v12534_v38 = vshrl.u32 %v23340_v59, 16  ;;  %v12437_v36 = vsel %vm19581_vm12, %v12432_v63, %v23473_v1  ;;  %v12471_v27 = vsel %vm19581_vm12, %v12466_v45, %v12470_v6 }
 0x7af   : > { %v23503_v62 = vpop.f32.mrb[42].mxu0  ;;  %v12513_v48 = vor.u32 %v12512_v23, %v12508_v60  ;;  %v12479_v21 = vor.u32 %v12478_v13, %v12475_v19  ;;  %v12492_v30 = vshll.u32 %v23298_v14, 16  ;;  %v12521_v44 = vshrl.u32 %v12157_v42, 16 }
 0x7b0   : > { %v23507_v7 = vpop.f32.mrb[43].mxu0  ;;  %v12524_v41 = vshll.u32 %v12157_v42, 16  ;;  %v16740_v35 = vcombine.low %v12437_v36, %v12447_v11  ;;  %v12461_v8 = vsel %vm19581_vm12, %v12456_v50, %v23475_v0  ;;  %v12503_v4 = vor.u32 %v12502_v32, %v12499_v31  ;;  %v19323_v42 = vld [vmem:[#allocation4 + $0x10] sm:$0xf] }
 0x7b1   : > { %v12516_v59 = vshll.u32 %v23329_v49, 16  ;;  %v16741_v26 = vcombine.low %v12461_v8, %v12471_v27  ;;  %v12490_v54 = vrot.slane %v12489_v3, 4  ;;  %v12532_v1 = vrot.slane %v12530_v10, 5 }
 0x7b2   : > { %v12536_v40 = vrot.slane %v12534_v38, 4  ;;  %v12514_v56 = vrot.slane %v12513_v48, 4  ;;  %v12480_v63 = vrot.slane %v12479_v21, 4  ;;  %v12494_v45 = vrot.slane %v12492_v30, 5  ;;  %v12866_v48 = vld [vmem:[#allocation4 + $0xc] sm:$0xe] }
 0x7b3   : > { %v12523_v14 = vrot.slane %v12521_v44, 4  ;;  %v12526_v23 = vrot.slane %v12524_v41, 5  ;;  %v12504_v12 = vrot.slane %v12503_v4, 4  ;;  %v12518_v19 = vrot.slane %v12516_v59, 5  ;;  %v626_v41 = vld [vmem:[#allocation4 + $0xcc] sm:$0x1] }
 0x7b4   : > { %v12495_v13 = vsel %vm19581_vm12, %v12490_v54, %v12494_v45  ;;  %v12537_v0 = vor.u32 %v12536_v40, %v12532_v1  ;;  %v12932_v50 = vrot.slane %v19323_v42, 5  ;;  %v12485_v6 = vsel %vm19581_vm12, %v12480_v63, %v12484_v25  ;;  %v19324_v4 = vld [vmem:[#allocation4 + $0x1c] sm:$0xf]  ;;  %v12867_v45 = vld [vmem:[#allocation4 + $0x18] sm:$0xe] }
 0x7b5   : > { %18235 = vmatmul.mubr.bf16.gmra.mrb[60].mxu1 %v16740_v35  ;;  %v12519_v49 = vsel %vm19581_vm12, %v12514_v56, %v12518_v19  ;;  %v12527_v31 = vor.u32 %v12526_v23, %v12523_v14  ;;  %v12540_v32 = vshll.u32 %v23351_v39, 16  ;;  %v16742_v11 = vcombine.low %v12485_v6, %v12495_v13  ;;  %v19251_v6 = vld [vmem:[%s24285_s5 + $0x190] sm:$0xff]  }
 0x7b6   : > { %18238 = vmatprep.mubr.bf16.mxu1 %v16741_v26  ;;  %v12509_v3 = vsel %vm19581_vm12, %v12504_v12, %v12508_v60  ;;  %v12538_v36 = vrot.slane %v12537_v0, 4  ;;  %v12934_v21 = vrot.slane %v12932_v50, 4  ;;  %v12935_v35 = vrot.slane %v23013_v29, 5  ;;  %v19250_v0 = vld [vmem:[%s24285_s5 + $0x188] sm:$0xff]  }
 0x7b7   : > { %v16743_v10 = vcombine.low %v12509_v3, %v12519_v49  ;;  %v12528_v25 = vrot.slane %v12527_v31, 4  ;;  %v12542_v44 = vrot.slane %v12540_v32, 5  ;;  %v627_v60 = vsel %vm22104_vm7, 0, %v626_v41  ;;  %v19252_v31 = vld [vmem:[%s24285_s5 + $0x198] sm:$0xff]  }
 0x7b8   : > { %v12939_v59 = vrot.slane %v19324_v4, 5  ;;  %628 = vst [vmem:[#allocation4 + $0xcc] sm:$0x1] %v627_v60  ;;  %v16753_v26 = vrot.slane %v12866_v48, 9  ;;  %v12936_v54 = vsel %vm19956_vm1, %v12934_v21, %v12935_v35  ;;  %v12942_v14 = vrot.slane %v23020_v37, 5  ;;  %v24555_v60 = vld [vmem:[#allocation45_spill] sm:$0xff] }
 0x7b9   : > { %v12543_v8 = vsel %vm19581_vm12, %v12538_v36, %v12542_v44  ;;  %v12533_v40 = vsel %vm19581_vm12, %v12528_v25, %v12532_v1  ;;  %v16754_v23 = vrot.slane %v12867_v45, 9  ;;  %v24540_v32 = vcombine.low %v23196_v33, %v23207_v52  ;;  %v19254_v52 = vld [vmem:[%s24285_s5 + $0x1a8] sm:$0xff]   ;;  %v19255_v25 = vld [vmem:[%s24285_s5 + $0x1b0] sm:$0xff]  }
 0x7ba   : > { %v16744_v56 = vcombine.low %v12533_v40, %v12543_v8  ;;  %v12933_v29 = vsel %vm19956_vm1, %v16753_v26, %v12932_v50  ;;  %v12941_v57 = vrot.slane %v12939_v59, 4  ;;  %v24539_v50 = vcombine.low %v23185_v15, %v23189_v18  ;;  %v24546_v33 = vld [vmem:[#allocation9_spill] sm:$0xff]  ;;  %v24549_v36 = vld [vmem:[#allocation44_spill] sm:$0xff]  ;;  %v24556_v8 = vld [vmem:[#allocation47_spill] sm:$0xff] }
 0x7bb   : > { %v16785_v63 = vcombine.low %v12933_v29, %v12936_v54  ;;  %v12940_v19 = vsel %vm19956_vm1, %v16754_v23, %v12939_v59  ;;  %v24542_v15 = vcombine.low %v23201_v28, %v23215_v5  ;;  %v24547_v28 = vcombine.low %v23221_v53, %v24546_v33  ;;  %v24548_v5 = vld [vmem:[#allocation43_spill] sm:$0xff]  ;;  %v24558_v59 = vld [vmem:[#allocation46_spill] sm:$0xff]  ;;  %v24559_v26 = vld [vmem:[#allocation49_spill] sm:$0xff] }
 0x7bc   : > { %v23530_v38 = vpop.f32.mrb[44].mxu0  ;;  %v12943_v12 = vsel %vm19956_vm1, %v12941_v57, %v12942_v14  ;;  %v24550_v48 = vcombine.low %v24548_v5, %v24549_v36  ;;  %v19256_v53 = vld [vmem:[%s24285_s5 + $0x1b8] sm:$0xff]   ;;  %v24557_v4 = vcombine.low %v24555_v60, %v24556_v8  ;;  %v24560_v54 = vcombine.low %v24558_v59, %v24559_v26  ;;  %v24565_v45 = vld [vmem:[#allocation52_spill] sm:$0xff]  ;;  %v24566_v14 = vld [vmem:[#allocation53_spill] sm:$0xff] }
 0x7bd   : > { %24531 = vst [vmem:[#allocation61_spill] sm:$0xff] %v23530_v38  ;;  %18239 = vmatmul.mubr.bf16.gmra.mrb[64].mxu1 %v16742_v11  ;;  %v23532_v27 = vpop.f32.mrb[45].mxu0  ;;  %v16786_v1 = vcombine.low %v12940_v19, %v12943_v12  ;;  %v24567_v23 = vcombine.low %v24565_v45, %v24566_v14  ;;  %v24568_v12 = vld [vmem:[#allocation54_spill] sm:$0xff]  ;;  %v24569_v19 = vld [vmem:[#allocation56_spill] sm:$0xff]  ;;  %v19258_v14 = vld [vmem:[#allocation4 + $0x24] sm:$0xff]   ;;  %vm15588_vm7 = vcmask 982912  }
 0x7be   : > { %24532 = vst [vmem:[#allocation62_spill] sm:$0xff] %v23532_v27  ;;  %18242 = vmatprep.mubr.bf16.mxu1 %v16743_v10  ;;  %v23534_v30 = vpop.f32.mrb[46].mxu0  ;;  %v19257_v26 = vld [vmem:[#allocation4 + $0x18] sm:$0xff]  }
 0x7bf   : > { %24533 = vst [vmem:[#allocation63_spill] sm:$0xff] %v23534_v30  ;;  %v23536_v39 = vpop.f32.mrb[47].mxu0 }
 0x7c0   : > { %24534 = vst [vmem:[#allocation64_spill] sm:$0xff] %v23536_v39 }
 0x7c5   : > { %18243 = vmatmul.mubr.bf16.gmra.mrb[68].mxu1 %v16744_v56  ;;  %v19259_v56 = vld [vmem:[%s24285_s5 + $0x1c0] sm:$0xff]  }
 0x7c6   : > { %18262 = vmatprep.mubr.bf16.mxu1 %v16785_v63 }
 0x7cb   : > { %v23554_v13 = vpop.f32.mrb[48].mxu0 }
 0x7cc   : > { %24535 = vst [vmem:[#allocation65_spill] sm:$0xff] %v23554_v13  ;;  %v23559_v49 = vpop.f32.mrb[49].mxu0 }
 0x7cd   : > { %24536 = vst [vmem:[#allocation66_spill] sm:$0xff] %v23559_v49  ;;  %v23561_v42 = vpop.f32.mrb[50].mxu0  ;;  %18263 = vmatmul.mubr.bf16.vlgmr.msra.gmra.mrb[40].mxu1 %v16786_v1  ;;  %v24570_v1 = vcombine.low %v24568_v12, %v24569_v19  ;;  %v19260_v12 = vld [vmem:[#allocation4 + $0x30] sm:$0xff]   ;;  %v19265_v19 = vld [vmem:[%s24285_s5 + $0x1d0] sm:$0xff]  }
 0x7ce   : > { %24537 = vst [vmem:[#allocation67_spill] sm:$0xff] %v23561_v42  ;;  %v23563_v37 = vpop.f32.mrb[51].mxu0  ;;  %18266 = vmatprep.mubr.bf16.mxu1 %v24539_v50  ;;  %18295 = vmatpush3.bf16.msra.mxu1 %v23483_v58  ;;  %v19253_v58 = vld [vmem:[%s24285_s5 + $0x1a0] sm:$0xff]   ;;  %v19279_v49 = vld [vmem:[#allocation4 + $0xcc] sm:$0xff]  }
 0x7cf   : > { %24538 = vst [vmem:[#allocation68_spill] sm:$0xff] %v23563_v37  ;;  %18296 = vmatprep.subr.bf16.mxu1 %v19250_v0  ;;  %v19332_v37 = vld [vmem:[#allocation4 + $0x38] sm:$0x1] }
 0x7d2   : > { %18297 = vmatpush3.bf16.msra.mxu1 %v19250_v0 }
 0x7d3   : > { %18298 = vmatprep.subr.bf16.mxu1 %v19251_v6 }
 0x7d5   : > { %18267 = vmatmul.mubr.bf16.gmra.mrb[44].mxu1 %v24540_v32  ;;  %v24571_v32 = vld [vmem:[#allocation57_spill] sm:$0xff] }
 0x7d6   : > { %v23578_v11 = vpop.f32.mrb[52].mxu0  ;;  %18270 = vmatprep.mubr.bf16.mxu1 %v24542_v15  ;;  %18299 = vmatpush3.bf16.msra.mxu1 %v19251_v6  ;;  %v24572_v15 = vld [vmem:[#allocation58_spill] sm:$0xff] }
 0x7d7   : > { %24541 = vst [vmem:[#allocation69_spill] sm:$0xff] %v23578_v11  ;;  %v23583_v18 = vpop.f32.mrb[53].mxu0  ;;  %18300 = vmatprep.subr.bf16.mxu1 %v19252_v31 }
 0x7d8   : > { %24543 = vst [vmem:[#allocation70_spill] sm:$0xff] %v23583_v18  ;;  %v23588_v3 = vpop.f32.mrb[54].mxu0 }
 0x7d9   : > { %24544 = vst [vmem:[#allocation71_spill] sm:$0xff] %v23588_v3  ;;  %v23590_v10 = vpop.f32.mrb[55].mxu0 }
 0x7da   : > { %24545 = vst [vmem:[#allocation72_spill] sm:$0xff] %v23590_v10  ;;  %18301 = vmatpush3.bf16.msra.mxu1 %v19252_v31 }
 0x7db   : > { %18302 = vmatprep.subr.bf16.mxu1 %v19253_v58 }
 0x7dd   : > { %18271 = vmatmul.mubr.bf16.gmra.mrb[48].mxu1 %v24547_v28 }
 0x7de   : > { %18274 = vmatprep.mubr.bf16.mxu1 %v24550_v48  ;;  %18303 = vmatpush3.bf16.msra.mxu1 %v19253_v58  ;;  %v24573_v58 = vcombine.low %v24571_v32, %v24572_v15  ;;  %v24575_v48 = vcombine.low %v23368_v47, %v23372_v34  ;;  %v24579_v47 = vld [vmem:[#allocation59_spill] sm:$0xff] }
 0x7df   : > { %v23601_v21 = vpop.f32.mrb[56].mxu0  ;;  %18304 = vmatprep.subr.bf16.mxu1 %v19254_v52  ;;  %v24580_v34 = vcombine.low %v23412_v16, %v24579_v47  ;;  %v19267_v47 = vld [vmem:[#allocation4 + $0x6c] sm:$0xff]  }
 0x7e0   : > { %24551 = vst [vmem:[#allocation9_spill] sm:$0xff] %v23601_v21  ;;  %v23606_v44 = vpop.f32.mrb[57].mxu0 }
 0x7e1   : > { %24552 = vst [vmem:[#allocation43_spill] sm:$0xff] %v23606_v44  ;;  %v23608_v41 = vpop.f32.mrb[58].mxu0 }
 0x7e2   : > { %24553 = vst [vmem:[#allocation44_spill] sm:$0xff] %v23608_v41  ;;  %v23610_v35 = vpop.f32.mrb[59].mxu0  ;;  %18305 = vmatpush3.bf16.msra.mxu1 %v19254_v52  ;;  %v24574_v52 = vcombine.low %v23348_v43, %v23357_v22  ;;  %v19266_v22 = vld [vmem:[#allocation4 + $0x60] sm:$0xff]  }
 0x7e3   : > { %24554 = vst [vmem:[#allocation73_spill] sm:$0xff] %v23610_v35  ;;  %18306 = vmatprep.subr.bf16.mxu1 %v19255_v25  ;;  %v13757_v35 = vld [vmem:[#allocation4 + $0x30] sm:$0xf]  ;;  %v19329_v41 = vld [vmem:[#allocation4 + $0x20] sm:$0x1] }
 0x7e4   : > { %v13819_v44 = vshll.u32 %v19329_v41, 16  ;;  %v13848_v3 = vshrl.u32 %v13757_v35, 16  ;;  %v13851_v18 = vshll.u32 %v13757_v35, 16  ;;  %v19276_v41 = vld [vmem:[#allocation4 + $0xb4] sm:$0xff]  }
 0x7e5   : > { %18275 = vmatmul.mubr.bf16.gmra.mrb[52].mxu1 %v24557_v4 }
 0x7e6   : > { %18278 = vmatprep.mubr.bf16.mxu1 %v24560_v54  ;;  %18307 = vmatpush3.bf16.msra.mxu1 %v19255_v25  ;;  %v24576_v25 = vcombine.low %v23380_v9, %v23384_v51  ;;  %v13853_v35 = vrot.slane %v13851_v18, 5 }
 0x7e7   : > { %v23621_v40 = vpop.f32.mrb[60].mxu0  ;;  %18308 = vmatprep.subr.bf16.mxu1 %v19256_v53 }
 0x7e8   : > { %24561 = vst [vmem:[#allocation45_spill] sm:$0xff] %v23621_v40  ;;  %v23626_v29 = vpop.f32.mrb[61].mxu0 }
 0x7e9   : > { %24562 = vst [vmem:[#allocation47_spill] sm:$0xff] %v23626_v29  ;;  %v23628_v63 = vpop.f32.mrb[62].mxu0 }
 0x7ea   : > { %24563 = vst [vmem:[#allocation46_spill] sm:$0xff] %v23628_v63  ;;  %v23630_v57 = vpop.f32.mrb[63].mxu0  ;;  %18309 = vmatpush3.bf16.msra.mxu1 %v19256_v53  ;;  %v681_v53 = vld [vmem:[#allocation4 + $0xd4] sm:$0x1] }
 0x7eb   : > { %24564 = vst [vmem:[#allocation49_spill] sm:$0xff] %v23630_v57  ;;  %18342 = vmatprep.subr.bf16.mxu1 %v19259_v56  ;;  %v682_v43 = vsel %vm22193_vm2, 0, %v681_v53  ;;  %v19274_v53 = vld [vmem:[%s24285_s5 + $0x1e8] sm:$0xff]   ;;  %vm15595_vm2 = vcmask 1048512  }
 0x7ec   : > { %683 = vst [vmem:[#allocation4 + $0xd4] sm:$0x1] %v682_v43  ;;  %v23713_v43 = vld [vmem:[%s24289_s9] ss:$0 sm:$0xff]  ;;  %v19273_v57 = vld [vmem:[#allocation4 + $0x9c] sm:$0xff]  }
 0x7ed   : > { %18279 = vmatmul.mubr.bf16.gmra.mrb[56].mxu1 %v24567_v23  ;;  %v19262_v23 = vld [vmem:[%s24285_s5 + $0x1c8] sm:$0xff]   ;;  %15252 = vbcast.lane.b32.xlu1 %v23713_v43, 264 }
 0x7ee   : > { %18282 = vmatprep.mubr.bf16.mxu1 %v24570_v1  ;;  %15248 = vbcast.lane.b32.xlu0 %v23713_v43, 256 }
 0x7ef   : > { %v23638_v0 = vpop.f32.mrb[64].mxu0 }
 0x7f0   : > { %v23640_v50 = vpop.f32.mrb[65].mxu0 }
 0x7f1   : > { %v23642_v6 = vpop.f32.mrb[66].mxu0  ;;  %15256 = vbcast.lane.b32.xlu1 %v23713_v43, 272 }
 0x7f2   : > { %v23644_v31 = vpop.f32.mrb[67].mxu0  ;;  %15264 = vbcast.lane.b32.xlu0 %v23713_v43, 288 }
 0x7f5   : > { %18283 = vmatmul.mubr.bf16.gmra.mrb[60].mxu1 %v24573_v58  ;;  %v19261_v58 = vld [vmem:[#allocation4 + $0x3c] sm:$0xff]   ;;  %15260 = vbcast.lane.b32.xlu1 %v23713_v43, 280 }
 0x7f6   : > { %18286 = vmatprep.mubr.bf16.mxu1 %v24574_v52  ;;  %v19263_v52 = vld [vmem:[#allocation4 + $0x48] sm:$0xff]   ;;  %15272 = vbcast.lane.b32.xlu0 %v23713_v43, 304 }
 0x7f7   : > { %v23652_v33 = vpop.f32.mrb[68].mxu0 }
 0x7f8   : > { %v23654_v28 = vpop.f32.mrb[69].mxu0 }
 0x7f9   : > { %v23656_v5 = vpop.f32.mrb[70].mxu0  ;;  %15268 = vbcast.lane.b32.xlu1 %v23713_v43, 296 }
 0x7fa   : > { %v23658_v36 = vpop.f32.mrb[71].mxu0  ;;  %15280 = vbcast.lane.b32.xlu0 %v23713_v43, 320 }
 0x7fd   : > { %18287 = vmatmul.mubr.bf16.gmra.mrb[64].mxu1 %v24575_v48  ;;  %v19271_v48 = vld [vmem:[%s24285_s5 + $0x1e0] sm:$0xff]   ;;  %15276 = vbcast.lane.b32.xlu1 %v23713_v43, 312 }
 0x7fe   : > { %18290 = vmatprep.mubr.bf16.mxu1 %v24576_v25  ;;  %v19264_v25 = vld [vmem:[#allocation4 + $0x54] sm:$0xff]   ;;  %15288 = vbcast.lane.b32.xlu0 %v23713_v43, 336 }
 0x7ff   : > { %v23666_v60 = vpop.f32.mrb[72].mxu0 }
 0x800   : > { %v23670_v8 = vpop.f32.mrb[73].mxu0 }
 0x801   : > { %v23672_v4 = vpop.f32.mrb[74].mxu0  ;;  %15284 = vbcast.lane.b32.xlu1 %v23713_v43, 328 }
 0x802   : > { %v23674_v59 = vpop.f32.mrb[75].mxu0  ;;  %15296 = vbcast.lane.b32.xlu0 %v23713_v43, 352 }
 0x803   : > { %24578 = vst [vmem:[#allocation52_spill] sm:$0xff] %v23674_v59 }
 0x805   : > { %18291 = vmatmul.mubr.bf16.gmra.mrb[68].mxu1 %v24580_v34  ;;  %v19280_v34 = vld [vmem:[%s24285_s5 + $0x1f8] sm:$0xff]   ;;  %15292 = vbcast.lane.b32.xlu1 %v23713_v43, 344 }
 0x806   : > { %18310 = vmatprep.mubr.bf16.mxu1 %v19257_v26  ;;  %v19277_v26 = vld [vmem:[%s24285_s5 + $0x1f0] sm:$0xff]   ;;  %15304 = vbcast.lane.b32.xlu0 %v23713_v43, 368 }
 0x807   : > { %v23679_v9 = vpop.f32.mrb[76].mxu0 }
 0x808   : > { %24581 = vst [vmem:[#allocation53_spill] sm:$0xff] %v23679_v9  ;;  %v23681_v51 = vpop.f32.mrb[77].mxu0 }
 0x809   : > { %24582 = vst [vmem:[#allocation54_spill] sm:$0xff] %v23681_v51  ;;  %v23683_v54 = vpop.f32.mrb[78].mxu0  ;;  %15300 = vbcast.lane.b32.xlu1 %v23713_v43, 360  ;;  %v13796_v51 = vld [vmem:[#allocation4 + $0xcc] sm:$0xf] }
 0x80a   : > { %24583 = vst [vmem:[#allocation56_spill] sm:$0xff] %v23683_v54  ;;  %v23685_v45 = vpop.f32.mrb[79].mxu0 }
 0x80b   : > { %24584 = vst [vmem:[#allocation57_spill] sm:$0xff] %v23685_v45 }
 0x80d   : > { %18311 = vmatmul.mubr.bf16.vlgmr.msra.gmra.mrb[40].mxu1 %v19258_v14  ;;  %v19269_v14 = vld [vmem:[#allocation4 + $0x78] sm:$0xff]   ;;  %15308 = vbcast.lane.b32.xlu1 %v23713_v43, 376 }
 0x80e   : > { %18314 = vmatprep.mubr.bf16.mxu1 %v19260_v12  ;;  %18343 = vmatpush3.bf16.msra.mxu1 %v19259_v56  ;;  %v19268_v56 = vld [vmem:[%s24285_s5 + $0x1d8] sm:$0xff]   ;;  %v13751_v12 = vld [vmem:[#allocation4 + $0x18] sm:$0xf] }
 0x80f   : > { %v23690_v16 = vpop.f32.mrb[80].mxu0  ;;  %18344 = vmatprep.subr.bf16.mxu1 %v19262_v23 }
 0x810   : > { %24585 = vst [vmem:[#allocation58_spill] sm:$0xff] %v23690_v16  ;;  %v23695_v1 = vpop.f32.mrb[81].mxu0 }
 0x811   : > { %24586 = vst [vmem:[#allocation42_spill] sm:$0xff] %v23695_v1  ;;  %v23697_v32 = vpop.f32.mrb[82].mxu0  ;;  %v19333_v1 = vld [vmem:[#allocation4 + $0x4c] sm:$0xf] }
 0x812   : > { %24587 = vst [vmem:[#allocation59_spill] sm:$0xff] %v23697_v32  ;;  %v23699_v15 = vpop.f32.mrb[83].mxu0  ;;  %18345 = vmatpush3.bf16.msra.mxu1 %v19262_v23  ;;  %v19270_v23 = vld [vmem:[#allocation4 + $0x84] sm:$0xff]   ;;  %v13905_v42 = vshll.u32 %v19333_v1, 16 }
 0x813   : > { %24588 = vst [vmem:[#allocation74_spill] sm:$0xff] %v23699_v15  ;;  %18346 = vmatprep.subr.bf16.mxu1 %v19265_v19  ;;  %v13850_v15 = vrot.slane %v13848_v3, 4  ;;  %v13766_v3 = vld [vmem:[#allocation4 + $0x54] sm:$0xf] }
 0x814   : > { %v13923_v45 = vshll.u32 %v13766_v3, 16 }
 0x815   : > { %18315 = vmatmul.mubr.bf16.gmra.mrb[44].mxu1 %v19261_v58  ;;  %v19272_v58 = vld [vmem:[#allocation4 + $0x90] sm:$0xff]  }
 0x816   : > { %18318 = vmatprep.mubr.bf16.mxu1 %v19263_v52  ;;  %18347 = vmatpush3.bf16.msra.mxu1 %v19265_v19  ;;  %v23730_v19 = vld [vmem:[%s24285_s5 + $0x200] sm:$0xff]  }
 0x817   : > { %18348 = vmatprep.subr.bf16.mxu1 %v19268_v56 }
 0x81a   : > { %18349 = vmatpush3.bf16.msra.mxu1 %v19268_v56  ;;  %v19326_v56 = vld [vmem:[#allocation4 + $0x1c] sm:$0xf] }
 0x81b   : > { %18350 = vmatprep.subr.bf16.mxu1 %v19271_v48  ;;  %v13809_v52 = vshll.u32 %v19326_v56, 16 }
 0x81d   : > { %18319 = vmatmul.mubr.bf16.gmra.mrb[48].mxu1 %v19264_v25  ;;  %v13800_v25 = vshrl.u32 %v13751_v12, 16 }
 0x81e   : > { %18322 = vmatprep.mubr.bf16.mxu1 %v19266_v22  ;;  %18351 = vmatpush3.bf16.msra.mxu1 %v19271_v48  ;;  %v13813_v48 = vshrl.u32 %v19326_v56, 16  ;;  %v13754_v22 = vld [vmem:[#allocation4 + $0x24] sm:$0xf]  ;;  %v19327_v56 = vld [vmem:[#allocation4 + $0x28] sm:$0xf] }
 0x81f   : > { %18352 = vmatprep.subr.bf16.mxu1 %v19274_v53  ;;  %v13824_v63 = vshrl.u32 %v13754_v22, 16  ;;  %v13827_v29 = vshll.u32 %v13754_v22, 16  ;;  %v13837_v40 = vshrl.u32 %v19327_v56, 16 }
 0x821   : > { %v13826_v22 = vrot.slane %v13824_v63, 4  ;;  %v13829_v21 = vrot.slane %v13827_v29, 5  ;;  %v13821_v63 = vrot.slane %v13819_v44, 5 }
 0x822   : > { %18353 = vmatpush3.bf16.msra.mxu1 %v19274_v53  ;;  %v13803_v53 = vshll.u32 %v13751_v12, 16 }
 0x823   : > { %18354 = vmatprep.subr.bf16.mxu1 %v19277_v26  ;;  %v13830_v29 = vor.u32 %v13829_v21, %v13826_v22 }
 0x825   : > { %18323 = vmatmul.mubr.bf16.gmra.mrb[52].mxu1 %v19267_v47  ;;  %v13815_v47 = vrot.slane %v13813_v48, 4  ;;  %v19328_v48 = vld [vmem:[#allocation4 + $0x34] sm:$0xf]  ;;  %v13831_v18 = vrot.slane %v13830_v29, 4  ;;  %v13920_v29 = vshrl.u32 %v13766_v3, 16 }
 0x826   : > { %18326 = vmatprep.mubr.bf16.mxu1 %v19269_v14  ;;  %18355 = vmatpush3.bf16.msra.mxu1 %v19277_v26  ;;  %v23737_v26 = vrot.slane %v13809_v52, 5  ;;  %v13805_v14 = vrot.slane %v13803_v53, 5  ;;  %v13861_v53 = vshrl.u32 %v19328_v48, 16 }
 0x827   : > { %18356 = vmatprep.subr.bf16.mxu1 %v19280_v34 }
 0x828   : > { %v13816_v12 = vor.u32 %v13815_v47, %v23737_v26  ;;  %v13760_v47 = vld [vmem:[#allocation4 + $0x3c] sm:$0xf] }
 0x829   : > { %v13872_v32 = vshrl.u32 %v13760_v47, 16  ;;  %v13875_v22 = vshll.u32 %v13760_v47, 16 }
 0x82a   : > { %18357 = vmatpush3.bf16.msra.mxu1 %v19280_v34  ;;  %v13802_v34 = vrot.slane %v13800_v25, 4  ;;  %v13857_v25 = vshll.u32 %v19328_v48, 16  ;;  %v13863_v48 = vrot.slane %v13861_v53, 4 }
 0x82b   : > { %18438 = vmatprep.subr.bf16.mxu1 %v23730_v19  ;;  %v13874_v16 = vrot.slane %v13872_v32, 4  ;;  %v13877_v13 = vrot.slane %v13875_v22, 5 }
 0x82c   : > { %v13806_v52 = vor.u32 %v13805_v14, %v13802_v34  ;;  %v19330_v34 = vld [vmem:[#allocation4 + $0x2c] sm:$0x1]  ;;  %v23746_v11 = vrot.slane %v13857_v25, 5 }
 0x82d   : > { %18327 = vmatmul.mubr.bf16.gmra.mrb[56].mxu1 %v19270_v23  ;;  %v19275_v23 = vld [vmem:[#allocation4 + $0xa8] sm:$0xff]   ;;  %v13843_v14 = vshll.u32 %v19330_v34, 16  ;;  %v13878_v22 = vor.u32 %v13877_v13, %v13874_v16 }
 0x82e   : > { %18330 = vmatprep.mubr.bf16.mxu1 %v19272_v58  ;;  %v13833_v58 = vshll.u32 %v19327_v56, 16  ;;  %v13839_v56 = vrot.slane %v13837_v40, 4  ;;  %v13864_v53 = vor.u32 %v13863_v48, %v23746_v11 }
 0x82f   : > { %v13845_v44 = vrot.slane %v13843_v14, 5 }
 0x830   : > { %v23743_v10 = vrot.slane %v13833_v58, 5  ;;  %v19278_v58 = vld [vmem:[#allocation4 + $0xc0] sm:$0xff]   ;;  %v13865_v48 = vrot.slane %v13864_v53, 4 }
 0x832   : > { %v13840_v40 = vor.u32 %v13839_v56, %v23743_v10  ;;  %v13763_v56 = vld [vmem:[#allocation4 + $0x48] sm:$0xf] }
 0x833   : > { %v13896_v14 = vshrl.u32 %v13763_v56, 16  ;;  %v13899_v47 = vshll.u32 %v13763_v56, 16  ;;  %v13922_v56 = vrot.slane %v13920_v29, 4  ;;  %v13879_v29 = vrot.slane %v13878_v22, 4 }
 0x835   : > { %18331 = vmatmul.mubr.bf16.gmra.mrb[60].mxu1 %v19273_v57  ;;  %v13817_v57 = vrot.slane %v13816_v12, 4 }
 0x836   : > { %18334 = vmatprep.mubr.bf16.mxu1 %v19275_v23  ;;  %v13807_v23 = vrot.slane %v13806_v52, 4  ;;  %v19331_v52 = vld [vmem:[#allocation4 + $0x40] sm:$0xf] }
 0x837   : > { %v13822_v12 = vsel %vm19581_vm12, %v13817_v57, %v13821_v63  ;;  %v13881_v34 = vshll.u32 %v19331_v52, 16  ;;  %v13885_v25 = vshrl.u32 %v19331_v52, 16  ;;  %v13909_v57 = vshrl.u32 %v19333_v1, 16  ;;  %v19334_v1 = vld [vmem:[#allocation4 + $0x58] sm:$0xf] }
 0x838   : > { %v13812_v21 = vsel %vm19581_vm12, %v13807_v23, %v23737_v26  ;;  %v13854_v52 = vor.u32 %v13853_v35, %v13850_v15  ;;  %v13929_v39 = vshll.u32 %v19334_v1, 16  ;;  %v13933_v43 = vshrl.u32 %v19334_v1, 16  ;;  %v19335_v35 = vld [vmem:[#allocation4 + $0x44] sm:$0x1] }
 0x839   : > { %v16865_v63 = vcombine.low %v13812_v21, %v13822_v12  ;;  %v23757_v26 = vrot.slane %v13881_v34, 5  ;;  %v13887_v23 = vrot.slane %v13885_v25, 4  ;;  %v13911_v54 = vrot.slane %v13909_v57, 4 }
 0x83a   : > { %v13855_v32 = vrot.slane %v13854_v52, 4  ;;  %v13891_v12 = vshll.u32 %v19335_v35, 16  ;;  %v13836_v34 = vsel %vm19581_vm12, %v13831_v18, %v23743_v10  ;;  %v13901_v21 = vrot.slane %v13899_v47, 5  ;;  %v19336_v52 = vld [vmem:[#allocation4 + $0x64] sm:$0xf] }
 0x83b   : > { %v13888_v25 = vor.u32 %v13887_v23, %v23757_v26  ;;  %v23770_v57 = vrot.slane %v13929_v39, 5  ;;  %v13957_v23 = vshrl.u32 %v19336_v52, 16 }
 0x83c   : > { %v13860_v10 = vsel %vm19581_vm12, %v13855_v32, %v23746_v11  ;;  %v13893_v18 = vrot.slane %v13891_v12, 5  ;;  %v19338_v12 = vld [vmem:[#allocation4 + $0x70] sm:$0xf] }
 0x83d   : > { %18335 = vmatmul.mubr.bf16.gmra.mrb[64].mxu1 %v19276_v41  ;;  %v13867_v41 = vshll.u32 %v19332_v37, 16  ;;  %v23759_v37 = vrot.slane %v13905_v42, 5  ;;  %v13898_v42 = vrot.slane %v13896_v14, 4  ;;  %v13772_v14 = vld [vmem:[#allocation4 + $0x6c] sm:$0xf]  ;;  %v13889_v13 = vrot.slane %v13888_v25, 4 }
 0x83e   : > { %18338 = vmatprep.mubr.bf16.mxu1 %v19278_v58  ;;  %v13841_v58 = vrot.slane %v13840_v40, 4  ;;  %v13971_v35 = vshll.u32 %v13772_v14, 16  ;;  %v13959_v32 = vrot.slane %v13957_v23, 4 }
 0x83f   : > { %v13869_v40 = vrot.slane %v13867_v41, 5  ;;  %v13912_v41 = vor.u32 %v13911_v54, %v23759_v37  ;;  %v13902_v16 = vor.u32 %v13901_v21, %v13898_v42  ;;  %v13894_v25 = vsel %vm19581_vm12, %v13889_v13, %v13893_v18 }
 0x840   : > { %v13846_v15 = vsel %vm19581_vm12, %v13841_v58, %v13845_v44  ;;  %v13925_v44 = vrot.slane %v13923_v45, 5  ;;  %v13769_v58 = vld [vmem:[#allocation4 + $0x60] sm:$0xf]  ;;  %v19337_v45 = vld [vmem:[#allocation4 + $0x50] sm:$0x1] }
 0x841   : > { %v13870_v53 = vsel %vm19581_vm12, %v13865_v48, %v13869_v40  ;;  %v16866_v3 = vcombine.low %v13836_v34, %v13846_v15  ;;  %v13915_v48 = vshll.u32 %v19337_v45, 16  ;;  %v13944_v39 = vshrl.u32 %v13769_v58, 16  ;;  %v19341_v45 = vld [vmem:[#allocation4 + $0x7c] sm:$0xf] }
 0x842   : > { %v16867_v47 = vcombine.low %v13860_v10, %v13870_v53  ;;  %v13926_v54 = vor.u32 %v13925_v44, %v13922_v56  ;;  %v13947_v1 = vshll.u32 %v13769_v58, 16  ;;  %v13968_v40 = vshrl.u32 %v13772_v14, 16  ;;  %v19339_v53 = vld [vmem:[#allocation4 + $0x5c] sm:$0x1] }
 0x843   : > { %v13977_v34 = vshll.u32 %v19338_v12, 16  ;;  %v13903_v42 = vrot.slane %v13902_v16, 4  ;;  %v13917_v21 = vrot.slane %v13915_v48, 5  ;;  %v13939_v22 = vshll.u32 %v19339_v53, 16  ;;  %v23804_v53 = vld [vmem:[#allocation4 + $0x94] sm:$0xf] }
 0x844   : > { %v13884_v56 = vsel %vm19581_vm12, %v13879_v29, %v23757_v26  ;;  %v13927_v44 = vrot.slane %v13926_v54, 4  ;;  %v13970_v18 = vrot.slane %v13968_v40, 4  ;;  %v14001_v48 = vshll.u32 %v19341_v45, 16  ;;  %v13778_v40 = vld [vmem:[#allocation4 + $0x84] sm:$0xf] }
 0x845   : > { %18339 = vmatmul.mubr.bf16.gmra.mrb[68].mxu1 %v19279_v49  ;;  %v13935_v49 = vrot.slane %v13933_v43, 4  ;;  %v13913_v43 = vrot.slane %v13912_v41, 4  ;;  %v13946_v41 = vrot.slane %v13944_v39, 4  ;;  %v16868_v23 = vcombine.low %v13884_v56, %v13894_v25 }
 0x846   : > { %18358 = vmatprep.mubr.bf16.mxu1 %v16865_v63  ;;  %v13953_v63 = vshll.u32 %v19336_v52, 16  ;;  %v13981_v52 = vshrl.u32 %v19338_v12, 16  ;;  %v23790_v14 = vrot.slane %v13977_v34, 5  ;;  %v13908_v13 = vsel %vm19581_vm12, %v13903_v42, %v23759_v37  ;;  %v19343_v37 = vld [vmem:[%s24285_s5 + $0x210] sm:$0xff]  }
 0x847   : > { %v13936_v15 = vor.u32 %v13935_v49, %v23770_v57  ;;  %v13949_v49 = vrot.slane %v13947_v1, 5  ;;  %v13918_v58 = vsel %vm19581_vm12, %v13913_v43, %v13917_v21  ;;  %v13941_v16 = vrot.slane %v13939_v22, 5  ;;  %v19342_v43 = vld [vmem:[#allocation4 + $0x68] sm:$0x1] }
 0x848   : > { %v23776_v11 = vrot.slane %v13953_v63, 5  ;;  %v13973_v63 = vrot.slane %v13971_v35, 5  ;;  %v13983_v26 = vrot.slane %v13981_v52, 4  ;;  %v14005_v29 = vshrl.u32 %v19341_v45, 16  ;;  %v19344_v42 = vld [vmem:[#allocation4 + $0x88] sm:$0xf] }
 0x849   : > { %v13937_v10 = vrot.slane %v13936_v15, 4  ;;  %v16869_v54 = vcombine.low %v13908_v13, %v13918_v58  ;;  %v13932_v39 = vsel %vm19581_vm12, %v13927_v44, %v23770_v57  ;;  %v13950_v1 = vor.u32 %v13949_v49, %v13946_v41 }
 0x84a   : > { %v13963_v15 = vshll.u32 %v19342_v43, 16  ;;  %v13984_v25 = vor.u32 %v13983_v26, %v23790_v14  ;;  %v14025_v57 = vshll.u32 %v19344_v42, 16  ;;  %v14029_v21 = vshrl.u32 %v19344_v42, 16 }
 0x84b   : > { %v13942_v35 = vsel %vm19581_vm12, %v13937_v10, %v13941_v16  ;;  %v23806_v22 = vrot.slane %v14001_v48, 5  ;;  %v14007_v56 = vrot.slane %v14005_v29, 4  ;;  %v14016_v44 = vshrl.u32 %v13778_v40, 16  ;;  %v19345_v10 = vld [vmem:[#allocation4 + $0x74] sm:$0x1] }
 0x84c   : > { %v14019_v41 = vshll.u32 %v13778_v40, 16  ;;  %v16870_v49 = vcombine.low %v13932_v39, %v13942_v35  ;;  %v13965_v58 = vrot.slane %v13963_v15, 5  ;;  %v14053_v13 = vshrl.u32 %v23804_v53, 16 }
 0x84d   : > { %18359 = vmatmul.mubr.bf16.vlgmr.msra.gmra.mrb[40].mxu1 %v16866_v3  ;;  %v19340_v3 = vld [vmem:[%s24285_s5 + $0x208] sm:$0xff]   ;;  %v13985_v45 = vrot.slane %v13984_v25, 4  ;;  %v23813_v48 = vrot.slane %v14025_v57, 5  ;;  %v14031_v29 = vrot.slane %v14029_v21, 4  ;;  %v14008_v39 = vor.u32 %v14007_v56, %v23806_v22  ;;  %v19348_v25 = vld [vmem:[%s24285_s5 + $0x220] sm:$0xff]  }
 0x84e   : > { %18362 = vmatprep.mubr.bf16.mxu1 %v16867_v47  ;;  %18446 = vmatpush3.bf16.msra.mxu1 %v23730_v19  ;;  %v13960_v19 = vor.u32 %v13959_v32, %v23776_v11  ;;  %v13775_v47 = vld [vmem:[#allocation4 + $0x78] sm:$0xf]  ;;  %v13974_v32 = vor.u32 %v13973_v63, %v13970_v18  ;;  %v13987_v18 = vshll.u32 %v19345_v10, 16  ;;  %v19346_v63 = vld [vmem:[%s24285_s5 + $0x218] sm:$0xff]   ;;  %v14021_v43 = vrot.slane %v14019_v41, 5 }
 0x84f   : > { %18439 = vmatprep.subr.bf16.mxu1 %v19340_v3  ;;  %v13992_v12 = vshrl.u32 %v13775_v47, 16  ;;  %v13995_v34 = vshll.u32 %v13775_v47, 16  ;;  %v14049_v47 = vshll.u32 %v23804_v53, 16  ;;  %v14055_v42 = vrot.slane %v14053_v13, 4  ;;  %v13784_v57 = vld [vmem:[#allocation4 + $0x9c] sm:$0xf] }
 0x850   : > { %v13961_v52 = vrot.slane %v13960_v19, 4  ;;  %v13975_v16 = vrot.slane %v13974_v32, 4  ;;  %v13989_v40 = vrot.slane %v13987_v18, 5  ;;  %v14032_v56 = vor.u32 %v14031_v29, %v23813_v48  ;;  %v23832_v18 = vld [vmem:[#allocation4 + $0x98] sm:$0x1] }
 0x851   : > { %v13994_v19 = vrot.slane %v13992_v12, 4  ;;  %v13997_v26 = vrot.slane %v13995_v34, 5  ;;  %v19347_v12 = vld [vmem:[#allocation4 + $0x80] sm:$0x1]  ;;  %v23836_v13 = vld [vmem:[#allocation4 + $0xac] sm:$0xf] }
 0x852   : > { %18447 = vmatpush3.bf16.msra.mxu1 %v19340_v3  ;;  %v13951_v3 = vrot.slane %v13950_v1, 4  ;;  %v14018_v1 = vrot.slane %v14016_v44, 4  ;;  %v14011_v34 = vshll.u32 %v19347_v12, 16  ;;  %v19349_v44 = vld [vmem:[#allocation4 + $0x8c] sm:$0x1] }
 0x853   : > { %18440 = vmatprep.subr.bf16.mxu1 %v19343_v37  ;;  %v13998_v32 = vor.u32 %v13997_v26, %v13994_v19  ;;  %v14035_v41 = vshll.u32 %v19349_v44, 16 }
 0x854   : > { %v13956_v15 = vsel %vm19581_vm12, %v13951_v3, %v23776_v11  ;;  %v13990_v11 = vsel %vm19581_vm12, %v13985_v45, %v13989_v40  ;;  %v13980_v3 = vsel %vm19581_vm12, %v13975_v16, %v23790_v14  ;;  %v14022_v10 = vor.u32 %v14021_v43, %v14018_v1  ;;  %v19350_v14 = vld [vmem:[%s24285_s5 + $0x228] sm:$0xff]  }
 0x855   : > { %18363 = vmatmul.mubr.bf16.gmra.mrb[44].mxu1 %v16868_v23  ;;  %v13781_v23 = vld [vmem:[#allocation4 + $0x90] sm:$0xf]  ;;  %v16872_v45 = vcombine.low %v13980_v3, %v13990_v11  ;;  %v14013_v29 = vrot.slane %v14011_v34, 5  ;;  %v14033_v16 = vrot.slane %v14032_v56, 4  ;;  %v23852_v11 = vld [vmem:[#allocation4 + $0xa4] sm:$0x1] }
 0x856   : > { %18366 = vmatprep.mubr.bf16.mxu1 %v16869_v54  ;;  %18448 = vmatpush3.bf16.msra.mxu1 %v19343_v37  ;;  %v13966_v54 = vsel %vm19581_vm12, %v13961_v52, %v13965_v58  ;;  %v14040_v35 = vshrl.u32 %v13781_v23, 16  ;;  %v14043_v37 = vshll.u32 %v13781_v23, 16  ;;  %v23824_v52 = vrot.slane %v14049_v47, 5 }
 0x857   : > { %18441 = vmatprep.subr.bf16.mxu1 %v19346_v63  ;;  %v16871_v21 = vcombine.low %v13956_v15, %v13966_v54  ;;  %v14009_v58 = vrot.slane %v14008_v39, 4  ;;  %v14064_v23 = vshrl.u32 %v13784_v57, 16  ;;  %v14067_v47 = vshll.u32 %v13784_v57, 16  ;;  %v13787_v15 = vld [vmem:[#allocation4 + $0xa8] sm:$0xf] }
 0x858   : > { %v14042_v19 = vrot.slane %v14040_v35, 4  ;;  %v14045_v26 = vrot.slane %v14043_v37, 5  ;;  %v14056_v54 = vor.u32 %v14055_v42, %v23824_v52  ;;  %v14037_v39 = vrot.slane %v14035_v41, 5  ;;  %v19351_v41 = vld [vmem:[%s24285_s5 + $0x230] sm:$0xff]  }
 0x859   : > { %v14014_v40 = vsel %vm19581_vm12, %v14009_v58, %v14013_v29  ;;  %v14059_v35 = vshll.u32 %v23832_v18, 16  ;;  %v14097_v37 = vshll.u32 %v23836_v13, 16  ;;  %v14023_v12 = vrot.slane %v14022_v10, 4 }
 0x85a   : > { %18449 = vmatpush3.bf16.msra.mxu1 %v19346_v63  ;;  %v23834_v63 = vld [vmem:[#allocation4 + $0xa0] sm:$0xf]  ;;  %v14046_v34 = vor.u32 %v14045_v26, %v14042_v19  ;;  %v14069_v42 = vrot.slane %v14067_v47, 5  ;;  %v14088_v56 = vshrl.u32 %v13787_v15, 16  ;;  %v14091_v44 = vshll.u32 %v13787_v15, 16 }
 0x85b   : > { %18442 = vmatprep.subr.bf16.mxu1 %v19348_v25  ;;  %v14073_v1 = vshll.u32 %v23834_v63, 16  ;;  %v14077_v43 = vshrl.u32 %v23834_v63, 16  ;;  %v14038_v58 = vsel %vm19581_vm12, %v14033_v16, %v14037_v39  ;;  %v13790_v26 = vld [vmem:[#allocation4 + $0xb4] sm:$0xf]  ;;  %v14028_v29 = vsel %vm19581_vm12, %v14023_v12, %v23813_v48  ;;  %v23869_v39 = vld [vmem:[#allocation4 + $0xc4] sm:$0xf] }
 0x85c   : > { %v14083_v16 = vshll.u32 %v23852_v11, 16  ;;  %v14090_v15 = vrot.slane %v14088_v56, 4 }
 0x85d   : > { %18367 = vmatmul.mubr.bf16.gmra.mrb[48].mxu1 %v16870_v49  ;;  %v13999_v49 = vrot.slane %v13998_v32, 4  ;;  %v14101_v32 = vshrl.u32 %v23836_v13, 16  ;;  %v23859_v10 = vrot.slane %v14073_v1, 5  ;;  %v14079_v19 = vrot.slane %v14077_v43, 4  ;;  %v23873_v43 = vld [vmem:[#allocation4 + $0xb0] sm:$0x1] }
 0x85e   : > { %18370 = vmatprep.mubr.bf16.mxu1 %v16871_v21  ;;  %18450 = vmatpush3.bf16.msra.mxu1 %v19348_v25  ;;  %v14066_v25 = vrot.slane %v14064_v23, 4  ;;  %v14057_v21 = vrot.slane %v14056_v54, 4  ;;  %v23861_v23 = vrot.slane %v14097_v37, 5  ;;  %v14047_v54 = vrot.slane %v14046_v34, 4  ;;  %v13793_v34 = vld [vmem:[#allocation4 + $0xc0] sm:$0xf] }
 0x85f   : > { %18443 = vmatprep.subr.bf16.mxu1 %v19350_v14  ;;  %v14004_v57 = vsel %vm19581_vm12, %v13999_v49, %v23806_v22  ;;  %v14061_v22 = vrot.slane %v14059_v35, 5  ;;  %v14103_v47 = vrot.slane %v14101_v32, 4  ;;  %v23863_v49 = vld [vmem:[#allocation4 + $0xb8] sm:$0xf]  ;;  %v16874_v1 = vcombine.low %v14028_v29, %v14038_v58  ;;  %v19352_v35 = vld [vmem:[%s24285_s5 + $0x238] sm:$0xff]  }
 0x860   : > { %v16873_v3 = vcombine.low %v14004_v57, %v14014_v40  ;;  %v14093_v40 = vrot.slane %v14091_v44, 5  ;;  %v14080_v48 = vor.u32 %v14079_v19, %v23859_v10  ;;  %v14112_v37 = vshrl.u32 %v13790_v26, 16 }
 0x861   : > { %v14121_v32 = vshll.u32 %v23863_v49, 16  ;;  %v14125_v12 = vshrl.u32 %v23863_v49, 16  ;;  %v14145_v57 = vshll.u32 %v23869_v39, 16  ;;  %v14052_v56 = vsel %vm19581_vm12, %v14047_v54, %v23824_v52 }
 0x862   : > { %18451 = vmatpush3.bf16.msra.mxu1 %v19350_v14  ;;  %v14070_v14 = vor.u32 %v14069_v42, %v14066_v25  ;;  %v14104_v25 = vor.u32 %v14103_v47, %v23861_v23  ;;  %v14115_v42 = vshll.u32 %v13790_v26, 16  ;;  %v14094_v19 = vor.u32 %v14093_v40, %v14090_v15  ;;  %v23888_v47 = vld [vmem:[#allocation4 + $0xd0] sm:$0xf] }
 0x863   : > { %18444 = vmatprep.subr.bf16.mxu1 %v19351_v41  ;;  %v14139_v29 = vshll.u32 %v13793_v34, 16  ;;  %v14081_v26 = vrot.slane %v14080_v48, 4  ;;  %v14114_v30 = vrot.slane %v14112_v37, 4  ;;  %v14123_v9 = vrot.slane %v14121_v32, 5 }
 0x864   : > { %v14071_v44 = vrot.slane %v14070_v14, 4  ;;  %v14127_v27 = vrot.slane %v14125_v12, 4  ;;  %v14105_v38 = vrot.slane %v14104_v25, 4  ;;  %v14117_v59 = vrot.slane %v14115_v42, 5  ;;  %v23890_v14 = vld [vmem:[#allocation4 + $0xbc] sm:$0x1] }
 0x865   : > { %18371 = vmatmul.mubr.bf16.gmra.mrb[52].mxu1 %v16872_v45  ;;  %v14062_v45 = vsel %vm19581_vm12, %v14057_v21, %v14061_v22  ;;  %v14149_v21 = vshrl.u32 %v23869_v39, 16  ;;  %v14136_v22 = vshrl.u32 %v13793_v34, 16  ;;  %v14147_v52 = vrot.slane %v14145_v57, 5  ;;  %v23899_v25 = vld [vmem:[#allocation4 + $0xc8] sm:$0x1] }
 0x866   : > { %18374 = vmatprep.mubr.bf16.mxu1 %v16873_v3  ;;  %18452 = vmatpush3.bf16.msra.mxu1 %v19351_v41  ;;  %v14085_v41 = vrot.slane %v14083_v16, 5  ;;  %v14107_v3 = vshll.u32 %v23873_v43, 16  ;;  %v16875_v58 = vcombine.low %v14052_v56, %v14062_v45  ;;  %v14160_v16 = vshrl.u32 %v13796_v51, 16 }
 0x867   : > { %18445 = vmatprep.subr.bf16.mxu1 %v19352_v35  ;;  %v14151_v54 = vrot.slane %v14149_v21, 4  ;;  %v14163_v45 = vshll.u32 %v13796_v51, 16  ;;  %v14169_v15 = vshll.u32 %v23888_v47, 16  ;;  %v14173_v40 = vshrl.u32 %v23888_v47, 16 }
 0x868   : > { %v14109_v34 = vrot.slane %v14107_v3, 5  ;;  %v14138_v48 = vrot.slane %v14136_v22, 4  ;;  %v14141_v37 = vrot.slane %v14139_v29, 5  ;;  %v14086_v32 = vsel %vm19581_vm12, %v14081_v26, %v14085_v41  ;;  %v23908_v41 = vld [vmem:[#allocation4 + $0xd4] sm:$0x1] }
 0x869   : > { %v14128_v12 = vor.u32 %v14127_v27, %v14123_v9  ;;  %v14118_v42 = vor.u32 %v14117_v59, %v14114_v30  ;;  %v14131_v57 = vshll.u32 %v23890_v14, 16  ;;  %v14152_v21 = vor.u32 %v14151_v54, %v14147_v52 }
 0x86a   : > { %18453 = vmatpush3.bf16.msra.mxu1 %v19352_v35  ;;  %v14095_v35 = vrot.slane %v14094_v19, 4  ;;  %v14110_v51 = vsel %vm19581_vm12, %v14105_v38, %v14109_v34  ;;  %v14162_v56 = vrot.slane %v14160_v16, 4  ;;  %v14165_v3 = vrot.slane %v14163_v45, 5 }
 0x86b   : > { %v14175_v19 = vrot.slane %v14173_v40, 4  ;;  %v14155_v27 = vshll.u32 %v23899_v25, 16  ;;  %v14129_v38 = vrot.slane %v14128_v12, 4  ;;  %v14133_v30 = vrot.slane %v14131_v57, 5 }
 0x86c   : > { %v14153_v59 = vrot.slane %v14152_v21, 4  ;;  %v14119_v26 = vrot.slane %v14118_v42, 4  ;;  %v14166_v54 = vor.u32 %v14165_v3, %v14162_v56  ;;  %v14179_v45 = vshll.u32 %v23908_v41, 16  ;;  %v14515_v56 = vld [vmem:[#allocation4 + $0x90] sm:$0xe] }
 0x86d   : > { %18375 = vmatmul.mubr.bf16.gmra.mrb[56].mxu1 %v16874_v1  ;;  %v14076_v1 = vsel %vm19581_vm12, %v14071_v44, %v23859_v10  ;;  %v14100_v10 = vsel %vm19581_vm12, %v14095_v35, %v23861_v23  ;;  %v14142_v44 = vor.u32 %v14141_v37, %v14138_v48  ;;  %v14157_v40 = vrot.slane %v14155_v27, 5 }
 0x86e   : > { %18378 = vmatprep.mubr.bf16.mxu1 %v16875_v58  ;;  %v14171_v58 = vrot.slane %v14169_v15, 5  ;;  %v16876_v22 = vcombine.low %v14076_v1, %v14086_v32  ;;  %v16877_v29 = vcombine.low %v14100_v10, %v14110_v51  ;;  %v14134_v23 = vsel %vm19581_vm12, %v14129_v38, %v14133_v30 }
 0x86f   : > { %v14143_v15 = vrot.slane %v14142_v44, 4  ;;  %v14158_v35 = vsel %vm19581_vm12, %v14153_v59, %v14157_v40  ;;  %v14641_v34 = vrot.slane %v23804_v53, 5  ;;  %v14124_v48 = vsel %vm19581_vm12, %v14119_v26, %v14123_v9 }
 0x870   : > { %v14176_v16 = vor.u32 %v14175_v19, %v14171_v58  ;;  %v14167_v37 = vrot.slane %v14166_v54, 4  ;;  %v14181_v32 = vrot.slane %v14179_v45, 5  ;;  %v16878_v12 = vcombine.low %v14124_v48, %v14134_v23  ;;  %v14518_v23 = vld [vmem:[#allocation4 + $0xb4] sm:$0xe] }
 0x871   : > { %v14148_v51 = vsel %vm19581_vm12, %v14143_v15, %v14147_v52  ;;  %v14643_v57 = vrot.slane %v14641_v34, 4  ;;  %v14644_v9 = vrot.slane %v23832_v18, 5  ;;  %v14648_v3 = vrot.slane %v23834_v63, 5  ;;  %v14517_v18 = vld [vmem:[#allocation4 + $0xa8] sm:$0xe] }
 0x872   : > { %v14177_v1 = vrot.slane %v14176_v16, 4  ;;  %v16879_v42 = vcombine.low %v14148_v51, %v14158_v35  ;;  %v14172_v21 = vsel %vm19581_vm12, %v14167_v37, %v14171_v58  ;;  %v14655_v10 = vrot.slane %v23836_v13, 5  ;;  %v14520_v37 = vld [vmem:[#allocation4 + $0xcc] sm:$0xe] }
 0x873   : > { %v14645_v52 = vsel %vm19956_vm1, %v14643_v57, %v14644_v9  ;;  %v14650_v27 = vrot.slane %v14648_v3, 4  ;;  %v14651_v38 = vrot.slane %v23852_v11, 5  ;;  %v14658_v63 = vrot.slane %v23873_v43, 5 }
 0x874   : > { %v14182_v53 = vsel %vm19581_vm12, %v14177_v1, %v14181_v32  ;;  %v16900_v30 = vrot.slane %v14516_v55, 9  ;;  %v14662_v13 = vrot.slane %v23863_v49, 5  ;;  %v16901_v26 = vrot.slane %v14517_v18, 9 }
 0x875   : > { %18379 = vmatmul.mubr.bf16.gmra.mrb[60].mxu1 %v16876_v22  ;;  %v16880_v19 = vcombine.low %v14172_v21, %v14182_v53  ;;  %v16899_v22 = vrot.slane %v14515_v56, 9  ;;  %v14652_v59 = vsel %vm19956_vm1, %v14650_v27, %v14651_v38  ;;  %v14669_v16 = vrot.slane %v23869_v39, 5 }
 0x876   : > { %18382 = vmatprep.mubr.bf16.mxu1 %v16877_v29  ;;  %v14657_v29 = vrot.slane %v14655_v10, 4  ;;  %v14649_v45 = vsel %vm19956_vm1, %v16900_v30, %v14648_v3  ;;  %v14656_v15 = vsel %vm19956_vm1, %v16901_v26, %v14655_v10  ;;  %v14664_v40 = vrot.slane %v14662_v13, 4 }
 0x877   : > { %v14642_v44 = vsel %vm19956_vm1, %v16899_v22, %v14641_v34  ;;  %v16932_v11 = vcombine.low %v14649_v45, %v14652_v59  ;;  %v14671_v35 = vrot.slane %v14669_v16, 4  ;;  %v14665_v49 = vrot.slane %v23890_v14, 5  ;;  %v14519_v34 = vld [vmem:[#allocation4 + $0xc0] sm:$0xe] }
 0x878   : > { %v16931_v58 = vcombine.low %v14642_v44, %v14645_v52  ;;  %v14659_v54 = vsel %vm19956_vm1, %v14657_v29, %v14658_v63  ;;  %v14676_v48 = vrot.slane %v23888_v47, 5  ;;  %v14672_v39 = vrot.slane %v23899_v25, 5  ;;  %v24589_v22 = vld [vmem:[#allocation48_spill] sm:$0xff]  ;;  %v24590_v44 = vld [vmem:[#allocation50_spill] sm:$0xff]  ;;  %v24591_v29 = vld [vmem:[#allocation51_spill] sm:$0xff] }
 0x879   : > { %v16933_v43 = vcombine.low %v14656_v15, %v14659_v54  ;;  %v16902_v1 = vrot.slane %v14518_v23, 9  ;;  %v14666_v32 = vsel %vm19956_vm1, %v14664_v40, %v14665_v49  ;;  %v16904_v57 = vrot.slane %v14520_v37, 9  ;;  %v24592_v63 = vld [vmem:[#allocation55_spill] sm:$0xff]  ;;  %v24593_v23 = vld [vmem:[#allocation20_spill] sm:$0xff] }
 0x87a   : > { %v14673_v51 = vsel %vm19956_vm1, %v14671_v35, %v14672_v39  ;;  %v14678_v21 = vrot.slane %v14676_v48, 4  ;;  %v14679_v14 = vrot.slane %v23908_v41, 5  ;;  %v23963_v41 = vld [vmem:[%s24286_s6] ss:$0 sm:$0xff]  ;;  %vm15518_vm12 = vcmask 326912  }
 0x87b   : > { %v14677_v56 = vsel %vm19956_vm1, %v16904_v57, %v14676_v48  ;;  %v24594_v48 = vld [vmem:[#allocation21_spill] sm:$0xff]  ;;  %v24596_v57 = vld [vmem:[#allocation60_spill] sm:$0xff] }
 0x87c   : > { %v14680_v9 = vsel %vm19956_vm1, %v14678_v21, %v14679_v14 }
 0x87d   : > { %18383 = vmatmul.mubr.bf16.gmra.mrb[64].mxu1 %v16878_v12  ;;  %v16903_v12 = vrot.slane %v14519_v34, 9  ;;  %v16936_v3 = vcombine.low %v14677_v56, %v14680_v9 }
 0x87e   : > { %18386 = vmatprep.mubr.bf16.mxu1 %v16879_v42  ;;  %v14663_v42 = vsel %vm19956_vm1, %v16902_v1, %v14662_v13 }
 0x87f   : > { %v16934_v53 = vcombine.low %v14663_v42, %v14666_v32  ;;  %v14670_v47 = vsel %vm19956_vm1, %v16903_v12, %v14669_v16  ;;  %vm15525_vm1 = vcmask 392512  }
 0x880   : > { %v16935_v25 = vcombine.low %v14670_v47, %v14673_v51  ;;  %v24595_v51 = vld [vmem:[#allocation10_spill] sm:$0xff] }
 0x885   : > { %18387 = vmatmul.mubr.bf16.gmra.mrb[68].mxu1 %v16880_v19 }
 0x886   : > { %18426 = vmatprep.mubr.bf16.mxu1 %v16931_v58 }
 0x88d   : > { %18427 = vmatmul.mubr.bf16.vlgmr.msra.gmra.mrb[60].mxu1 %v16932_v11 }
 0x88e   : > { %18430 = vmatprep.mubr.bf16.mxu1 %v16933_v43 }
 0x895   : > { %18431 = vmatmul.mubr.bf16.gmra.mrb[64].mxu1 %v16934_v53  ;;  %v24597_v53 = vld [vmem:[#allocation11_spill] sm:$0xff] }
 0x896   : > { %18434 = vmatprep.mubr.bf16.mxu1 %v16935_v25 }
 0x89d   : > { %18435 = vmatmul.mubr.bf16.gmra.mrb[68].mxu1 %v16936_v3 }
 0x920   : > { %v18360_v19 = vpop.f32.mrb[40].mxu1 }
 0x921   : > { %v18454_v52 = vadd.f32 %v18360_v19, %v24589_v22  ;;  %v14346_v10 = vpop.f32.mrb[41].mxu1 }
 0x922   : > { %v18456_v27 = vadd.f32 %v14346_v10, %v24590_v44  ;;  %v18361_v58 = vpop.f32.mrb[42].mxu1 }
 0x923   : > { %v18455_v55 = vadd.f32 %v18454_v52, %v23638_v0  ;;  %v18458_v38 = vadd.f32 %v18361_v58, %v24591_v29  ;;  %v14349_v20 = vpop.f32.mrb[43].mxu1 }
 0x924   : > { %v18457_v18 = vadd.f32 %v18456_v27, %v23640_v50  ;;  %v18460_v30 = vadd.f32 %v14349_v20, %v24592_v63  ;;  %v23979_v50 = vld [vmem:[%s24288_s8] ss:$0 sm:$0xff] }
 0x925   : > { %v15012_v59 = vadd.f32 %v18455_v55, %v23963_v41  ;;  %v18459_v13 = vadd.f32 %v18458_v38, %v23642_v6 }
 0x926   : > { %v15010_v26 = vadd.f32 %v18457_v18, %v23963_v41  ;;  %v18461_v54 = vadd.f32 %v18460_v30, %v23644_v31  ;;  %v24599_v30 = vld [vmem:[#allocation13_spill] sm:$0xff] }
 0x927   : > { %v15044_v16 = vmax.f32 %v15012_v59, 0.0  ;;  %v15013_v45 = vadd.f32 %v18459_v13, %v23963_v41 }
 0x928   : > { %v15042_v11 = vmax.f32 %v15010_v26, 0.0  ;;  %v15011_v0 = vadd.f32 %v18461_v54, %v23963_v41  ;;  %v18364_v15 = vpop.f32.mrb[44].mxu1 }
 0x929   : > { %v15045_v43 = vmax.f32 %v15013_v45, 0.0  ;;  %v18462_v40 = vadd.f32 %v18364_v15, %v23437_v24  ;;  %v14362_v6 = vpop.f32.mrb[45].mxu1  ;;  %v15076_v35 = vadd.f32 %v15044_v16, %v24593_v23  ;;  %v24600_v16 = vld [vmem:[#allocation14_spill] sm:$0xff]  ;;  %v24601_v15 = vld [vmem:[#allocation15_spill] sm:$0xff] }
 0x92a   : > { %v15043_v49 = vmax.f32 %v15011_v0, 0.0  ;;  %v18464_v31 = vadd.f32 %v14362_v6, %v23443_v17  ;;  %v18365_v34 = vpop.f32.mrb[46].mxu1  ;;  %v15074_v39 = vadd.f32 %v15042_v11, %v24594_v48 }
 0x92b   : > { %v18463_v37 = vadd.f32 %v18462_v40, %v23652_v33  ;;  %v18466_v1 = vadd.f32 %v18365_v34, %v23448_v46  ;;  %v14365_v32 = vpop.f32.mrb[47].mxu1  ;;  %v15115_v12 = vmul.f32 %v23979_v50, %v15076_v35  ;;  %v15077_v42 = vadd.f32 %v15045_v43, %v24595_v51  ;;  %v24602_v35 = vld [vmem:[#allocation52_spill] sm:$0xff] }
 0x92c   : > { %v18465_v24 = vadd.f32 %v18464_v31, %v23654_v28  ;;  %v18468_v21 = vadd.f32 %v14365_v32, %v24596_v57  ;;  %v15113_v14 = vmul.f32 %v23979_v50, %v15074_v39  ;;  %v15075_v17 = vadd.f32 %v15043_v49, %v24597_v53 }
 0x92d   : > { %v15016_v47 = vadd.f32 %v18463_v37, %v23963_v41  ;;  %v18467_v25 = vadd.f32 %v18466_v1, %v23656_v5  ;;  %v15151_v33 = vsel %vm7756_vm6, %v15115_v12, 0.0  ;;  %v15116_v46 = vmul.f32 %v23979_v50, %v15077_v42  ;;  %v24603_v1 = vld [vmem:[#allocation61_spill] sm:$0xff]  ;;  %v24604_v42 = vld [vmem:[#allocation16_spill] sm:$0xff] }
 0x92e   : > { %v15014_v56 = vadd.f32 %v18465_v24, %v23963_v41  ;;  %v18469_v9 = vadd.f32 %v18468_v21, %v23658_v36  ;;  %15152 = vadd.xlane.f32.xlu1 %v15151_v33  ;;  %v15145_v28 = vsel %vm7756_vm6, %v15113_v14, 0.0  ;;  %v15114_v3 = vmul.f32 %v23979_v50, %v15075_v17  ;;  %v24598_v36 = vld [vmem:[#allocation12_spill] sm:$0xff]  ;;  %v24605_v21 = vld [vmem:[#allocation62_spill] sm:$0xff]  ;;  %v24607_v33 = vld [vmem:[#allocation53_spill] sm:$0xff] }
 0x92f   : > { %v15048_v19 = vmax.f32 %v15016_v47, 0.0  ;;  %v15017_v22 = vadd.f32 %v18467_v25, %v23963_v41  ;;  %15146 = vadd.xlane.f32.xlu0 %v15145_v28  ;;  %v15154_v55 = vsel %vm7756_vm6, %v15116_v46, 0.0  ;;  %v24606_v47 = vld [vmem:[#allocation17_spill] sm:$0xff] }
 0x930   : > { %v15046_v52 = vmax.f32 %v15014_v56, 0.0  ;;  %v15015_v5 = vadd.f32 %v18469_v9, %v23963_v41  ;;  %v18368_v10 = vpop.f32.mrb[48].mxu1  ;;  %v15148_v63 = vsel %vm7756_vm6, %v15114_v3, 0.0  ;;  %v24608_v56 = vld [vmem:[#allocation63_spill] sm:$0xff] }
 0x931   : > { %v15049_v44 = vmax.f32 %v15017_v22, 0.0  ;;  %v18470_v27 = vadd.f32 %v18368_v10, %v23499_v2  ;;  %v14378_v58 = vpop.f32.mrb[49].mxu1  ;;  %v15080_v29 = vadd.f32 %v15048_v19, %v24598_v36  ;;  %v24609_v19 = vld [vmem:[#allocation18_spill] sm:$0xff]  ;;  %v24611_v10 = vld [vmem:[#allocation64_spill] sm:$0xff] }
 0x932   : > { %v15047_v38 = vmax.f32 %v15015_v5, 0.0  ;;  %v18472_v20 = vadd.f32 %v14378_v58, %v23501_v61  ;;  %v18369_v18 = vpop.f32.mrb[50].mxu1  ;;  %15155 = vadd.xlane.f32.xlu1 %v15154_v55  ;;  %v15078_v59 = vadd.f32 %v15046_v52, %v24599_v30  ;;  %v24610_v52 = vld [vmem:[#allocation54_spill] sm:$0xff]  ;;  %v24612_v58 = vld [vmem:[#allocation19_spill] sm:$0xff]  ;;  %v24614_v30 = vld [vmem:[#allocation57_spill] sm:$0xff] }
 0x933   : > { %v18471_v13 = vadd.f32 %v18470_v27, %v23666_v60  ;;  %v18474_v26 = vadd.f32 %v18369_v18, %v23503_v62  ;;  %v14381_v54 = vpop.f32.mrb[51].mxu1  ;;  %15149 = vadd.xlane.f32.xlu0 %v15148_v63  ;;  %v15119_v2 = vmul.f32 %v23979_v50, %v15080_v29  ;;  %v15081_v45 = vadd.f32 %v15049_v44, %v24600_v16  ;;  %v24613_v29 = vld [vmem:[#allocation56_spill] sm:$0xff] }
 0x934   : > { %v18473_v11 = vadd.f32 %v18472_v20, %v23670_v8  ;;  %v18476_v61 = vadd.f32 %v14381_v54, %v23507_v7  ;;  %v15117_v0 = vmul.f32 %v23979_v50, %v15078_v59  ;;  %v15079_v43 = vadd.f32 %v15047_v38, %v24601_v15 }
 0x935   : > { %v15020_v40 = vadd.f32 %v18471_v13, %v23963_v41  ;;  %v18475_v60 = vadd.f32 %v18474_v26, %v23672_v4  ;;  %v15163_v62 = vsel %vm7756_vm6, %v15119_v2, 0.0  ;;  %v15120_v6 = vmul.f32 %v23979_v50, %v15081_v45 }
 0x936   : > { %v15018_v23 = vadd.f32 %v18473_v11, %v23963_v41  ;;  %v18477_v49 = vadd.f32 %v18476_v61, %v24602_v35  ;;  %v15118_v8 = vmul.f32 %v23979_v50, %v15079_v43  ;;  %v15157_v51 = vsel %vm7756_vm6, %v15117_v0, 0.0  ;;  %v24615_v0 = vld [vmem:[#allocation65_spill] sm:$0xff] }
 0x937   : > { %v15052_v31 = vmax.f32 %v15020_v40, 0.0  ;;  %v15021_v7 = vadd.f32 %v18475_v60, %v23963_v41  ;;  %15164 = vadd.xlane.f32.xlu0 %v15163_v62  ;;  %v15166_v34 = vsel %vm7756_vm6, %v15120_v6, 0.0  ;;  %v24616_v60 = vld [vmem:[#allocation22_spill] sm:$0xff] }
 0x938   : > { %v15050_v48 = vmax.f32 %v15018_v23, 0.0  ;;  %v15019_v39 = vadd.f32 %v18477_v49, %v23963_v41  ;;  %v18372_v4 = vpop.f32.mrb[52].mxu1  ;;  %15167 = vadd.xlane.f32.xlu1 %v15166_v34  ;;  %v15160_v17 = vsel %vm7756_vm6, %v15118_v8, 0.0  ;;  %v24617_v23 = vld [vmem:[#allocation66_spill] sm:$0xff] }
 0x939   : > { %v15053_v37 = vmax.f32 %v15021_v7, 0.0  ;;  %v18478_v32 = vadd.f32 %v18372_v4, %v24603_v1  ;;  %v14394_v12 = vpop.f32.mrb[53].mxu1  ;;  %v15084_v24 = vadd.f32 %v15052_v31, %v24604_v42  ;;  %v24618_v31 = vld [vmem:[#allocation23_spill] sm:$0xff]  ;;  %v24619_v34 = vld [vmem:[#allocation58_spill] sm:$0xff] }
 0x93a   : > { %v15051_v57 = vmax.f32 %v15019_v39, 0.0  ;;  %v18480_v14 = vadd.f32 %v14394_v12, %v24605_v21  ;;  %v18373_v53 = vpop.f32.mrb[54].mxu1  ;;  %v15082_v25 = vadd.f32 %v15050_v48, %v24606_v47  ;;  %v24620_v39 = vld [vmem:[#allocation67_spill] sm:$0xff]  ;;  %v24624_v21 = vld [vmem:[#allocation25_spill] sm:$0xff] }
 0x93b   : > { %v18479_v46 = vadd.f32 %v18478_v32, %v24607_v33  ;;  %v18482_v9 = vadd.f32 %v18373_v53, %v24608_v56  ;;  %v14397_v28 = vpop.f32.mrb[55].mxu1  ;;  %15158 = vadd.xlane.f32.xlu0 %v15157_v51  ;;  %v15123_v3 = vmul.f32 %v23979_v50, %v15084_v24  ;;  %v15085_v22 = vadd.f32 %v15053_v37, %v24609_v19  ;;  %v24621_v32 = vld [vmem:[#allocation24_spill] sm:$0xff]  ;;  %v24622_v51 = vld [vmem:[#allocation42_spill] sm:$0xff] }
 0x93c   : > { %v18481_v5 = vadd.f32 %v18480_v14, %v24610_v52  ;;  %v18484_v44 = vadd.f32 %v14397_v28, %v24611_v10  ;;  %15161 = vadd.xlane.f32.xlu1 %v15160_v17  ;;  %v15121_v27 = vmul.f32 %v23979_v50, %v15082_v25  ;;  %v15083_v55 = vadd.f32 %v15051_v57, %v24612_v58  ;;  %v24623_v24 = vld [vmem:[#allocation68_spill] sm:$0xff]  ;;  %v24625_v17 = vld [vmem:[#allocation59_spill] sm:$0xff]  ;;  %v24626_v56 = vld [vmem:[#allocation74_spill] sm:$0xff] }
 0x93d   : > { %v15024_v36 = vadd.f32 %v18479_v46, %v23963_v41  ;;  %v18483_v38 = vadd.f32 %v18482_v9, %v24613_v29  ;;  %v15175_v20 = vsel %vm7756_vm6, %v15123_v3, 0.0  ;;  %v15124_v18 = vmul.f32 %v23979_v50, %v15085_v22  ;;  %v24628_v29 = vld [vmem:[#allocation27_spill] sm:$0xff] }
 0x93e   : > { %v15022_v63 = vadd.f32 %v18481_v5, %v23963_v41  ;;  %v18485_v59 = vadd.f32 %v18484_v44, %v24614_v30  ;;  %v15122_v13 = vmul.f32 %v23979_v50, %v15083_v55  ;;  %v15169_v40 = vsel %vm7756_vm6, %v15121_v27, 0.0  ;;  %v24627_v27 = vld [vmem:[#allocation26_spill] sm:$0xff] }
 0x93f   : > { %v15056_v26 = vmax.f32 %v15024_v36, 0.0  ;;  %v15025_v54 = vadd.f32 %v18483_v38, %v23963_v41  ;;  %15176 = vadd.xlane.f32.xlu0 %v15175_v20  ;;  %v15178_v2 = vsel %vm7756_vm6, %v15124_v18, 0.0 }
 0x940   : > { %v15054_v16 = vmax.f32 %v15022_v63, 0.0  ;;  %v15023_v45 = vadd.f32 %v18485_v59, %v23963_v41  ;;  %v18376_v11 = vpop.f32.mrb[56].mxu1  ;;  %15179 = vadd.xlane.f32.xlu1 %v15178_v2  ;;  %v15172_v8 = vsel %vm7756_vm6, %v15122_v13, 0.0  ;;  %v24629_v63 = vld [vmem:[#allocation28_spill] sm:$0xff]  ;;  %v24630_v59 = vld [vmem:[#allocation29_spill] sm:$0xff] }
 0x941   : > { %v15057_v61 = vmax.f32 %v15025_v54, 0.0  ;;  %v18486_v15 = vadd.f32 %v18376_v11, %v24615_v0  ;;  %v14410_v43 = vpop.f32.mrb[57].mxu1  ;;  %v15088_v62 = vadd.f32 %v15056_v26, %v24616_v60  ;;  %v24632_v60 = vld [vmem:[#allocation70_spill] sm:$0xff] }
 0x942   : > { %v15055_v6 = vmax.f32 %v15023_v45, 0.0  ;;  %v18488_v35 = vadd.f32 %v14410_v43, %v24617_v23  ;;  %v18377_v49 = vpop.f32.mrb[58].mxu1  ;;  %v15086_v7 = vadd.f32 %v15054_v16, %v24618_v31 }
 0x943   : > { %v18487_v48 = vadd.f32 %v18486_v15, %v24619_v34  ;;  %v18490_v4 = vadd.f32 %v18377_v49, %v24620_v39  ;;  %v14413_v37 = vpop.f32.mrb[59].mxu1  ;;  %15170 = vadd.xlane.f32.xlu0 %v15169_v40  ;;  %v15127_v1 = vmul.f32 %v23979_v50, %v15088_v62  ;;  %v15089_v12 = vadd.f32 %v15057_v61, %v24621_v32  ;;  %v24631_v15 = vld [vmem:[#allocation69_spill] sm:$0xff]  ;;  %v24635_v32 = vld [vmem:[#allocation30_spill] sm:$0xff] }
 0x944   : > { %v18489_v42 = vadd.f32 %v18488_v35, %v24622_v51  ;;  %v18492_v57 = vadd.f32 %v14413_v37, %v24623_v24  ;;  %15173 = vadd.xlane.f32.xlu1 %v15172_v8  ;;  %v15087_v14 = vadd.f32 %v15055_v6, %v24624_v21  ;;  %v15125_v28 = vmul.f32 %v23979_v50, %v15086_v7  ;;  %v24633_v35 = vld [vmem:[#allocation71_spill] sm:$0xff]  ;;  %v24634_v7 = vld [vmem:[#allocation72_spill] sm:$0xff]  ;;  %v24637_v21 = vld [vmem:[#allocation9_spill] sm:$0xff] }
 0x945   : > { %v15028_v53 = vadd.f32 %v18487_v48, %v23963_v41  ;;  %v18491_v47 = vadd.f32 %v18490_v4, %v24625_v17  ;;  %v15187_v25 = vsel %vm7756_vm6, %v15127_v1, 0.0  ;;  %v15128_v33 = vmul.f32 %v23979_v50, %v15089_v12  ;;  %v24636_v24 = vld [vmem:[#allocation31_spill] sm:$0xff] }
 0x946   : > { %v15026_v46 = vadd.f32 %v18489_v42, %v23963_v41  ;;  %v18493_v9 = vadd.f32 %v18492_v57, %v24626_v56  ;;  %v15126_v52 = vmul.f32 %v23979_v50, %v15087_v14  ;;  %v15181_v36 = vsel %vm7756_vm6, %v15125_v28, 0.0  ;;  %v24640_v28 = vld [vmem:[#allocation33_spill] sm:$0xff] }
 0x947   : > { %v15060_v3 = vmax.f32 %v15028_v53, 0.0  ;;  %v15029_v19 = vadd.f32 %v18491_v47, %v23963_v41  ;;  %15188 = vadd.xlane.f32.xlu0 %v15187_v25  ;;  %v15190_v22 = vsel %vm7756_vm6, %v15128_v33, 0.0  ;;  %v24638_v47 = vld [vmem:[#allocation32_spill] sm:$0xff]  ;;  %v24639_v33 = vld [vmem:[#allocation43_spill] sm:$0xff] }
 0x948   : > { %v15058_v5 = vmax.f32 %v15026_v46, 0.0  ;;  %v15027_v10 = vadd.f32 %v18493_v9, %v23963_v41  ;;  %15191 = vadd.xlane.f32.xlu1 %v15190_v22  ;;  %v15184_v20 = vsel %vm7756_vm6, %v15126_v52, 0.0  ;;  %v24641_v22 = vld [vmem:[#allocation44_spill] sm:$0xff] }
 0x949   : > { %v15061_v44 = vmax.f32 %v15029_v19, 0.0  ;;  %v15092_v58 = vadd.f32 %v15060_v3, %v24627_v27 }
 0x94a   : > { %v15059_v55 = vmax.f32 %v15027_v10, 0.0  ;;  %v15090_v38 = vadd.f32 %v15058_v5, %v24628_v29 }
 0x94b   : > { %15182 = vadd.xlane.f32.xlu0 %v15181_v36  ;;  %v15131_v18 = vmul.f32 %v23979_v50, %v15092_v58  ;;  %v15093_v30 = vadd.f32 %v15061_v44, %v24629_v63  ;;  %v24642_v58 = vld [vmem:[#allocation73_spill] sm:$0xff] }
 0x94c   : > { %15185 = vadd.xlane.f32.xlu1 %v15184_v20  ;;  %v15091_v13 = vadd.f32 %v15059_v55, %v24630_v59  ;;  %v15129_v2 = vmul.f32 %v23979_v50, %v15090_v38 }
 0x94d   : > { %v15199_v26 = vsel %vm7756_vm6, %v15131_v18, 0.0  ;;  %v15132_v54 = vmul.f32 %v23979_v50, %v15093_v30 }
 0x94e   : > { %v15130_v45 = vmul.f32 %v23979_v50, %v15091_v13  ;;  %v15193_v11 = vsel %vm7756_vm6, %v15129_v2, 0.0  ;;  %v24643_v13 = vld [vmem:[#allocation34_spill] sm:$0xff] }
 0x94f   : > { %15200 = vadd.xlane.f32.xlu0 %v15199_v26  ;;  %v15202_v16 = vsel %vm7756_vm6, %v15132_v54, 0.0 }
 0x950   : > { %15203 = vadd.xlane.f32.xlu1 %v15202_v16  ;;  %v15196_v61 = vsel %vm7756_vm6, %v15130_v45, 0.0  ;;  %v24644_v16 = vld [vmem:[#allocation35_spill] sm:$0xff] }
 0x953   : > { %15194 = vadd.xlane.f32.xlu0 %v15193_v11  ;;  %v24645_v11 = vld [vmem:[#allocation45_spill] sm:$0xff] }
 0x954   : > { %15197 = vadd.xlane.f32.xlu1 %v15196_v61 }
 0x960   : > { %v18428_v0 = vpop.f32.mrb[60].mxu1 }
 0x961   : > { %v18494_v43 = vadd.f32 %v18428_v0, %v24631_v15  ;;  %v14924_v40 = vpop.f32.mrb[61].mxu1 }
 0x962   : > { %v18495_v62 = vadd.f32 %v14924_v40, %v24632_v60  ;;  %v18429_v6 = vpop.f32.mrb[62].mxu1  ;;  %v24646_v40 = vld [vmem:[#allocation36_spill] sm:$0xff] }
 0x963   : > { %v15032_v23 = vadd.f32 %v18494_v43, %v23963_v41  ;;  %v18496_v49 = vadd.f32 %v18429_v6, %v24633_v35  ;;  %v14927_v8 = vpop.f32.mrb[63].mxu1 }
 0x964   : > { %v15030_v31 = vadd.f32 %v18495_v62, %v23963_v41  ;;  %v18497_v34 = vadd.f32 %v14927_v8, %v24634_v7  ;;  %v24647_v62 = vld [vmem:[#allocation47_spill] sm:$0xff]  ;;  %v24649_v7 = vld [vmem:[#allocation46_spill] sm:$0xff] }
 0x965   : > { %v15064_v48 = vmax.f32 %v15032_v23, 0.0  ;;  %v15033_v39 = vadd.f32 %v18496_v49, %v23963_v41  ;;  %v24648_v49 = vld [vmem:[#allocation37_spill] sm:$0xff] }
 0x966   : > { %v15062_v4 = vmax.f32 %v15030_v31, 0.0  ;;  %v15031_v37 = vadd.f32 %v18497_v34, %v23963_v41 }
 0x967   : > { %v15065_v1 = vmax.f32 %v15033_v39, 0.0  ;;  %v15096_v12 = vadd.f32 %v15064_v48, %v24635_v32 }
 0x968   : > { %v15063_v51 = vmax.f32 %v15031_v37, 0.0  ;;  %v18432_v42 = vpop.f32.mrb[64].mxu1  ;;  %v15094_v57 = vadd.f32 %v15062_v4, %v24636_v24 }
 0x969   : > { %v18498_v14 = vadd.f32 %v18432_v42, %v24637_v21  ;;  %v14940_v53 = vpop.f32.mrb[65].mxu1  ;;  %v15135_v17 = vmul.f32 %v23979_v50, %v15096_v12  ;;  %v15097_v25 = vadd.f32 %v15065_v1, %v24638_v47  ;;  %v24650_v1 = vld [vmem:[#allocation49_spill] sm:$0xff] }
 0x96a   : > { %v18499_v46 = vadd.f32 %v14940_v53, %v24639_v33  ;;  %v18433_v56 = vpop.f32.mrb[66].mxu1  ;;  %v15133_v9 = vmul.f32 %v23979_v50, %v15094_v57  ;;  %v15095_v3 = vadd.f32 %v15063_v51, %v24640_v28  ;;  %v24652_v33 = vld [vmem:[#allocation39_spill] sm:$0xff]  ;;  %v24653_v28 = vld [vmem:[#allocation40_spill] sm:$0xff] }
 0x96b   : > { %v15036_v19 = vadd.f32 %v18498_v14, %v23963_v41  ;;  %v18500_v52 = vadd.f32 %v18433_v56, %v24641_v22  ;;  %v14943_v5 = vpop.f32.mrb[67].mxu1  ;;  %v15211_v10 = vsel %vm7756_vm6, %v15135_v17, 0.0  ;;  %v15136_v44 = vmul.f32 %v23979_v50, %v15097_v25  ;;  %v24651_v17 = vld [vmem:[#allocation38_spill] sm:$0xff] }
 0x96c   : > { %v15034_v27 = vadd.f32 %v18499_v46, %v23963_v41  ;;  %v18501_v55 = vadd.f32 %v14943_v5, %v24642_v58  ;;  %15212 = vadd.xlane.f32.xlu0 %v15211_v10  ;;  %v15134_v20 = vmul.f32 %v23979_v50, %v15095_v3  ;;  %v15205_v59 = vsel %vm7756_vm6, %v15133_v9, 0.0 }
 0x96d   : > { %v15068_v36 = vmax.f32 %v15036_v19, 0.0  ;;  %v15037_v29 = vadd.f32 %v18500_v52, %v23963_v41  ;;  %v15214_v38 = vsel %vm7756_vm6, %v15136_v44, 0.0  ;;  %v24654_v19 = vld [vmem:[#allocation41_spill] sm:$0xff] }
 0x96e   : > { %v15066_v18 = vmax.f32 %v15034_v27, 0.0  ;;  %v15035_v63 = vadd.f32 %v18501_v55, %v23963_v41  ;;  %15215 = vadd.xlane.f32.xlu1 %v15214_v38  ;;  %v15208_v15 = vsel %vm7756_vm6, %v15134_v20, 0.0  ;;  %v24149_v55 = vpop.permute.xlu1 %15252  ;;  %v24153_v38 = vpop.permute.xlu0 %15248 }
 0x96f   : > { %v15069_v30 = vmax.f32 %v15037_v29, 0.0  ;;  %v15100_v26 = vadd.f32 %v15068_v36, %v24643_v13 }
 0x970   : > { %v15067_v54 = vmax.f32 %v15035_v63, 0.0  ;;  %v18436_v2 = vpop.f32.mrb[68].mxu1  ;;  %15206 = vadd.xlane.f32.xlu0 %v15205_v59  ;;  %v15098_v45 = vadd.f32 %v15066_v18, %v24644_v16 }
 0x971   : > { %v18502_v61 = vadd.f32 %v18436_v2, %v24645_v11  ;;  %v14956_v0 = vpop.f32.mrb[69].mxu1  ;;  %v15139_v43 = vmul.f32 %v23979_v50, %v15100_v26  ;;  %v15101_v60 = vadd.f32 %v15069_v30, %v24646_v40 }
 0x972   : > { %v18503_v6 = vadd.f32 %v14956_v0, %v24647_v62  ;;  %v18437_v23 = vpop.f32.mrb[70].mxu1  ;;  %15209 = vadd.xlane.f32.xlu1 %v15208_v15  ;;  %v15137_v35 = vmul.f32 %v23979_v50, %v15098_v45  ;;  %v15099_v8 = vadd.f32 %v15067_v54, %v24648_v49  ;;  %v24151_v36 = vpop.permute.xlu1 %15256 }
 0x973   : > { %v15040_v31 = vadd.f32 %v18502_v61, %v23963_v41  ;;  %v18504_v34 = vadd.f32 %v18437_v23, %v24649_v7  ;;  %v14959_v48 = vpop.f32.mrb[71].mxu1  ;;  %v15223_v39 = vsel %vm7756_vm6, %v15139_v43, 0.0  ;;  %v15140_v4 = vmul.f32 %v23979_v50, %v15101_v60  ;;  %v24157_v18 = vpop.permute.xlu0 %15264 }
 0x974   : > { %v15038_v37 = vadd.f32 %v18503_v6, %v23963_v41  ;;  %v18505_v32 = vadd.f32 %v14959_v48, %v24650_v1  ;;  %15224 = vadd.xlane.f32.xlu0 %v15223_v39  ;;  %v15138_v24 = vmul.f32 %v23979_v50, %v15099_v8  ;;  %v15217_v53 = vsel %vm7756_vm6, %v15137_v35, 0.0 }
 0x975   : > { %v15072_v12 = vmax.f32 %v15040_v31, 0.0  ;;  %v15041_v51 = vadd.f32 %v18504_v34, %v23963_v41  ;;  %v15226_v42 = vsel %vm7756_vm6, %v15140_v4, 0.0 }
 0x976   : > { %v15070_v57 = vmax.f32 %v15038_v37, 0.0  ;;  %v15039_v21 = vadd.f32 %v18505_v32, %v23963_v41  ;;  %15227 = vadd.xlane.f32.xlu1 %v15226_v42  ;;  %v15220_v56 = vsel %vm7756_vm6, %v15138_v24, 0.0  ;;  %v15261_v29 = vpop.permute.xlu1 %15260 }
 0x977   : > { %v15073_v14 = vmax.f32 %v15041_v51, 0.0  ;;  %v15104_v47 = vadd.f32 %v15072_v12, %v24651_v17 }
 0x978   : > { %v15071_v25 = vmax.f32 %v15039_v21, 0.0  ;;  %15218 = vadd.xlane.f32.xlu0 %v15217_v53  ;;  %v15102_v46 = vadd.f32 %v15070_v57, %v24652_v33 }
 0x979   : > { %v15143_v9 = vmul.f32 %v23979_v50, %v15104_v47  ;;  %v15105_v3 = vadd.f32 %v15073_v14, %v24653_v28 }
 0x97a   : > { %15221 = vadd.xlane.f32.xlu1 %v15220_v56  ;;  %v15103_v22 = vadd.f32 %v15071_v25, %v24654_v19  ;;  %v15141_v5 = vmul.f32 %v23979_v50, %v15102_v46  ;;  %v24155_v20 = vpop.permute.xlu1 %15268 }
 0x97b   : > { %v15235_v41 = vsel %vm7756_vm6, %v15143_v9, 0.0  ;;  %v15144_v52 = vmul.f32 %v23979_v50, %v15105_v3 }
 0x97c   : > { %15236 = vadd.xlane.f32.xlu0 %v15235_v41  ;;  %v15142_v44 = vmul.f32 %v23979_v50, %v15103_v22  ;;  %v15229_v27 = vsel %vm7756_vm6, %v15141_v5, 0.0  ;;  %v24161_v50 = vpop.permute.xlu0 %15272 }
 0x97d   : > { %v15238_v10 = vsel %vm7756_vm6, %v15144_v52, 0.0 }
 0x97e   : > { %15239 = vadd.xlane.f32.xlu1 %v15238_v10  ;;  %v15232_v58 = vsel %vm7756_vm6, %v15142_v44, 0.0  ;;  %v24159_v63 = vpop.permute.xlu1 %15276  ;;  %vm15574_vm6 = vcmask 851712  }
 0x980   : > { %15230 = vadd.xlane.f32.xlu0 %v15229_v27  ;;  %v24165_v59 = vpop.permute.xlu0 %15280 }
 0x982   : > { %15233 = vadd.xlane.f32.xlu1 %v15232_v58  ;;  %v24163_v30 = vpop.permute.xlu1 %15284 }
 0x984   : > { %v24169_v26 = vpop.permute.xlu0 %15288 }
 0x986   : > { %v24167_v13 = vpop.permute.xlu1 %15292 }
 0x988   : > { %v24173_v2 = vpop.permute.xlu0 %15296 }
 0x98a   : > { %v24171_v54 = vpop.permute.xlu1 %15300 }
 0x98c   : > { %v24177_v45 = vpop.permute.xlu0 %15304 }
 0x98e   : > { %v24175_v16 = vpop.permute.xlu1 %15308 }
 0x9bb   : > { %v15153_v11 = vpop.xlane.xlu1 %15152 }
 0x9bc   : > { %v15328_v61 = vadd.f32 %v24151_v36, %v15153_v11  ;;  %v15147_v0 = vpop.xlane.xlu0 %15146 }
 0x9bd   : > { %v15326_v15 = vadd.f32 %v24153_v38, %v15147_v0 }
 0x9be   : > { %15397 = vperm.xlu1 %19062, %v15328_v61  }
 0x9bf   : > { %v15156_v43 = vpop.xlane.xlu1 %15155  ;;  %15391 = vperm.xlu0 %19063, %v15326_v15  }
 0x9c0   : > { %v15329_v40 = vadd.f32 %v15261_v29, %v15156_v43  ;;  %v15150_v60 = vpop.xlane.xlu0 %15149 }
 0x9c1   : > { %v15327_v62 = vadd.f32 %v24149_v55, %v15150_v60 }
 0x9c3   : > { %15400 = vperm.xlu0 %19063, %v15329_v40   ;;  %15394 = vperm.xlu1 %19062, %v15327_v62  }
 0x9c4   : > { %v15165_v6 = vpop.xlane.xlu0 %15164 }
 0x9c5   : > { %v15332_v23 = vadd.f32 %v24161_v50, %v15165_v6  ;;  %v15168_v35 = vpop.xlane.xlu1 %15167 }
 0x9c6   : > { %v15333_v49 = vadd.f32 %v24159_v63, %v15168_v35 }
 0x9c7   : > { %15409 = vperm.xlu1 %19062, %v15332_v23  }
 0x9c8   : > { %v15159_v8 = vpop.xlane.xlu0 %15158  ;;  %15412 = vperm.xlu0 %19063, %v15333_v49  }
 0x9c9   : > { %v15330_v31 = vadd.f32 %v24157_v18, %v15159_v8  ;;  %v15162_v7 = vpop.xlane.xlu1 %15161 }
 0x9ca   : > { %v15331_v34 = vadd.f32 %v24155_v20, %v15162_v7 }
 0x9cb   : > { %15403 = vperm.xlu1 %19062, %v15330_v31  }
 0x9cc   : > { %v15177_v48 = vpop.xlane.xlu0 %15176  ;;  %15406 = vperm.xlu0 %19063, %v15331_v34   ;;  %v24655_v34 = vlaneseq }
 0x9cd   : > { %v15336_v39 = vadd.f32 %v24169_v26, %v15177_v48  ;;  %v15180_v4 = vpop.xlane.xlu1 %15179 }
 0x9ce   : > { %v15337_v37 = vadd.f32 %v24167_v13, %v15180_v4  ;;  %v24228_v48 = vand.u32 127, %v24655_v34 }
 0x9cf   : > { %15421 = vperm.xlu1 %19062, %v15336_v39  }
 0x9d0   : > { %v15171_v1 = vpop.xlane.xlu0 %15170  ;;  %15424 = vperm.xlu0 %19063, %v15337_v37   ;;  %v15492_v4 = vadd.s32 4294967288, %v24228_v48 }
 0x9d1   : > { %v15334_v32 = vadd.f32 %v24165_v59, %v15171_v1  ;;  %v15174_v12 = vpop.xlane.xlu1 %15173  ;;  %v24656_v1 = vld [vmem:[#allocation8_spill] sm:$0xff] }
 0x9d2   : > { %v15335_v51 = vadd.f32 %v24163_v30, %v15174_v12  ;;  %v15495_v12 = vsub.s32 %v15492_v4, %v24656_v1 }
 0x9d3   : > { %15415 = vperm.xlu1 %19062, %v15334_v32   ;;  %v15490_v32 = vsub.s32 %v24228_v48, %v24656_v1 }
 0x9d4   : > { %v15189_v42 = vpop.xlane.xlu0 %15188  ;;  %15418 = vperm.xlu0 %19063, %v15335_v51   ;;  %v15499_v51 = vadd.s32 4294967280, %v24228_v48 }
 0x9d5   : > { %v15192_v24 = vpop.xlane.xlu1 %15191 }
 0x9d8   : > { %v15183_v57 = vpop.xlane.xlu0 %15182 }
 0x9d9   : > { %v15338_v21 = vadd.f32 %v24173_v2, %v15183_v57  ;;  %v15186_v14 = vpop.xlane.xlu1 %15185  ;;  %v15513_v57 = vadd.s32 4294967264, %v24228_v48 }
 0x9da   : > { %v15339_v17 = vadd.f32 %v24171_v54, %v15186_v14 }
 0x9db   : > { %15427 = vperm.xlu1 %19062, %v15338_v21   ;;  %v15506_v21 = vadd.s32 4294967272, %v24228_v48 }
 0x9dc   : > { %v15201_v53 = vpop.xlane.xlu0 %15200 }
 0x9dd   : > { %v15204_v47 = vpop.xlane.xlu1 %15203  ;;  %v15344_v33 = vadd.f32 %v24151_v36, %v15201_v53 }
 0x9de   : > { %v15345_v25 = vadd.f32 %v15261_v29, %v15204_v47 }
 0x9df   : > { %15430 = vperm.xlu1 %19062, %v15339_v17   ;;  %v15502_v17 = vsub.s32 %v15499_v51, %v24656_v1 }
 0x9e0   : > { %15448 = vperm.xlu0 %19063, %v15345_v25   ;;  %v15195_v56 = vpop.xlane.xlu0 %15194 }
 0x9e1   : > { %v15198_v46 = vpop.xlane.xlu1 %15197  ;;  %v15342_v28 = vadd.f32 %v24153_v38, %v15195_v56  ;;  %v15516_v56 = vsub.s32 %v15513_v57, %v24656_v1 }
 0x9e2   : > { %v15343_v9 = vadd.f32 %v24149_v55, %v15198_v46 }
 0x9e3   : > { %15445 = vperm.xlu1 %19062, %v15344_v33   ;;  %v15520_v33 = vadd.s32 4294967256, %v24228_v48 }
 0x9e4   : > { %15442 = vperm.xlu0 %19063, %v15343_v9  }
 0x9e7   : > { %15439 = vperm.xlu1 %19062, %v15342_v28  }
 0x9f9   : > { %v15213_v3 = vpop.xlane.xlu0 %15212 }
 0x9fa   : > { %v15348_v19 = vadd.f32 %v24161_v50, %v15213_v3  ;;  %v15509_v3 = vsub.s32 %v15506_v21, %v24656_v1  ;;  %v15569_v21 = vadd.s32 4294967200, %v24228_v48 }
 0x9fb   : > { %v15216_v22 = vpop.xlane.xlu1 %15215 }
 0x9fc   : > { %v15349_v41 = vadd.f32 %v24159_v63, %v15216_v22  ;;  %15457 = vperm.xlu1 %19062, %v15348_v19  }
 0x9fd   : > { %v15207_v52 = vpop.xlane.xlu0 %15206 }
 0x9fe   : > { %v15346_v5 = vadd.f32 %v24157_v18, %v15207_v52  ;;  %15460 = vperm.xlu0 %19063, %v15349_v41  }
 0x9ff   : > { %v15210_v10 = vpop.xlane.xlu1 %15209 }
 0xa00   : > { %v15347_v44 = vadd.f32 %v24155_v20, %v15210_v10  ;;  %15451 = vperm.xlu1 %19062, %v15346_v5   ;;  %v15340_v20 = vadd.f32 %v24177_v45, %v15189_v42  ;;  %v15523_v5 = vsub.s32 %v15520_v33, %v24656_v1 }
 0xa01   : > { %v15225_v27 = vpop.xlane.xlu0 %15224 }
 0xa02   : > { %v15352_v58 = vadd.f32 %v24169_v26, %v15225_v27  ;;  %15454 = vperm.xlu0 %19063, %v15347_v44  }
 0xa03   : > { %v15228_v55 = vpop.xlane.xlu1 %15227 }
 0xa04   : > { %v15353_v36 = vadd.f32 %v24167_v13, %v15228_v55  ;;  %15469 = vperm.xlu1 %19062, %v15352_v58   ;;  %v15341_v13 = vadd.f32 %v24175_v16, %v15192_v24  ;;  %v15527_v58 = vadd.s32 4294967248, %v24228_v48 }
 0xa05   : > { %v15219_v29 = vpop.xlane.xlu0 %15218 }
 0xa06   : > { %v15350_v38 = vadd.f32 %v24165_v59, %v15219_v29  ;;  %15472 = vperm.xlu0 %19063, %v15353_v36  }
 0xa07   : > { %v15222_v63 = vpop.xlane.xlu1 %15221 }
 0xa08   : > { %v15351_v18 = vadd.f32 %v24163_v30, %v15222_v63  ;;  %15463 = vperm.xlu1 %19062, %v15350_v38  }
 0xa09   : > { %v15237_v50 = vpop.xlane.xlu0 %15236 }
 0xa0a   : > { %15466 = vperm.xlu0 %19063, %v15351_v18   ;;  %v15356_v26 = vadd.f32 %v24177_v45, %v15237_v50  ;;  %v15541_v18 = vadd.s32 4294967232, %v24228_v48 }
 0xa0b   : > { %v15240_v11 = vpop.xlane.xlu1 %15239 }
 0xa0c   : > { %15433 = vperm.xlu1 %19062, %v15340_v20   ;;  %v15357_v15 = vadd.f32 %v24175_v16, %v15240_v11  ;;  %v15534_v11 = vadd.s32 4294967240, %v24228_v48 }
 0xa0d   : > { %v15231_v61 = vpop.xlane.xlu0 %15230 }
 0xa0e   : > { %15481 = vperm.xlu0 %19063, %v15356_v26   ;;  %v15354_v0 = vadd.f32 %v24173_v2, %v15231_v61 }
 0xa0f   : > { %v15234_v59 = vpop.xlane.xlu1 %15233 }
 0xa10   : > { %15436 = vperm.xlu1 %19062, %v15341_v13   ;;  %v15355_v30 = vadd.f32 %v24171_v54, %v15234_v59  ;;  %v15530_v13 = vsub.s32 %v15527_v58, %v24656_v1 }
 0xa12   : > { %15475 = vperm.xlu0 %19063, %v15354_v0  }
 0xa16   : > { %15478 = vperm.xlu0 %19063, %v15355_v30   ;;  %v15548_v30 = vadd.s32 4294967224, %v24228_v48 }
 0xa18   : > { %v15551_v4 = vsub.s32 %v15548_v30, %v24656_v1 }
 0xa1a   : > { %15484 = vperm.xlu0 %19063, %v15357_v15  }
 0xa3d   : > { %v15398_v43 = vpop.permute.xlu1 %15397 }
 0xa3e   : > { %v15392_v45 = vpop.permute.xlu0 %15391  ;;  %v15503_v22 = vrot.slane %v15398_v43, %v15502_v17  ;;  %v15544_v43 = vsub.s32 %v15541_v18, %v24656_v1 }
 0xa3f   : > { %v15491_v25 = vrot.slane %v15392_v45, %v15490_v32 }
 0xa42   : > { %v15395_v40 = vpop.permute.xlu1 %15394  ;;  %v15401_v6 = vpop.permute.xlu0 %15400 }
 0xa43   : > { %v15496_v14 = vrot.slane %v15395_v40, %v15495_v12  ;;  %v15510_v29 = vrot.slane %v15401_v6, %v15509_v3 }
 0xa45   : > { %v15498_v19 = vsel %vm15497_vm3, %v15496_v14, %v15491_v25  ;;  %v15576_v25 = vadd.s32 4294967192, %v24228_v48 }
 0xa46   : > { %v24209_v60 = vpop.permute.xlu1 %15409  ;;  %v15505_v27 = vsel %vm15504_vm4, %v15503_v22, %v15498_v19 }
 0xa47   : > { %v24213_v35 = vpop.permute.xlu0 %15412  ;;  %v15512_v26 = vsel %vm15511_vm11, %v15510_v29, %v15505_v27 }
 0xa4a   : > { %v15404_v62 = vpop.permute.xlu1 %15403 }
 0xa4b   : > { %v24217_v49 = vpop.permute.xlu0 %15406  ;;  %v15517_v55 = vrot.slane %v15404_v62, %v15516_v56  ;;  %v15537_v62 = vsub.s32 %v15534_v11, %v24656_v1 }
 0xa4c   : > { %v15524_v61 = vrot.slane %v24217_v49, %v15523_v5 }
 0xa4d   : > { %v15519_v0 = vsel %vm15518_vm12, %v15517_v55, %v15512_v26 }
 0xa4e   : > { %v24211_v23 = vpop.permute.xlu1 %15421  ;;  %v15526_v6 = vsel %vm15525_vm1, %v15524_v61, %v15519_v0 }
 0xa4f   : > { %v24221_v8 = vpop.permute.xlu0 %15424 }
 0xa52   : > { %v24215_v2 = vpop.permute.xlu1 %15415 }
 0xa53   : > { %v24225_v31 = vpop.permute.xlu0 %15418  ;;  %v15545_v51 = vrot.slane %v24215_v2, %v15544_v43 }
 0xa5a   : > { %v24219_v54 = vpop.permute.xlu1 %15427 }
 0xa5e   : > { %v24223_v16 = vpop.permute.xlu1 %15430 }
 0xa5f   : > { %v15449_v39 = vpop.permute.xlu0 %15448 }
 0xa60   : > { %v15614_v10 = vrot.slane %v15449_v39, %v15509_v3 }
 0xa62   : > { %v15446_v7 = vpop.permute.xlu1 %15445 }
 0xa63   : > { %v15443_v42 = vpop.permute.xlu0 %15442  ;;  %v15609_v9 = vrot.slane %v15446_v7, %v15502_v17  ;;  %v15531_v7 = vrot.slane %v24209_v60, %v15530_v13 }
 0xa64   : > { %v15604_v53 = vrot.slane %v15443_v42, %v15495_v12  ;;  %v15555_v12 = vadd.s32 4294967216, %v24228_v48  ;;  %v15538_v42 = vrot.slane %v24213_v35, %v15537_v62  ;;  %v15583_v35 = vadd.s32 4294967184, %v24228_v48 }
 0xa66   : > { %v15440_v37 = vpop.permute.xlu1 %15439  ;;  %v15558_v33 = vsub.s32 %v15555_v12, %v24656_v1 }
 0xa67   : > { %v15600_v24 = vrot.slane %v15440_v37, %v15490_v32  ;;  %v15533_v32 = vsel %vm15532_vm9, %v15531_v7, %v15526_v6 }
 0xa68   : > { %v15540_v17 = vsel %vm15539_vm10, %v15538_v42, %v15533_v32 }
 0xa69   : > { %v15605_v46 = vsel %vm15497_vm3, %v15604_v53, %v15600_v24  ;;  %v15562_v53 = vadd.s32 4294967208, %v24228_v48 }
 0xa6a   : > { %v15610_v41 = vsel %vm15504_vm4, %v15609_v9, %v15605_v46  ;;  %v15547_v46 = vsel %vm15546_vm13, %v15545_v51, %v15540_v17  ;;  %v15590_v9 = vadd.s32 4294967176, %v24228_v48 }
 0xa6b   : > { %v15615_v38 = vsel %vm15511_vm11, %v15614_v10, %v15610_v41  ;;  %v15565_v22 = vsub.s32 %v15562_v53, %v24656_v1  ;;  %v15579_v41 = vsub.s32 %v15576_v25, %v24656_v1  ;;  %v15586_v10 = vsub.s32 %v15583_v35, %v24656_v1 }
 0xa6c   : > { %v15593_v58 = vsub.s32 %v15590_v9, %v24656_v1 }
 0xa7b   : > { %v15458_v47 = vpop.permute.xlu1 %15457 }
 0xa7c   : > { %v15629_v40 = vrot.slane %v15458_v47, %v15530_v13  ;;  %v15552_v47 = vrot.slane %v24225_v31, %v15551_v4 }
 0xa7d   : > { %v15461_v28 = vpop.permute.xlu0 %15460 }
 0xa7e   : > { %v15634_v37 = vrot.slane %v15461_v28, %v15537_v62  ;;  %v15572_v28 = vsub.s32 %v15569_v21, %v24656_v1  ;;  %v15554_v31 = vsel %vm15553_vm14, %v15552_v47, %v15547_v46 }
 0xa7f   : > { %v15452_v52 = vpop.permute.xlu1 %15451 }
 0xa80   : > { %v15619_v44 = vrot.slane %v15452_v52, %v15516_v56  ;;  %v15559_v52 = vrot.slane %v24211_v23, %v15558_v33  ;;  %v15573_v55 = vrot.slane %v24219_v54, %v15572_v28 }
 0xa81   : > { %v15455_v36 = vpop.permute.xlu0 %15454 }
 0xa82   : > { %v15624_v63 = vrot.slane %v15455_v36, %v15523_v5  ;;  %v15620_v50 = vsel %vm15518_vm12, %v15619_v44, %v15615_v38  ;;  %v15561_v48 = vsel %vm15560_vm15, %v15559_v52, %v15554_v31  ;;  %v15566_v38 = vrot.slane %v24221_v8, %v15565_v22 }
 0xa83   : > { %v15470_v20 = vpop.permute.xlu1 %15469 }
 0xa84   : > { %v15625_v15 = vsel %vm15525_vm1, %v15624_v63, %v15620_v50  ;;  %v15649_v3 = vrot.slane %v15470_v20, %v15558_v33  ;;  %v15580_v63 = vrot.slane %v24223_v16, %v15579_v41  ;;  %v15568_v11 = vsel %vm15567_vm0, %v15566_v38, %v15561_v48 }
 0xa85   : > { %v15473_v59 = vpop.permute.xlu0 %15472  ;;  %v15630_v34 = vsel %vm15532_vm9, %v15629_v40, %v15625_v15  ;;  %v15575_v61 = vsel %vm15574_vm6, %v15573_v55, %v15568_v11 }
 0xa86   : > { %v15635_v24 = vsel %vm15539_vm10, %v15634_v37, %v15630_v34  ;;  %v15654_v27 = vrot.slane %v15473_v59, %v15565_v22  ;;  %v15582_v0 = vsel %vm15581_vm5, %v15580_v63, %v15575_v61 }
 0xa87   : > { %v15464_v45 = vpop.permute.xlu1 %15463 }
 0xa88   : > { %v15639_v49 = vrot.slane %v15464_v45, %v15544_v43 }
 0xa89   : > { %v15467_v39 = vpop.permute.xlu0 %15466 }
 0xa8a   : > { %v15644_v57 = vrot.slane %v15467_v39, %v15551_v4  ;;  %v15640_v60 = vsel %vm15546_vm13, %v15639_v49, %v15635_v24 }
 0xa8b   : > { %v15434_v2 = vpop.permute.xlu1 %15433 }
 0xa8c   : > { %v15645_v56 = vsel %vm15553_vm14, %v15644_v57, %v15640_v60  ;;  %v15587_v50 = vrot.slane %v15434_v2, %v15586_v10 }
 0xa8d   : > { %v15482_v14 = vpop.permute.xlu0 %15481  ;;  %v15650_v5 = vsel %vm15560_vm15, %v15649_v3, %v15645_v56 }
 0xa8e   : > { %v15655_v23 = vsel %vm15567_vm0, %v15654_v27, %v15650_v5  ;;  %v15669_v54 = vrot.slane %v15482_v14, %v15586_v10  ;;  %v15589_v16 = vsel %vm15588_vm7, %v15587_v50, %v15582_v0 }
 0xa8f   : > { %v15437_v36 = vpop.permute.xlu1 %15436 }
 0xa90   : > { %v15594_v1 = vrot.slane %v15437_v36, %v15593_v58 }
 0xa91   : > { %v15476_v19 = vpop.permute.xlu0 %15475 }
 0xa92   : > { %v15659_v44 = vrot.slane %v15476_v19, %v15572_v28  ;;  %v15596_v30 = vsel %vm15595_vm2, %v15594_v1, %v15589_v16 }
 0xa94   : > { %v15660_v20 = vsel %vm15574_vm6, %v15659_v44, %v15655_v23 }
 0xa95   : > { %v15479_v29 = vpop.permute.xlu0 %15478 }
 0xa96   : > { %v15664_v18 = vrot.slane %v15479_v29, %v15579_v41 }
 0xa98   : > { %v15665_v26 = vsel %vm15581_vm5, %v15664_v18, %v15660_v20 }
 0xa99   : > { %v15485_v13 = vpop.permute.xlu0 %15484  ;;  %v15670_v59 = vsel %vm15588_vm7, %v15669_v54, %v15665_v26 }
 0xa9a   : > { %v15674_v8 = vrot.slane %v15485_v13, %v15593_v58 }
 0xa9c   : > { %v15675_v15 = vsel %vm15595_vm2, %v15674_v8, %v15670_v59 }
 0xa9d   : > { %v15677_v43 = vsel %vm15676_vm8, %v15675_v15, %v15596_v30 }
 0xa9e   : > { %15679 = vst [vmem:[%s372_s28] sm:$0x3] %v15677_v43 }
 0xa9f PF: > { %s21_s13 = sadd.s32 1, %s19391_s13  }
 0xaa0   : > { %p18_p3 = scmp.ge.s32.totalorder %s21_s13, 4  }
 0xaa2   :  { %20 = sbr.rel (!%p18_p3) target bundleno = 1 (0x1), region = 128 }
 0xaa9   :  { %15699 = vsyncpa [#allocation6], 1 }
 0xaaa   :  { %15701 = vsyncpa [#allocation6 + $0x1], 1 }

</bundles_post_ra>
